<compile_context>
chip_gen: v7x
topology: tpu7x:2x2x1
jax: 0.10.0
libtpu: 0.0.40
codegen_flags: <defaults>
</compile_context>

<pallas_src>
import functools

import jax
import jax.numpy as jnp
from jax.experimental import pallas as pl
from jax.experimental.pallas import tpu as pltpu


def _integer_power(x, n):
    """x**n for a small positive integer n using VPU multiplies only."""
    acc = None
    base = x
    while n > 0:
        if n & 1:
            acc = base if acc is None else acc * base
        n >>= 1
        if n:
            base = base * base
    return acc


def gem_linear_kernel(x_ref, seg_ref, w_ref, b_ref, out_ref, *, p, eps):
    """Fused GeM pooling + classifier for one batch tile.

    x_ref  : VMEM (bt, G, Cg*HW)   feature tile (free reshape of NCHW), bf16/f32
    seg_ref: VMEM (Cg*HW, Cg)      block-diagonal spatial-sum matrix (0/1)
    w_ref  : VMEM (G, Cg, Npad)    classifier weight, channel = g*Cg + cg, lane-padded classes
    b_ref  : VMEM (1, Npad)        classifier bias (lane-padded), f32
    out_ref: VMEM (bt, Npad)       logits (lane-padded), f32
    """
    groups = w_ref.shape[0]
    cg = seg_ref.shape[1]
    hw = x_ref.shape[2] // cg
    inv_hw = 1.0 / float(hw)

    p_int = int(round(p))
    p_is_int = (abs(p - p_int) < 1e-12) and (1 <= p_int <= 16)

    # Output tile is VMEM-resident for the whole step: init with bias, accumulate into it.
    out_ref[...] = jnp.broadcast_to(b_ref[...], out_ref.shape).astype(out_ref.dtype)

    seg = seg_ref[...]                                  # hoisted, reused by every group
    # TODO(synk): nn.Dropout(0.5) is identity at inference; no RNG mask applied.
    for g in range(groups):                             # static unroll, G is small (C/128)
        x = x_ref[:, g, :].astype(jnp.float32)          # [bt, Cg*HW], lane-dense
        xc = jnp.maximum(x, eps)                        # x.clamp(min=eps)
        if p_is_int:
            xp = _integer_power(xc, p_int)              # p=3 -> two VPU multiplies
        else:
            xp = jnp.exp(jnp.log(xc) * p)               # generic p (EUP path)
        # Per-channel spatial sum on the MXU: [bt, Cg*HW] @ [Cg*HW, Cg] -> [bt, Cg].
        s = jnp.dot(xp.astype(seg.dtype), seg, preferred_element_type=jnp.float32)
        if p_is_int and p_int == 1:
            pooled = s * inv_hw
        else:
            pooled = jnp.exp(jnp.log(s * inv_hw) * (1.0 / p))   # mean^(1/p), tiny tensor
        # Streamed classifier over channels g*Cg .. (g+1)*Cg - 1.
        out_ref[...] += jnp.dot(pooled.astype(w_ref.dtype), w_ref[g],
                                preferred_element_type=jnp.float32)


def _pick_channel_group(C, HW):
    """Split C = G * Cg so the folded lane axis (Cg*HW) is wide and G is sublane friendly."""
    for cand in (128, 64, 32, 16, 8, 4, 2, 1):
        if C % cand:
            continue
        g = C // cand
        if g == 1 or g % 8 == 0:
            # Keep the segment-sum matrix (Cg*HW x Cg) at a few MiB of VMEM.
            if cand * HW * cand * 2 <= 4 * 1024 * 1024 or cand <= 8:
                return cand
    return 1


def prepare_baseline_single_head_params(weight, bias, C, H, W, param_dtype=jnp.bfloat16):
    """One-time (off the hot path) packing of the classifier + pooling constants.

    weight: [num_classes, C] Linear weight;  bias: [num_classes].
    Returns (seg, w3, b2) ready for baseline_single_head.
    """
    num_classes = weight.shape[0]
    assert weight.shape[1] == C
    HW = H * W
    Cg = _pick_channel_group(C, HW)
    G = C // Cg
    n_pad = pl.cdiv(num_classes, 128) * 128             # lane-dense output columns

    # Block-diagonal spatial-sum matrix: seg[cg*HW + h, cg] = 1.
    row_chan = jnp.arange(Cg * HW, dtype=jnp.int32) // HW
    col_chan = jnp.arange(Cg, dtype=jnp.int32)
    seg = (row_chan[:, None] == col_chan[None, :]).astype(param_dtype)

    # Classifier weight in folded-channel order (channel = g*Cg + cg), lane-padded classes.
    w_t = jnp.zeros((C, n_pad), param_dtype).at[:, :num_classes].set(
        weight.T.astype(param_dtype))
    w3 = w_t.reshape(G, Cg, n_pad)
    b2 = jnp.zeros((1, n_pad), jnp.float32).at[:, :num_classes].set(
        bias.astype(jnp.float32)[None, :])
    return seg, w3, b2


def baseline_single_head(feat_nchw, seg, w3, b2, num_classes, p=3.0, eps=1e-6):
    """GeM(p, eps) -> Dropout(identity) -> Linear head on a [B, C, H, W] feature map."""
    B, C, H, W = feat_nchw.shape
    HW = H * W
    G, Cg, n_pad = w3.shape
    assert G * Cg == C and seg.shape == (Cg * HW, Cg)

    # Free contiguous reshape: channel c = g*Cg + cg, lane axis = Cg*HW (dense).
    x = feat_nchw.reshape(B, G, Cg * HW)

    # Batch tile: full batch when tiny; otherwise a multiple of 8 sized for a ~20 MiB
    # double-buffered feature window (v7x-safe) with >= 2 grid steps when B permits.
    row_bytes = C * HW * x.dtype.itemsize
    if B <= 8:
        bt = B
    else:
        budget = 20 * 1024 * 1024
        bt = max(8, min(64, (budget // (2 * row_bytes)) // 8 * 8))
        if bt >= B:
            bt = max(8, (pl.cdiv(B, 2) + 7) // 8 * 8)
    b_pad = pl.cdiv(B, bt) * bt
    if b_pad != B:
        x = jnp.pad(x, ((0, b_pad - B), (0, 0), (0, 0)))

    out = pl.pallas_call(
        functools.partial(gem_linear_kernel, p=float(p), eps=float(eps)),
        out_shape=jax.ShapeDtypeStruct((b_pad, n_pad), jnp.float32),
        grid=(b_pad // bt,),
        in_specs=[
            pl.BlockSpec((bt, G, Cg * HW), lambda i: (i, 0, 0)),
            pl.BlockSpec((Cg * HW, Cg), lambda i: (0, 0)),
            pl.BlockSpec((G, Cg, n_pad), lambda i: (0, 0, 0)),
            pl.BlockSpec((1, n_pad), lambda i: (0, 0)),
        ],
        out_specs=pl.BlockSpec((bt, n_pad), lambda i: (i, 0)),
        compiler_params=pltpu.CompilerParams(
            dimension_semantics=("parallel",),
            vmem_limit_bytes=32 * 1024 * 1024,
        ),
    )(x, seg, w3, b2)

    return out[:B, :num_classes]


if __name__ == "__main__":
    key = jax.random.PRNGKey(0)
    k_feat, k_w, k_b = jax.random.split(key, 3)

    # densenet121 `features` output has C = 1024 channels (== self.feature_dim = 512 * 2).
    B, C, H, W = 2, 1024, 4, 4
    num_classes = 8
    p, eps = 3.0, 1e-6

    # Deterministic synthetic "backbone output" (bf16 over HBM) and head parameters.
    feat = jax.random.normal(k_feat, (B, C, H, W), jnp.float32).astype(jnp.bfloat16)
    weight = jax.random.normal(k_w, (num_classes, C), jnp.float32) * 0.02   # Linear(1024, nc)
    bias = jax.random.normal(k_b, (num_classes,), jnp.float32) * 0.01
    # GeM p init = 3.0 (static at inference).

    seg, w3, b2 = prepare_baseline_single_head_params(
        weight, bias, C, H, W, param_dtype=jnp.bfloat16)

    ys = baseline_single_head(feat, seg, w3, b2, num_classes, p=p, eps=eps)
    jax.block_until_ready(ys)
    assert ys.shape == (B, num_classes)

    # Plain-JAX f32 reference (GeM -> dropout(identity) -> Linear) from the same bf16 features.
    xf = feat.astype(jnp.float32)
    pooled = jnp.mean(jnp.maximum(xf, eps) ** p, axis=(2, 3)) ** (1.0 / p)
    ref = pooled @ weight.T + bias

    assert jnp.allclose(ys, ref, atol=2e-2, rtol=2e-2), (
        f"mismatch vs reference: max abs err {jnp.max(jnp.abs(ys - ref))}")

    print("KERNEL_OK")
</pallas_src>

<mosaic_0001>
module attributes {stable_mosaic.version = 11 : i64} {
  func.func @gem_linear_kernel(%arg0: i32, %arg1: memref<2x8x2048xbf16, #tpu.memory_space<vmem>>, %arg2: memref<2048x128xbf16, #tpu.memory_space<vmem>>, %arg3: memref<8x128x128xbf16, #tpu.memory_space<vmem>>, %arg4: memref<1x128xf32, #tpu.memory_space<vmem>>, %arg5: memref<2x128xf32, #tpu.memory_space<vmem>>) attributes {dimension_semantics = [#tpu.dimension_semantics<parallel>], iteration_bounds = array<i64: 1>, scalar_prefetch = 0 : i64, scratch_operands = 0 : i64, tpu.core_type = #tpu.core_type<tc>, window_params = [{transform_indices = @transform_0, window_bounds = array<i64: 2, 8, 2048>}, {pipeline_mode = #tpu.pipeline_mode<synchronous>, transform_indices = @transform_1, window_bounds = array<i64: 2048, 128>}, {pipeline_mode = #tpu.pipeline_mode<synchronous>, transform_indices = @transform_2, window_bounds = array<i64: 8, 128, 128>}, {pipeline_mode = #tpu.pipeline_mode<synchronous>, transform_indices = @transform_3, window_bounds = array<i64: 1, 128>}, {transform_indices = @transform_4, window_bounds = array<i64: 2, 128>}]} {
    %c0 = arith.constant 0 : index
    %c0_0 = arith.constant 0 : index
    %0 = vector.load %arg4[%c0, %c0_0] : memref<1x128xf32, #tpu.memory_space<vmem>>, vector<1x128xf32>
    %1 = vector.shape_cast %0 : vector<1x128xf32> to vector<1x128xf32>
    %2 = vector.broadcast %1 : vector<1x128xf32> to vector<2x128xf32>
    %c0_1 = arith.constant 0 : index
    %c0_2 = arith.constant 0 : index
    %3 = vector.load %arg5[%c0_1, %c0_2] : memref<2x128xf32, #tpu.memory_space<vmem>>, vector<2x128xf32>
    tpu.vector_store %arg5[%c0_1, %c0_2], %2 {strides = array<i32>} : memref<2x128xf32, #tpu.memory_space<vmem>>, vector<2x128xf32>,
    %c0_3 = arith.constant 0 : index
    %c0_4 = arith.constant 0 : index
    %4 = vector.load %arg2[%c0_3, %c0_4] : memref<2048x128xbf16, #tpu.memory_space<vmem>>, vector<2048x128xbf16>
    %c0_5 = arith.constant 0 : index
    %c0_6 = arith.constant 0 : index
    %c0_7 = arith.constant 0 : index
    %5 = vector.load %arg1[%c0_5, %c0_6, %c0_7] : memref<2x8x2048xbf16, #tpu.memory_space<vmem>>, vector<2x1x2048xbf16>
    %6 = vector.shape_cast %5 : vector<2x1x2048xbf16> to vector<2x2048xbf16>
    %7 = arith.extf %6 : vector<2x2048xbf16> to vector<2x2048xf32>
    %cst = arith.constant 9.99999997E-7 : f32
    %8 = vector.broadcast %cst : f32 to vector<2x2048xf32>
    %9 = arith.maximumf %7, %8 : vector<2x2048xf32>
    %10 = arith.mulf %9, %9 : vector<2x2048xf32>
    %11 = arith.mulf %9, %10 : vector<2x2048xf32>
    %12 = arith.truncf %11 : vector<2x2048xf32> to vector<2x2048xbf16>
    %cst_8 = arith.constant dense<0.000000e+00> : vector<2x128xf32>
    %13 = tpu.matmul %12, %4, %cst_8 {dimension_numbers = #tpu.dot_dimension_numbers<[1], [0], [0], [1], [0, 0, 1, 1], [], []>} : vector<2x2048xbf16>, vector<2048x128xbf16>, vector<2x128xf32> -> vector<2x128xf32>
    %cst_9 = arith.constant 6.250000e-02 : f32
    %14 = vector.broadcast %cst_9 : f32 to vector<2x128xf32>
    %15 = arith.mulf %13, %14 : vector<2x128xf32>
    %16 = math.log %15 : vector<2x128xf32>
    %cst_10 = arith.constant 0.333333343 : f32
    %17 = vector.broadcast %cst_10 : f32 to vector<2x128xf32>
    %18 = arith.mulf %16, %17 : vector<2x128xf32>
    %19 = math.exp %18 : vector<2x128xf32>
    %c0_11 = arith.constant 0 : index
    %c0_12 = arith.constant 0 : index
    %20 = vector.load %arg5[%c0_11, %c0_12] : memref<2x128xf32, #tpu.memory_space<vmem>>, vector<2x128xf32>
    %21 = arith.truncf %19 : vector<2x128xf32> to vector<2x128xbf16>
    %c0_13 = arith.constant 0 : index
    %c0_14 = arith.constant 0 : index
    %c0_15 = arith.constant 0 : index
    %22 = vector.load %arg3[%c0_13, %c0_14, %c0_15] : memref<8x128x128xbf16, #tpu.memory_space<vmem>>, vector<1x128x128xbf16>
    %23 = vector.shape_cast %22 : vector<1x128x128xbf16> to vector<128x128xbf16>
    %cst_16 = arith.constant dense<0.000000e+00> : vector<2x128xf32>
    %24 = tpu.matmul %21, %23, %cst_16 {dimension_numbers = #tpu.dot_dimension_numbers<[1], [0], [0], [1], [0, 0, 1, 1], [], []>} : vector<2x128xbf16>, vector<128x128xbf16>, vector<2x128xf32> -> vector<2x128xf32>
    %25 = arith.addf %20, %24 : vector<2x128xf32>
    %c0_17 = arith.constant 0 : index
    %c0_18 = arith.constant 0 : index
    %26 = vector.load %arg5[%c0_17, %c0_18] : memref<2x128xf32, #tpu.memory_space<vmem>>, vector<2x128xf32>
    tpu.vector_store %arg5[%c0_17, %c0_18], %25 {strides = array<i32>} : memref<2x128xf32, #tpu.memory_space<vmem>>, vector<2x128xf32>,
    %c0_19 = arith.constant 0 : index
    %c1 = arith.constant 1 : index
    %c0_20 = arith.constant 0 : index
    %27 = vector.load %arg1[%c0_19, %c1, %c0_20] : memref<2x8x2048xbf16, #tpu.memory_space<vmem>>, vector<2x1x2048xbf16>
    %28 = vector.shape_cast %27 : vector<2x1x2048xbf16> to vector<2x2048xbf16>
    %29 = arith.extf %28 : vector<2x2048xbf16> to vector<2x2048xf32>
    %cst_21 = arith.constant 9.99999997E-7 : f32
    %30 = vector.broadcast %cst_21 : f32 to vector<2x2048xf32>
    %31 = arith.maximumf %29, %30 : vector<2x2048xf32>
    %32 = arith.mulf %31, %31 : vector<2x2048xf32>
    %33 = arith.mulf %31, %32 : vector<2x2048xf32>
    %34 = arith.truncf %33 : vector<2x2048xf32> to vector<2x2048xbf16>
    %cst_22 = arith.constant dense<0.000000e+00> : vector<2x128xf32>
    %35 = tpu.matmul %34, %4, %cst_22 {dimension_numbers = #tpu.dot_dimension_numbers<[1], [0], [0], [1], [0, 0, 1, 1], [], []>} : vector<2x2048xbf16>, vector<2048x128xbf16>, vector<2x128xf32> -> vector<2x128xf32>
    %cst_23 = arith.constant 6.250000e-02 : f32
    %36 = vector.broadcast %cst_23 : f32 to vector<2x128xf32>
    %37 = arith.mulf %35, %36 : vector<2x128xf32>
    %38 = math.log %37 : vector<2x128xf32>
    %cst_24 = arith.constant 0.333333343 : f32
    %39 = vector.broadcast %cst_24 : f32 to vector<2x128xf32>
    %40 = arith.mulf %38, %39 : vector<2x128xf32>
    %41 = math.exp %40 : vector<2x128xf32>
    %c0_25 = arith.constant 0 : index
    %c0_26 = arith.constant 0 : index
    %42 = vector.load %arg5[%c0_25, %c0_26] : memref<2x128xf32, #tpu.memory_space<vmem>>, vector<2x128xf32>
    %43 = arith.truncf %41 : vector<2x128xf32> to vector<2x128xbf16>
    %c1_27 = arith.constant 1 : index
    %c0_28 = arith.constant 0 : index
    %c0_29 = arith.constant 0 : index
    %44 = vector.load %arg3[%c1_27, %c0_28, %c0_29] : memref<8x128x128xbf16, #tpu.memory_space<vmem>>, vector<1x128x128xbf16>
    %45 = vector.shape_cast %44 : vector<1x128x128xbf16> to vector<128x128xbf16>
    %cst_30 = arith.constant dense<0.000000e+00> : vector<2x128xf32>
    %46 = tpu.matmul %43, %45, %cst_30 {dimension_numbers = #tpu.dot_dimension_numbers<[1], [0], [0], [1], [0, 0, 1, 1], [], []>} : vector<2x128xbf16>, vector<128x128xbf16>, vector<2x128xf32> -> vector<2x128xf32>
    %47 = arith.addf %42, %46 : vector<2x128xf32>
    %c0_31 = arith.constant 0 : index
    %c0_32 = arith.constant 0 : index
    %48 = vector.load %arg5[%c0_31, %c0_32] : memref<2x128xf32, #tpu.memory_space<vmem>>, vector<2x128xf32>
    tpu.vector_store %arg5[%c0_31, %c0_32], %47 {strides = array<i32>} : memref<2x128xf32, #tpu.memory_space<vmem>>, vector<2x128xf32>,
    %c0_33 = arith.constant 0 : index
    %c2 = arith.constant 2 : index
    %c0_34 = arith.constant 0 : index
    %49 = vector.load %arg1[%c0_33, %c2, %c0_34] : memref<2x8x2048xbf16, #tpu.memory_space<vmem>>, vector<2x1x2048xbf16>
    %50 = vector.shape_cast %49 : vector<2x1x2048xbf16> to vector<2x2048xbf16>
    %51 = arith.extf %50 : vector<2x2048xbf16> to vector<2x2048xf32>
    %cst_35 = arith.constant 9.99999997E-7 : f32
    %52 = vector.broadcast %cst_35 : f32 to vector<2x2048xf32>
    %53 = arith.maximumf %51, %52 : vector<2x2048xf32>
    %54 = arith.mulf %53, %53 : vector<2x2048xf32>
    %55 = arith.mulf %53, %54 : vector<2x2048xf32>
    %56 = arith.truncf %55 : vector<2x2048xf32> to vector<2x2048xbf16>
    %cst_36 = arith.constant dense<0.000000e+00> : vector<2x128xf32>
    %57 = tpu.matmul %56, %4, %cst_36 {dimension_numbers = #tpu.dot_dimension_numbers<[1], [0], [0], [1], [0, 0, 1, 1], [], []>} : vector<2x2048xbf16>, vector<2048x128xbf16>, vector<2x128xf32> -> vector<2x128xf32>
    %cst_37 = arith.constant 6.250000e-02 : f32
    %58 = vector.broadcast %cst_37 : f32 to vector<2x128xf32>
    %59 = arith.mulf %57, %58 : vector<2x128xf32>
    %60 = math.log %59 : vector<2x128xf32>
    %cst_38 = arith.constant 0.333333343 : f32
    %61 = vector.broadcast %cst_38 : f32 to vector<2x128xf32>
    %62 = arith.mulf %60, %61 : vector<2x128xf32>
    %63 = math.exp %62 : vector<2x128xf32>
    %c0_39 = arith.constant 0 : index
    %c0_40 = arith.constant 0 : index
    %64 = vector.load %arg5[%c0_39, %c0_40] : memref<2x128xf32, #tpu.memory_space<vmem>>, vector<2x128xf32>
    %65 = arith.truncf %63 : vector<2x128xf32> to vector<2x128xbf16>
    %c2_41 = arith.constant 2 : index
    %c0_42 = arith.constant 0 : index
    %c0_43 = arith.constant 0 : index
    %66 = vector.load %arg3[%c2_41, %c0_42, %c0_43] : memref<8x128x128xbf16, #tpu.memory_space<vmem>>, vector<1x128x128xbf16>
    %67 = vector.shape_cast %66 : vector<1x128x128xbf16> to vector<128x128xbf16>
    %cst_44 = arith.constant dense<0.000000e+00> : vector<2x128xf32>
    %68 = tpu.matmul %65, %67, %cst_44 {dimension_numbers = #tpu.dot_dimension_numbers<[1], [0], [0], [1], [0, 0, 1, 1], [], []>} : vector<2x128xbf16>, vector<128x128xbf16>, vector<2x128xf32> -> vector<2x128xf32>
    %69 = arith.addf %64, %68 : vector<2x128xf32>
    %c0_45 = arith.constant 0 : index
    %c0_46 = arith.constant 0 : index
    %70 = vector.load %arg5[%c0_45, %c0_46] : memref<2x128xf32, #tpu.memory_space<vmem>>, vector<2x128xf32>
    tpu.vector_store %arg5[%c0_45, %c0_46], %69 {strides = array<i32>} : memref<2x128xf32, #tpu.memory_space<vmem>>, vector<2x128xf32>,
    %c0_47 = arith.constant 0 : index
    %c3 = arith.constant 3 : index
    %c0_48 = arith.constant 0 : index
    %71 = vector.load %arg1[%c0_47, %c3, %c0_48] : memref<2x8x2048xbf16, #tpu.memory_space<vmem>>, vector<2x1x2048xbf16>
    %72 = vector.shape_cast %71 : vector<2x1x2048xbf16> to vector<2x2048xbf16>
    %73 = arith.extf %72 : vector<2x2048xbf16> to vector<2x2048xf32>
    %cst_49 = arith.constant 9.99999997E-7 : f32
    %74 = vector.broadcast %cst_49 : f32 to vector<2x2048xf32>
    %75 = arith.maximumf %73, %74 : vector<2x2048xf32>
    %76 = arith.mulf %75, %75 : vector<2x2048xf32>
    %77 = arith.mulf %75, %76 : vector<2x2048xf32>
    %78 = arith.truncf %77 : vector<2x2048xf32> to vector<2x2048xbf16>
    %cst_50 = arith.constant dense<0.000000e+00> : vector<2x128xf32>
    %79 = tpu.matmul %78, %4, %cst_50 {dimension_numbers = #tpu.dot_dimension_numbers<[1], [0], [0], [1], [0, 0, 1, 1], [], []>} : vector<2x2048xbf16>, vector<2048x128xbf16>, vector<2x128xf32> -> vector<2x128xf32>
    %cst_51 = arith.constant 6.250000e-02 : f32
    %80 = vector.broadcast %cst_51 : f32 to vector<2x128xf32>
    %81 = arith.mulf %79, %80 : vector<2x128xf32>
    %82 = math.log %81 : vector<2x128xf32>
    %cst_52 = arith.constant 0.333333343 : f32
    %83 = vector.broadcast %cst_52 : f32 to vector<2x128xf32>
    %84 = arith.mulf %82, %83 : vector<2x128xf32>
    %85 = math.exp %84 : vector<2x128xf32>
    %c0_53 = arith.constant 0 : index
    %c0_54 = arith.constant 0 : index
    %86 = vector.load %arg5[%c0_53, %c0_54] : memref<2x128xf32, #tpu.memory_space<vmem>>, vector<2x128xf32>
    %87 = arith.truncf %85 : vector<2x128xf32> to vector<2x128xbf16>
    %c3_55 = arith.constant 3 : index
    %c0_56 = arith.constant 0 : index
    %c0_57 = arith.constant 0 : index
    %88 = vector.load %arg3[%c3_55, %c0_56, %c0_57] : memref<8x128x128xbf16, #tpu.memory_space<vmem>>, vector<1x128x128xbf16>
    %89 = vector.shape_cast %88 : vector<1x128x128xbf16> to vector<128x128xbf16>
    %cst_58 = arith.constant dense<0.000000e+00> : vector<2x128xf32>
    %90 = tpu.matmul %87, %89, %cst_58 {dimension_numbers = #tpu.dot_dimension_numbers<[1], [0], [0], [1], [0, 0, 1, 1], [], []>} : vector<2x128xbf16>, vector<128x128xbf16>, vector<2x128xf32> -> vector<2x128xf32>
    %91 = arith.addf %86, %90 : vector<2x128xf32>
    %c0_59 = arith.constant 0 : index
    %c0_60 = arith.constant 0 : index
    %92 = vector.load %arg5[%c0_59, %c0_60] : memref<2x128xf32, #tpu.memory_space<vmem>>, vector<2x128xf32>
    tpu.vector_store %arg5[%c0_59, %c0_60], %91 {strides = array<i32>} : memref<2x128xf32, #tpu.memory_space<vmem>>, vector<2x128xf32>,
    %c0_61 = arith.constant 0 : index
    %c4 = arith.constant 4 : index
    %c0_62 = arith.constant 0 : index
    %93 = vector.load %arg1[%c0_61, %c4, %c0_62] : memref<2x8x2048xbf16, #tpu.memory_space<vmem>>, vector<2x1x2048xbf16>
    %94 = vector.shape_cast %93 : vector<2x1x2048xbf16> to vector<2x2048xbf16>
    %95 = arith.extf %94 : vector<2x2048xbf16> to vector<2x2048xf32>
    %cst_63 = arith.constant 9.99999997E-7 : f32
    %96 = vector.broadcast %cst_63 : f32 to vector<2x2048xf32>
    %97 = arith.maximumf %95, %96 : vector<2x2048xf32>
    %98 = arith.mulf %97, %97 : vector<2x2048xf32>
    %99 = arith.mulf %97, %98 : vector<2x2048xf32>
    %100 = arith.truncf %99 : vector<2x2048xf32> to vector<2x2048xbf16>
    %cst_64 = arith.constant dense<0.000000e+00> : vector<2x128xf32>
    %101 = tpu.matmul %100, %4, %cst_64 {dimension_numbers = #tpu.dot_dimension_numbers<[1], [0], [0], [1], [0, 0, 1, 1], [], []>} : vector<2x2048xbf16>, vector<2048x128xbf16>, vector<2x128xf32> -> vector<2x128xf32>
    %cst_65 = arith.constant 6.250000e-02 : f32
    %102 = vector.broadcast %cst_65 : f32 to vector<2x128xf32>
    %103 = arith.mulf %101, %102 : vector<2x128xf32>
    %104 = math.log %103 : vector<2x128xf32>
    %cst_66 = arith.constant 0.333333343 : f32
    %105 = vector.broadcast %cst_66 : f32 to vector<2x128xf32>
    %106 = arith.mulf %104, %105 : vector<2x128xf32>
    %107 = math.exp %106 : vector<2x128xf32>
    %c0_67 = arith.constant 0 : index
    %c0_68 = arith.constant 0 : index
    %108 = vector.load %arg5[%c0_67, %c0_68] : memref<2x128xf32, #tpu.memory_space<vmem>>, vector<2x128xf32>
    %109 = arith.truncf %107 : vector<2x128xf32> to vector<2x128xbf16>
    %c4_69 = arith.constant 4 : index
    %c0_70 = arith.constant 0 : index
    %c0_71 = arith.constant 0 : index
    %110 = vector.load %arg3[%c4_69, %c0_70, %c0_71] : memref<8x128x128xbf16, #tpu.memory_space<vmem>>, vector<1x128x128xbf16>
    %111 = vector.shape_cast %110 : vector<1x128x128xbf16> to vector<128x128xbf16>
    %cst_72 = arith.constant dense<0.000000e+00> : vector<2x128xf32>
    %112 = tpu.matmul %109, %111, %cst_72 {dimension_numbers = #tpu.dot_dimension_numbers<[1], [0], [0], [1], [0, 0, 1, 1], [], []>} : vector<2x128xbf16>, vector<128x128xbf16>, vector<2x128xf32> -> vector<2x128xf32>
    %113 = arith.addf %108, %112 : vector<2x128xf32>
    %c0_73 = arith.constant 0 : index
    %c0_74 = arith.constant 0 : index
    %114 = vector.load %arg5[%c0_73, %c0_74] : memref<2x128xf32, #tpu.memory_space<vmem>>, vector<2x128xf32>
    tpu.vector_store %arg5[%c0_73, %c0_74], %113 {strides = array<i32>} : memref<2x128xf32, #tpu.memory_space<vmem>>, vector<2x128xf32>,
    %c0_75 = arith.constant 0 : index
    %c5 = arith.constant 5 : index
    %c0_76 = arith.constant 0 : index
    %115 = vector.load %arg1[%c0_75, %c5, %c0_76] : memref<2x8x2048xbf16, #tpu.memory_space<vmem>>, vector<2x1x2048xbf16>
    %116 = vector.shape_cast %115 : vector<2x1x2048xbf16> to vector<2x2048xbf16>
    %117 = arith.extf %116 : vector<2x2048xbf16> to vector<2x2048xf32>
    %cst_77 = arith.constant 9.99999997E-7 : f32
    %118 = vector.broadcast %cst_77 : f32 to vector<2x2048xf32>
    %119 = arith.maximumf %117, %118 : vector<2x2048xf32>
    %120 = arith.mulf %119, %119 : vector<2x2048xf32>
    %121 = arith.mulf %119, %120 : vector<2x2048xf32>
    %122 = arith.truncf %121 : vector<2x2048xf32> to vector<2x2048xbf16>
    %cst_78 = arith.constant dense<0.000000e+00> : vector<2x128xf32>
    %123 = tpu.matmul %122, %4, %cst_78 {dimension_numbers = #tpu.dot_dimension_numbers<[1], [0], [0], [1], [0, 0, 1, 1], [], []>} : vector<2x2048xbf16>, vector<2048x128xbf16>, vector<2x128xf32> -> vector<2x128xf32>
    %cst_79 = arith.constant 6.250000e-02 : f32
    %124 = vector.broadcast %cst_79 : f32 to vector<2x128xf32>
    %125 = arith.mulf %123, %124 : vector<2x128xf32>
    %126 = math.log %125 : vector<2x128xf32>
    %cst_80 = arith.constant 0.333333343 : f32
    %127 = vector.broadcast %cst_80 : f32 to vector<2x128xf32>
    %128 = arith.mulf %126, %127 : vector<2x128xf32>
    %129 = math.exp %128 : vector<2x128xf32>
    %c0_81 = arith.constant 0 : index
    %c0_82 = arith.constant 0 : index
    %130 = vector.load %arg5[%c0_81, %c0_82] : memref<2x128xf32, #tpu.memory_space<vmem>>, vector<2x128xf32>
    %131 = arith.truncf %129 : vector<2x128xf32> to vector<2x128xbf16>
    %c5_83 = arith.constant 5 : index
    %c0_84 = arith.constant 0 : index
    %c0_85 = arith.constant 0 : index
    %132 = vector.load %arg3[%c5_83, %c0_84, %c0_85] : memref<8x128x128xbf16, #tpu.memory_space<vmem>>, vector<1x128x128xbf16>
    %133 = vector.shape_cast %132 : vector<1x128x128xbf16> to vector<128x128xbf16>
    %cst_86 = arith.constant dense<0.000000e+00> : vector<2x128xf32>
    %134 = tpu.matmul %131, %133, %cst_86 {dimension_numbers = #tpu.dot_dimension_numbers<[1], [0], [0], [1], [0, 0, 1, 1], [], []>} : vector<2x128xbf16>, vector<128x128xbf16>, vector<2x128xf32> -> vector<2x128xf32>
    %135 = arith.addf %130, %134 : vector<2x128xf32>
    %c0_87 = arith.constant 0 : index
    %c0_88 = arith.constant 0 : index
    %136 = vector.load %arg5[%c0_87, %c0_88] : memref<2x128xf32, #tpu.memory_space<vmem>>, vector<2x128xf32>
    tpu.vector_store %arg5[%c0_87, %c0_88], %135 {strides = array<i32>} : memref<2x128xf32, #tpu.memory_space<vmem>>, vector<2x128xf32>,
    %c0_89 = arith.constant 0 : index
    %c6 = arith.constant 6 : index
    %c0_90 = arith.constant 0 : index
    %137 = vector.load %arg1[%c0_89, %c6, %c0_90] : memref<2x8x2048xbf16, #tpu.memory_space<vmem>>, vector<2x1x2048xbf16>
    %138 = vector.shape_cast %137 : vector<2x1x2048xbf16> to vector<2x2048xbf16>
    %139 = arith.extf %138 : vector<2x2048xbf16> to vector<2x2048xf32>
    %cst_91 = arith.constant 9.99999997E-7 : f32
    %140 = vector.broadcast %cst_91 : f32 to vector<2x2048xf32>
    %141 = arith.maximumf %139, %140 : vector<2x2048xf32>
    %142 = arith.mulf %141, %141 : vector<2x2048xf32>
    %143 = arith.mulf %141, %142 : vector<2x2048xf32>
    %144 = arith.truncf %143 : vector<2x2048xf32> to vector<2x2048xbf16>
    %cst_92 = arith.constant dense<0.000000e+00> : vector<2x128xf32>
    %145 = tpu.matmul %144, %4, %cst_92 {dimension_numbers = #tpu.dot_dimension_numbers<[1], [0], [0], [1], [0, 0, 1, 1], [], []>} : vector<2x2048xbf16>, vector<2048x128xbf16>, vector<2x128xf32> -> vector<2x128xf32>
    %cst_93 = arith.constant 6.250000e-02 : f32
    %146 = vector.broadcast %cst_93 : f32 to vector<2x128xf32>
    %147 = arith.mulf %145, %146 : vector<2x128xf32>
    %148 = math.log %147 : vector<2x128xf32>
    %cst_94 = arith.constant 0.333333343 : f32
    %149 = vector.broadcast %cst_94 : f32 to vector<2x128xf32>
    %150 = arith.mulf %148, %149 : vector<2x128xf32>
    %151 = math.exp %150 : vector<2x128xf32>
    %c0_95 = arith.constant 0 : index
    %c0_96 = arith.constant 0 : index
    %152 = vector.load %arg5[%c0_95, %c0_96] : memref<2x128xf32, #tpu.memory_space<vmem>>, vector<2x128xf32>
    %153 = arith.truncf %151 : vector<2x128xf32> to vector<2x128xbf16>
    %c6_97 = arith.constant 6 : index
    %c0_98 = arith.constant 0 : index
    %c0_99 = arith.constant 0 : index
    %154 = vector.load %arg3[%c6_97, %c0_98, %c0_99] : memref<8x128x128xbf16, #tpu.memory_space<vmem>>, vector<1x128x128xbf16>
    %155 = vector.shape_cast %154 : vector<1x128x128xbf16> to vector<128x128xbf16>
    %cst_100 = arith.constant dense<0.000000e+00> : vector<2x128xf32>
    %156 = tpu.matmul %153, %155, %cst_100 {dimension_numbers = #tpu.dot_dimension_numbers<[1], [0], [0], [1], [0, 0, 1, 1], [], []>} : vector<2x128xbf16>, vector<128x128xbf16>, vector<2x128xf32> -> vector<2x128xf32>
    %157 = arith.addf %152, %156 : vector<2x128xf32>
    %c0_101 = arith.constant 0 : index
    %c0_102 = arith.constant 0 : index
    %158 = vector.load %arg5[%c0_101, %c0_102] : memref<2x128xf32, #tpu.memory_space<vmem>>, vector<2x128xf32>
    tpu.vector_store %arg5[%c0_101, %c0_102], %157 {strides = array<i32>} : memref<2x128xf32, #tpu.memory_space<vmem>>, vector<2x128xf32>,
    %c0_103 = arith.constant 0 : index
    %c7 = arith.constant 7 : index
    %c0_104 = arith.constant 0 : index
    %159 = vector.load %arg1[%c0_103, %c7, %c0_104] : memref<2x8x2048xbf16, #tpu.memory_space<vmem>>, vector<2x1x2048xbf16>
    %160 = vector.shape_cast %159 : vector<2x1x2048xbf16> to vector<2x2048xbf16>
    %161 = arith.extf %160 : vector<2x2048xbf16> to vector<2x2048xf32>
    %cst_105 = arith.constant 9.99999997E-7 : f32
    %162 = vector.broadcast %cst_105 : f32 to vector<2x2048xf32>
    %163 = arith.maximumf %161, %162 : vector<2x2048xf32>
    %164 = arith.mulf %163, %163 : vector<2x2048xf32>
    %165 = arith.mulf %163, %164 : vector<2x2048xf32>
    %166 = arith.truncf %165 : vector<2x2048xf32> to vector<2x2048xbf16>
    %cst_106 = arith.constant dense<0.000000e+00> : vector<2x128xf32>
    %167 = tpu.matmul %166, %4, %cst_106 {dimension_numbers = #tpu.dot_dimension_numbers<[1], [0], [0], [1], [0, 0, 1, 1], [], []>} : vector<2x2048xbf16>, vector<2048x128xbf16>, vector<2x128xf32> -> vector<2x128xf32>
    %cst_107 = arith.constant 6.250000e-02 : f32
    %168 = vector.broadcast %cst_107 : f32 to vector<2x128xf32>
    %169 = arith.mulf %167, %168 : vector<2x128xf32>
    %170 = math.log %169 : vector<2x128xf32>
    %cst_108 = arith.constant 0.333333343 : f32
    %171 = vector.broadcast %cst_108 : f32 to vector<2x128xf32>
    %172 = arith.mulf %170, %171 : vector<2x128xf32>
    %173 = math.exp %172 : vector<2x128xf32>
    %c0_109 = arith.constant 0 : index
    %c0_110 = arith.constant 0 : index
    %174 = vector.load %arg5[%c0_109, %c0_110] : memref<2x128xf32, #tpu.memory_space<vmem>>, vector<2x128xf32>
    %175 = arith.truncf %173 : vector<2x128xf32> to vector<2x128xbf16>
    %c7_111 = arith.constant 7 : index
    %c0_112 = arith.constant 0 : index
    %c0_113 = arith.constant 0 : index
    %176 = vector.load %arg3[%c7_111, %c0_112, %c0_113] : memref<8x128x128xbf16, #tpu.memory_space<vmem>>, vector<1x128x128xbf16>
    %177 = vector.shape_cast %176 : vector<1x128x128xbf16> to vector<128x128xbf16>
    %cst_114 = arith.constant dense<0.000000e+00> : vector<2x128xf32>
    %178 = tpu.matmul %175, %177, %cst_114 {dimension_numbers = #tpu.dot_dimension_numbers<[1], [0], [0], [1], [0, 0, 1, 1], [], []>} : vector<2x128xbf16>, vector<128x128xbf16>, vector<2x128xf32> -> vector<2x128xf32>
    %179 = arith.addf %174, %178 : vector<2x128xf32>
    %c0_115 = arith.constant 0 : index
    %c0_116 = arith.constant 0 : index
    %180 = vector.load %arg5[%c0_115, %c0_116] : memref<2x128xf32, #tpu.memory_space<vmem>>, vector<2x128xf32>
    tpu.vector_store %arg5[%c0_115, %c0_116], %179 {strides = array<i32>} : memref<2x128xf32, #tpu.memory_space<vmem>>, vector<2x128xf32>,
    return
  }
  func.func @transform_0(%arg0: i32) -> (i32, i32, i32) {
    %c0_i32 = arith.constant 0 : i32
    %c0_i32_0 = arith.constant 0 : i32
    %c0_i32_1 = arith.constant 0 : i32
    return %arg0, %c0_i32, %c0_i32_0 : i32, i32, i32
  }
  func.func @transform_1(%arg0: i32) -> (i32, i32) {
    %c0_i32 = arith.constant 0 : i32
    %c0_i32_0 = arith.constant 0 : i32
    %c0_i32_1 = arith.constant 0 : i32
    return %c0_i32, %c0_i32_0 : i32, i32
  }
  func.func @transform_2(%arg0: i32) -> (i32, i32, i32) {
    %c0_i32 = arith.constant 0 : i32
    %c0_i32_0 = arith.constant 0 : i32
    %c0_i32_1 = arith.constant 0 : i32
    %c0_i32_2 = arith.constant 0 : i32
    return %c0_i32, %c0_i32_0, %c0_i32_1 : i32, i32, i32
  }
  func.func @transform_3(%arg0: i32) -> (i32, i32) {
    %c0_i32 = arith.constant 0 : i32
    %c0_i32_0 = arith.constant 0 : i32
    %c0_i32_1 = arith.constant 0 : i32
    return %c0_i32, %c0_i32_0 : i32, i32
  }
  func.func @transform_4(%arg0: i32) -> (i32, i32) {
    %c0_i32 = arith.constant 0 : i32
    %c0_i32_0 = arith.constant 0 : i32
    return %arg0, %c0_i32 : i32, i32
  }
}

</mosaic_0001>

<bundles_post_ra>
// kernel: tpu_custom_call.1
= control target key start
LH: loop header
LB: loop body
LE: loop exit
PB: predicated region body
PF: predicated region fallthrough
CT: control target
= control target key end

     0   :  { %9 = vsyncpa [#allocation3], 0  ;;  %s11942_s0 = inlined_call_operand.hbm [shape: bf16[2,8,2048], index: 0, kind: input, shape index: {}]   ;;  %s11943_s1 = inlined_call_operand.hbm [shape: bf16[2048,128], index: 1, kind: input, shape index: {}]   ;;  %s11944_s2 = inlined_call_operand.hbm [shape: bf16[8,128,128], index: 2, kind: input, shape index: {}]   ;;  %s11945_s3 = inlined_call_operand.vmem [shape: f32[1,128], index: 3, kind: input, shape index: {}]   ;;  %s11946_s4 = inlined_call_operand.hbm [shape: f32[2,128], index: 4, kind: output, shape index: {}]  }
   0x1   :  { %10 = vsyncpa [#allocation6], 0 }
   0x2   :  { %11 = vsyncpa [#allocation4], 0  ;;  %s9775_s15 = smov [#allocation5]   ;;  %s9681_s19 = scalar_lea.hbm %s11943_s1, 16384 }
   0x3   :  { %s29_s16 = sshll.u32 %s9775_s15, 4  ;;  %p9682_p0 = scmp.ne.s32.totalorder %s11943_s1, %s9681_s19  ;;  %s30_s16 = int_to_ptr.vmem [resolvable:$true] %s29_s16 }
   0x4   :  { %p9685_p1 = scmp.lt.u32.totalorder %s9681_s19, %s11943_s1 }
   0x6   :  { %p9687_p2 = pnand %p9685_p1, %p9682_p0 }
   0x8   :  { %9690 = shalt.err (!%p9687_p2)
}
   0x9   :  { %s9691_s24 = scalar_lea.vmem %s30_s16, 16384  ;;  %p9696_p4 = scmp.lt.s32.totalorder %s30_s16, %s30_s16 }
   0xa   :  { %p9692_p3 = scmp.ne.s32.totalorder %s30_s16, %s9691_s24  ;;  %p9697_p5 = scmp.lt.s32.totalorder %s9691_s24, %s9691_s24 }
   0xc   :  { %p9698_p6 = por %p9697_p5, %p9696_p4 }
   0xe   :  { %p9699_p7 = pnand %p9698_p6, %p9692_p3 }
  0x10   :  { %9702 = shalt.err (!%p9699_p7)
}
  0x11   :  { %s9776_s25 = smov 64   ;;  %s9777_s26 = smov 4  }
  0x12   :  { %35 = dma.hbm_to_vmem [thread:$0]  %s11943_s1, 16384, %s30_s16, [#allocation6], %s9776_s25, %s9776_s25, %s9777_s26  }
  0x13   :  { %s9778_s29 = smov [#allocation2]   ;;  %s9703_s7 = scalar_lea.hbm %s11942_s0, 2048 }
  0x14   :  { %s17_s30 = sshll.u32 %s9778_s29, 4  ;;  %p9704_p8 = scmp.ne.s32.totalorder %s11942_s0, %s9703_s7  ;;  %s18_s30 = int_to_ptr.vmem [resolvable:$true] %s17_s30 }
  0x15   :  { %p9707_p9 = scmp.lt.u32.totalorder %s9703_s7, %s11942_s0 }
  0x17   :  { %p9709_p10 = pnand %p9707_p9, %p9704_p8 }
  0x19   :  { %9712 = shalt.err (!%p9709_p10)
}
  0x1a   :  { %s9713_s12 = scalar_lea.vmem %s18_s30, 2048  ;;  %p9718_p12 = scmp.lt.s32.totalorder %s18_s30, %s18_s30 }
  0x1b   :  { %p9714_p11 = scmp.ne.s32.totalorder %s18_s30, %s9713_s12  ;;  %p9719_p13 = scmp.lt.s32.totalorder %s9713_s12, %s9713_s12 }
  0x1d   :  { %p9720_p0 = por %p9719_p13, %p9718_p12 }
  0x1f   :  { %p9721_p1 = pnand %p9720_p0, %p9714_p11 }
  0x21   :  { %9724 = shalt.err (!%p9721_p1)
}
  0x22   :  { %s9779_s1 = smov 1024   ;;  %s9780_s15 = smov [#allocation7]  }
  0x23   :  { %23 = dma.hbm_to_vmem [thread:$0]  %s11942_s0, 2048, %s18_s30, [#allocation3], %s9779_s1, %s9779_s1, %s9776_s25  }
  0x24   :  { %s41_s16 = sshll.u32 %s9780_s15, 4  ;;  %s9725_s19 = scalar_lea.hbm %s11944_s2, 8192  ;;  %s42_s16 = int_to_ptr.vmem [resolvable:$true] %s41_s16 }
  0x25   :  { %p9726_p2 = scmp.ne.s32.totalorder %s11944_s2, %s9725_s19  ;;  %p9729_p3 = scmp.lt.u32.totalorder %s9725_s19, %s11944_s2 }
  0x27   :  { %p9731_p4 = pnand %p9729_p3, %p9726_p2 }
  0x29   :  { %9734 = shalt.err (!%p9731_p4)
}
  0x2a   :  { %s9735_s24 = scalar_lea.vmem %s42_s16, 8192  ;;  %p9740_p6 = scmp.lt.s32.totalorder %s42_s16, %s42_s16 }
  0x2b   :  { %p9736_p5 = scmp.ne.s32.totalorder %s42_s16, %s9735_s24  ;;  %p9741_p7 = scmp.lt.s32.totalorder %s9735_s24, %s9735_s24 }
  0x2d   :  { %p9742_p8 = por %p9741_p7, %p9740_p6 }
  0x2f   :  { %p9743_p9 = pnand %p9742_p8, %p9736_p5 }
  0x31   :  { %9746 = shalt.err (!%p9743_p9)
}
  0x32   :  { %47 = dma.hbm_to_vmem [thread:$0]  %s11944_s2, 8192, %s42_s16, [#allocation6], %s9776_s25, %s9776_s25, %s9777_s26  }
  0x33   :  { %9769 = dma.done.wait [#allocation3], 2048  }
  0x34   :  { %9770 = vsyncadd [#allocation3], 4294965248 }
  0x35   :  { %9771 = dma.done.wait [#allocation6], 24576  }
  0x36   :  { %9772 = vsyncadd [#allocation6], 4294942720  ;;  %v8958_v0 = vld [vmem:[#allocation5 + $0x40] sm:$0xff]   ;;  %v8962_v4 = vld [vmem:[#allocation5 + $0x48] sm:$0xff]   ;;  %vm565_vm0 = vcmask 1041409   ;;  %vm9782_vm1 = vmmov 0  }
  0x37   :  { %v8959_v1 = vld [vmem:[#allocation5 + $0xc0] sm:$0xff]   ;;  %7309 = vmatprep.subr.bf16.mxu0 %v8958_v0  ;;  %v8963_v5 = vld [vmem:[#allocation5 + $0xc8] sm:$0xff]   ;;  %v8966_v8 = vld [vmem:[#allocation5 + $0x50] sm:$0xff]  }
  0x38   :  { %v8960_v2 = vld [vmem:[#allocation5] sm:$0xff]   ;;  %7331 = vmatprep.subr.bf16.mxu1 %v8959_v1  ;;  %v8964_v6 = vld [vmem:[#allocation5 + $0x8] sm:$0xff]   ;;  %v8967_v9 = vld [vmem:[#allocation5 + $0xd0] sm:$0xff]  }
  0x39   :  { %v8961_v3 = vld [vmem:[#allocation5 + $0x80] sm:$0xff]   ;;  %7310 = vmatpush3.bf16.msra.mxu0 %v8960_v2  ;;  %v8965_v7 = vld [vmem:[#allocation5 + $0x88] sm:$0xff]   ;;  %v8968_v10 = vld [vmem:[#allocation5 + $0x10] sm:$0xff]  }
  0x3a   :  { %7332 = vmatpush3.bf16.msra.mxu1 %v8961_v3  ;;  %7311 = vmatprep.subr.bf16.mxu0 %v8962_v4  ;;  %v8969_v11 = vld [vmem:[#allocation5 + $0x90] sm:$0xff]   ;;  %v8970_v12 = vld [vmem:[#allocation5 + $0x58] sm:$0xff]   ;;  %v8974_v16 = vld [vmem:[#allocation5 + $0x60] sm:$0xff]  }
  0x3b   :  { %7333 = vmatprep.subr.bf16.mxu1 %v8963_v5  ;;  %v8971_v13 = vld [vmem:[#allocation5 + $0xd8] sm:$0xff]   ;;  %v8975_v17 = vld [vmem:[#allocation5 + $0xe0] sm:$0xff]   ;;  %v8978_v20 = vld [vmem:[#allocation5 + $0x68] sm:$0xff]  }
  0x3c   :  { %v8972_v14 = vld [vmem:[#allocation5 + $0x18] sm:$0xff]   ;;  %v8976_v18 = vld [vmem:[#allocation5 + $0x20] sm:$0xff]   ;;  %v8979_v21 = vld [vmem:[#allocation5 + $0xe8] sm:$0xff]  }
  0x3d   :  { %7312 = vmatpush3.bf16.msra.mxu0 %v8964_v6  ;;  %v8973_v15 = vld [vmem:[#allocation5 + $0x98] sm:$0xff]   ;;  %v8977_v19 = vld [vmem:[#allocation5 + $0xa0] sm:$0xff]   ;;  %v8980_v22 = vld [vmem:[#allocation5 + $0x28] sm:$0xff]  }
  0x3e   :  { %7334 = vmatpush3.bf16.msra.mxu1 %v8965_v7  ;;  %7313 = vmatprep.subr.bf16.mxu0 %v8966_v8  ;;  %v8981_v23 = vld [vmem:[#allocation5 + $0xa8] sm:$0xff]   ;;  %v8982_v24 = vld [vmem:[#allocation5 + $0x70] sm:$0xff]   ;;  %v8986_v28 = vld [vmem:[#allocation5 + $0x78] sm:$0xff]  }
  0x3f   :  { %7335 = vmatprep.subr.bf16.mxu1 %v8967_v9  ;;  %v8983_v25 = vld [vmem:[#allocation5 + $0xf0] sm:$0xff]   ;;  %v8987_v29 = vld [vmem:[#allocation5 + $0xf8] sm:$0xff]   ;;  %v324_v32 = vld [vmem:[#allocation2] sm:$0x11] }
  0x40   :  { %v8984_v26 = vld [vmem:[#allocation5 + $0x30] sm:$0xff]   ;;  %v8988_v30 = vld [vmem:[#allocation5 + $0x38] sm:$0xff]   ;;  %v332_v33 = vld [vmem:[#allocation2 + $0x40] sm:$0x11]  ;;  %v340_v35 = vunpack.c.l.bf16 %v324_v32  ;;  %v341_v36 = vunpack.c.h.bf16 %v324_v32 }
  0x41   :  { %7314 = vmatpush3.bf16.msra.mxu0 %v8968_v10  ;;  %v8985_v27 = vld [vmem:[#allocation5 + $0xb0] sm:$0xff]   ;;  %v8989_v31 = vld [vmem:[#allocation5 + $0xb8] sm:$0xff]   ;;  %v325_v34 = vld [vmem:[#allocation2 + $0x8] sm:$0x11]  ;;  %v356_v37 = vunpack.c.l.bf16 %v332_v33  ;;  %v357_v38 = vunpack.c.h.bf16 %v332_v33 }
  0x42   :  { %7336 = vmatpush3.bf16.msra.mxu1 %v8969_v11  ;;  %7315 = vmatprep.subr.bf16.mxu0 %v8970_v12  ;;  %v333_v39 = vld [vmem:[#allocation2 + $0x48] sm:$0x11]  ;;  %v342_v40 = vunpack.c.l.bf16 %v325_v34  ;;  %v343_v41 = vunpack.c.h.bf16 %v325_v34  ;;  %v8990_v44 = vld [vmem:[#allocation5 + $0x140] sm:$0xff]   ;;  %v372_v45 = vmax.f32 %v340_v35, 1e-06 }
  0x43   :  { %7337 = vmatprep.subr.bf16.mxu1 %v8971_v13  ;;  %v358_v42 = vunpack.c.l.bf16 %v333_v39  ;;  %v359_v43 = vunpack.c.h.bf16 %v333_v39  ;;  %v373_v46 = vmax.f32 %v341_v36, 1e-06  ;;  %v388_v47 = vmax.f32 %v356_v37, 1e-06  ;;  %v8991_v55 = vld [vmem:[#allocation5 + $0x1c0] sm:$0xff]   ;;  %v8994_v34 = vld [vmem:[#allocation5 + $0x148] sm:$0xff]  }
  0x44   :  { %v389_v48 = vmax.f32 %v357_v38, 1e-06  ;;  %v374_v49 = vmax.f32 %v342_v40, 1e-06  ;;  %v375_v50 = vmax.f32 %v343_v41, 1e-06  ;;  %v404_v54 = vmul.f32 %v372_v45, %v372_v45 }
  0x45   :  { %7316 = vmatpush3.bf16.msra.mxu0 %v8972_v14  ;;  %v405_v51 = vmul.f32 %v373_v46, %v373_v46  ;;  %v390_v52 = vmax.f32 %v358_v42, 1e-06  ;;  %v391_v53 = vmax.f32 %v359_v43, 1e-06  ;;  %v420_v58 = vmul.f32 %v388_v47, %v388_v47  ;;  %v8995_v37 = vld [vmem:[#allocation5 + $0x1c8] sm:$0xff]   ;;  %v8998_v40 = vld [vmem:[#allocation5 + $0x150] sm:$0xff]  }
  0x46   :  { %7338 = vmatpush3.bf16.msra.mxu1 %v8973_v15  ;;  %7317 = vmatprep.subr.bf16.mxu0 %v8974_v16  ;;  %v421_v56 = vmul.f32 %v389_v48, %v389_v48  ;;  %v407_v57 = vmul.f32 %v375_v50, %v375_v50  ;;  %v406_v59 = vmul.f32 %v374_v49, %v374_v49  ;;  %v8996_v38 = vld [vmem:[#allocation5 + $0x108] sm:$0xff]   ;;  %v8999_v41 = vld [vmem:[#allocation5 + $0x1d0] sm:$0xff]  }
  0x47   :  { %7339 = vmatprep.subr.bf16.mxu1 %v8975_v17  ;;  %v437_v60 = vmul.f32 %v405_v51, %v373_v46  ;;  %v423_v61 = vmul.f32 %v391_v53, %v391_v53  ;;  %v436_v62 = vmul.f32 %v404_v54, %v372_v45  ;;  %v422_v63 = vmul.f32 %v390_v52, %v390_v52  ;;  %v8997_v39 = vld [vmem:[#allocation5 + $0x188] sm:$0xff]   ;;  %v9000_v42 = vld [vmem:[#allocation5 + $0x110] sm:$0xff]   ;;  %v9003_v45 = vld [vmem:[#allocation5 + $0x1d8] sm:$0xff]  }
  0x48   :  { %v453_v0 = vmul.f32 %v421_v56, %v389_v48  ;;  %v439_v1 = vmul.f32 %v407_v57, %v375_v50  ;;  %v452_v2 = vmul.f32 %v420_v58, %v388_v47  ;;  %v438_v3 = vmul.f32 %v406_v59, %v374_v49  ;;  %v9001_v43 = vld [vmem:[#allocation5 + $0x190] sm:$0xff]   ;;  %v9004_v46 = vld [vmem:[#allocation5 + $0x118] sm:$0xff]   ;;  %v9006_v48 = vld [vmem:[#allocation5 + $0x160] sm:$0xff]  }
  0x49   :  { %7318 = vmatpush3.bf16.msra.mxu0 %v8976_v18  ;;  %v469_v4 = vpack.c.bf16 %v437_v60, %v437_v60  ;;  %v455_v5 = vmul.f32 %v423_v61, %v391_v53  ;;  %v468_v6 = vpack.c.bf16 %v436_v62, %v436_v62  ;;  %v454_v7 = vmul.f32 %v422_v63, %v390_v52  ;;  %v9005_v47 = vld [vmem:[#allocation5 + $0x198] sm:$0xff]   ;;  %v9007_v49 = vld [vmem:[#allocation5 + $0x1e0] sm:$0xff]   ;;  %v9010_v52 = vld [vmem:[#allocation5 + $0x168] sm:$0xff]  }
  0x4a   :  { %7340 = vmatpush3.bf16.msra.mxu1 %v8977_v19  ;;  %7319 = vmatprep.subr.bf16.mxu0 %v8978_v20  ;;  %v485_v8 = vpack.c.bf16 %v453_v0, %v453_v0  ;;  %v471_v9 = vpack.c.bf16 %v439_v1, %v439_v1  ;;  %v484_v10 = vpack.c.bf16 %v452_v2, %v452_v2  ;;  %v9008_v50 = vld [vmem:[#allocation5 + $0x120] sm:$0xff]   ;;  %v9011_v53 = vld [vmem:[#allocation5 + $0x1e8] sm:$0xff]   ;;  %v9014_v56 = vld [vmem:[#allocation5 + $0x170] sm:$0xff]  }
  0x4b   :  { %7341 = vmatprep.subr.bf16.mxu1 %v8979_v21  ;;  %v470_v11 = vpack.c.bf16 %v438_v3, %v438_v3  ;;  %v487_v12 = vpack.c.bf16 %v455_v5, %v455_v5  ;;  %v486_v13 = vpack.c.bf16 %v454_v7, %v454_v7  ;;  %v533_v14 = vunpack.c.l.b16 %v469_v4  ;;  %v9009_v51 = vld [vmem:[#allocation5 + $0x1a0] sm:$0xff]   ;;  %v9012_v54 = vld [vmem:[#allocation5 + $0x128] sm:$0xff]   ;;  %v326_v57 = vld [vmem:[#allocation2 + $0x10] sm:$0x11] }
  0x4c   :  { %v549_v15 = vunpack.c.l.b16 %v485_v8  ;;  %v532_v16 = vunpack.c.l.b16 %v468_v6  ;;  %v548_v17 = vunpack.c.l.b16 %v484_v10  ;;  %v535_v18 = vunpack.c.l.b16 %v471_v9  ;;  %v334_v58 = vld [vmem:[#allocation2 + $0x50] sm:$0x11]  ;;  %v327_v59 = vld [vmem:[#allocation2 + $0x18] sm:$0x11] }
  0x4d   :  { %7320 = vmatpush3.bf16.msra.mxu0 %v8980_v22  ;;  %v551_v19 = vunpack.c.l.b16 %v487_v12  ;;  %v534_v20 = vunpack.c.l.b16 %v470_v11  ;;  %v550_v21 = vunpack.c.l.b16 %v486_v13  ;;  %v344_v60 = vunpack.c.l.bf16 %v326_v57  ;;  %v335_v0 = vld [vmem:[#allocation2 + $0x58] sm:$0x11]  ;;  %v9015_v1 = vld [vmem:[#allocation5 + $0x1f0] sm:$0xff]  }
  0x4e   :  { %7342 = vmatpush3.bf16.msra.mxu1 %v8981_v23  ;;  %7321 = vmatprep.subr.bf16.mxu0 %v8982_v24  ;;  %v567_v22 = vrot.slane %v549_v15, 7  ;;  %v564_v23 = vrot.slane %v548_v17, 7  ;;  %v345_v61 = vunpack.c.h.bf16 %v326_v57  ;;  %v360_v62 = vunpack.c.l.bf16 %v334_v58  ;;  %v9016_v6 = vld [vmem:[#allocation5 + $0x130] sm:$0xff]   ;;  %v9024_v57 = vld [vmem:[#allocation5 + $0x200] sm:$0xff]  }
  0x4f   :  { %7343 = vmatprep.subr.bf16.mxu1 %v8983_v25  ;;  %v571_v24 = vrot.slane %v551_v19, 7  ;;  %v569_v25 = vrot.slane %v550_v21, 7  ;;  %v361_v63 = vunpack.c.h.bf16 %v334_v58  ;;  %v346_v2 = vunpack.c.l.bf16 %v327_v59  ;;  %v9017_v13 = vld [vmem:[#allocation5 + $0x1b0] sm:$0xff]  }
  0x50   :  { %v347_v3 = vunpack.c.h.bf16 %v327_v59  ;;  %v362_v4 = vunpack.c.l.bf16 %v335_v0  ;;  %v363_v5 = vunpack.c.h.bf16 %v335_v0  ;;  %v376_v7 = vmax.f32 %v344_v60, 1e-06  ;;  %v9025_v0 = vld [vmem:[#allocation5 + $0x280] sm:$0xff]  }
  0x51   :  { %7322 = vmatpush3.bf16.msra.mxu0 %v8984_v26  ;;  %v8992_v26 = vld [vmem:[#allocation5 + $0x100] sm:$0xff]   ;;  %v570_v33 = vsel %vm565_vm0, %v569_v25, %v534_v20  ;;  %v377_v8 = vmax.f32 %v345_v61, 1e-06  ;;  %v392_v9 = vmax.f32 %v360_v62, 1e-06 }
  0x52   :  { %7344 = vmatpush3.bf16.msra.mxu1 %v8985_v27  ;;  %7323 = vmatprep.subr.bf16.mxu0 %v8986_v28  ;;  %v568_v27 = vsel %vm565_vm0, %v567_v22, %v533_v14  ;;  %v566_v28 = vsel %vm565_vm0, %v564_v23, %v532_v16  ;;  %v599_v36 = vpack.c.b16 %v570_v33, %v570_v33  ;;  %v393_v10 = vmax.f32 %v361_v63, 1e-06  ;;  %v9018_v14 = vld [vmem:[#allocation5 + $0x178] sm:$0xff]  }
  0x53   :  { %7345 = vmatprep.subr.bf16.mxu1 %v8987_v29  ;;  %v8993_v29 = vld [vmem:[#allocation5 + $0x180] sm:$0xff]   ;;  %v597_v32 = vpack.c.b16 %v566_v28, %v566_v28  ;;  %v378_v11 = vmax.f32 %v346_v2, 1e-06  ;;  %v379_v12 = vmax.f32 %v347_v3, 1e-06  ;;  %v409_v15 = vmul.f32 %v377_v8, %v377_v8  ;;  %v9019_v22 = vld [vmem:[#allocation5 + $0x1f8] sm:$0xff]  }
  0x54   :  { %v394_v16 = vmax.f32 %v362_v4, 1e-06  ;;  %v395_v17 = vmax.f32 %v363_v5, 1e-06  ;;  %v425_v19 = vmul.f32 %v393_v10, %v393_v10  ;;  %v424_v21 = vmul.f32 %v392_v9, %v392_v9  ;;  %v9026_v2 = vld [vmem:[#allocation5 + $0x248] sm:$0xff]  }
  0x55   :  { %7324 = vmatpush3.bf16.msra.mxu0 %v8988_v30  ;;  %v598_v30 = vpack.c.b16 %v568_v27, %v568_v27  ;;  %v411_v20 = vmul.f32 %v379_v12, %v379_v12  ;;  %v441_v23 = vmul.f32 %v409_v15, %v377_v8  ;;  %v9020_v27 = vld [vmem:[#allocation5 + $0x138] sm:$0xff]   ;;  %v9027_v4 = vld [vmem:[#allocation5 + $0x2c8] sm:$0xff]   ;;  %v9030_v8 = vld [vmem:[#allocation5 + $0x250] sm:$0xff]  }
  0x56   :  { %7346 = vmatpush3.bf16.msra.mxu1 %v8989_v31  ;;  %7353 = vmatprep.subr.bf16.mxu0 %v8990_v44  ;;  %v572_v31 = vsel %vm565_vm0, %v571_v24, %v535_v18  ;;  %v9002_v44 = vld [vmem:[#allocation5 + $0x158] sm:$0xff]   ;;  %v408_v18 = vmul.f32 %v376_v7, %v376_v7  ;;  %v427_v24 = vmul.f32 %v395_v17, %v395_v17 }
  0x57   :  { %7375 = vmatprep.subr.bf16.mxu1 %v8991_v55  ;;  %v600_v35 = vpack.c.b16 %v572_v31, %v572_v31  ;;  %1429 = vmatprep.mubr.bf16.mxu0 %v598_v30  ;;  %v9013_v55 = vld [vmem:[#allocation5 + $0x1a8] sm:$0xff]   ;;  %v457_v28 = vmul.f32 %v425_v19, %v393_v10  ;;  %v456_v30 = vmul.f32 %v424_v21, %v392_v9  ;;  %v9031_v9 = vld [vmem:[#allocation5 + $0x2d0] sm:$0xff]   ;;  %v9037_v15 = vld [vmem:[#allocation5 + $0x298] sm:$0xff]  }
  0x58   :  { %1430 = vmatmul.mubr.bf16.vlgmr.msra.gmra.mrb[0].mxu0 %v597_v32  ;;  %v440_v25 = vmul.f32 %v408_v18, %v376_v7  ;;  %v426_v31 = vmul.f32 %v394_v16, %v394_v16  ;;  %v9021_v32 = vld [vmem:[#allocation5 + $0x1b8] sm:$0xff]   ;;  %v473_v33 = vpack.c.bf16 %v441_v23, %v441_v23  ;;  %v9029_v7 = vld [vmem:[#allocation5 + $0x288] sm:$0xff]   ;;  %v9032_v10 = vld [vmem:[#allocation5 + $0x210] sm:$0xff]  }
  0x59   :  { %1469 = vmatprep.mubr.bf16.mxu1 %v600_v35  ;;  %7354 = vmatpush3.bf16.msra.mxu0 %v8992_v26  ;;  %v410_v26 = vmul.f32 %v378_v11, %v378_v11  ;;  %v9040_v18 = vld [vmem:[#allocation5 + $0x220] sm:$0xff]   ;;  %v9043_v21 = vld [vmem:[#allocation5 + $0x2e8] sm:$0xff]  }
  0x5a   :  { %1470 = vmatmul.mubr.bf16.vlgmr.msra.gmra.mrb[0].mxu1 %v599_v36  ;;  %7355 = vmatprep.subr.bf16.mxu0 %v8994_v34  ;;  %v459_v34 = vmul.f32 %v427_v24, %v395_v17  ;;  %v472_v35 = vpack.c.bf16 %v440_v25, %v440_v25  ;;  %v9039_v17 = vld [vmem:[#allocation5 + $0x2e0] sm:$0xff]  }
  0x5b   :  { %7376 = vmatpush3.bf16.msra.mxu1 %v8993_v29  ;;  %v443_v29 = vmul.f32 %v411_v20, %v379_v12  ;;  %v442_v36 = vmul.f32 %v410_v26, %v378_v11  ;;  %v9033_v11 = vld [vmem:[#allocation5 + $0x290] sm:$0xff]   ;;  %v9034_v12 = vld [vmem:[#allocation5 + $0x258] sm:$0xff]   ;;  %v9041_v19 = vld [vmem:[#allocation5 + $0x2a0] sm:$0xff]  }
  0x5c   :  { %7377 = vmatprep.subr.bf16.mxu1 %v8995_v37  ;;  %v489_v37 = vpack.c.bf16 %v457_v28, %v457_v28  ;;  %v9042_v20 = vld [vmem:[#allocation5 + $0x268] sm:$0xff]   ;;  %v328_v23 = vld [vmem:[#allocation2 + $0x20] sm:$0x11] }
  0x5d   :  { %7356 = vmatpush3.bf16.msra.mxu0 %v8996_v38  ;;  %v475_v38 = vpack.c.bf16 %v443_v29, %v443_v29  ;;  %v336_v24 = vld [vmem:[#allocation2 + $0x60] sm:$0x11]  ;;  %v348_v25 = vunpack.c.l.bf16 %v328_v23  ;;  %v349_v26 = vunpack.c.h.bf16 %v328_v23  ;;  %v337_v28 = vld [vmem:[#allocation2 + $0x68] sm:$0x11] }
  0x5e   :  { %7357 = vmatprep.subr.bf16.mxu0 %v8998_v40  ;;  %v9022_v40 = vld [vmem:[#allocation5 + $0x240] sm:$0xff]   ;;  %v9045_v29 = vld [vmem:[#allocation5 + $0x2a8] sm:$0xff]  }
  0x5f   :  { %7378 = vmatpush3.bf16.msra.mxu1 %v8997_v39  ;;  %v488_v39 = vpack.c.bf16 %v456_v30, %v456_v30  ;;  %v9046_v30 = vld [vmem:[#allocation5 + $0x270] sm:$0xff]  }
  0x60   :  { %7379 = vmatprep.subr.bf16.mxu1 %v8999_v41  ;;  %v537_v41 = vunpack.c.l.b16 %v473_v33 }
  0x61   :  { %7358 = vmatpush3.bf16.msra.mxu0 %v9000_v42  ;;  %v491_v42 = vpack.c.bf16 %v459_v34, %v459_v34 }
  0x62   :  { %7359 = vmatprep.subr.bf16.mxu0 %v9002_v44  ;;  %v9023_v44 = vld [vmem:[#allocation5 + $0x2c0] sm:$0xff]  }
  0x63   :  { %7380 = vmatpush3.bf16.msra.mxu1 %v9001_v43  ;;  %v458_v43 = vmul.f32 %v426_v31, %v394_v16  ;;  %v9038_v16 = vld [vmem:[#allocation5 + $0x260] sm:$0xff]   ;;  %v364_v31 = vunpack.c.l.bf16 %v336_v24 }
  0x64   :  { %7381 = vmatprep.subr.bf16.mxu1 %v9003_v45  ;;  %v553_v45 = vunpack.c.l.b16 %v489_v37  ;;  %v381_v37 = vmax.f32 %v349_v26, 1e-06  ;;  %v9056_v26 = vld [vmem:[#allocation5 + $0x300] sm:$0xff]  }
  0x65   :  { %7360 = vmatpush3.bf16.msra.mxu0 %v9004_v46  ;;  %v536_v46 = vunpack.c.l.b16 %v472_v35  ;;  %v9047_v35 = vld [vmem:[#allocation5 + $0x2f0] sm:$0xff]  }
  0x66   :  { %7361 = vmatprep.subr.bf16.mxu0 %v9006_v48  ;;  %v474_v48 = vpack.c.bf16 %v442_v36, %v442_v36  ;;  %v380_v36 = vmax.f32 %v348_v25, 1e-06 }
  0x67   :  { %7382 = vmatpush3.bf16.msra.mxu1 %v9005_v47  ;;  %v552_v47 = vunpack.c.l.b16 %v488_v39  ;;  %v367_v39 = vunpack.c.h.bf16 %v337_v28 }
  0x68   :  { %7383 = vmatprep.subr.bf16.mxu1 %v9007_v49  ;;  %v539_v49 = vunpack.c.l.b16 %v475_v38  ;;  %v366_v38 = vunpack.c.l.bf16 %v337_v28 }
  0x69   :  { %7362 = vmatpush3.bf16.msra.mxu0 %v9008_v50  ;;  %v555_v50 = vunpack.c.l.b16 %v491_v42 }
  0x6a   :  { %7363 = vmatprep.subr.bf16.mxu0 %v9010_v52  ;;  %v575_v52 = vrot.slane %v553_v45, 7  ;;  %v398_v45 = vmax.f32 %v366_v38, 1e-06  ;;  %v9864_v38 = vld [vmem:[#allocation5 + $0x308] sm:$0xff]  }
  0x6b   :  { %7384 = vmatpush3.bf16.msra.mxu1 %v9009_v51  ;;  %v490_v51 = vpack.c.bf16 %v458_v43, %v458_v43  ;;  %v413_v43 = vmul.f32 %v381_v37, %v381_v37 }
  0x6c   :  { %7385 = vmatprep.subr.bf16.mxu1 %v9011_v53  ;;  %v573_v53 = vrot.slane %v552_v47, 7  ;;  %v576_v58 = vsel %vm565_vm0, %v575_v52, %v537_v41  ;;  %v9048_v47 = vld [vmem:[#allocation5 + $0x230] sm:$0xff]   ;;  %v9050_v52 = vld [vmem:[#allocation5 + $0x278] sm:$0xff]  }
  0x6d   :  { %7364 = vmatpush3.bf16.msra.mxu0 %v9012_v54  ;;  %v579_v54 = vrot.slane %v555_v50, 7  ;;  %v602_v60 = vpack.c.b16 %v576_v58, %v576_v58 }
  0x6e   :  { %7365 = vmatprep.subr.bf16.mxu0 %v9014_v56  ;;  %v554_v56 = vunpack.c.l.b16 %v490_v51  ;;  %v574_v59 = vsel %vm565_vm0, %v573_v53, %v536_v46  ;;  %v399_v46 = vmax.f32 %v367_v39, 1e-06  ;;  %v445_v53 = vmul.f32 %v413_v43, %v381_v37  ;;  %v9059_v37 = vld [vmem:[#allocation5 + $0x3c8] sm:$0xff]   ;;  %v9065_v43 = vld [vmem:[#allocation5 + $0x390] sm:$0xff]  }
  0x6f   :  { %7386 = vmatpush3.bf16.msra.mxu1 %v9013_v55  ;;  %v538_v55 = vunpack.c.l.b16 %v474_v48  ;;  %v580_v61 = vsel %vm565_vm0, %v579_v54, %v539_v49  ;;  %v601_v62 = vpack.c.b16 %v574_v59, %v574_v59  ;;  %1509 = vmatprep.mubr.bf16.mxu0 %v602_v60  ;;  %v412_v49 = vmul.f32 %v380_v36, %v380_v36  ;;  %v9061_v39 = vld [vmem:[#allocation5 + $0x388] sm:$0xff]  }
  0x70   :  { %7387 = vmatprep.subr.bf16.mxu1 %v9015_v1  ;;  %v577_v63 = vrot.slane %v554_v56, 7  ;;  %v604_v1 = vpack.c.b16 %v580_v61, %v580_v61  ;;  %v430_v56 = vmul.f32 %v398_v45, %v398_v45 }
  0x71   :  { %7366 = vmatpush3.bf16.msra.mxu0 %v9016_v6  ;;  %v9028_v6 = vld [vmem:[#allocation5 + $0x208] sm:$0xff]   ;;  %v444_v59 = vmul.f32 %v412_v49, %v380_v36  ;;  %v9071_v49 = vld [vmem:[#allocation5 + $0x3e0] sm:$0xff]  }
  0x72   :  { %7367 = vmatprep.subr.bf16.mxu0 %v9018_v14  ;;  %v578_v3 = vsel %vm565_vm0, %v577_v63, %v538_v55  ;;  %1549 = vmatprep.mubr.bf16.mxu1 %v604_v1  ;;  %v9036_v14 = vld [vmem:[#allocation5 + $0x218] sm:$0xff]   ;;  %v431_v55 = vmul.f32 %v399_v46, %v399_v46  ;;  %v477_v63 = vpack.c.bf16 %v445_v53, %v445_v53  ;;  %v9075_v53 = vld [vmem:[#allocation5 + $0x3e8] sm:$0xff]  }
  0x73   :  { %7388 = vmatpush3.bf16.msra.mxu1 %v9017_v13  ;;  %v603_v5 = vpack.c.b16 %v578_v3, %v578_v3  ;;  %v9035_v13 = vld [vmem:[#allocation5 + $0x2d8] sm:$0xff]  }
  0x74   :  { %7389 = vmatprep.subr.bf16.mxu1 %v9019_v22  ;;  %v9044_v22 = vld [vmem:[#allocation5 + $0x228] sm:$0xff]   ;;  %v463_v1 = vmul.f32 %v431_v55, %v399_v46  ;;  %v9052_v3 = vld [vmem:[#allocation5 + $0x238] sm:$0xff]  }
  0x75   :  { %7368 = vmatpush3.bf16.msra.mxu0 %v9020_v27  ;;  %v329_v27 = vld [vmem:[#allocation2 + $0x28] sm:$0x11]  ;;  %v9874_v46 = vld [vmem:[#allocation5 + $0x318] sm:$0xff]  }
  0x76   :  { %7397 = vmatprep.subr.bf16.mxu0 %v9022_v40  ;;  %v350_v33 = vunpack.c.l.bf16 %v329_v27  ;;  %v351_v34 = vunpack.c.h.bf16 %v329_v27  ;;  %v396_v40 = vmax.f32 %v364_v31, 1e-06  ;;  %v9077_v55 = vld [vmem:[#allocation5 + $0x3a8] sm:$0xff]  }
  0x77   :  { %7390 = vmatpush3.bf16.msra.mxu1 %v9021_v32  ;;  %v365_v32 = vunpack.c.h.bf16 %v336_v24 }
  0x78   :  { %7419 = vmatprep.subr.bf16.mxu1 %v9023_v44  ;;  %1510 = vmatmul.mubr.bf16.vlgmr.msra.gmra.mrb[4].mxu0 %v601_v62  ;;  %v382_v42 = vmax.f32 %v350_v33, 1e-06  ;;  %v383_v44 = vmax.f32 %v351_v34, 1e-06  ;;  %v428_v50 = vmul.f32 %v396_v40, %v396_v40  ;;  %v9051_v62 = vld [vmem:[#allocation5 + $0x2f8] sm:$0xff]   ;;  %v9058_v34 = vld [vmem:[#allocation5 + $0x348] sm:$0xff]  }
  0x79   :  { %7398 = vmatpush3.bf16.msra.mxu0 %v9024_v57  ;;  %v397_v41 = vmax.f32 %v365_v32, 1e-06  ;;  %v9049_v57 = vld [vmem:[#allocation5 + $0x2b0] sm:$0xff]  }
  0x7a   :  { %1550 = vmatmul.mubr.bf16.vlgmr.msra.gmra.mrb[4].mxu1 %v603_v5  ;;  %7399 = vmatprep.subr.bf16.mxu0 %v9026_v2  ;;  %v414_v51 = vmul.f32 %v382_v42, %v382_v42  ;;  %v415_v54 = vmul.f32 %v383_v44, %v383_v44  ;;  %v460_v60 = vmul.f32 %v428_v50, %v396_v40  ;;  %v9866_v40 = vld [vmem:[#allocation5 + $0x350] sm:$0xff]   ;;  %v9880_v50 = vld [vmem:[#allocation5 + $0x320] sm:$0xff]  }
  0x7b   :  { %7420 = vmatpush3.bf16.msra.mxu1 %v9025_v0  ;;  %v429_v48 = vmul.f32 %v397_v41, %v397_v41  ;;  %v462_v2 = vmul.f32 %v430_v56, %v398_v45  ;;  %v476_v5 = vpack.c.bf16 %v444_v59, %v444_v59  ;;  %v9067_v45 = vld [vmem:[#allocation5 + $0x3d8] sm:$0xff]   ;;  %v9888_v56 = vld [vmem:[#allocation5 + $0x370] sm:$0xff]  }
  0x7c   :  { %7421 = vmatprep.subr.bf16.mxu1 %v9027_v4  ;;  %v446_v61 = vmul.f32 %v414_v51, %v382_v42  ;;  %v447_v0 = vmul.f32 %v415_v54, %v383_v44  ;;  %v9868_v42 = vld [vmem:[#allocation5 + $0x310] sm:$0xff]   ;;  %v9871_v44 = vld [vmem:[#allocation5 + $0x358] sm:$0xff]   ;;  %v9073_v51 = vld [vmem:[#allocation5 + $0x3a0] sm:$0xff]  }
  0x7d   :  { %7400 = vmatpush3.bf16.msra.mxu0 %v9028_v6  ;;  %v461_v58 = vmul.f32 %v429_v48, %v397_v41  ;;  %v492_v6 = vpack.c.bf16 %v460_v60, %v460_v60  ;;  %v9063_v41 = vld [vmem:[#allocation5 + $0x3d0] sm:$0xff]   ;;  %v9877_v48 = vld [vmem:[#allocation5 + $0x360] sm:$0xff]   ;;  %v9886_v54 = vld [vmem:[#allocation5 + $0x328] sm:$0xff]  }
  0x7e   :  { %7401 = vmatprep.subr.bf16.mxu0 %v9030_v8  ;;  %v479_v8 = vpack.c.bf16 %v447_v0, %v447_v0  ;;  %v338_v59 = vld [vmem:[#allocation2 + $0x70] sm:$0x11]  ;;  %v331_v60 = vld [vmem:[#allocation2 + $0x38] sm:$0x11] }
  0x7f   :  { %7422 = vmatpush3.bf16.msra.mxu1 %v9029_v7  ;;  %v493_v4 = vpack.c.bf16 %v461_v58, %v461_v58  ;;  %v478_v7 = vpack.c.bf16 %v446_v61, %v446_v61  ;;  %v330_v58 = vld [vmem:[#allocation2 + $0x30] sm:$0x11]  ;;  %v369_v0 = vunpack.c.h.bf16 %v338_v59 }
  0x80   :  { %7423 = vmatprep.subr.bf16.mxu1 %v9031_v9  ;;  %v495_v9 = vpack.c.bf16 %v463_v1, %v463_v1  ;;  %v352_v61 = vunpack.c.l.bf16 %v330_v58  ;;  %v339_v1 = vld [vmem:[#allocation2 + $0x78] sm:$0x11] }
  0x81   :  { %7402 = vmatpush3.bf16.msra.mxu0 %v9032_v10  ;;  %v494_v10 = vpack.c.bf16 %v462_v2, %v462_v2  ;;  %v9892_v2 = vld [vmem:[#allocation5 + $0x330] sm:$0xff]  }
  0x82   :  { %7403 = vmatprep.subr.bf16.mxu0 %v9034_v12  ;;  %v9053_v12 = vld [vmem:[#allocation5 + $0x2b8] sm:$0xff]  }
  0x83   :  { %7424 = vmatpush3.bf16.msra.mxu1 %v9033_v11  ;;  %v9054_v11 = vld [vmem:[#allocation5 + $0x340] sm:$0xff]  }
  0x84   :  { %7425 = vmatprep.subr.bf16.mxu1 %v9035_v13  ;;  %v541_v13 = vunpack.c.l.b16 %v477_v63  ;;  %v368_v63 = vunpack.c.l.bf16 %v338_v59 }
  0x85   :  { %7404 = vmatpush3.bf16.msra.mxu0 %v9036_v14  ;;  %v557_v14 = vunpack.c.l.b16 %v493_v4  ;;  %v355_v4 = vunpack.c.h.bf16 %v331_v60 }
  0x86   :  { %7405 = vmatprep.subr.bf16.mxu0 %v9038_v16  ;;  %v556_v16 = vunpack.c.l.b16 %v492_v6  ;;  %v371_v6 = vunpack.c.h.bf16 %v339_v1 }
  0x87   :  { %7426 = vmatpush3.bf16.msra.mxu1 %v9037_v15  ;;  %v540_v15 = vunpack.c.l.b16 %v476_v5  ;;  %v370_v5 = vunpack.c.l.bf16 %v339_v1 }
  0x88   :  { %7427 = vmatprep.subr.bf16.mxu1 %v9039_v17  ;;  %v543_v17 = vunpack.c.l.b16 %v479_v8  ;;  %v581_v23 = vrot.slane %v556_v16, 7  ;;  %v9894_v8 = vld [vmem:[#allocation5 + $0x378] sm:$0xff]  }
  0x89   :  { %7406 = vmatpush3.bf16.msra.mxu0 %v9040_v18  ;;  %v559_v18 = vunpack.c.l.b16 %v495_v9  ;;  %v384_v9 = vmax.f32 %v352_v61, 1e-06 }
  0x8a   :  { %7407 = vmatprep.subr.bf16.mxu0 %v9042_v20  ;;  %v558_v20 = vunpack.c.l.b16 %v494_v10  ;;  %v582_v28 = vsel %vm565_vm0, %v581_v23, %v540_v15  ;;  %v387_v15 = vmax.f32 %v355_v4, 1e-06 }
  0x8b   :  { %7428 = vmatpush3.bf16.msra.mxu1 %v9041_v19  ;;  %v542_v19 = vunpack.c.l.b16 %v478_v7  ;;  %v587_v24 = vrot.slane %v559_v18, 7  ;;  %v605_v32 = vpack.c.b16 %v582_v28, %v582_v28  ;;  %v9081_v7 = vld [vmem:[#allocation5 + $0x3b0] sm:$0xff]   ;;  %v403_v18 = vmax.f32 %v371_v6, 1e-06 }
  0x8c   :  { %7429 = vmatprep.subr.bf16.mxu1 %v9043_v21  ;;  %v9055_v21 = vld [vmem:[#allocation5 + $0x3c0] sm:$0xff]   ;;  %v585_v25 = vrot.slane %v558_v20, 7  ;;  %v9898_v20 = vld [vmem:[#allocation5 + $0x338] sm:$0xff]  }
  0x8d   :  { %7408 = vmatpush3.bf16.msra.mxu0 %v9044_v22  ;;  %v583_v22 = vrot.slane %v557_v14, 7  ;;  %v588_v31 = vsel %vm565_vm0, %v587_v24, %v543_v17  ;;  %v402_v17 = vmax.f32 %v370_v5, 1e-06 }
  0x8e   :  { %7409 = vmatprep.subr.bf16.mxu0 %v9046_v30  ;;  %v586_v33 = vsel %vm565_vm0, %v585_v25, %v542_v19  ;;  %v416_v19 = vmul.f32 %v384_v9, %v384_v9  ;;  %v9085_v25 = vld [vmem:[#allocation5 + $0x3b8] sm:$0xff]  }
  0x8f   :  { %7430 = vmatpush3.bf16.msra.mxu1 %v9045_v29  ;;  %v584_v27 = vsel %vm565_vm0, %v583_v22, %v541_v13  ;;  %v9057_v29 = vld [vmem:[#allocation5 + $0x380] sm:$0xff]   ;;  %v607_v36 = vpack.c.b16 %v586_v33, %v586_v33  ;;  %v401_v13 = vmax.f32 %v369_v0, 1e-06  ;;  %v419_v22 = vmul.f32 %v387_v15, %v387_v15 }
  0x90   :  { %7431 = vmatprep.subr.bf16.mxu1 %v9047_v35  ;;  %v606_v30 = vpack.c.b16 %v584_v27, %v584_v27  ;;  %v608_v35 = vpack.c.b16 %v588_v31, %v588_v31  ;;  %v435_v27 = vmul.f32 %v403_v18, %v403_v18  ;;  %v448_v28 = vmul.f32 %v416_v19, %v384_v9  ;;  %v9182_v0 = vld [vmem:[#allocation5 + $0x40] sm:$0xff]   ;;  %v9189_v19 = vld [vmem:[#allocation5 + $0x18] sm:$0xff]  }
  0x91   :  { %7410 = vmatpush3.bf16.msra.mxu0 %v9048_v47  ;;  %v9069_v47 = vld [vmem:[#allocation5 + $0x398] sm:$0xff]   ;;  %v451_v31 = vmul.f32 %v419_v22, %v387_v15  ;;  %v9185_v15 = vld [vmem:[#allocation5 + $0x8] sm:$0xff]   ;;  %v9191_v22 = vld [vmem:[#allocation5 + $0x20] sm:$0xff]  }
  0x92   :  { %7411 = vmatprep.subr.bf16.mxu0 %v9050_v52  ;;  %1589 = vmatprep.mubr.bf16.mxu0 %v606_v30  ;;  %v9883_v52 = vld [vmem:[#allocation5 + $0x368] sm:$0xff]  }
  0x93   :  { %7432 = vmatpush3.bf16.msra.mxu1 %v9049_v57  ;;  %1629 = vmatprep.mubr.bf16.mxu1 %v608_v35  ;;  %v9079_v57 = vld [vmem:[#allocation5 + $0x3f0] sm:$0xff]   ;;  %v467_v35 = vmul.f32 %v435_v27, %v403_v18  ;;  %v9188_v18 = vld [vmem:[#allocation5 + $0x58] sm:$0xff]  }
  0x94   :  { %7433 = vmatprep.subr.bf16.mxu1 %v9051_v62  ;;  %v353_v62 = vunpack.c.h.bf16 %v330_v58  ;;  %v9910_v27 = vld [vmem:[#allocation5 + $0x78] sm:$0xff]  }
  0x95   :  { %7412 = vmatpush3.bf16.msra.mxu0 %v9052_v3  ;;  %v354_v3 = vunpack.c.l.bf16 %v331_v60 }
  0x96   :  { %7441 = vmatprep.subr.bf16.mxu0 %v9054_v11  ;;  %v385_v10 = vmax.f32 %v353_v62, 1e-06  ;;  %v400_v11 = vmax.f32 %v368_v63, 1e-06 }
  0x97   :  { %7434 = vmatpush3.bf16.msra.mxu1 %v9053_v12  ;;  %v9083_v12 = vld [vmem:[#allocation5 + $0x3f8] sm:$0xff]   ;;  %v386_v14 = vmax.f32 %v354_v3, 1e-06 }
  0x98   :  { %7463 = vmatprep.subr.bf16.mxu1 %v9055_v21  ;;  %1590 = vmatmul.mubr.bf16.vlgmr.msra.gmra.mrb[8].mxu0 %v605_v32  ;;  %v417_v16 = vmul.f32 %v385_v10, %v385_v10  ;;  %v433_v21 = vmul.f32 %v401_v13, %v401_v13  ;;  %v432_v23 = vmul.f32 %v400_v11, %v400_v11 }
  0x99   :  { %7442 = vmatpush3.bf16.msra.mxu0 %v9056_v26  ;;  %v418_v24 = vmul.f32 %v386_v14, %v386_v14 }
  0x9a   :  { %1630 = vmatmul.mubr.bf16.vlgmr.msra.gmra.mrb[8].mxu1 %v607_v36  ;;  %7443 = vmatprep.subr.bf16.mxu0 %v9058_v34  ;;  %v449_v26 = vmul.f32 %v417_v16, %v385_v10  ;;  %v465_v30 = vmul.f32 %v433_v21, %v401_v13  ;;  %v464_v32 = vmul.f32 %v432_v23, %v400_v11  ;;  %v9183_v13 = vld [vmem:[#allocation5] sm:$0xff]   ;;  %v9186_v16 = vld [vmem:[#allocation5 + $0x50] sm:$0xff]   ;;  %v9192_v23 = vld [vmem:[#allocation5 + $0x68] sm:$0xff]  }
  0x9b   :  { %7464 = vmatpush3.bf16.msra.mxu1 %v9057_v29  ;;  %v434_v29 = vmul.f32 %v402_v17, %v402_v17  ;;  %v450_v33 = vmul.f32 %v418_v24, %v386_v14  ;;  %v480_v36 = vpack.c.bf16 %v448_v28, %v448_v28  ;;  %v9184_v14 = vld [vmem:[#allocation5 + $0x48] sm:$0xff]   ;;  %v9190_v21 = vld [vmem:[#allocation5 + $0x60] sm:$0xff]   ;;  %v9913_v28 = vld [vmem:[#allocation5 + $0x38] sm:$0xff]  }
  0x9c   :  { %7465 = vmatprep.subr.bf16.mxu1 %v9059_v37  ;;  %v481_v34 = vpack.c.bf16 %v449_v26, %v449_v26  ;;  %v497_v37 = vpack.c.bf16 %v465_v30, %v465_v30  ;;  %v9193_v24 = vld [vmem:[#allocation5 + $0x28] sm:$0xff]   ;;  %v9907_v26 = vld [vmem:[#allocation5 + $0x30] sm:$0xff]   ;;  %v9086_v30 = vld [vmem:[#allocation7] sm:$0xff]  }
  0x9d   :  { %7444 = vmatpush3.bf16.msra.mxu0 %v9864_v38 }
  0x9e   :  { %7445 = vmatprep.subr.bf16.mxu0 %v9866_v40 }
  0x9f   :  { %7466 = vmatpush3.bf16.msra.mxu1 %v9061_v39  ;;  %v483_v39 = vpack.c.bf16 %v451_v31, %v451_v31  ;;  %v11947_v31 = vmov 0.0  }
  0xa0   :  { %7467 = vmatprep.subr.bf16.mxu1 %v9063_v41  ;;  %v496_v41 = vpack.c.bf16 %v464_v32, %v464_v32  ;;  %v9087_v32 = vld [vmem:[#allocation7 + $0x8] sm:$0xff]  }
  0xa1   :  { %7446 = vmatpush3.bf16.msra.mxu0 %v9868_v42  ;;  %v547_v58 = vunpack.c.l.b16 %v483_v39 }
  0xa2   :  { %7447 = vmatprep.subr.bf16.mxu0 %v9871_v44 }
  0xa3   :  { %7468 = vmatpush3.bf16.msra.mxu1 %v9065_v43  ;;  %v466_v43 = vmul.f32 %v434_v29, %v402_v17  ;;  %v9187_v17 = vld [vmem:[#allocation5 + $0x10] sm:$0xff]   ;;  %v9916_v29 = vld [vmem:[#allocation5 + $0x140] sm:$0xff]  }
  0xa4   :  { %7469 = vmatprep.subr.bf16.mxu1 %v9067_v45  ;;  %v545_v45 = vunpack.c.l.b16 %v481_v34  ;;  %v9089_v34 = vld [vmem:[#allocation7 + $0x18] sm:$0xff]  }
  0xa5   :  { %7448 = vmatpush3.bf16.msra.mxu0 %v9874_v46 }
  0xa6   :  { %7449 = vmatprep.subr.bf16.mxu0 %v9877_v48 }
  0xa7   :  { %7470 = vmatpush3.bf16.msra.mxu1 %v9069_v47  ;;  %v499_v47 = vpack.c.bf16 %v467_v35, %v467_v35 }
  0xa8   :  { %7471 = vmatprep.subr.bf16.mxu1 %v9071_v49  ;;  %v482_v49 = vpack.c.bf16 %v450_v33, %v450_v33  ;;  %v9088_v33 = vld [vmem:[#allocation7 + $0x10] sm:$0xff]  }
  0xa9   :  { %7450 = vmatpush3.bf16.msra.mxu0 %v9880_v50  ;;  %v563_v59 = vunpack.c.l.b16 %v499_v47 }
  0xaa   :  { %7451 = vmatprep.subr.bf16.mxu0 %v9883_v52  ;;  %v546_v62 = vunpack.c.l.b16 %v482_v49 }
  0xab   :  { %7472 = vmatpush3.bf16.msra.mxu1 %v9073_v51  ;;  %v561_v51 = vunpack.c.l.b16 %v497_v37  ;;  %v595_v1 = vrot.slane %v563_v59, 7  ;;  %v1839_v59 = vld [vmem:[#allocation2 + $0x40] sm:$0x11] }
  0xac   :  { %7473 = vmatprep.subr.bf16.mxu1 %v9075_v53  ;;  %v544_v53 = vunpack.c.l.b16 %v480_v36 }
  0xad   :  { %7452 = vmatpush3.bf16.msra.mxu0 %v9886_v54  ;;  %v591_v60 = vrot.slane %v561_v51, 7  ;;  %v9090_v51 = vld [vmem:[#allocation7 + $0x20] sm:$0xff]  }
  0xae   :  { %7453 = vmatprep.subr.bf16.mxu0 %v9888_v56 }
  0xaf   :  { %7474 = vmatpush3.bf16.msra.mxu1 %v9077_v55  ;;  %v560_v55 = vunpack.c.l.b16 %v496_v41  ;;  %v592_v3 = vsel %vm565_vm0, %v591_v60, %v545_v45 }
  0xb0   :  { %7475 = vmatprep.subr.bf16.mxu1 %v9079_v57  ;;  %v498_v57 = vpack.c.bf16 %v466_v43, %v466_v43  ;;  %v610_v6 = vpack.c.b16 %v592_v3, %v592_v3  ;;  %v9092_v3 = vld [vmem:[#allocation7 + $0x30] sm:$0xff]  }
  0xb1   :  { %7454 = vmatpush3.bf16.msra.mxu0 %v9892_v2  ;;  %v589_v61 = vrot.slane %v560_v55, 7  ;;  %v1831_v55 = vld [vmem:[#allocation2] sm:$0x11] }
  0xb2   :  { %7455 = vmatprep.subr.bf16.mxu0 %v9894_v8  ;;  %v562_v63 = vunpack.c.l.b16 %v498_v57  ;;  %1669 = vmatprep.mubr.bf16.mxu0 %v610_v6  ;;  %v1847_v60 = vunpack.c.l.bf16 %v1831_v55 }
  0xb3   :  { %7476 = vmatpush3.bf16.msra.mxu1 %v9081_v7  ;;  %v590_v4 = vsel %vm565_vm0, %v589_v61, %v544_v53  ;;  %v596_v7 = vsel %vm565_vm0, %v595_v1, %v547_v58  ;;  %v1848_v58 = vunpack.c.h.bf16 %v1831_v55  ;;  %v9091_v61 = vld [vmem:[#allocation7 + $0x28] sm:$0xff]  }
  0xb4   :  { %7477 = vmatprep.subr.bf16.mxu1 %v9083_v12  ;;  %v593_v5 = vrot.slane %v562_v63, 7  ;;  %v609_v9 = vpack.c.b16 %v590_v4, %v590_v4  ;;  %v612_v10 = vpack.c.b16 %v596_v7, %v596_v7  ;;  %v1879_v1 = vmax.f32 %v1847_v60, 1e-06 }
  0xb5   :  { %7456 = vmatpush3.bf16.msra.mxu0 %v9898_v20  ;;  %v1880_v63 = vmax.f32 %v1848_v58, 1e-06  ;;  %v9957_v58 = vld [vmem:[#allocation5 + $0x160] sm:$0xff]  }
  0xb6   :  { %v594_v11 = vsel %vm565_vm0, %v593_v5, %v546_v62  ;;  %1709 = vmatprep.mubr.bf16.mxu1 %v612_v10  ;;  %8789 = vmatprep.subr.bf16.mxu0 %v11947_v31  ;;  %v1864_v62 = vunpack.c.h.bf16 %v1839_v59  ;;  %v1911_v7 = vmul.f32 %v1879_v1, %v1879_v1 }
  0xb7   :  { %7478 = vmatpush3.bf16.msra.mxu1 %v9085_v25  ;;  %v611_v12 = vpack.c.b16 %v594_v11, %v594_v11  ;;  %v9194_v25 = vld [vmem:[#allocation5 + $0x70] sm:$0xff]   ;;  %v1912_v5 = vmul.f32 %v1880_v63, %v1880_v63 }
  0xb8   :  { %7494 = vmatprep.subr.bf16.mxu1 %v9182_v0  ;;  %1670 = vmatmul.mubr.bf16.vlgmr.msra.gmra.mrb[12].mxu0 %v609_v9  ;;  %v1863_v0 = vunpack.c.l.bf16 %v1839_v59  ;;  %v1896_v4 = vmax.f32 %v1864_v62, 1e-06  ;;  %v1841_v59 = vld [vmem:[#allocation2 + $0x50] sm:$0x11] }
  0xb9   :  { %8790 = vmatpush3.bf16.msra.mxu0 %v9086_v30  ;;  %8805 = vmatprep.mubr.msk.bf16.mxu0 %vm9782_vm1, %v11947_v31  ;;  %v1944_v10 = vmul.f32 %v1912_v5, %v1880_v63  ;;  %v1867_v5 = vunpack.c.l.bf16 %v1841_v59 }
  0xba   :  { %1710 = vmatmul.mubr.bf16.vlgmr.msra.gmra.mrb[12].mxu1 %v611_v12  ;;  %8791 = vmatprep.subr.bf16.mxu0 %v11947_v31  ;;  %v1895_v6 = vmax.f32 %v1863_v0, 1e-06  ;;  %v1928_v9 = vmul.f32 %v1896_v4, %v1896_v4  ;;  %v1943_v12 = vmul.f32 %v1911_v7, %v1879_v1  ;;  %v1868_v1 = vunpack.c.h.bf16 %v1841_v59 }
  0xbb   :  { %7495 = vmatpush3.bf16.msra.mxu1 %v9183_v13  ;;  %v9093_v13 = vld [vmem:[#allocation7 + $0x38] sm:$0xff]  }
  0xbc   :  { %7496 = vmatprep.subr.bf16.mxu1 %v9184_v14  ;;  %v1927_v11 = vmul.f32 %v1895_v6, %v1895_v6  ;;  %v1960_v14 = vmul.f32 %v1928_v9, %v1896_v4 }
  0xbd   :  { %8792 = vmatpush3.bf16.msra.mxu0 %v9087_v32 }
  0xbe   :  { %8793 = vmatprep.subr.bf16.mxu0 %v11947_v31 }
  0xbf   :  { %7497 = vmatpush3.bf16.msra.mxu1 %v9185_v15  ;;  %v1976_v15 = vpack.c.bf16 %v1944_v10, %v1944_v10 }
  0xc0   :  { %7498 = vmatprep.subr.bf16.mxu1 %v9186_v16  ;;  %v1959_v16 = vmul.f32 %v1927_v11, %v1895_v6  ;;  %v9961_v11 = vld [vmem:[#allocation5 + $0x120] sm:$0xff]  }
  0xc1   :  { %8794 = vmatpush3.bf16.msra.mxu0 %v9088_v33 }
  0xc2   :  { %8795 = vmatprep.subr.bf16.mxu0 %v11947_v31 }
  0xc3   :  { %7499 = vmatpush3.bf16.msra.mxu1 %v9187_v17  ;;  %v1975_v17 = vpack.c.bf16 %v1943_v12, %v1943_v12 }
  0xc4   :  { %7500 = vmatprep.subr.bf16.mxu1 %v9188_v18  ;;  %v1992_v18 = vpack.c.bf16 %v1960_v14, %v1960_v14 }
  0xc5   :  { %8796 = vmatpush3.bf16.msra.mxu0 %v9089_v34 }
  0xc6   :  { %8797 = vmatprep.subr.bf16.mxu0 %v11947_v31 }
  0xc7   :  { %7501 = vmatpush3.bf16.msra.mxu1 %v9189_v19  ;;  %v2040_v19 = vunpack.c.l.b16 %v1976_v15  ;;  %v1899_v15 = vmax.f32 %v1867_v5, 1e-06  ;;  %v9986_v5 = vld [vmem:[#allocation5 + $0x240] sm:$0xff]  }
  0xc8   :  { %7502 = vmatprep.subr.bf16.mxu1 %v9190_v21  ;;  %v1991_v21 = vpack.c.bf16 %v1959_v16, %v1959_v16 }
  0xc9   :  { %8798 = vmatpush3.bf16.msra.mxu0 %v9090_v51 }
  0xca   :  { %8799 = vmatprep.subr.bf16.mxu0 %v11947_v31  ;;  %v2055_v30 = vunpack.c.l.b16 %v1991_v21  ;;  %v9969_v21 = vld [vmem:[#allocation5 + $0x128] sm:$0xff]  }
  0xcb   :  { %7503 = vmatpush3.bf16.msra.mxu1 %v9191_v22  ;;  %v2039_v22 = vunpack.c.l.b16 %v1975_v17  ;;  %v1900_v17 = vmax.f32 %v1868_v1, 1e-06  ;;  %v9981_v1 = vld [vmem:[#allocation5 + $0x138] sm:$0xff]  }
  0xcc   :  { %7504 = vmatprep.subr.bf16.mxu1 %v9192_v23  ;;  %v2056_v23 = vunpack.c.l.b16 %v1992_v18 }
  0xcd   :  { %8800 = vmatpush3.bf16.msra.mxu0 %v9091_v61  ;;  %v2071_v32 = vrot.slane %v2039_v22, 1  ;;  %v1931_v22 = vmul.f32 %v1899_v15, %v1899_v15 }
  0xce   :  { %8801 = vmatprep.subr.bf16.mxu0 %v11947_v31 }
  0xcf   :  { %7505 = vmatpush3.bf16.msra.mxu1 %v9193_v24  ;;  %v2073_v24 = vrot.slane %v2040_v19, 1 }
  0xd0   :  { %7506 = vmatprep.subr.bf16.mxu1 %v9194_v25  ;;  %v9931_v25 = vld [vmem:[#allocation5 + $0xc0] sm:$0xff]  }
  0xd1   :  { %8802 = vmatpush3.bf16.msra.mxu0 %v9092_v3  ;;  %v2074_v33 = vsel %vm565_vm0, %v2056_v23, %v2073_v24  ;;  %v9972_v23 = vld [vmem:[#allocation5 + $0x170] sm:$0xff]  }
  0xd2   :  { %8803 = vmatprep.subr.bf16.mxu0 %v11947_v31  ;;  %v2104_v34 = vpack.c.b16 %v2074_v33, %v2074_v33  ;;  %v1963_v33 = vmul.f32 %v1931_v22, %v1899_v15  ;;  %v10001_v15 = vld [vmem:[#allocation5 + $0x210] sm:$0xff]  }
  0xd3   :  { %7507 = vmatpush3.bf16.msra.mxu1 %v9907_v26 }
  0xd4   :  { %7508 = vmatprep.subr.bf16.mxu1 %v9910_v27  ;;  %2167 = vmatprep.mubr.bf16.mxu1 %v2104_v34 }
  0xd5   :  { %8804 = vmatpush3.bf16.msra.mxu0 %v9093_v13  ;;  %v9964_v13 = vld [vmem:[#allocation5 + $0x168] sm:$0xff]  }
  0xd6   :  { %7516 = vmatprep.subr.bf16.mxu0 %v9931_v25 }
  0xd7   :  { %7509 = vmatpush3.bf16.msra.mxu1 %v9913_v28 }
  0xd8   :  { %7538 = vmatprep.subr.bf16.mxu1 %v9916_v29 }
 0x12b   :  { %v7325_v35 = vpop.f32.mrb[0].mxu0 }
 0x12c   :  { %v7326_v37 = vpop.f32.mrb[1].mxu0 }
 0x12d   :  { %v7347_v36 = vpop.f32.mrb[0].mxu1  ;;  %v7327_v39 = vadd.f32 %v7326_v37, %v7325_v35  ;;  %v7328_v43 = vpop.f32.mrb[2].mxu0  ;;  %v2072_v35 = vsel %vm565_vm0, %v2055_v30, %v2071_v32  ;;  %v9936_v37 = vld [vmem:[#allocation5 + $0x100] sm:$0xff]  }
 0x12e   :  { %v7348_v41 = vpop.f32.mrb[1].mxu1  ;;  %v7329_v49 = vpop.f32.mrb[3].mxu0  ;;  %v9945_v43 = vld [vmem:[#allocation5 + $0x150] sm:$0xff]  }
 0x12f   :  { %v7349_v45 = vadd.f32 %v7348_v41, %v7347_v36  ;;  %v7350_v47 = vpop.f32.mrb[2].mxu1  ;;  %v2103_v36 = vpack.c.b16 %v2072_v35, %v2072_v35  ;;  %v9942_v41 = vld [vmem:[#allocation5 + $0x108] sm:$0xff]   ;;  %v1833_v49 = vld [vmem:[#allocation2 + $0x10] sm:$0x11] }
 0x130   :  { %v7351_v53 = vpop.f32.mrb[3].mxu1  ;;  %v9951_v47 = vld [vmem:[#allocation5 + $0x158] sm:$0xff]   ;;  %v1851_v60 = vunpack.c.l.bf16 %v1833_v49  ;;  %v1852_v61 = vunpack.c.h.bf16 %v1833_v49 }
 0x131   :  { %v9924_v57 = vadd.f32 %v7349_v45, %v7327_v39  ;;  %2168 = vmatmul.mubr.bf16.vlgmr.msra.gmra.mrb[16].mxu1 %v2103_v36  ;;  %v9939_v39 = vld [vmem:[#allocation5 + $0x148] sm:$0xff]   ;;  %v9948_v45 = vld [vmem:[#allocation5 + $0x110] sm:$0xff]   ;;  %v9954_v53 = vld [vmem:[#allocation5 + $0x118] sm:$0xff]  }
 0x132   :  { %7539 = vmatpush3.bf16.msra.mxu1 %v9936_v37  ;;  %v1883_v6 = vmax.f32 %v1851_v60, 1e-06  ;;  %v1884_v14 = vmax.f32 %v1852_v61, 1e-06  ;;  %v9975_v36 = vld [vmem:[#allocation5 + $0x130] sm:$0xff]  }
 0x133   :  { %7540 = vmatprep.subr.bf16.mxu1 %v9939_v39 }
 0x134   :  { %v1916_v18 = vmul.f32 %v1884_v14, %v1884_v14  ;;  %v1915_v19 = vmul.f32 %v1883_v6, %v1883_v6 }
 0x136   :  { %7541 = vmatpush3.bf16.msra.mxu1 %v9942_v41  ;;  %v1948_v24 = vmul.f32 %v1916_v18, %v1884_v14  ;;  %v1947_v30 = vmul.f32 %v1915_v19, %v1883_v6  ;;  %v9998_v14 = vld [vmem:[#allocation5 + $0x250] sm:$0xff]   ;;  %v1835_v18 = vld [vmem:[#allocation2 + $0x20] sm:$0x11] }
 0x137   :  { %7542 = vmatprep.subr.bf16.mxu1 %v9945_v43  ;;  %v1856_v19 = vunpack.c.h.bf16 %v1835_v18  ;;  %v1855_v22 = vunpack.c.l.bf16 %v1835_v18 }
 0x138   :  { %v1980_v34 = vpack.c.bf16 %v1948_v24, %v1948_v24  ;;  %v1979_v35 = vpack.c.bf16 %v1947_v30, %v1947_v30  ;;  %v10007_v24 = vld [vmem:[#allocation5 + $0x218] sm:$0xff]  }
 0x13a   :  { %7543 = vmatpush3.bf16.msra.mxu1 %v9948_v45  ;;  %v2044_v59 = vunpack.c.l.b16 %v1980_v34  ;;  %v2043_v60 = vunpack.c.l.b16 %v1979_v35  ;;  %v10010_v34 = vld [vmem:[#allocation5 + $0x260] sm:$0xff]  }
 0x13b   :  { %7544 = vmatprep.subr.bf16.mxu1 %v9951_v47  ;;  %12180 = vst [vmem:[#allocation12_spill] sm:$0xff] %v10010_v34 }
 0x13e   :  { %7545 = vmatpush3.bf16.msra.mxu1 %v9954_v53 }
 0x13f   :  { %7546 = vmatprep.subr.bf16.mxu1 %v9957_v58 }
 0x142   :  { %7547 = vmatpush3.bf16.msra.mxu1 %v9961_v11 }
 0x143   :  { %7548 = vmatprep.subr.bf16.mxu1 %v9964_v13 }
 0x146   :  { %7549 = vmatpush3.bf16.msra.mxu1 %v9969_v21 }
 0x147   :  { %7550 = vmatprep.subr.bf16.mxu1 %v9972_v23 }
 0x14a   :  { %7551 = vmatpush3.bf16.msra.mxu1 %v9975_v36 }
 0x14b   :  { %v7369_v51 = vpop.f32.mrb[4].mxu0 }
 0x14c   :  { %v7370_v55 = vpop.f32.mrb[5].mxu0 }
 0x14d   :  { %v7391_v62 = vpop.f32.mrb[4].mxu1  ;;  %v7371_v63 = vadd.f32 %v7370_v55, %v7369_v51  ;;  %v7372_v0 = vpop.f32.mrb[6].mxu0  ;;  %v1995_v51 = vpack.c.bf16 %v1963_v33, %v1963_v33  ;;  %v9978_v55 = vld [vmem:[#allocation5 + $0x178] sm:$0xff]  }
 0x14e   :  { %v7392_v3 = vpop.f32.mrb[5].mxu1  ;;  %v7373_v4 = vpop.f32.mrb[7].mxu0  ;;  %7552 = vmatprep.subr.bf16.mxu1 %v9978_v55  ;;  %v2079_v0 = vrot.slane %v2043_v60, 1 }
 0x14f   :  { %v1512_v7 = vadd.f32 %v7371_v63, %v9924_v57  ;;  %v7393_v9 = vadd.f32 %v7392_v3, %v7391_v62  ;;  %v7394_v10 = vpop.f32.mrb[6].mxu1  ;;  %v1932_v57 = vmul.f32 %v1900_v17, %v1900_v17  ;;  %v2059_v62 = vunpack.c.l.b16 %v1995_v51  ;;  %7553 = vmatpush3.bf16.msra.mxu1 %v9981_v1 }
 0x150   :  { %v7395_v12 = vpop.f32.mrb[7].mxu1  ;;  %v2081_v63 = vrot.slane %v2044_v59, 1  ;;  %7582 = vmatprep.subr.bf16.mxu1 %v9986_v5  ;;  %v9992_v10 = vld [vmem:[#allocation5 + $0x248] sm:$0xff]   ;;  %v1887_v59 = vmax.f32 %v1855_v22, 1e-06 }
 0x151   :  { %v9967_v16 = vadd.f32 %v7393_v9, %v1512_v7  ;;  %v1964_v32 = vmul.f32 %v1932_v57, %v1900_v17  ;;  %v2080_v4 = vsel %vm565_vm0, %v2059_v62, %v2079_v0  ;;  %v9989_v9 = vld [vmem:[#allocation5 + $0x200] sm:$0xff]   ;;  %v9995_v12 = vld [vmem:[#allocation5 + $0x208] sm:$0xff]   ;;  %v10004_v17 = vld [vmem:[#allocation5 + $0x258] sm:$0xff]  }
 0x152   :  { %v2107_v7 = vpack.c.b16 %v2080_v4, %v2080_v4  ;;  %v1843_v57 = vld [vmem:[#allocation2 + $0x60] sm:$0x11] }
 0x153   :  { %v1996_v49 = vpack.c.bf16 %v1964_v32, %v1964_v32  ;;  %v1872_v30 = vunpack.c.h.bf16 %v1843_v57  ;;  %v1888_v32 = vmax.f32 %v1856_v19, 1e-06  ;;  %v1871_v35 = vunpack.c.l.bf16 %v1843_v57 }
 0x155   :  { %v2060_v61 = vunpack.c.l.b16 %v1996_v49  ;;  %v1904_v60 = vmax.f32 %v1872_v30, 1e-06  ;;  %v1903_v18 = vmax.f32 %v1871_v35, 1e-06 }
 0x157   :  { %v2082_v3 = vsel %vm565_vm0, %v2060_v61, %v2081_v63  ;;  %v1920_v61 = vmul.f32 %v1888_v32, %v1888_v32  ;;  %v1936_v19 = vmul.f32 %v1904_v60, %v1904_v60  ;;  %v1935_v35 = vmul.f32 %v1903_v18, %v1903_v18 }
 0x158   :  { %v2108_v6 = vpack.c.b16 %v2082_v3, %v2082_v3 }
 0x159   :  { %v1952_v22 = vmul.f32 %v1920_v61, %v1888_v32  ;;  %v1968_v30 = vmul.f32 %v1936_v19, %v1904_v60  ;;  %v10028_v61 = vld [vmem:[#allocation5 + $0x230] sm:$0xff]  }
 0x15a   :  { %2247 = vmatprep.mubr.bf16.mxu1 %v2108_v6 }
 0x15b   :  { %2248 = vmatmul.mubr.bf16.vlgmr.msra.gmra.mrb[20].mxu1 %v2107_v7  ;;  %v10013_v7 = vld [vmem:[#allocation5 + $0x220] sm:$0xff]  }
 0x15c   :  { %7583 = vmatpush3.bf16.msra.mxu1 %v9989_v9 }
 0x15d   :  { %7584 = vmatprep.subr.bf16.mxu1 %v9992_v10 }
 0x160   :  { %7585 = vmatpush3.bf16.msra.mxu1 %v9995_v12 }
 0x161   :  { %7586 = vmatprep.subr.bf16.mxu1 %v9998_v14 }
 0x164   :  { %7587 = vmatpush3.bf16.msra.mxu1 %v10001_v15 }
 0x165   :  { %7588 = vmatprep.subr.bf16.mxu1 %v10004_v17 }
 0x168   :  { %7589 = vmatpush3.bf16.msra.mxu1 %v10007_v24 }
 0x169   :  { %7590 = vmatprep.subr.bf16.mxu1 %v10010_v34  ;;  %v10017_v34 = vld [vmem:[#allocation5 + $0x268] sm:$0xff]  }
 0x16b   :  { %v7413_v33 = vpop.f32.mrb[8].mxu0 }
 0x16c   :  { %v7414_v51 = vpop.f32.mrb[9].mxu0  ;;  %7591 = vmatpush3.bf16.msra.mxu1 %v10013_v7 }
 0x16d   :  { %v7435_v49 = vpop.f32.mrb[8].mxu1  ;;  %v7415_v62 = vadd.f32 %v7414_v51, %v7413_v33  ;;  %v7416_v0 = vpop.f32.mrb[10].mxu0  ;;  %7592 = vmatprep.subr.bf16.mxu1 %v10017_v34  ;;  %v1919_v33 = vmul.f32 %v1887_v59, %v1887_v59 }
 0x16e   :  { %v7436_v63 = vpop.f32.mrb[9].mxu1  ;;  %v7417_v6 = vpop.f32.mrb[11].mxu0  ;;  %v2000_v0 = vpack.c.bf16 %v1968_v30, %v1968_v30 }
 0x16f   :  { %v7437_v3 = vadd.f32 %v7436_v63, %v7435_v49  ;;  %v7438_v4 = vpop.f32.mrb[10].mxu1  ;;  %v1592_v31 = vadd.f32 %v7415_v62, %v9967_v16  ;;  %v1984_v49 = vpack.c.bf16 %v1952_v22, %v1952_v22  ;;  %v10022_v63 = vld [vmem:[#allocation5 + $0x228] sm:$0xff]   ;;  %v1951_v62 = vmul.f32 %v1919_v33, %v1887_v59  ;;  %v10035_v59 = vld [vmem:[#allocation5 + $0x238] sm:$0xff]   ;;  %v10039_v33 = vld [vmem:[#allocation5 + $0x340] sm:$0xff]  }
 0x170   :  { %v7439_v57 = vpop.f32.mrb[11].mxu1  ;;  %7593 = vmatpush3.bf16.msra.mxu1 %v10022_v63  ;;  %v10025_v4 = vld [vmem:[#allocation5 + $0x270] sm:$0xff]   ;;  %v2064_v6 = vunpack.c.l.b16 %v2000_v0  ;;  %12182 = vst [vmem:[#allocation14_spill] sm:$0xff] %v10035_v59  ;;  %12183 = vst [vmem:[#allocation15_spill] sm:$0xff] %v10039_v33 }
 0x171   :  { %v10020_v51 = vadd.f32 %v7437_v3, %v1592_v31  ;;  %12181 = vst [vmem:[#allocation13_spill] sm:$0xff] %v10025_v4  ;;  %7594 = vmatprep.subr.bf16.mxu1 %v10025_v4  ;;  %v2048_v16 = vunpack.c.l.b16 %v1984_v49  ;;  %v1967_v57 = vmul.f32 %v1935_v35, %v1903_v18  ;;  %v1983_v60 = vpack.c.bf16 %v1951_v62, %v1951_v62  ;;  %v10031_v3 = vld [vmem:[#allocation5 + $0x278] sm:$0xff]   ;;  %v10042_v35 = vld [vmem:[#allocation5 + $0x300] sm:$0xff]  }
 0x172   :  { %12184 = vst [vmem:[#allocation16_spill] sm:$0xff] %v10042_v35 }
 0x173   :  { %v2089_v32 = vrot.slane %v2048_v16, 1  ;;  %v1999_v31 = vpack.c.bf16 %v1967_v57, %v1967_v57  ;;  %v2047_v22 = vunpack.c.l.b16 %v1983_v60  ;;  %v10045_v16 = vld [vmem:[#allocation5 + $0x348] sm:$0xff]  }
 0x174   :  { %7595 = vmatpush3.bf16.msra.mxu1 %v10028_v61  ;;  %12185 = vst [vmem:[#allocation17_spill] sm:$0xff] %v10045_v16 }
 0x175   :  { %7596 = vmatprep.subr.bf16.mxu1 %v10031_v3  ;;  %v2090_v19 = vsel %vm565_vm0, %v2064_v6, %v2089_v32  ;;  %v2063_v4 = vunpack.c.l.b16 %v1999_v31  ;;  %v2087_v49 = vrot.slane %v2047_v22, 1  ;;  %v1845_v6 = vld [vmem:[#allocation2 + $0x70] sm:$0x11] }
 0x176   :  { %v2112_v30 = vpack.c.b16 %v2090_v19, %v2090_v19  ;;  %v1876_v32 = vunpack.c.h.bf16 %v1845_v6  ;;  %v1875_v31 = vunpack.c.l.bf16 %v1845_v6 }
 0x177   :  { %v2088_v18 = vsel %vm565_vm0, %v2063_v4, %v2087_v49  ;;  %v1837_v4 = vld [vmem:[#allocation2 + $0x30] sm:$0x11] }
 0x178   :  { %7597 = vmatpush3.bf16.msra.mxu1 %v10035_v59  ;;  %2327 = vmatprep.mubr.bf16.mxu1 %v2112_v30  ;;  %v2111_v0 = vpack.c.b16 %v2088_v18, %v2088_v18  ;;  %v1860_v62 = vunpack.c.h.bf16 %v1837_v4  ;;  %v1859_v57 = vunpack.c.l.bf16 %v1837_v4  ;;  %v1908_v22 = vmax.f32 %v1876_v32, 1e-06 }
 0x179   :  { %7626 = vmatprep.subr.bf16.mxu1 %v10039_v33  ;;  %v1907_v30 = vmax.f32 %v1875_v31, 1e-06 }
 0x17a   :  { %v1892_v60 = vmax.f32 %v1860_v62, 1e-06  ;;  %v1891_v19 = vmax.f32 %v1859_v57, 1e-06  ;;  %v1940_v49 = vmul.f32 %v1908_v22, %v1908_v22 }
 0x17b   :  { %2328 = vmatmul.mubr.bf16.vlgmr.msra.gmra.mrb[24].mxu1 %v2111_v0 }
 0x17c   :  { %7627 = vmatpush3.bf16.msra.mxu1 %v10042_v35  ;;  %v1972_v4 = vmul.f32 %v1940_v49, %v1908_v22 }
 0x17d   :  { %7628 = vmatprep.subr.bf16.mxu1 %v10045_v16 }
 0x17e   :  { %v2004_v31 = vpack.c.bf16 %v1972_v4, %v1972_v4 }
 0x180   :  { %7629 = vmatpush3.bf16.msra.mxu1 %v9864_v38  ;;  %v1924_v38 = vmul.f32 %v1892_v60, %v1892_v60  ;;  %v2068_v22 = vunpack.c.l.b16 %v2004_v31 }
 0x181   :  { %7630 = vmatprep.subr.bf16.mxu1 %v9866_v40  ;;  %v1923_v40 = vmul.f32 %v1891_v19, %v1891_v19 }
 0x183   :  { %v1955_v18 = vmul.f32 %v1923_v40, %v1891_v19 }
 0x184   :  { %7631 = vmatpush3.bf16.msra.mxu1 %v9868_v42  ;;  %v1956_v42 = vmul.f32 %v1924_v38, %v1892_v60  ;;  %v1832_v38 = vld [vmem:[#allocation2 + $0x8] sm:$0x11] }
 0x185   :  { %7632 = vmatprep.subr.bf16.mxu1 %v9871_v44  ;;  %v1939_v44 = vmul.f32 %v1907_v30, %v1907_v30  ;;  %v1987_v16 = vpack.c.bf16 %v1955_v18, %v1955_v18  ;;  %v1840_v18 = vld [vmem:[#allocation2 + $0x48] sm:$0x11] }
 0x186   :  { %v1988_v62 = vpack.c.bf16 %v1956_v42, %v1956_v42 }
 0x187   :  { %v1971_v57 = vmul.f32 %v1939_v44, %v1907_v30  ;;  %v2051_v49 = vunpack.c.l.b16 %v1987_v16  ;;  %v1850_v44 = vunpack.c.h.bf16 %v1832_v38 }
 0x188   :  { %7633 = vmatpush3.bf16.msra.mxu1 %v9874_v46 }
 0x189   :  { %7634 = vmatprep.subr.bf16.mxu1 %v9877_v48  ;;  %v2003_v40 = vpack.c.bf16 %v1971_v57, %v1971_v57 }
 0x18b   :  { %v7457_v0 = vpop.f32.mrb[12].mxu0 }
 0x18c   :  { %7635 = vmatpush3.bf16.msra.mxu1 %v9880_v50  ;;  %v7458_v6 = vpop.f32.mrb[13].mxu0  ;;  %v2052_v50 = vunpack.c.l.b16 %v1988_v62  ;;  %v1882_v62 = vmax.f32 %v1850_v44, 1e-06 }
 0x18d   :  { %7636 = vmatprep.subr.bf16.mxu1 %v9883_v52  ;;  %v7479_v46 = vpop.f32.mrb[12].mxu1  ;;  %v7459_v48 = vadd.f32 %v7458_v6, %v7457_v0  ;;  %v7460_v35 = vpop.f32.mrb[14].mxu0  ;;  %v2095_v0 = vrot.slane %v2051_v49, 1 }
 0x18e   :  { %v7480_v32 = vpop.f32.mrb[13].mxu1  ;;  %v7461_v60 = vpop.f32.mrb[15].mxu0  ;;  %v2097_v30 = vrot.slane %v2052_v50, 1  ;;  %v2067_v35 = vunpack.c.l.b16 %v2003_v40 }
 0x18f   :  { %v7481_v33 = vadd.f32 %v7480_v32, %v7479_v46  ;;  %v7482_v59 = vpop.f32.mrb[14].mxu1  ;;  %v1672_v19 = vadd.f32 %v7459_v48, %v10020_v51 }
 0x190   :  { %7637 = vmatpush3.bf16.msra.mxu1 %v9886_v54  ;;  %v7483_v52 = vpop.f32.mrb[15].mxu1  ;;  %v2098_v59 = vsel %vm565_vm0, %v2068_v22, %v2097_v30  ;;  %v2096_v4 = vsel %vm565_vm0, %v2067_v35, %v2095_v0  ;;  %v10068_v30 = vld [vmem:[#allocation2 + $0x18] sm:$0x11] }
 0x191   :  { %7638 = vmatprep.subr.bf16.mxu1 %v9888_v56  ;;  %v1712_v42 = vadd.f32 %v7481_v33, %v1672_v19  ;;  %v2116_v51 = vpack.c.b16 %v2098_v59, %v2098_v59  ;;  %v1866_v56 = vunpack.c.h.bf16 %v1840_v18  ;;  %v2115_v16 = vpack.c.b16 %v2096_v4, %v2096_v4  ;;  %v10071_v0 = vld [vmem:[#allocation2 + $0x58] sm:$0x11] }
 0x192   :  { %v12186_v33 = vmov 0.0   ;;  %v1854_v59 = vunpack.c.h.bf16 %v10068_v30  ;;  %v1865_v4 = vunpack.c.l.bf16 %v1840_v18 }
 0x193   :  { %v1717_v54 = vmul.f32 0.0625, %v1712_v42  ;;  %2407 = vmatprep.mubr.bf16.mxu1 %v2116_v51  ;;  %v1898_v46 = vmax.f32 %v1866_v56, 1e-06  ;;  %v1849_v42 = vunpack.c.l.bf16 %v1832_v38  ;;  %v10076_v51 = vld [vmem:[#allocation5 + $0x80] sm:$0xff]   ;;  %v10079_v38 = vld [vmem:[#allocation5 + $0xc8] sm:$0xff]  }
 0x194   :  { %7639 = vmatpush3.bf16.msra.mxu1 %v9892_v2  ;;  %v1914_v2 = vmul.f32 %v1882_v62, %v1882_v62 }
 0x195   :  { %7640 = vmatprep.subr.bf16.mxu1 %v9894_v8  ;;  %9150 = vlog2.f32 %v1717_v54  ;;  %v1930_v6 = vmul.f32 %v1898_v46, %v1898_v46  ;;  %v7116_v54 = vld [vmem:[%s11945_s3] ss:$0 sm:$0xff]  ;;  %v1881_v56 = vmax.f32 %v1849_v42, 1e-06  ;;  %s9783_s3 = smov [#allocation8]  }
 0x196   :  { %v1946_v8 = vmul.f32 %v1914_v2, %v1882_v62  ;;  %67 = vst [vmem:[#allocation8] sm:$0x3] %v7116_v54  ;;  %v1870_v62 = vunpack.c.h.bf16 %v10071_v0  ;;  %v1897_v2 = vmax.f32 %v1865_v4, 1e-06  ;;  %v10104_v54 = vld [vmem:[#allocation5 + $0xe8] sm:$0xff]   ;;  %s7106_s26 = sshll.u32 %s9783_s3, 4  ;;  %s7107_s26 = int_to_ptr.vmem [resolvable:$true] %s7106_s26 }
 0x197   :  { %v1962_v32 = vmul.f32 %v1930_v6, %v1898_v46  ;;  %v10083_v46 = vld [vmem:[#allocation5 + $0x88] sm:$0xff]   ;;  %v1913_v6 = vmul.f32 %v1881_v56, %v1881_v56  ;;  %12191 = vst [vmem:[#allocation22_spill] sm:$0xff] %v10104_v54  ;;  %s9747_s28 = scalar_lea.vmem %s7107_s26, 32  ;;  %p9752_p11 = scmp.lt.s32.totalorder %s7107_s26, %s7107_s26 }
 0x198   :  { %7641 = vmatpush3.bf16.msra.mxu1 %v9898_v20  ;;  %v1978_v31 = vpack.c.bf16 %v1946_v8, %v1946_v8  ;;  %v10086_v8 = vld [vmem:[#allocation5 + $0xd0] sm:$0xff]   ;;  %v1902_v18 = vmax.f32 %v1870_v62, 1e-06  ;;  %v10107_v62 = vld [vmem:[#allocation5 + $0xa8] sm:$0xff]   ;;  %p9748_p10 = scmp.ne.s32.totalorder %s7107_s26, %s9747_s28  ;;  %p9753_p12 = scmp.lt.s32.totalorder %s9747_s28, %s9747_s28 }
 0x199   :  { %8809 = vmatprep.subr.bf16.mxu1 %v12186_v33  ;;  %v1994_v19 = vpack.c.bf16 %v1962_v32, %v1962_v32  ;;  %v1929_v32 = vmul.f32 %v1897_v2, %v1897_v2  ;;  %12192 = vst [vmem:[#allocation23_spill] sm:$0xff] %v10107_v62 }
 0x19a   :  { %v2042_v52 = vunpack.c.l.b16 %v1978_v31  ;;  %v1945_v31 = vmul.f32 %v1913_v6, %v1881_v56  ;;  %v10110_v6 = vld [vmem:[#allocation5 + $0xf0] sm:$0xff]   ;;  %p9754_p13 = por %p9753_p12, %p9752_p11 }
 0x19b   :  { %2408 = vmatmul.mubr.bf16.vlgmr.msra.gmra.mrb[28].mxu1 %v2115_v16  ;;  %v2058_v20 = vunpack.c.l.b16 %v1994_v19  ;;  %v1886_v16 = vmax.f32 %v1854_v59, 1e-06  ;;  %12193 = vst [vmem:[#allocation24_spill] sm:$0xff] %v10110_v6 }
 0x19c   :  { %8825 = vmatprep.mubr.msk.bf16.mxu1 %vm9782_vm1, %v12186_v33  ;;  %v2077_v22 = vrot.slane %v2042_v52, 1  ;;  %v10095_v52 = vld [vmem:[#allocation5 + $0x98] sm:$0xff]   ;;  %p9755_p0 = pnand %p9754_p13, %p9748_p10 }
 0x19d   :  { %12188 = vst [vmem:[#allocation19_spill] sm:$0xff] %v10095_v52 }
 0x19e   :  { %v2078_v40 = vsel %vm565_vm0, %v2058_v20, %v2077_v22  ;;  %v1961_v20 = vmul.f32 %v1929_v32, %v1897_v2  ;;  %v1977_v22 = vpack.c.bf16 %v1945_v31, %v1945_v31  ;;  %v10113_v32 = vld [vmem:[#allocation5 + $0xb0] sm:$0xff]  }
 0x19f   :  { %v9151_v57 = vpop.eup %9150  ;;  %v2106_v44 = vpack.c.b16 %v2078_v40, %v2078_v40  ;;  %v10098_v40 = vld [vmem:[#allocation5 + $0xe0] sm:$0xff]   ;;  %12194 = vst [vmem:[#allocation25_spill] sm:$0xff] %v10113_v32 }
 0x1a0   :  { %v1719_v48 = vmul.f32 0.6931472, %v9151_v57  ;;  %v1918_v57 = vmul.f32 %v1886_v16, %v1886_v16  ;;  %12189 = vst [vmem:[#allocation20_spill] sm:$0xff] %v10098_v40  ;;  %v2041_v59 = vunpack.c.l.b16 %v1977_v22 }
 0x1a2   :  { %v1720_v60 = vmul.f32 0.33333334, %v1719_v48  ;;  %v10089_v48 = vld [vmem:[#allocation5 + $0x90] sm:$0xff]   ;;  %v1950_v19 = vmul.f32 %v1918_v57, %v1886_v16  ;;  %v2075_v2 = vrot.slane %v2041_v59, 1  ;;  %v10127_v59 = vld [vmem:[#allocation5 + $0x1c0] sm:$0xff]  }
 0x1a3   :  { %12197 = vst [vmem:[#allocation28_spill] sm:$0xff] %v10127_v59 }
 0x1a4   :  { %v1721_v50 = vmul.f32 1.442695, %v1720_v60  ;;  %v10092_v60 = vld [vmem:[#allocation5 + $0xd8] sm:$0xff]   ;;  %v1982_v42 = vpack.c.bf16 %v1950_v19, %v1950_v19 }
 0x1a5   :  { %12187 = vst [vmem:[#allocation18_spill] sm:$0xff] %v10092_v60 }
 0x1a6   :  { %9152 = vpow2.f32 %v1721_v50  ;;  %v1934_v50 = vmul.f32 %v1902_v18, %v1902_v18  ;;  %v2046_v56 = vunpack.c.l.b16 %v1982_v42  ;;  %v1853_v42 = vunpack.c.l.bf16 %v10068_v30 }
 0x1a8   :  { %v2085_v57 = vrot.slane %v2046_v56, 1  ;;  %v10131_v56 = vld [vmem:[#allocation2 + $0x68] sm:$0x11] }
 0x1a9   :  { %v1874_v30 = vunpack.c.h.bf16 %v10131_v56 }
 0x1b0   :  { %v9153_v49 = vpop.eup %9152 }
 0x1b1   :  { %v1724_v35 = vpack.c.bf16 %v9153_v49, %v9153_v49  ;;  %v1966_v49 = vmul.f32 %v1934_v50, %v1902_v18  ;;  %v10117_v50 = vld [vmem:[#allocation5 + $0xf8] sm:$0xff]  }
 0x1b2   :  { %12195 = vst [vmem:[#allocation26_spill] sm:$0xff] %v10117_v50 }
 0x1b3   :  { %8806 = vmatmul.mubr.bf16.vlgmr.msra.gmra.mrb[16].mxu0 %v1724_v35  ;;  %v1993_v35 = vpack.c.bf16 %v1961_v20, %v1961_v20  ;;  %v1998_v4 = vpack.c.bf16 %v1966_v49, %v1966_v49  ;;  %v10121_v20 = vld [vmem:[#allocation2 + $0x28] sm:$0x11]  ;;  %v10123_v49 = vld [vmem:[#allocation5 + $0xb8] sm:$0xff]  }
 0x1b4   :  { %7517 = vmatpush3.bf16.msra.mxu0 %v10076_v51  ;;  %2207 = vmatprep.mubr.bf16.mxu0 %v2106_v44  ;;  %v10101_v44 = vld [vmem:[#allocation5 + $0xa0] sm:$0xff]   ;;  %12196 = vst [vmem:[#allocation27_spill] sm:$0xff] %v10123_v49 }
 0x1b5   :  { %7518 = vmatprep.subr.bf16.mxu0 %v10079_v38  ;;  %12190 = vst [vmem:[#allocation21_spill] sm:$0xff] %v10101_v44  ;;  %v2057_v16 = vunpack.c.l.b16 %v1993_v35  ;;  %v2062_v18 = vunpack.c.l.b16 %v1998_v4  ;;  %v1858_v4 = vunpack.c.h.bf16 %v10121_v20 }
 0x1b7   :  { %v2076_v31 = vsel %vm565_vm0, %v2057_v16, %v2075_v2  ;;  %v2086_v19 = vsel %vm565_vm0, %v2062_v18, %v2085_v57  ;;  %v10133_v16 = vld [vmem:[#allocation5 + $0x180] sm:$0xff]   ;;  %v1869_v2 = vunpack.c.l.bf16 %v10071_v0  ;;  %v1885_v18 = vmax.f32 %v1853_v42, 1e-06  ;;  %v10137_v57 = vld [vmem:[#allocation5 + $0x1c8] sm:$0xff]  }
 0x1b8   :  { %7519 = vmatpush3.bf16.msra.mxu0 %v10083_v46  ;;  %v2105_v22 = vpack.c.b16 %v2076_v31, %v2076_v31  ;;  %v2110_v35 = vpack.c.b16 %v2086_v19, %v2086_v19  ;;  %12198 = vst [vmem:[#allocation29_spill] sm:$0xff] %v10133_v16  ;;  %12199 = vst [vmem:[#allocation30_spill] sm:$0xff] %v10137_v57  ;;  %v1890_v31 = vmax.f32 %v1858_v4, 1e-06  ;;  %v10141_v19 = vld [vmem:[#allocation5 + $0x188] sm:$0xff]  }
 0x1b9   :  { %7520 = vmatprep.subr.bf16.mxu0 %v10086_v8  ;;  %12200 = vst [vmem:[#allocation31_spill] sm:$0xff] %v10141_v19  ;;  %v1906_v0 = vmax.f32 %v1874_v30, 1e-06  ;;  %v10156_v30 = vld [vmem:[#allocation5 + $0x1e0] sm:$0xff]  }
 0x1ba   :  { %v1922_v42 = vmul.f32 %v1890_v31, %v1890_v31  ;;  %12205 = vst [vmem:[#allocation36_spill] sm:$0xff] %v10156_v30 }
 0x1bb   :  { %v1938_v4 = vmul.f32 %v1906_v0, %v1906_v0 }
 0x1bc   :  { %7521 = vmatpush3.bf16.msra.mxu0 %v10089_v48 }
 0x1bd   :  { %7522 = vmatprep.subr.bf16.mxu0 %v10092_v60 }
 0x1c0   :  { %7523 = vmatpush3.bf16.msra.mxu0 %v10095_v52 }
 0x1c1   :  { %7524 = vmatprep.subr.bf16.mxu0 %v10098_v40 }
 0x1c4   :  { %7525 = vmatpush3.bf16.msra.mxu0 %v10101_v44 }
 0x1c5   :  { %7526 = vmatprep.subr.bf16.mxu0 %v10104_v54 }
 0x1c8   :  { %7527 = vmatpush3.bf16.msra.mxu0 %v10107_v62  ;;  %v10159_v62 = vld [vmem:[#allocation5 + $0x1a0] sm:$0xff]  }
 0x1c9   :  { %7528 = vmatprep.subr.bf16.mxu0 %v10110_v6  ;;  %v1970_v6 = vmul.f32 %v1938_v4, %v1906_v0  ;;  %12206 = vst [vmem:[#allocation37_spill] sm:$0xff] %v10159_v62  ;;  %v10168_v0 = vld [vmem:[#allocation5 + $0x1f0] sm:$0xff]  }
 0x1ca   :  { %12209 = vst [vmem:[#allocation40_spill] sm:$0xff] %v10168_v0 }
 0x1cc   :  { %7529 = vmatpush3.bf16.msra.mxu0 %v10113_v32 }
 0x1cd   :  { %7530 = vmatprep.subr.bf16.mxu0 %v10117_v50  ;;  %v10150_v50 = vld [vmem:[#allocation5 + $0x1d8] sm:$0xff]  }
 0x1ce   :  { %12203 = vst [vmem:[#allocation34_spill] sm:$0xff] %v10150_v50 }
 0x1d0   :  { %7531 = vmatpush3.bf16.msra.mxu0 %v10123_v49  ;;  %v10144_v49 = vld [vmem:[#allocation5 + $0x1d0] sm:$0xff]  }
 0x1d1   :  { %7560 = vmatprep.subr.bf16.mxu0 %v10127_v59  ;;  %v1917_v59 = vmul.f32 %v1885_v18, %v1885_v18  ;;  %12201 = vst [vmem:[#allocation32_spill] sm:$0xff] %v10144_v49 }
 0x1d3   :  { %2208 = vmatmul.mubr.bf16.vlgmr.msra.gmra.mrb[20].mxu0 %v2105_v22  ;;  %v1901_v22 = vmax.f32 %v1869_v2, 1e-06  ;;  %v10153_v2 = vld [vmem:[#allocation5 + $0x198] sm:$0xff]  }
 0x1d4   :  { %7561 = vmatpush3.bf16.msra.mxu0 %v10133_v16  ;;  %2287 = vmatprep.mubr.bf16.mxu0 %v2110_v35  ;;  %v10147_v35 = vld [vmem:[#allocation5 + $0x190] sm:$0xff]   ;;  %v1949_v16 = vmul.f32 %v1917_v59, %v1885_v18  ;;  %12204 = vst [vmem:[#allocation35_spill] sm:$0xff] %v10153_v2 }
 0x1d5   :  { %7562 = vmatprep.subr.bf16.mxu0 %v10137_v57  ;;  %12202 = vst [vmem:[#allocation33_spill] sm:$0xff] %v10147_v35  ;;  %v1933_v57 = vmul.f32 %v1901_v22, %v1901_v22 }
 0x1d7   :  { %v1965_v32 = vmul.f32 %v1933_v57, %v1901_v22  ;;  %v10165_v57 = vld [vmem:[#allocation5 + $0x1a8] sm:$0xff]  }
 0x1d8   :  { %7563 = vmatpush3.bf16.msra.mxu0 %v10141_v19  ;;  %v1954_v19 = vmul.f32 %v1922_v42, %v1890_v31  ;;  %v2002_v31 = vpack.c.bf16 %v1970_v6, %v1970_v6  ;;  %12208 = vst [vmem:[#allocation39_spill] sm:$0xff] %v10165_v57  ;;  %v10175_v6 = vld [vmem:[#allocation5 + $0x1f8] sm:$0xff]  }
 0x1d9   :  { %7564 = vmatprep.subr.bf16.mxu0 %v10144_v49  ;;  %v1981_v49 = vpack.c.bf16 %v1949_v16, %v1949_v16  ;;  %v1997_v59 = vpack.c.bf16 %v1965_v32, %v1965_v32  ;;  %v10171_v32 = vld [vmem:[#allocation5 + $0x1b0] sm:$0xff]   ;;  %12211 = vst [vmem:[#allocation42_spill] sm:$0xff] %v10175_v6 }
 0x1da   :  { %12210 = vst [vmem:[#allocation41_spill] sm:$0xff] %v10171_v32 }
 0x1db   :  { %v2045_v18 = vunpack.c.l.b16 %v1981_v49  ;;  %v2061_v16 = vunpack.c.l.b16 %v1997_v59  ;;  %v10179_v59 = vld [vmem:[#allocation2 + $0x38] sm:$0x11] }
 0x1dc   :  { %7565 = vmatpush3.bf16.msra.mxu0 %v10147_v35  ;;  %v1986_v35 = vpack.c.bf16 %v1954_v19, %v1954_v19  ;;  %v2066_v19 = vunpack.c.l.b16 %v2002_v31  ;;  %v1857_v31 = vunpack.c.l.bf16 %v10121_v20 }
 0x1dd   :  { %7566 = vmatprep.subr.bf16.mxu0 %v10150_v50  ;;  %v10162_v50 = vld [vmem:[#allocation5 + $0x1e8] sm:$0xff]   ;;  %v2083_v22 = vrot.slane %v2045_v18, 1 }
 0x1de   :  { %12207 = vst [vmem:[#allocation38_spill] sm:$0xff] %v10162_v50  ;;  %v2050_v42 = vunpack.c.l.b16 %v1986_v35 }
 0x1df   :  { %v2084_v49 = vsel %vm565_vm0, %v2061_v16, %v2083_v22  ;;  %v1862_v16 = vunpack.c.h.bf16 %v10179_v59  ;;  %v10189_v22 = vld [vmem:[#allocation2 + $0x78] sm:$0x11] }
 0x1e0   :  { %7567 = vmatpush3.bf16.msra.mxu0 %v10153_v2  ;;  %v2093_v4 = vrot.slane %v2050_v42, 1  ;;  %v2109_v18 = vpack.c.b16 %v2084_v49, %v2084_v49  ;;  %v1889_v49 = vmax.f32 %v1857_v31, 1e-06  ;;  %v1878_v20 = vunpack.c.h.bf16 %v10189_v22  ;;  %v10217_v2 = vld [vmem:[#allocation5 + $0x2a0] sm:$0xff]  }
 0x1e1   :  { %7568 = vmatprep.subr.bf16.mxu0 %v10156_v30  ;;  %12222 = vst [vmem:[#allocation53_spill] sm:$0xff] %v10217_v2 }
 0x1e2   :  { %v2094_v35 = vsel %vm565_vm0, %v2066_v19, %v2093_v4  ;;  %v10191_v19 = vld [vmem:[#allocation5 + $0x280] sm:$0xff]   ;;  %v1873_v4 = vunpack.c.l.bf16 %v10131_v56  ;;  %v1910_v56 = vmax.f32 %v1878_v20, 1e-06 }
 0x1e3   :  { %v2114_v42 = vpack.c.b16 %v2094_v35, %v2094_v35  ;;  %12214 = vst [vmem:[#allocation45_spill] sm:$0xff] %v10191_v19  ;;  %v1894_v35 = vmax.f32 %v1862_v16, 1e-06  ;;  %v10214_v20 = vld [vmem:[#allocation5 + $0x2e0] sm:$0xff]  }
 0x1e4   :  { %7569 = vmatpush3.bf16.msra.mxu0 %v10159_v62  ;;  %v1942_v16 = vmul.f32 %v1910_v56, %v1910_v56  ;;  %12221 = vst [vmem:[#allocation52_spill] sm:$0xff] %v10214_v20 }
 0x1e5   :  { %7570 = vmatprep.subr.bf16.mxu0 %v10162_v50  ;;  %v1926_v31 = vmul.f32 %v1894_v35, %v1894_v35  ;;  %v10208_v50 = vld [vmem:[#allocation5 + $0x2d8] sm:$0xff]  }
 0x1e6   :  { %12219 = vst [vmem:[#allocation50_spill] sm:$0xff] %v10208_v50  ;;  %v1974_v30 = vmul.f32 %v1942_v16, %v1910_v56  ;;  %v10226_v56 = vld [vmem:[#allocation5 + $0x2f0] sm:$0xff]  }
 0x1e7   :  { %12225 = vst [vmem:[#allocation56_spill] sm:$0xff] %v10226_v56 }
 0x1e8   :  { %7571 = vmatpush3.bf16.msra.mxu0 %v10165_v57  ;;  %v10181_v57 = vld [vmem:[#allocation5 + $0x1b8] sm:$0xff]  }
 0x1e9   :  { %7572 = vmatprep.subr.bf16.mxu0 %v10168_v0  ;;  %12212 = vst [vmem:[#allocation43_spill] sm:$0xff] %v10181_v57  ;;  %v10185_v0 = vld [vmem:[#allocation5 + $0x2c0] sm:$0xff]  }
 0x1ea   :  { %12213 = vst [vmem:[#allocation44_spill] sm:$0xff] %v10185_v0 }
 0x1ec   :  { %7573 = vmatpush3.bf16.msra.mxu0 %v10171_v32  ;;  %v10202_v32 = vld [vmem:[#allocation5 + $0x2d0] sm:$0xff]  }
 0x1ed   :  { %7574 = vmatprep.subr.bf16.mxu0 %v10175_v6  ;;  %v1921_v6 = vmul.f32 %v1889_v49, %v1889_v49  ;;  %12217 = vst [vmem:[#allocation48_spill] sm:$0xff] %v10202_v32 }
 0x1f0   :  { %7575 = vmatpush3.bf16.msra.mxu0 %v10181_v57  ;;  %v10195_v57 = vld [vmem:[#allocation5 + $0x2c8] sm:$0xff]  }
 0x1f1   :  { %7604 = vmatprep.subr.bf16.mxu0 %v10185_v0  ;;  %12215 = vst [vmem:[#allocation46_spill] sm:$0xff] %v10195_v57  ;;  %v10199_v0 = vld [vmem:[#allocation5 + $0x288] sm:$0xff]  }
 0x1f2   :  { %12216 = vst [vmem:[#allocation47_spill] sm:$0xff] %v10199_v0 }
 0x1f3   :  { %2288 = vmatmul.mubr.bf16.vlgmr.msra.gmra.mrb[24].mxu0 %v2109_v18  ;;  %v1905_v18 = vmax.f32 %v1873_v4, 1e-06  ;;  %v10211_v4 = vld [vmem:[#allocation5 + $0x298] sm:$0xff]  }
 0x1f4   :  { %7605 = vmatpush3.bf16.msra.mxu0 %v10191_v19  ;;  %2367 = vmatprep.mubr.bf16.mxu0 %v2114_v42  ;;  %v10205_v42 = vld [vmem:[#allocation5 + $0x290] sm:$0xff]   ;;  %v1953_v19 = vmul.f32 %v1921_v6, %v1889_v49  ;;  %12220 = vst [vmem:[#allocation51_spill] sm:$0xff] %v10211_v4 }
 0x1f5   :  { %7606 = vmatprep.subr.bf16.mxu0 %v10195_v57  ;;  %12218 = vst [vmem:[#allocation49_spill] sm:$0xff] %v10205_v42  ;;  %v1937_v57 = vmul.f32 %v1905_v18, %v1905_v18 }
 0x1f7   :  { %v1969_v62 = vmul.f32 %v1937_v57, %v1905_v18  ;;  %v10223_v57 = vld [vmem:[#allocation5 + $0x2a8] sm:$0xff]  }
 0x1f8   :  { %7607 = vmatpush3.bf16.msra.mxu0 %v10199_v0  ;;  %v1958_v0 = vmul.f32 %v1926_v31, %v1894_v35  ;;  %v2006_v35 = vpack.c.bf16 %v1974_v30, %v1974_v30  ;;  %12224 = vst [vmem:[#allocation55_spill] sm:$0xff] %v10223_v57 }
 0x1f9   :  { %7608 = vmatprep.subr.bf16.mxu0 %v10202_v32  ;;  %v1985_v32 = vpack.c.bf16 %v1953_v19, %v1953_v19  ;;  %v2001_v6 = vpack.c.bf16 %v1969_v62, %v1969_v62 }
 0x1fb   :  { %v2049_v49 = vunpack.c.l.b16 %v1985_v32  ;;  %v2065_v19 = vunpack.c.l.b16 %v2001_v6  ;;  %v10235_v6 = vld [vmem:[#allocation5 + $0x2f8] sm:$0xff]  }
 0x1fc   :  { %7609 = vmatpush3.bf16.msra.mxu0 %v10205_v42  ;;  %v1990_v42 = vpack.c.bf16 %v1958_v0, %v1958_v0  ;;  %v2070_v0 = vunpack.c.l.b16 %v2006_v35  ;;  %12227 = vst [vmem:[#allocation58_spill] sm:$0xff] %v10235_v6 }
 0x1fd   :  { %7610 = vmatprep.subr.bf16.mxu0 %v10208_v50  ;;  %v10220_v50 = vld [vmem:[#allocation5 + $0x2e8] sm:$0xff]   ;;  %v2091_v18 = vrot.slane %v2049_v49, 1 }
 0x1fe   :  { %12223 = vst [vmem:[#allocation54_spill] sm:$0xff] %v10220_v50  ;;  %v2054_v31 = vunpack.c.l.b16 %v1990_v42 }
 0x1ff   :  { %v2092_v30 = vsel %vm565_vm0, %v2065_v19, %v2091_v18  ;;  %v10246_v19 = vld [vmem:[#allocation5 + $0x380] sm:$0xff]   ;;  %v1877_v18 = vunpack.c.l.bf16 %v10189_v22 }
 0x200   :  { %7611 = vmatpush3.bf16.msra.mxu0 %v10211_v4  ;;  %v2101_v16 = vrot.slane %v2054_v31, 1  ;;  %v2113_v35 = vpack.c.b16 %v2092_v30, %v2092_v30  ;;  %v10239_v31 = vld [vmem:[#allocation5 + $0x2b8] sm:$0xff]   ;;  %12230 = vst [vmem:[#allocation61_spill] sm:$0xff] %v10246_v19  ;;  %v10253_v30 = vld [vmem:[#allocation5 + $0x388] sm:$0xff]  }
 0x201   :  { %7612 = vmatprep.subr.bf16.mxu0 %v10214_v20  ;;  %12228 = vst [vmem:[#allocation59_spill] sm:$0xff] %v10239_v31  ;;  %12232 = vst [vmem:[#allocation63_spill] sm:$0xff] %v10253_v30 }
 0x202   :  { %v2102_v49 = vsel %vm565_vm0, %v2070_v0, %v2101_v16  ;;  %v10250_v16 = vld [vmem:[#allocation5 + $0x3c8] sm:$0xff]  }
 0x203   :  { %12231 = vst [vmem:[#allocation62_spill] sm:$0xff] %v10250_v16 }
 0x204   :  { %7613 = vmatpush3.bf16.msra.mxu0 %v10217_v2  ;;  %v7510_v62 = vpop.f32.mrb[16].mxu1 }
 0x205   :  { %7614 = vmatprep.subr.bf16.mxu0 %v10220_v50  ;;  %v7511_v32 = vpop.f32.mrb[17].mxu1  ;;  %v10231_v50 = vld [vmem:[#allocation5 + $0x2b0] sm:$0xff]  }
 0x206   :  { %v10229_v2 = vadd.f32 %v7511_v32, %v7510_v62  ;;  %v7513_v20 = vpop.f32.mrb[18].mxu1  ;;  %12226 = vst [vmem:[#allocation57_spill] sm:$0xff] %v10231_v50  ;;  %v2118_v62 = vpack.c.b16 %v2102_v49, %v2102_v49  ;;  %v10243_v32 = vld [vmem:[#allocation5 + $0x3c0] sm:$0xff]   ;;  %v10256_v49 = vld [vmem:[#allocation5 + $0x3d0] sm:$0xff]  }
 0x207   :  { %v7514_v42 = vpop.f32.mrb[19].mxu1  ;;  %v1861_v20 = vunpack.c.l.bf16 %v10179_v59  ;;  %12229 = vst [vmem:[#allocation60_spill] sm:$0xff] %v10243_v32  ;;  %v1909_v59 = vmax.f32 %v1877_v18, 1e-06  ;;  %12233 = vst [vmem:[#allocation64_spill] sm:$0xff] %v10256_v49 }
 0x208   :  { %7615 = vmatpush3.bf16.msra.mxu0 %v10223_v57  ;;  %v9101_v57 = vld [vmem:[#allocation7 + $0x78] sm:$0xff]  }
 0x209   :  { %7616 = vmatprep.subr.bf16.mxu0 %v10226_v56  ;;  %v1893_v0 = vmax.f32 %v1861_v20, 1e-06  ;;  %v1941_v22 = vmul.f32 %v1909_v59, %v1909_v59 }
 0x20b   :  { %v1925_v42 = vmul.f32 %v1893_v0, %v1893_v0  ;;  %v1973_v18 = vmul.f32 %v1941_v22, %v1909_v59 }
 0x20c   :  { %7617 = vmatpush3.bf16.msra.mxu0 %v10231_v50 }
 0x20d   :  { %7618 = vmatprep.subr.bf16.mxu0 %v10235_v6  ;;  %v1957_v20 = vmul.f32 %v1925_v42, %v1893_v0  ;;  %v10274_v42 = vld [vmem:[#allocation5 + $0x3e8] sm:$0xff]  }
 0x20e   :  { %12239 = vst [vmem:[#allocation70_spill] sm:$0xff] %v10274_v42 }
 0x210   :  { %7619 = vmatpush3.bf16.msra.mxu0 %v10239_v31 }
 0x211   :  { %7648 = vmatprep.subr.bf16.mxu0 %v10243_v32  ;;  %v10292_v32 = vld [vmem:[#allocation5 + $0x3b8] sm:$0xff]  }
 0x212   :  { %12244 = vst [vmem:[#allocation75_spill] sm:$0xff] %v10292_v32 }
 0x213   :  { %2368 = vmatmul.mubr.bf16.vlgmr.msra.gmra.mrb[28].mxu0 %v2113_v35  ;;  %v10259_v35 = vld [vmem:[#allocation5 + $0x390] sm:$0xff]  }
 0x214   :  { %7649 = vmatpush3.bf16.msra.mxu0 %v10246_v19  ;;  %2447 = vmatprep.mubr.bf16.mxu0 %v2118_v62  ;;  %12234 = vst [vmem:[#allocation65_spill] sm:$0xff] %v10259_v35  ;;  %v10262_v62 = vld [vmem:[#allocation5 + $0x3d8] sm:$0xff]   ;;  %v10268_v19 = vld [vmem:[#allocation5 + $0x3e0] sm:$0xff]  }
 0x215   :  { %7650 = vmatprep.subr.bf16.mxu0 %v10250_v16  ;;  %12235 = vst [vmem:[#allocation66_spill] sm:$0xff] %v10262_v62  ;;  %v10265_v16 = vld [vmem:[#allocation5 + $0x398] sm:$0xff]   ;;  %12237 = vst [vmem:[#allocation68_spill] sm:$0xff] %v10268_v19 }
 0x216   :  { %12236 = vst [vmem:[#allocation67_spill] sm:$0xff] %v10265_v16 }
 0x218   :  { %7651 = vmatpush3.bf16.msra.mxu0 %v10253_v30  ;;  %v1989_v30 = vpack.c.bf16 %v1957_v20, %v1957_v20  ;;  %v10280_v20 = vld [vmem:[#allocation5 + $0x3f0] sm:$0xff]  }
 0x219   :  { %7652 = vmatprep.subr.bf16.mxu0 %v10256_v49  ;;  %v10271_v49 = vld [vmem:[#allocation5 + $0x3a0] sm:$0xff]   ;;  %12241 = vst [vmem:[#allocation72_spill] sm:$0xff] %v10280_v20 }
 0x21a   :  { %12238 = vst [vmem:[#allocation69_spill] sm:$0xff] %v10271_v49  ;;  %v2053_v0 = vunpack.c.l.b16 %v1989_v30 }
 0x21c   :  { %7653 = vmatpush3.bf16.msra.mxu0 %v10259_v35  ;;  %v2005_v35 = vpack.c.bf16 %v1973_v18, %v1973_v18  ;;  %v2099_v22 = vrot.slane %v2053_v0, 1 }
 0x21d   :  { %7654 = vmatprep.subr.bf16.mxu0 %v10262_v62  ;;  %v10277_v62 = vld [vmem:[#allocation5 + $0x3a8] sm:$0xff]  }
 0x21e   :  { %12240 = vst [vmem:[#allocation71_spill] sm:$0xff] %v10277_v62  ;;  %v2069_v59 = vunpack.c.l.b16 %v2005_v35 }
 0x220   :  { %7655 = vmatpush3.bf16.msra.mxu0 %v10265_v16  ;;  %v10283_v16 = vld [vmem:[#allocation5 + $0x3b0] sm:$0xff]   ;;  %v2100_v30 = vsel %vm565_vm0, %v2069_v59, %v2099_v22  ;;  %v10298_v59 = vld [vmem:[#allocation5] sm:$0xff]   ;;  %v10301_v22 = vld [vmem:[#allocation5 + $0x48] sm:$0xff]  }
 0x221   :  { %7656 = vmatprep.subr.bf16.mxu0 %v10268_v19  ;;  %12242 = vst [vmem:[#allocation73_spill] sm:$0xff] %v10283_v16  ;;  %12246 = vst [vmem:[#allocation77_spill] sm:$0xff] %v10298_v59 }
 0x222   :  { %12247 = vst [vmem:[#allocation78_spill] sm:$0xff] %v10301_v22 }
 0x224   :  { %7657 = vmatpush3.bf16.msra.mxu0 %v10271_v49  ;;  %v10287_v49 = vld [vmem:[#allocation5 + $0x3f8] sm:$0xff]  }
 0x225   :  { %7658 = vmatprep.subr.bf16.mxu0 %v10274_v42  ;;  %12243 = vst [vmem:[#allocation74_spill] sm:$0xff] %v10287_v49 }
 0x228   :  { %7659 = vmatpush3.bf16.msra.mxu0 %v10277_v62  ;;  %v2117_v62 = vpack.c.b16 %v2100_v30, %v2100_v30  ;;  %v10307_v30 = vld [vmem:[#allocation5 + $0x50] sm:$0xff]  }
 0x229   :  { %7660 = vmatprep.subr.bf16.mxu0 %v10280_v20  ;;  %v10295_v20 = vld [vmem:[#allocation5 + $0x40] sm:$0xff]   ;;  %12249 = vst [vmem:[#allocation80_spill] sm:$0xff] %v10307_v30 }
 0x22a   :  { %12245 = vst [vmem:[#allocation76_spill] sm:$0xff] %v10295_v20 }
 0x22c   :  { %7661 = vmatpush3.bf16.msra.mxu0 %v10283_v16 }
 0x22d   :  { %7662 = vmatprep.subr.bf16.mxu0 %v10287_v49  ;;  %v1723_v49 = vld [vmem:[#allocation8] sm:$0x3] }
 0x22e   :  { %v7554_v19 = vpop.f32.mrb[20].mxu1 }
 0x22f   :  { %v7555_v18 = vpop.f32.mrb[21].mxu1 }
 0x230   :  { %v10290_v42 = vadd.f32 %v7555_v18, %v7554_v19  ;;  %v7557_v35 = vpop.f32.mrb[22].mxu1  ;;  %7663 = vmatpush3.bf16.msra.mxu0 %v10292_v32  ;;  %v10304_v19 = vld [vmem:[#allocation5 + $0x8] sm:$0xff]   ;;  %v10310_v18 = vld [vmem:[#allocation5 + $0x10] sm:$0xff]  }
 0x231   :  { %v7558_v0 = vpop.f32.mrb[23].mxu1  ;;  %7679 = vmatprep.subr.bf16.mxu0 %v10295_v20  ;;  %12248 = vst [vmem:[#allocation79_spill] sm:$0xff] %v10304_v19  ;;  %12250 = vst [vmem:[#allocation81_spill] sm:$0xff] %v10310_v18  ;;  %v10316_v35 = vld [vmem:[#allocation5 + $0x18] sm:$0xff]  }
 0x232   :  { %12252 = vst [vmem:[#allocation83_spill] sm:$0xff] %v10316_v35  ;;  %v10319_v0 = vld [vmem:[#allocation5 + $0x60] sm:$0xff]  }
 0x233   :  { %2448 = vmatmul.mubr.bf16.vlgmr.msra.gmra.mrb[32].mxu0 %v2117_v62  ;;  %v10313_v62 = vld [vmem:[#allocation5 + $0x58] sm:$0xff]   ;;  %12253 = vst [vmem:[#allocation84_spill] sm:$0xff] %v10319_v0 }
 0x234   :  { %7680 = vmatpush3.bf16.msra.mxu0 %v10298_v59  ;;  %12251 = vst [vmem:[#allocation82_spill] sm:$0xff] %v10313_v62 }
 0x235   :  { %7681 = vmatprep.subr.bf16.mxu0 %v10301_v22 }
 0x238   :  { %7682 = vmatpush3.bf16.msra.mxu0 %v10304_v19  ;;  %v10322_v19 = vld [vmem:[#allocation5 + $0x20] sm:$0xff]  }
 0x239   :  { %7683 = vmatprep.subr.bf16.mxu0 %v10307_v30  ;;  %12254 = vst [vmem:[#allocation85_spill] sm:$0xff] %v10322_v19  ;;  %v10325_v30 = vld [vmem:[#allocation5 + $0x68] sm:$0xff]  }
 0x23a   :  { %12255 = vst [vmem:[#allocation86_spill] sm:$0xff] %v10325_v30 }
 0x23c   :  { %7684 = vmatpush3.bf16.msra.mxu0 %v10310_v18  ;;  %v10328_v18 = vld [vmem:[#allocation5 + $0x28] sm:$0xff]  }
 0x23d   :  { %7685 = vmatprep.subr.bf16.mxu0 %v10313_v62  ;;  %12256 = vst [vmem:[#allocation87_spill] sm:$0xff] %v10328_v18  ;;  %v10331_v62 = vld [vmem:[#allocation5 + $0x70] sm:$0xff]  }
 0x23e   :  { %12257 = vst [vmem:[#allocation88_spill] sm:$0xff] %v10331_v62 }
 0x240   :  { %7686 = vmatpush3.bf16.msra.mxu0 %v10316_v35 }
 0x241   :  { %7687 = vmatprep.subr.bf16.mxu0 %v10319_v0 }
 0x244   :  { %7688 = vmatpush3.bf16.msra.mxu0 %v10322_v19 }
 0x245   :  { %7689 = vmatprep.subr.bf16.mxu0 %v10325_v30 }
 0x248   :  { %7690 = vmatpush3.bf16.msra.mxu0 %v10328_v18 }
 0x249   :  { %7691 = vmatprep.subr.bf16.mxu0 %v10331_v62 }
 0x24c   :  { %7692 = vmatpush3.bf16.msra.mxu0 %v9907_v26 }
 0x24d   :  { %7693 = vmatprep.subr.bf16.mxu0 %v9910_v27 }
 0x24e   :  { %v7598_v35 = vpop.f32.mrb[24].mxu1 }
 0x24f   :  { %v7599_v0 = vpop.f32.mrb[25].mxu1 }
 0x250   :  { %v10336_v22 = vadd.f32 %v7599_v0, %v7598_v35  ;;  %v7601_v19 = vpop.f32.mrb[26].mxu1  ;;  %7694 = vmatpush3.bf16.msra.mxu0 %v9913_v28  ;;  %v9094_v35 = vld [vmem:[#allocation7 + $0x40] sm:$0xff]   ;;  %v9095_v28 = vld [vmem:[#allocation7 + $0x48] sm:$0xff]  }
 0x251   :  { %v7602_v59 = vpop.f32.mrb[27].mxu1  ;;  %7723 = vmatprep.subr.bf16.mxu0 %v9916_v29  ;;  %8810 = vmatpush3.bf16.msra.mxu1 %v9094_v35  ;;  %v9096_v29 = vld [vmem:[#allocation7 + $0x50] sm:$0xff]   ;;  %v9099_v19 = vld [vmem:[#allocation7 + $0x68] sm:$0xff]  }
 0x252   :  { %8811 = vmatprep.subr.bf16.mxu1 %v12186_v33 }
 0x255   :  { %8812 = vmatpush3.bf16.msra.mxu1 %v9095_v28 }
 0x256   :  { %8813 = vmatprep.subr.bf16.mxu1 %v12186_v33 }
 0x259   :  { %8814 = vmatpush3.bf16.msra.mxu1 %v9096_v29 }
 0x25a   :  { %8815 = vmatprep.subr.bf16.mxu1 %v12186_v33 }
 0x26e   :  { %v7642_v30 = vpop.f32.mrb[28].mxu1 }
 0x26f   :  { %v7643_v18 = vpop.f32.mrb[29].mxu1 }
 0x270   :  { %v10340_v20 = vadd.f32 %v7643_v18, %v7642_v30  ;;  %v7645_v32 = vpop.f32.mrb[30].mxu1 }
 0x271   :  { %v7646_v62 = vpop.f32.mrb[31].mxu1  ;;  %v9097_v32 = vld [vmem:[#allocation7 + $0x58] sm:$0xff]  }
 0x272   :  { %8816 = vmatpush3.bf16.msra.mxu1 %v9097_v32 }
 0x273   :  { %8817 = vmatprep.subr.bf16.mxu1 %v12186_v33 }
 0x286   :  { %v1823_v16 = vpop.f32.mrb[16].mxu0 }
 0x287   :  { %v1829_v26 = vadd.f32 %v1823_v16, %v1723_v49  ;;  %v8807_v31 = vpop.f32.mrb[17].mxu0  ;;  %v2578_v16 = vld [vmem:[#allocation2 + $0x40] sm:$0x22] }
 0x288   :  { %v1826_v6 = vpop.f32.mrb[18].mxu0  ;;  %v9098_v31 = vld [vmem:[#allocation7 + $0x60] sm:$0xff]   ;;  %v2603_v59 = vunpack.c.h.bf16 %v2578_v16  ;;  %v2602_v18 = vunpack.c.l.bf16 %v2578_v16 }
 0x289   :  { %1830 = vst [vmem:[#allocation8] sm:$0x3] %v1829_v26  ;;  %v8808_v27 = vpop.f32.mrb[19].mxu0  ;;  %8818 = vmatpush3.bf16.msra.mxu1 %v9098_v31  ;;  %v2570_v6 = vld [vmem:[#allocation2] sm:$0x22]  ;;  %v9100_v26 = vld [vmem:[#allocation7 + $0x70] sm:$0xff]  }
 0x28a   :  { %8819 = vmatprep.subr.bf16.mxu1 %v12186_v33  ;;  %v2587_v49 = vunpack.c.h.bf16 %v2570_v6  ;;  %v2586_v30 = vunpack.c.l.bf16 %v2570_v6  ;;  %v2635_v0 = vmax.f32 %v2603_v59, 1e-06  ;;  %v2634_v35 = vmax.f32 %v2602_v18, 1e-06 }
 0x28c   :  { %v2619_v62 = vmax.f32 %v2587_v49, 1e-06  ;;  %v2618_v27 = vmax.f32 %v2586_v30, 1e-06  ;;  %v2667_v29 = vmul.f32 %v2635_v0, %v2635_v0  ;;  %v2666_v31 = vmul.f32 %v2634_v35, %v2634_v35 }
 0x28d   :  { %8820 = vmatpush3.bf16.msra.mxu1 %v9099_v19 }
 0x28e   :  { %8821 = vmatprep.subr.bf16.mxu1 %v12186_v33  ;;  %v2651_v28 = vmul.f32 %v2619_v62, %v2619_v62  ;;  %v2650_v32 = vmul.f32 %v2618_v27, %v2618_v27  ;;  %v2699_v56 = vmul.f32 %v2667_v29, %v2635_v0  ;;  %v2698_v54 = vmul.f32 %v2666_v31, %v2634_v35 }
 0x290   :  { %v2683_v50 = vmul.f32 %v2651_v28, %v2619_v62  ;;  %v2682_v4 = vmul.f32 %v2650_v32, %v2618_v27  ;;  %v2731_v16 = vpack.c.bf16 %v2699_v56, %v2699_v56  ;;  %v2730_v19 = vpack.c.bf16 %v2698_v54, %v2698_v54 }
 0x291   :  { %8822 = vmatpush3.bf16.msra.mxu1 %v9100_v26 }
 0x292   :  { %8823 = vmatprep.subr.bf16.mxu1 %v12186_v33  ;;  %v2715_v6 = vpack.c.bf16 %v2683_v50, %v2683_v50  ;;  %v2714_v59 = vpack.c.bf16 %v2682_v4, %v2682_v4  ;;  %v2795_v44 = vunpack.c.l.b16 %v2731_v16  ;;  %v2794_v62 = vunpack.c.l.b16 %v2730_v19 }
 0x294   :  { %v2779_v18 = vunpack.c.l.b16 %v2715_v6  ;;  %v2778_v60 = vunpack.c.l.b16 %v2714_v59  ;;  %v2814_v27 = vrot.slane %v2795_v44, 1  ;;  %v2811_v56 = vrot.slane %v2794_v62, 1 }
 0x295   :  { %8824 = vmatpush3.bf16.msra.mxu1 %v9101_v57 }
 0x296   :  { %7701 = vmatprep.subr.bf16.mxu1 %v9931_v25  ;;  %v2813_v26 = vrot.slane %v2779_v18, 2  ;;  %v2810_v50 = vrot.slane %v2778_v60, 2  ;;  %v2572_v25 = vld [vmem:[#allocation2 + $0x10] sm:$0x22] }
 0x297   :  { %v2580_v60 = vld [vmem:[#allocation2 + $0x50] sm:$0x22] }
 0x298   :  { %v2815_v4 = vsel %vm565_vm0, %v2814_v27, %v2813_v26  ;;  %v2812_v29 = vsel %vm565_vm0, %v2811_v56, %v2810_v50  ;;  %v2607_v44 = vunpack.c.h.bf16 %v2580_v60 }
 0x299   :  { %v2859_v28 = vpack.c.b16 %v2815_v4, %v2815_v4 }
 0x29b   :  { %2922 = vmatprep.mubr.bf16.mxu0 %v2859_v28 }
 0x2a6   :  { %v7532_v49 = vpop.f32.mrb[20].mxu0 }
 0x2a7   :  { %v7533_v30 = vpop.f32.mrb[21].mxu0 }
 0x2a8   :  { %v7534_v40 = vadd.f32 %v7533_v30, %v7532_v49  ;;  %v7535_v52 = vpop.f32.mrb[22].mxu0 }
 0x2a9   :  { %v7536_v0 = vpop.f32.mrb[23].mxu0  ;;  %v2858_v52 = vpack.c.b16 %v2812_v29, %v2812_v29 }
 0x2aa   :  { %v2210_v35 = vadd.f32 %v7534_v40, %v10229_v2  ;;  %v2591_v40 = vunpack.c.h.bf16 %v2572_v25  ;;  %v2590_v2 = vunpack.c.l.bf16 %v2572_v25 }
 0x2ab   :  { %2923 = vmatmul.mubr.bf16.vlgmr.msra.gmra.mrb[36].mxu0 %v2858_v52 }
 0x2ac   :  { %v2250_v54 = vadd.f32 %v10290_v42, %v2210_v35  ;;  %7724 = vmatpush3.bf16.msra.mxu0 %v9936_v37  ;;  %v2606_v37 = vunpack.c.l.bf16 %v2580_v60  ;;  %v2623_v57 = vmax.f32 %v2591_v40, 1e-06  ;;  %v2622_v42 = vmax.f32 %v2590_v2, 1e-06 }
 0x2ad   :  { %7725 = vmatprep.subr.bf16.mxu0 %v9939_v39  ;;  %v2639_v39 = vmax.f32 %v2607_v44, 1e-06 }
 0x2b0   :  { %7726 = vmatpush3.bf16.msra.mxu0 %v9942_v41  ;;  %v2638_v41 = vmax.f32 %v2606_v37, 1e-06 }
 0x2b1   :  { %7727 = vmatprep.subr.bf16.mxu0 %v9945_v43  ;;  %v2655_v43 = vmul.f32 %v2623_v57, %v2623_v57 }
 0x2b2   :  { %v2670_v32 = vmul.f32 %v2638_v41, %v2638_v41 }
 0x2b3   :  { %v2687_v31 = vmul.f32 %v2655_v43, %v2623_v57  ;;  %v12259_v43 = vld [vmem:[#allocation13_spill] sm:$0xff] }
 0x2b4   :  { %7728 = vmatpush3.bf16.msra.mxu0 %v9948_v45  ;;  %v2671_v45 = vmul.f32 %v2639_v39, %v2639_v39  ;;  %v2702_v16 = vmul.f32 %v2670_v32, %v2638_v41 }
 0x2b5   :  { %7729 = vmatprep.subr.bf16.mxu0 %v9951_v47  ;;  %v2654_v47 = vmul.f32 %v2622_v42, %v2622_v42 }
 0x2b6   :  { %v2734_v19 = vpack.c.bf16 %v2702_v16, %v2702_v16 }
 0x2b7   :  { %v2686_v6 = vmul.f32 %v2654_v47, %v2622_v42 }
 0x2b8   :  { %7730 = vmatpush3.bf16.msra.mxu0 %v9954_v53  ;;  %v2703_v53 = vmul.f32 %v2671_v45, %v2639_v39 }
 0x2b9   :  { %7731 = vmatprep.subr.bf16.mxu0 %v9957_v58  ;;  %v2719_v58 = vpack.c.bf16 %v2687_v31, %v2687_v31  ;;  %v2718_v59 = vpack.c.bf16 %v2686_v6, %v2686_v6 }
 0x2ba   :  { %v2735_v49 = vpack.c.bf16 %v2703_v53, %v2703_v53 }
 0x2bb   :  { %v2782_v0 = vunpack.c.l.b16 %v2718_v59 }
 0x2bc   :  { %7732 = vmatpush3.bf16.msra.mxu0 %v9961_v11  ;;  %v2783_v11 = vunpack.c.l.b16 %v2719_v58  ;;  %v2799_v18 = vunpack.c.l.b16 %v2735_v49 }
 0x2bd   :  { %7733 = vmatprep.subr.bf16.mxu0 %v9964_v13  ;;  %v2798_v13 = vunpack.c.l.b16 %v2734_v19 }
 0x2be   :  { %v2825_v35 = vrot.slane %v2783_v11, 2  ;;  %v2826_v50 = vrot.slane %v2799_v18, 1 }
 0x2bf   :  { %v2823_v4 = vrot.slane %v2798_v13, 1 }
 0x2c0   :  { %7734 = vmatpush3.bf16.msra.mxu0 %v9969_v21  ;;  %v2822_v21 = vrot.slane %v2782_v0, 2  ;;  %v2827_v28 = vsel %vm565_vm0, %v2826_v50, %v2825_v35  ;;  %v12262_v35 = vld [vmem:[#allocation16_spill] sm:$0xff] }
 0x2c1   :  { %7735 = vmatprep.subr.bf16.mxu0 %v9972_v23  ;;  %v2863_v29 = vpack.c.b16 %v2827_v28, %v2827_v28  ;;  %v10396_v50 = vld [vmem:[#allocation5 + $0x308] sm:$0xff]   ;;  %v10408_v28 = vld [vmem:[#allocation5 + $0x318] sm:$0xff]  }
 0x2c2   :  { %v2824_v52 = vsel %vm565_vm0, %v2823_v4, %v2822_v21  ;;  %v10405_v21 = vld [vmem:[#allocation5 + $0x358] sm:$0xff]   ;;  %v2576_v4 = vld [vmem:[#allocation2 + $0x30] sm:$0x22] }
 0x2c3   :  { %v2862_v60 = vpack.c.b16 %v2824_v52, %v2824_v52  ;;  %3002 = vmatprep.mubr.bf16.mxu0 %v2863_v29  ;;  %v2599_v29 = vunpack.c.h.bf16 %v2576_v4 }
 0x2c4   :  { %7736 = vmatpush3.bf16.msra.mxu0 %v9975_v36  ;;  %v2574_v36 = vld [vmem:[#allocation2 + $0x20] sm:$0x22] }
 0x2c5   :  { %7737 = vmatprep.subr.bf16.mxu0 %v9978_v55  ;;  %v2582_v55 = vld [vmem:[#allocation2 + $0x60] sm:$0x22] }
 0x2c6   :  { %v7576_v30 = vpop.f32.mrb[24].mxu0 }
 0x2c7   :  { %v7577_v62 = vpop.f32.mrb[25].mxu0 }
 0x2c8   :  { %v7578_v26 = vadd.f32 %v7577_v62, %v7576_v30  ;;  %v7579_v27 = vpop.f32.mrb[26].mxu0  ;;  %7738 = vmatpush3.bf16.msra.mxu0 %v9981_v1  ;;  %v2595_v1 = vunpack.c.h.bf16 %v2574_v36 }
 0x2c9   :  { %v7580_v56 = vpop.f32.mrb[27].mxu0  ;;  %7767 = vmatprep.subr.bf16.mxu0 %v9986_v5  ;;  %v12258_v5 = vld [vmem:[#allocation12_spill] sm:$0xff] }
 0x2ca   :  { %v2290_v23 = vadd.f32 %v7578_v26, %v2250_v54  ;;  %v2594_v54 = vunpack.c.l.bf16 %v2574_v36  ;;  %v2627_v40 = vmax.f32 %v2595_v1, 1e-06  ;;  %v12260_v26 = vld [vmem:[#allocation14_spill] sm:$0xff] }
 0x2cb   :  { %3003 = vmatmul.mubr.bf16.vlgmr.msra.gmra.mrb[40].mxu0 %v2862_v60  ;;  %v10399_v56 = vld [vmem:[#allocation5 + $0x350] sm:$0xff]   ;;  %v2598_v60 = vunpack.c.l.bf16 %v2576_v4 }
 0x2cc   :  { %v2330_v25 = vadd.f32 %v10336_v22, %v2290_v23  ;;  %7768 = vmatpush3.bf16.msra.mxu0 %v9989_v9  ;;  %v2611_v22 = vunpack.c.h.bf16 %v2582_v55  ;;  %v2610_v9 = vunpack.c.l.bf16 %v2582_v55  ;;  %v2626_v44 = vmax.f32 %v2594_v54, 1e-06  ;;  %v2584_v23 = vld [vmem:[#allocation2 + $0x70] sm:$0x22]  ;;  %v10414_v54 = vld [vmem:[#allocation5 + $0x320] sm:$0xff]  }
 0x2cd   :  { %7769 = vmatprep.subr.bf16.mxu0 %v9992_v10  ;;  %v2615_v52 = vunpack.c.h.bf16 %v2584_v23  ;;  %v2614_v36 = vunpack.c.l.bf16 %v2584_v23  ;;  %v2631_v55 = vmax.f32 %v2599_v29, 1e-06 }
 0x2ce   :  { %v2643_v10 = vmax.f32 %v2611_v22, 1e-06  ;;  %v2630_v22 = vmax.f32 %v2598_v60, 1e-06 }
 0x2cf   :  { %v2647_v1 = vmax.f32 %v2615_v52, 1e-06 }
 0x2d0   :  { %7770 = vmatpush3.bf16.msra.mxu0 %v9995_v12  ;;  %v2642_v12 = vmax.f32 %v2610_v9, 1e-06  ;;  %v2663_v9 = vmul.f32 %v2631_v55, %v2631_v55 }
 0x2d1   :  { %7771 = vmatprep.subr.bf16.mxu0 %v9998_v14  ;;  %v2659_v14 = vmul.f32 %v2627_v40, %v2627_v40 }
 0x2d2   :  { %v2674_v2 = vmul.f32 %v2642_v12, %v2642_v12 }
 0x2d3   :  { %v2691_v37 = vmul.f32 %v2659_v14, %v2627_v40  ;;  %v2679_v40 = vmul.f32 %v2647_v1, %v2647_v1  ;;  %v2695_v14 = vmul.f32 %v2663_v9, %v2631_v55 }
 0x2d4   :  { %7772 = vmatpush3.bf16.msra.mxu0 %v10001_v15  ;;  %v2675_v15 = vmul.f32 %v2643_v10, %v2643_v10  ;;  %v2706_v39 = vmul.f32 %v2674_v2, %v2642_v12 }
 0x2d5   :  { %7773 = vmatprep.subr.bf16.mxu0 %v10004_v17  ;;  %v2658_v17 = vmul.f32 %v2626_v44, %v2626_v44  ;;  %v2723_v42 = vpack.c.bf16 %v2691_v37, %v2691_v37  ;;  %v10420_v37 = vld [vmem:[#allocation5 + $0x328] sm:$0xff]  }
 0x2d6   :  { %v2738_v47 = vpack.c.bf16 %v2706_v39, %v2706_v39  ;;  %v10423_v39 = vld [vmem:[#allocation5 + $0x370] sm:$0xff]  }
 0x2d7   :  { %v2690_v57 = vmul.f32 %v2658_v17, %v2626_v44  ;;  %v2662_v44 = vmul.f32 %v2630_v22, %v2630_v22 }
 0x2d8   :  { %7774 = vmatpush3.bf16.msra.mxu0 %v10007_v24  ;;  %v2707_v24 = vmul.f32 %v2675_v15, %v2643_v10  ;;  %v10417_v10 = vld [vmem:[#allocation5 + $0x368] sm:$0xff]   ;;  %v2711_v15 = vmul.f32 %v2679_v40, %v2647_v1 }
 0x2d9   :  { %7775 = vmatprep.subr.bf16.mxu0 %v12258_v5  ;;  %v2722_v45 = vpack.c.bf16 %v2690_v57, %v2690_v57  ;;  %v2646_v5 = vmax.f32 %v2614_v36, 1e-06  ;;  %v2694_v17 = vmul.f32 %v2662_v44, %v2630_v22 }
 0x2da   :  { %v2739_v41 = vpack.c.bf16 %v2707_v24, %v2707_v24  ;;  %v2727_v24 = vpack.c.bf16 %v2695_v14, %v2695_v14  ;;  %v2743_v57 = vpack.c.bf16 %v2711_v15, %v2711_v15 }
 0x2db   :  { %v2786_v6 = vunpack.c.l.b16 %v2722_v45  ;;  %v2678_v12 = vmul.f32 %v2646_v5, %v2646_v5 }
 0x2dc   :  { %7776 = vmatpush3.bf16.msra.mxu0 %v10013_v7  ;;  %v2787_v7 = vunpack.c.l.b16 %v2723_v42  ;;  %v2803_v31 = vunpack.c.l.b16 %v2739_v41  ;;  %v2726_v42 = vpack.c.bf16 %v2694_v17, %v2694_v17  ;;  %v2791_v45 = vunpack.c.l.b16 %v2727_v24  ;;  %v10444_v24 = vld [vmem:[#allocation2 + $0x58] sm:$0x22] }
 0x2dd   :  { %7777 = vmatprep.subr.bf16.mxu0 %v10017_v34  ;;  %v2802_v34 = vunpack.c.l.b16 %v2738_v47  ;;  %v2710_v2 = vmul.f32 %v2678_v12, %v2646_v5  ;;  %v2807_v47 = vunpack.c.l.b16 %v2743_v57 }
 0x2de   :  { %v2837_v49 = vrot.slane %v2787_v7, 2  ;;  %v2838_v59 = vrot.slane %v2803_v31, 1  ;;  %v2571_v7 = vld [vmem:[#allocation2 + $0x8] sm:$0x22] }
 0x2df   :  { %v2835_v30 = vrot.slane %v2802_v34, 1  ;;  %v2742_v41 = vpack.c.bf16 %v2710_v2, %v2710_v2  ;;  %v2579_v31 = vld [vmem:[#allocation2 + $0x48] sm:$0x22]  ;;  %v10442_v2 = vld [vmem:[#allocation2 + $0x18] sm:$0x22] }
 0x2e0   :  { %7778 = vmatpush3.bf16.msra.mxu0 %v10022_v63  ;;  %v2834_v63 = vrot.slane %v2786_v6, 2  ;;  %v2839_v18 = vsel %vm565_vm0, %v2838_v59, %v2837_v49  ;;  %v2849_v49 = vrot.slane %v2791_v45, 2  ;;  %v2850_v59 = vrot.slane %v2807_v47, 1 }
 0x2e1   :  { %7779 = vmatprep.subr.bf16.mxu0 %v12259_v43  ;;  %v2867_v62 = vpack.c.b16 %v2839_v18, %v2839_v18  ;;  %v2806_v6 = vunpack.c.l.b16 %v2742_v41  ;;  %v2604_v41 = vunpack.c.l.bf16 %v2579_v31  ;;  %v2593_v47 = vunpack.c.h.bf16 %v10442_v2 }
 0x2e2   :  { %v2836_v0 = vsel %vm565_vm0, %v2835_v30, %v2834_v63  ;;  %v10429_v63 = vld [vmem:[#allocation5 + $0x378] sm:$0xff]  }
 0x2e3   :  { %v2866_v27 = vpack.c.b16 %v2836_v0, %v2836_v0  ;;  %3082 = vmatprep.mubr.bf16.mxu0 %v2867_v62  ;;  %v2589_v62 = vunpack.c.h.bf16 %v2571_v7  ;;  %v2605_v0 = vunpack.c.h.bf16 %v2579_v31 }
 0x2e4   :  { %7780 = vmatpush3.bf16.msra.mxu0 %v10028_v61  ;;  %v12261_v61 = vld [vmem:[#allocation15_spill] sm:$0xff] }
 0x2e5   :  { %7781 = vmatprep.subr.bf16.mxu0 %v10031_v3  ;;  %v12263_v3 = vld [vmem:[#allocation17_spill] sm:$0xff]  ;;  %v2621_v23 = vmax.f32 %v2589_v62, 1e-06  ;;  %v2637_v29 = vmax.f32 %v2605_v0, 1e-06  ;;  %v12265_v62 = vld [vmem:[#allocation19_spill] sm:$0xff] }
 0x2e6   :  { %v7620_v32 = vpop.f32.mrb[28].mxu0 }
 0x2e7   :  { %v7621_v53 = vpop.f32.mrb[29].mxu0  ;;  %v2669_v52 = vmul.f32 %v2637_v29, %v2637_v29 }
 0x2e8   :  { %v7622_v16 = vadd.f32 %v7621_v53, %v7620_v32  ;;  %v7623_v58 = vpop.f32.mrb[30].mxu0  ;;  %7782 = vmatpush3.bf16.msra.mxu0 %v12260_v26  ;;  %v2790_v53 = vunpack.c.l.b16 %v2726_v42  ;;  %v2851_v26 = vsel %vm565_vm0, %v2850_v59, %v2849_v49  ;;  %v2588_v42 = vunpack.c.l.bf16 %v2571_v7 }
 0x2e9   :  { %v7624_v19 = vpop.f32.mrb[31].mxu0  ;;  %7811 = vmatprep.subr.bf16.mxu0 %v12261_v61  ;;  %v10426_v58 = vld [vmem:[#allocation5 + $0x330] sm:$0xff]   ;;  %v2701_v36 = vmul.f32 %v2669_v52, %v2637_v29  ;;  %v12269_v29 = vld [vmem:[#allocation23_spill] sm:$0xff] }
 0x2ea   :  { %v2370_v11 = vadd.f32 %v7622_v16, %v2330_v25  ;;  %v10411_v25 = vld [vmem:[#allocation5 + $0x360] sm:$0xff]   ;;  %v2846_v30 = vrot.slane %v2790_v53, 2  ;;  %v2620_v53 = vmax.f32 %v2588_v42, 1e-06 }
 0x2eb   :  { %3083 = vmatmul.mubr.bf16.vlgmr.msra.gmra.mrb[44].mxu0 %v2866_v27  ;;  %v2871_v27 = vpack.c.b16 %v2851_v26, %v2851_v26  ;;  %v2733_v5 = vpack.c.bf16 %v2701_v36, %v2701_v36  ;;  %v12266_v26 = vld [vmem:[#allocation20_spill] sm:$0xff] }
 0x2ec   :  { %v10390_v13 = vadd.f32 %v10340_v20, %v2370_v11  ;;  %7812 = vmatpush3.bf16.msra.mxu0 %v12262_v35  ;;  %v10402_v20 = vld [vmem:[#allocation5 + $0x310] sm:$0xff]   ;;  %v2847_v11 = vrot.slane %v2806_v6, 1  ;;  %v2636_v6 = vmax.f32 %v2604_v41, 1e-06  ;;  %v2652_v7 = vmul.f32 %v2620_v53, %v2620_v53  ;;  %v12274_v42 = vld [vmem:[#allocation28_spill] sm:$0xff] }
 0x2ed   :  { %7813 = vmatprep.subr.bf16.mxu0 %v12263_v3  ;;  %v10435_v3 = vld [vmem:[#allocation5 + $0x338] sm:$0xff]   ;;  %3162 = vmatprep.mubr.bf16.mxu0 %v2871_v27  ;;  %v2797_v12 = vunpack.c.l.b16 %v2733_v5 }
 0x2ee   :  { %v2848_v61 = vsel %vm565_vm0, %v2847_v11, %v2846_v30  ;;  %v2668_v31 = vmul.f32 %v2636_v6, %v2636_v6  ;;  %v12272_v5 = vld [vmem:[#allocation26_spill] sm:$0xff] }
 0x2ef   :  { %v2870_v4 = vpack.c.b16 %v2848_v61, %v2848_v61  ;;  %v2820_v15 = vrot.slane %v2797_v12, 1  ;;  %v12267_v61 = vld [vmem:[#allocation21_spill] sm:$0xff] }
 0x2f0   :  { %7814 = vmatpush3.bf16.msra.mxu0 %v10396_v50  ;;  %v2700_v30 = vmul.f32 %v2668_v31, %v2636_v6 }
 0x2f1   :  { %7815 = vmatprep.subr.bf16.mxu0 %v10399_v56 }
 0x2f2   :  { %v2732_v0 = vpack.c.bf16 %v2700_v30, %v2700_v30 }
 0x2f4   :  { %7816 = vmatpush3.bf16.msra.mxu0 %v10402_v20 }
 0x2f5   :  { %7817 = vmatprep.subr.bf16.mxu0 %v10405_v21 }
 0x2f8   :  { %7818 = vmatpush3.bf16.msra.mxu0 %v10408_v28 }
 0x2f9   :  { %7819 = vmatprep.subr.bf16.mxu0 %v10411_v25 }
 0x2fc   :  { %7820 = vmatpush3.bf16.msra.mxu0 %v10414_v54 }
 0x2fd   :  { %7821 = vmatprep.subr.bf16.mxu0 %v10417_v10 }
 0x300   :  { %7822 = vmatpush3.bf16.msra.mxu0 %v10420_v37 }
 0x301   :  { %7823 = vmatprep.subr.bf16.mxu0 %v10423_v39 }
 0x304   :  { %7824 = vmatpush3.bf16.msra.mxu0 %v10426_v58 }
 0x305   :  { %7825 = vmatprep.subr.bf16.mxu0 %v10429_v63 }
 0x306   :  { %v7664_v43 = vpop.f32.mrb[32].mxu0 }
 0x307   :  { %v7665_v32 = vpop.f32.mrb[33].mxu0 }
 0x308   :  { %v7666_v34 = vadd.f32 %v7665_v32, %v7664_v43  ;;  %v7667_v16 = vpop.f32.mrb[34].mxu0  ;;  %7826 = vmatpush3.bf16.msra.mxu0 %v10435_v3  ;;  %v2609_v32 = vunpack.c.h.bf16 %v10444_v24 }
 0x309   :  { %v7668_v19 = vpop.f32.mrb[35].mxu0  ;;  %8829 = vmatprep.subr.bf16.mxu0 %v12186_v33 }
 0x30a   :  { %v2450_v18 = vadd.f32 %v7666_v34, %v10390_v13  ;;  %v2653_v13 = vmul.f32 %v2621_v23, %v2621_v23  ;;  %v2625_v34 = vmax.f32 %v2593_v47, 1e-06  ;;  %v2641_v16 = vmax.f32 %v2609_v32, 1e-06 }
 0x30b   :  { %3163 = vmatmul.mubr.bf16.vlgmr.msra.gmra.mrb[48].mxu0 %v2870_v4  ;;  %v2684_v19 = vmul.f32 %v2652_v7, %v2620_v53  ;;  %v12268_v4 = vld [vmem:[#allocation22_spill] sm:$0xff]  ;;  %v12278_v7 = vld [vmem:[#allocation32_spill] sm:$0xff] }
 0x30c   :  { %v2455_v35 = vmul.f32 0.0625, %v2450_v18  ;;  %8845 = vmatprep.mubr.msk.bf16.mxu0 %vm9782_vm1, %v12186_v33  ;;  %v2685_v60 = vmul.f32 %v2653_v13, %v2621_v23  ;;  %v2657_v49 = vmul.f32 %v2625_v34, %v2625_v34  ;;  %v2673_v59 = vmul.f32 %v2641_v16, %v2641_v16  ;;  %v12276_v53 = vld [vmem:[#allocation30_spill] sm:$0xff] }
 0x30e   :  { %9154 = vlog2.f32 %v2455_v35  ;;  %v2717_v22 = vpack.c.bf16 %v2685_v60, %v2685_v60  ;;  %v2689_v11 = vmul.f32 %v2657_v49, %v2625_v34  ;;  %v2705_v18 = vmul.f32 %v2673_v59, %v2641_v16  ;;  %v12270_v60 = vld [vmem:[#allocation24_spill] sm:$0xff]  ;;  %v12279_v59 = vld [vmem:[#allocation33_spill] sm:$0xff] }
 0x30f   :  { %v2796_v35 = vunpack.c.l.b16 %v2732_v0 }
 0x310   :  { %v2781_v44 = vunpack.c.l.b16 %v2717_v22  ;;  %v2737_v27 = vpack.c.bf16 %v2705_v18, %v2705_v18 }
 0x311   :  { %v2817_v52 = vrot.slane %v2796_v35, 1 }
 0x312   :  { %v2819_v14 = vrot.slane %v2781_v44, 2  ;;  %v2801_v23 = vunpack.c.l.b16 %v2737_v27  ;;  %v10466_v44 = vld [vmem:[#allocation2 + $0x68] sm:$0x22] }
 0x314   :  { %v2821_v17 = vsel %vm565_vm0, %v2820_v15, %v2819_v14  ;;  %v12273_v14 = vld [vmem:[#allocation27_spill] sm:$0xff]  ;;  %v2592_v15 = vunpack.c.l.bf16 %v10442_v2 }
 0x315   :  { %v2861_v43 = vpack.c.b16 %v2821_v17, %v2821_v17  ;;  %v2608_v17 = vunpack.c.l.bf16 %v10444_v24  ;;  %v12277_v2 = vld [vmem:[#allocation31_spill] sm:$0xff] }
 0x316   :  { %v2624_v47 = vmax.f32 %v2592_v15, 1e-06 }
 0x317   :  { %v2640_v32 = vmax.f32 %v2608_v17, 1e-06  ;;  %v12289_v17 = vld [vmem:[#allocation43_spill] sm:$0xff] }
 0x318   :  { %v9155_v55 = vpop.eup %9154  ;;  %v2656_v24 = vmul.f32 %v2624_v47, %v2624_v47 }
 0x319   :  { %v2457_v1 = vmul.f32 0.6931472, %v9155_v55  ;;  %v2832_v55 = vrot.slane %v2801_v23, 1  ;;  %v2672_v16 = vmul.f32 %v2640_v32, %v2640_v32 }
 0x31b   :  { %v2458_v9 = vmul.f32 0.33333334, %v2457_v1  ;;  %v12271_v1 = vld [vmem:[#allocation25_spill] sm:$0xff]  ;;  %v2704_v30 = vmul.f32 %v2672_v16, %v2640_v32 }
 0x31c   :  { %v12291_v32 = vld [vmem:[#allocation45_spill] sm:$0xff] }
 0x31d   :  { %v2459_v40 = vmul.f32 1.442695, %v2458_v9  ;;  %v2736_v0 = vpack.c.bf16 %v2704_v30, %v2704_v30 }
 0x31f   :  { %9156 = vpow2.f32 %v2459_v40  ;;  %v10464_v40 = vld [vmem:[#allocation2 + $0x28] sm:$0x22]  ;;  %v2800_v35 = vunpack.c.l.b16 %v2736_v0 }
 0x320   :  { %v2597_v41 = vunpack.c.h.bf16 %v10464_v40 }
 0x322   :  { %v2629_v6 = vmax.f32 %v2597_v41, 1e-06 }
 0x324   :  { %v2661_v31 = vmul.f32 %v2629_v6, %v2629_v6 }
 0x329   :  { %v9157_v57 = vpop.eup %9156 }
 0x32a   :  { %v2462_v45 = vpack.c.bf16 %v9157_v57, %v9157_v57 }
 0x32c   :  { %8826 = vmatmul.mubr.bf16.vlgmr.msra.gmra.mrb[32].mxu1 %v2462_v45  ;;  %v12275_v45 = vld [vmem:[#allocation29_spill] sm:$0xff] }
 0x32d   :  { %7702 = vmatpush3.bf16.msra.mxu1 %v10076_v51  ;;  %2962 = vmatprep.mubr.bf16.mxu1 %v2861_v43  ;;  %v12264_v51 = vld [vmem:[#allocation18_spill] sm:$0xff]  ;;  %v2613_v43 = vunpack.c.h.bf16 %v10466_v44 }
 0x32e   :  { %7703 = vmatprep.subr.bf16.mxu1 %v10079_v38  ;;  %v2716_v38 = vpack.c.bf16 %v2684_v19, %v2684_v19  ;;  %v2688_v19 = vmul.f32 %v2656_v24, %v2624_v47 }
 0x32f   :  { %v2645_v34 = vmax.f32 %v2613_v43, 1e-06  ;;  %v12290_v43 = vld [vmem:[#allocation44_spill] sm:$0xff] }
 0x331   :  { %7704 = vmatpush3.bf16.msra.mxu1 %v10083_v46  ;;  %v2721_v46 = vpack.c.bf16 %v2689_v11, %v2689_v11  ;;  %v2677_v49 = vmul.f32 %v2645_v34, %v2645_v34  ;;  %v2693_v11 = vmul.f32 %v2661_v31, %v2629_v6 }
 0x332   :  { %7705 = vmatprep.subr.bf16.mxu1 %v10086_v8  ;;  %v2780_v8 = vunpack.c.l.b16 %v2716_v38  ;;  %v2720_v38 = vpack.c.bf16 %v2688_v19, %v2688_v19 }
 0x333   :  { %v2709_v18 = vmul.f32 %v2677_v49, %v2645_v34  ;;  %v12292_v34 = vld [vmem:[#allocation46_spill] sm:$0xff] }
 0x334   :  { %v2816_v13 = vrot.slane %v2780_v8, 2  ;;  %v2784_v8 = vunpack.c.l.b16 %v2720_v38 }
 0x335   :  { %7706 = vmatpush3.bf16.msra.mxu1 %v10089_v48  ;;  %v2785_v48 = vunpack.c.l.b16 %v2721_v46  ;;  %v2725_v46 = vpack.c.bf16 %v2693_v11, %v2693_v11  ;;  %v2741_v27 = vpack.c.bf16 %v2709_v18, %v2709_v18 }
 0x336   :  { %7707 = vmatprep.subr.bf16.mxu1 %v12264_v51  ;;  %v2818_v22 = vsel %vm565_vm0, %v2817_v52, %v2816_v13  ;;  %v12280_v51 = vld [vmem:[#allocation34_spill] sm:$0xff]  ;;  %v2828_v13 = vrot.slane %v2784_v8, 2  ;;  %v2829_v52 = vrot.slane %v2800_v35, 1 }
 0x337   :  { %v2831_v36 = vrot.slane %v2785_v48, 2  ;;  %v2860_v12 = vpack.c.b16 %v2818_v22, %v2818_v22  ;;  %v2789_v48 = vunpack.c.l.b16 %v2725_v46  ;;  %v2805_v23 = vunpack.c.l.b16 %v2741_v27 }
 0x338   :  { %v2830_v22 = vsel %vm565_vm0, %v2829_v52, %v2828_v13 }
 0x339   :  { %7708 = vmatpush3.bf16.msra.mxu1 %v12265_v62  ;;  %v2833_v9 = vsel %vm565_vm0, %v2832_v55, %v2831_v36  ;;  %v12281_v62 = vld [vmem:[#allocation35_spill] sm:$0xff]  ;;  %v2843_v36 = vrot.slane %v2789_v48, 2  ;;  %v2844_v55 = vrot.slane %v2805_v23, 1  ;;  %v2864_v15 = vpack.c.b16 %v2830_v22, %v2830_v22 }
 0x33a   :  { %7709 = vmatprep.subr.bf16.mxu1 %v12266_v26  ;;  %v2865_v57 = vpack.c.b16 %v2833_v9, %v2833_v9  ;;  %v12282_v26 = vld [vmem:[#allocation36_spill] sm:$0xff] }
 0x33b   :  { %v2845_v9 = vsel %vm565_vm0, %v2844_v55, %v2843_v36 }
 0x33c   :  { %v2869_v41 = vpack.c.b16 %v2845_v9, %v2845_v9 }
 0x33d   :  { %7710 = vmatpush3.bf16.msra.mxu1 %v12267_v61  ;;  %v12283_v61 = vld [vmem:[#allocation37_spill] sm:$0xff] }
 0x33e   :  { %7711 = vmatprep.subr.bf16.mxu1 %v12268_v4  ;;  %v12284_v4 = vld [vmem:[#allocation38_spill] sm:$0xff] }
 0x341   :  { %7712 = vmatpush3.bf16.msra.mxu1 %v12269_v29  ;;  %v12285_v29 = vld [vmem:[#allocation39_spill] sm:$0xff] }
 0x342   :  { %7713 = vmatprep.subr.bf16.mxu1 %v12270_v60  ;;  %v12286_v60 = vld [vmem:[#allocation40_spill] sm:$0xff] }
 0x345   :  { %7714 = vmatpush3.bf16.msra.mxu1 %v12271_v1  ;;  %v12287_v1 = vld [vmem:[#allocation41_spill] sm:$0xff] }
 0x346   :  { %7715 = vmatprep.subr.bf16.mxu1 %v12272_v5  ;;  %v12288_v5 = vld [vmem:[#allocation42_spill] sm:$0xff] }
 0x349   :  { %7716 = vmatpush3.bf16.msra.mxu1 %v12273_v14  ;;  %v10492_v14 = vld [vmem:[#allocation2 + $0x78] sm:$0x22] }
 0x34a   :  { %7745 = vmatprep.subr.bf16.mxu1 %v12274_v42  ;;  %v2612_v42 = vunpack.c.l.bf16 %v10466_v44  ;;  %v2617_v47 = vunpack.c.h.bf16 %v10492_v14 }
 0x34c   :  { %2963 = vmatmul.mubr.bf16.vlgmr.msra.gmra.mrb[36].mxu1 %v2860_v12  ;;  %v10490_v12 = vld [vmem:[#allocation2 + $0x38] sm:$0x22]  ;;  %v2644_v6 = vmax.f32 %v2612_v42, 1e-06  ;;  %v2649_v24 = vmax.f32 %v2617_v47, 1e-06 }
 0x34d   :  { %7746 = vmatpush3.bf16.msra.mxu1 %v12275_v45  ;;  %3042 = vmatprep.mubr.bf16.mxu1 %v2865_v57  ;;  %v2596_v57 = vunpack.c.l.bf16 %v10464_v40  ;;  %v2601_v45 = vunpack.c.h.bf16 %v10490_v12  ;;  %v12293_v40 = vld [vmem:[#allocation47_spill] sm:$0xff]  ;;  %v12304_v42 = vld [vmem:[#allocation58_spill] sm:$0xff]  ;;  %v2600_v47 = vunpack.c.l.bf16 %v10490_v12  ;;  %v12311_v12 = vld [vmem:[#allocation65_spill] sm:$0xff] }
 0x34e   :  { %7747 = vmatprep.subr.bf16.mxu1 %v12276_v53  ;;  %v2676_v16 = vmul.f32 %v2644_v6, %v2644_v6  ;;  %v2681_v49 = vmul.f32 %v2649_v24, %v2649_v24 }
 0x34f   :  { %v2628_v53 = vmax.f32 %v2596_v57, 1e-06 }
 0x350   :  { %v2708_v30 = vmul.f32 %v2676_v16, %v2644_v6  ;;  %v2713_v18 = vmul.f32 %v2681_v49, %v2649_v24  ;;  %v12306_v6 = vld [vmem:[#allocation60_spill] sm:$0xff] }
 0x351   :  { %7748 = vmatpush3.bf16.msra.mxu1 %v12277_v2  ;;  %v2633_v2 = vmax.f32 %v2601_v45, 1e-06  ;;  %v2660_v44 = vmul.f32 %v2628_v53, %v2628_v53  ;;  %v12305_v45 = vld [vmem:[#allocation59_spill] sm:$0xff] }
 0x352   :  { %7749 = vmatprep.subr.bf16.mxu1 %v12278_v7  ;;  %v12294_v7 = vld [vmem:[#allocation48_spill] sm:$0xff]  ;;  %v2740_v0 = vpack.c.bf16 %v2708_v30, %v2708_v30  ;;  %v2745_v27 = vpack.c.bf16 %v2713_v18, %v2713_v18  ;;  %v12315_v18 = vld [vmem:[#allocation69_spill] sm:$0xff] }
 0x353   :  { %v2665_v31 = vmul.f32 %v2633_v2, %v2633_v2  ;;  %v2692_v19 = vmul.f32 %v2660_v44, %v2628_v53  ;;  %v12309_v44 = vld [vmem:[#allocation63_spill] sm:$0xff] }
 0x354   :  { %v2804_v35 = vunpack.c.l.b16 %v2740_v0  ;;  %v2809_v23 = vunpack.c.l.b16 %v2745_v27  ;;  %v12316_v0 = vld [vmem:[#allocation70_spill] sm:$0xff] }
 0x355   :  { %7750 = vmatpush3.bf16.msra.mxu1 %v12279_v59  ;;  %v12295_v59 = vld [vmem:[#allocation49_spill] sm:$0xff]  ;;  %v2697_v11 = vmul.f32 %v2665_v31, %v2633_v2  ;;  %v2724_v38 = vpack.c.bf16 %v2692_v19, %v2692_v19  ;;  %v2632_v2 = vmax.f32 %v2600_v47, 1e-06  ;;  %v12310_v31 = vld [vmem:[#allocation64_spill] sm:$0xff]  ;;  %v12313_v19 = vld [vmem:[#allocation67_spill] sm:$0xff] }
 0x356   :  { %7751 = vmatprep.subr.bf16.mxu1 %v12280_v51  ;;  %v12296_v51 = vld [vmem:[#allocation50_spill] sm:$0xff]  ;;  %v2841_v52 = vrot.slane %v2804_v35, 1  ;;  %v2856_v55 = vrot.slane %v2809_v23, 1  ;;  %v12319_v23 = vld [vmem:[#allocation73_spill] sm:$0xff]  ;;  %v12333_v47 = vld [vmem:[#allocation87_spill] sm:$0xff] }
 0x357   :  { %v2729_v46 = vpack.c.bf16 %v2697_v11, %v2697_v11  ;;  %v2788_v8 = vunpack.c.l.b16 %v2724_v38  ;;  %v2664_v16 = vmul.f32 %v2632_v2, %v2632_v2  ;;  %v12314_v11 = vld [vmem:[#allocation68_spill] sm:$0xff] }
 0x359   :  { %7752 = vmatpush3.bf16.msra.mxu1 %v12281_v62  ;;  %v12297_v62 = vld [vmem:[#allocation51_spill] sm:$0xff]  ;;  %v2793_v48 = vunpack.c.l.b16 %v2729_v46  ;;  %v2840_v13 = vrot.slane %v2788_v8, 2 }
 0x35a   :  { %7753 = vmatprep.subr.bf16.mxu1 %v12282_v26  ;;  %v12298_v26 = vld [vmem:[#allocation52_spill] sm:$0xff] }
 0x35b   :  { %v2855_v36 = vrot.slane %v2793_v48, 2 }
 0x35d   :  { %7754 = vmatpush3.bf16.msra.mxu1 %v12283_v61  ;;  %v12299_v61 = vld [vmem:[#allocation53_spill] sm:$0xff] }
 0x35e   :  { %7755 = vmatprep.subr.bf16.mxu1 %v12284_v4  ;;  %v12300_v4 = vld [vmem:[#allocation54_spill] sm:$0xff] }
 0x361   :  { %7756 = vmatpush3.bf16.msra.mxu1 %v12285_v29  ;;  %v12301_v29 = vld [vmem:[#allocation55_spill] sm:$0xff] }
 0x362   :  { %7757 = vmatprep.subr.bf16.mxu1 %v12286_v60  ;;  %v12302_v60 = vld [vmem:[#allocation56_spill] sm:$0xff] }
 0x365   :  { %7758 = vmatpush3.bf16.msra.mxu1 %v12287_v1 }
 0x366   :  { %7759 = vmatprep.subr.bf16.mxu1 %v12288_v5 }
 0x369   :  { %7760 = vmatpush3.bf16.msra.mxu1 %v12289_v17  ;;  %v2842_v17 = vsel %vm565_vm0, %v2841_v52, %v2840_v13  ;;  %v12320_v52 = vld [vmem:[#allocation74_spill] sm:$0xff] }
 0x36a   :  { %7789 = vmatprep.subr.bf16.mxu1 %v12290_v43  ;;  %v2868_v43 = vpack.c.b16 %v2842_v17, %v2842_v17  ;;  %v12327_v17 = vld [vmem:[#allocation81_spill] sm:$0xff] }
 0x36c   :  { %3043 = vmatmul.mubr.bf16.vlgmr.msra.gmra.mrb[40].mxu1 %v2864_v15  ;;  %v12303_v15 = vld [vmem:[#allocation57_spill] sm:$0xff] }
 0x36d   :  { %7790 = vmatpush3.bf16.msra.mxu1 %v12291_v32  ;;  %3122 = vmatprep.mubr.bf16.mxu1 %v2869_v41  ;;  %v2857_v41 = vsel %vm565_vm0, %v2856_v55, %v2855_v36  ;;  %v2616_v32 = vunpack.c.l.bf16 %v10492_v14  ;;  %v2696_v14 = vmul.f32 %v2664_v16, %v2632_v2  ;;  %v12321_v36 = vld [vmem:[#allocation75_spill] sm:$0xff]  ;;  %v12322_v55 = vld [vmem:[#allocation76_spill] sm:$0xff] }
 0x36e   :  { %7791 = vmatprep.subr.bf16.mxu1 %v12292_v34  ;;  %v2873_v53 = vpack.c.b16 %v2857_v41, %v2857_v41  ;;  %v12307_v34 = vld [vmem:[#allocation61_spill] sm:$0xff]  ;;  %v12330_v41 = vld [vmem:[#allocation84_spill] sm:$0xff]  ;;  %v10561_v16 = vld [vmem:[#allocation5 + $0x38] sm:$0xff]  }
 0x36f   :  { %v2648_v24 = vmax.f32 %v2616_v32, 1e-06  ;;  %v2728_v30 = vpack.c.bf16 %v2696_v14, %v2696_v14 }
 0x371   :  { %7792 = vmatpush3.bf16.msra.mxu1 %v12293_v40  ;;  %v12308_v40 = vld [vmem:[#allocation62_spill] sm:$0xff] }
 0x372   :  { %7793 = vmatprep.subr.bf16.mxu1 %v12294_v7  ;;  %v2680_v7 = vmul.f32 %v2648_v24, %v2648_v24 }
 0x374   :  { %v2712_v49 = vmul.f32 %v2680_v7, %v2648_v24  ;;  %v10564_v7 = vld [vmem:[#allocation5 + $0x140] sm:$0xff]  }
 0x375   :  { %7794 = vmatpush3.bf16.msra.mxu1 %v12295_v59  ;;  %v12312_v59 = vld [vmem:[#allocation66_spill] sm:$0xff] }
 0x376   :  { %7795 = vmatprep.subr.bf16.mxu1 %v12296_v51  ;;  %v2744_v51 = vpack.c.bf16 %v2712_v49, %v2712_v49 }
 0x378   :  { %v2808_v38 = vunpack.c.l.b16 %v2744_v51 }
 0x379   :  { %7796 = vmatpush3.bf16.msra.mxu1 %v12297_v62  ;;  %v2792_v62 = vunpack.c.l.b16 %v2728_v30 }
 0x37a   :  { %7797 = vmatprep.subr.bf16.mxu1 %v12298_v26  ;;  %v12317_v26 = vld [vmem:[#allocation71_spill] sm:$0xff]  ;;  %v2853_v27 = vrot.slane %v2808_v38, 1 }
 0x37b   :  { %v2852_v46 = vrot.slane %v2792_v62, 2  ;;  %v9102_v38 = vld [vmem:[#allocation7 + $0x80] sm:$0xff]  }
 0x37c   :  { %8830 = vmatpush3.bf16.msra.mxu0 %v9102_v38 }
 0x37d   :  { %7798 = vmatpush3.bf16.msra.mxu1 %v12299_v61  ;;  %v12318_v61 = vld [vmem:[#allocation72_spill] sm:$0xff]  ;;  %8831 = vmatprep.subr.bf16.mxu0 %v12186_v33 }
 0x37e   :  { %7799 = vmatprep.subr.bf16.mxu1 %v12300_v4  ;;  %v7695_v1 = vpop.f32.mrb[36].mxu0 }
 0x37f   :  { %v7696_v22 = vpop.f32.mrb[37].mxu0 }
 0x380   :  { %v10512_v5 = vadd.f32 %v7696_v22, %v7695_v1  ;;  %v7698_v9 = vpop.f32.mrb[38].mxu0  ;;  %v12323_v1 = vld [vmem:[#allocation77_spill] sm:$0xff]  ;;  %v12324_v22 = vld [vmem:[#allocation78_spill] sm:$0xff] }
 0x381   :  { %7800 = vmatpush3.bf16.msra.mxu1 %v12301_v29  ;;  %v7699_v57 = vpop.f32.mrb[39].mxu0  ;;  %v2854_v29 = vsel %vm565_vm0, %v2853_v27, %v2852_v46  ;;  %v12325_v9 = vld [vmem:[#allocation79_spill] sm:$0xff] }
 0x382   :  { %7801 = vmatprep.subr.bf16.mxu1 %v12302_v60  ;;  %v2872_v60 = vpack.c.b16 %v2854_v29, %v2854_v29  ;;  %v12328_v57 = vld [vmem:[#allocation82_spill] sm:$0xff]  ;;  %v9106_v27 = vld [vmem:[#allocation7 + $0xa0] sm:$0xff]  }
 0x383   :  { %v9105_v46 = vld [vmem:[#allocation7 + $0x98] sm:$0xff]  }
 0x385   :  { %7802 = vmatpush3.bf16.msra.mxu1 %v12303_v15  ;;  %v12326_v15 = vld [vmem:[#allocation80_spill] sm:$0xff] }
 0x386   :  { %7803 = vmatprep.subr.bf16.mxu1 %v12304_v42  ;;  %v12329_v42 = vld [vmem:[#allocation83_spill] sm:$0xff] }
 0x389   :  { %7804 = vmatpush3.bf16.msra.mxu1 %v12305_v45  ;;  %v12332_v45 = vld [vmem:[#allocation86_spill] sm:$0xff] }
 0x38a   :  { %7833 = vmatprep.subr.bf16.mxu1 %v12306_v6 }
 0x38c   :  { %3123 = vmatmul.mubr.bf16.vlgmr.msra.gmra.mrb[44].mxu1 %v2868_v43  ;;  %v12331_v43 = vld [vmem:[#allocation85_spill] sm:$0xff] }
 0x38d   :  { %7834 = vmatpush3.bf16.msra.mxu1 %v12307_v34  ;;  %3202 = vmatprep.mubr.bf16.mxu1 %v2873_v53  ;;  %v12334_v53 = vld [vmem:[#allocation88_spill] sm:$0xff] }
 0x38e   :  { %7835 = vmatprep.subr.bf16.mxu1 %v12308_v40  ;;  %v10555_v40 = vld [vmem:[#allocation5 + $0x30] sm:$0xff]  }
 0x391   :  { %7836 = vmatpush3.bf16.msra.mxu1 %v12309_v44  ;;  %v10558_v44 = vld [vmem:[#allocation5 + $0x78] sm:$0xff]  }
 0x392   :  { %7837 = vmatprep.subr.bf16.mxu1 %v12310_v31 }
 0x395   :  { %7838 = vmatpush3.bf16.msra.mxu1 %v12311_v12 }
 0x396   :  { %7839 = vmatprep.subr.bf16.mxu1 %v12312_v59 }
 0x399   :  { %7840 = vmatpush3.bf16.msra.mxu1 %v12313_v19  ;;  %v2461_v19 = vld [vmem:[#allocation8] sm:$0x3] }
 0x39a   :  { %7841 = vmatprep.subr.bf16.mxu1 %v12314_v11 }
 0x39d   :  { %7842 = vmatpush3.bf16.msra.mxu1 %v12315_v18 }
 0x39e   :  { %7843 = vmatprep.subr.bf16.mxu1 %v12316_v0  ;;  %v7739_v8 = vpop.f32.mrb[40].mxu0  ;;  %v9103_v0 = vld [vmem:[#allocation7 + $0x88] sm:$0xff]  }
 0x39f   :  { %v7740_v35 = vpop.f32.mrb[41].mxu0  ;;  %8832 = vmatpush3.bf16.msra.mxu0 %v9103_v0 }
 0x3a0   :  { %v10534_v4 = vadd.f32 %v7740_v35, %v7739_v8  ;;  %v7742_v48 = vpop.f32.mrb[42].mxu0  ;;  %8833 = vmatprep.subr.bf16.mxu0 %v12186_v33  ;;  %v3333_v8 = vld [vmem:[#allocation2 + $0x40] sm:$0x22] }
 0x3a1   :  { %7844 = vmatpush3.bf16.msra.mxu1 %v12317_v26  ;;  %v7743_v13 = vpop.f32.mrb[43].mxu0  ;;  %v9104_v26 = vld [vmem:[#allocation7 + $0x90] sm:$0xff]   ;;  %v3358_v48 = vunpack.c.h.bf16 %v3333_v8 }
 0x3a2   :  { %7845 = vmatprep.subr.bf16.mxu1 %v12318_v61  ;;  %v3325_v61 = vld [vmem:[#allocation2] sm:$0x22]  ;;  %v3357_v13 = vunpack.c.l.bf16 %v3333_v8 }
 0x3a3   :  { %8834 = vmatpush3.bf16.msra.mxu0 %v9104_v26  ;;  %v3342_v35 = vunpack.c.h.bf16 %v3325_v61  ;;  %v3341_v29 = vunpack.c.l.bf16 %v3325_v61 }
 0x3a4   :  { %8835 = vmatprep.subr.bf16.mxu0 %v12186_v33 }
 0x3a5   :  { %7846 = vmatpush3.bf16.msra.mxu1 %v12319_v23  ;;  %v9107_v23 = vld [vmem:[#allocation7 + $0xa8] sm:$0xff]  }
 0x3a6   :  { %7847 = vmatprep.subr.bf16.mxu1 %v12320_v52  ;;  %v3374_v52 = vmax.f32 %v3342_v35, 1e-06 }
 0x3a7   :  { %8836 = vmatpush3.bf16.msra.mxu0 %v9105_v46 }
 0x3a8   :  { %8837 = vmatprep.subr.bf16.mxu0 %v12186_v33 }
 0x3a9   :  { %7848 = vmatpush3.bf16.msra.mxu1 %v12321_v36  ;;  %v9108_v36 = vld [vmem:[#allocation7 + $0xb0] sm:$0xff]  }
 0x3aa   :  { %7864 = vmatprep.subr.bf16.mxu1 %v12322_v55  ;;  %v3373_v55 = vmax.f32 %v3341_v29, 1e-06  ;;  %v10597_v29 = vld [vmem:[#allocation5 + $0x110] sm:$0xff]  }
 0x3ab   :  { %8838 = vmatpush3.bf16.msra.mxu0 %v9106_v27 }
 0x3ac   :  { %3203 = vmatmul.mubr.bf16.vlgmr.msra.gmra.mrb[48].mxu1 %v2872_v60  ;;  %8839 = vmatprep.subr.bf16.mxu0 %v12186_v33  ;;  %v3390_v60 = vmax.f32 %v3358_v48, 1e-06  ;;  %v10585_v48 = vld [vmem:[#allocation5 + $0x100] sm:$0xff]  }
 0x3ad   :  { %7865 = vmatpush3.bf16.msra.mxu1 %v12323_v1  ;;  %v3389_v1 = vmax.f32 %v3357_v13, 1e-06  ;;  %v10600_v13 = vld [vmem:[#allocation5 + $0x158] sm:$0xff]  }
 0x3ae   :  { %7866 = vmatprep.subr.bf16.mxu1 %v12324_v22  ;;  %v3406_v22 = vmul.f32 %v3374_v52, %v3374_v52 }
 0x3af   :  { %8840 = vmatpush3.bf16.msra.mxu0 %v9107_v23  ;;  %v10588_v23 = vld [vmem:[#allocation5 + $0x148] sm:$0xff]  }
 0x3b0   :  { %8841 = vmatprep.subr.bf16.mxu0 %v12186_v33 }
 0x3b1   :  { %7867 = vmatpush3.bf16.msra.mxu1 %v12325_v9  ;;  %v3422_v9 = vmul.f32 %v3390_v60, %v3390_v60 }
 0x3b2   :  { %7868 = vmatprep.subr.bf16.mxu1 %v12326_v15  ;;  %v3405_v15 = vmul.f32 %v3373_v55, %v3373_v55 }
 0x3b3   :  { %8842 = vmatpush3.bf16.msra.mxu0 %v9108_v36  ;;  %v10603_v36 = vld [vmem:[#allocation5 + $0x118] sm:$0xff]  }
 0x3b4   :  { %8843 = vmatprep.subr.bf16.mxu0 %v12186_v33 }
 0x3b5   :  { %7869 = vmatpush3.bf16.msra.mxu1 %v12327_v17  ;;  %v3421_v17 = vmul.f32 %v3389_v1, %v3389_v1 }
 0x3b6   :  { %7870 = vmatprep.subr.bf16.mxu1 %v12328_v57  ;;  %v3438_v57 = vmul.f32 %v3406_v22, %v3374_v52  ;;  %v3327_v52 = vld [vmem:[#allocation2 + $0x10] sm:$0x22]  ;;  %v10606_v22 = vld [vmem:[#allocation5 + $0x160] sm:$0xff]  }
 0x3b9   :  { %7871 = vmatpush3.bf16.msra.mxu1 %v12329_v42  ;;  %v3454_v42 = vmul.f32 %v3422_v9, %v3390_v60  ;;  %v3335_v60 = vld [vmem:[#allocation2 + $0x50] sm:$0x22]  ;;  %v3345_v9 = vunpack.c.l.bf16 %v3327_v52 }
 0x3ba   :  { %7872 = vmatprep.subr.bf16.mxu1 %v12330_v41  ;;  %v9109_v41 = vld [vmem:[#allocation7 + $0xb8] sm:$0xff]  }
 0x3bb   :  { %8844 = vmatpush3.bf16.msra.mxu0 %v9109_v41 }
 0x3bd   :  { %7873 = vmatpush3.bf16.msra.mxu1 %v12331_v43  ;;  %v3437_v43 = vmul.f32 %v3405_v15, %v3373_v55  ;;  %v3346_v55 = vunpack.c.h.bf16 %v3327_v52  ;;  %v3361_v15 = vunpack.c.l.bf16 %v3335_v60  ;;  %v10621_v52 = vld [vmem:[#allocation5 + $0x130] sm:$0xff]  }
 0x3be   :  { %7874 = vmatprep.subr.bf16.mxu1 %v12332_v45  ;;  %v7783_v32 = vpop.f32.mrb[44].mxu0  ;;  %v3453_v45 = vmul.f32 %v3421_v17, %v3389_v1  ;;  %v3362_v1 = vunpack.c.h.bf16 %v3335_v60 }
 0x3bf   :  { %v7784_v6 = vpop.f32.mrb[45].mxu0  ;;  %v3378_v17 = vmax.f32 %v3346_v55, 1e-06  ;;  %v3393_v41 = vmax.f32 %v3361_v15, 1e-06 }
 0x3c0   :  { %v10553_v34 = vadd.f32 %v7784_v6, %v7783_v32  ;;  %v7786_v2 = vpop.f32.mrb[46].mxu0  ;;  %v3486_v32 = vpack.c.bf16 %v3454_v42, %v3454_v42  ;;  %v3469_v6 = vpack.c.bf16 %v3437_v43, %v3437_v43  ;;  %v3377_v42 = vmax.f32 %v3345_v9, 1e-06  ;;  %v10609_v43 = vld [vmem:[#allocation5 + $0x120] sm:$0xff]   ;;  %v10624_v9 = vld [vmem:[#allocation5 + $0x178] sm:$0xff]  }
 0x3c1   :  { %7875 = vmatpush3.bf16.msra.mxu1 %v12333_v47  ;;  %v7787_v24 = vpop.f32.mrb[47].mxu0  ;;  %v3470_v47 = vpack.c.bf16 %v3438_v57, %v3438_v57  ;;  %v3485_v2 = vpack.c.bf16 %v3453_v45, %v3453_v45  ;;  %v3394_v57 = vmax.f32 %v3362_v1, 1e-06  ;;  %v3410_v45 = vmul.f32 %v3378_v17, %v3378_v17 }
 0x3c2   :  { %7876 = vmatprep.subr.bf16.mxu1 %v12334_v53 }
 0x3c5   :  { %7877 = vmatpush3.bf16.msra.mxu1 %v10555_v40 }
 0x3c6   :  { %7878 = vmatprep.subr.bf16.mxu1 %v10558_v44 }
 0x3c9   :  { %7879 = vmatpush3.bf16.msra.mxu1 %v10561_v16 }
 0x3ca   :  { %7908 = vmatprep.subr.bf16.mxu1 %v10564_v7 }
 0x3de   :  { %v7827_v31 = vpop.f32.mrb[48].mxu0 }
 0x3df   :  { %v7828_v12 = vpop.f32.mrb[49].mxu0 }
 0x3e0   :  { %v10567_v14 = vadd.f32 %v7828_v12, %v7827_v31  ;;  %v7830_v49 = vpop.f32.mrb[50].mxu0  ;;  %v3534_v31 = vunpack.c.l.b16 %v3470_v47  ;;  %v3550_v12 = vunpack.c.l.b16 %v3486_v32  ;;  %v3426_v47 = vmul.f32 %v3394_v57, %v3394_v57  ;;  %v10612_v32 = vld [vmem:[#allocation5 + $0x168] sm:$0xff]  }
 0x3e1   :  { %v7831_v59 = vpop.f32.mrb[51].mxu0 }
 0x3ff   :  { %v2562_v30 = vpop.f32.mrb[32].mxu1 }
 0x400   :  { %v2568_v51 = vadd.f32 %v2562_v30, %v2461_v19  ;;  %v8827_v11 = vpop.f32.mrb[33].mxu1  ;;  %v3533_v19 = vunpack.c.l.b16 %v3469_v6  ;;  %v3549_v30 = vunpack.c.l.b16 %v3485_v2  ;;  %v3425_v6 = vmul.f32 %v3393_v41, %v3393_v41 }
 0x401   :  { %v2565_v18 = vpop.f32.mrb[34].mxu1  ;;  %v10576_v11 = vld [vmem:[#allocation5 + $0xc0] sm:$0xff]   ;;  %v3442_v2 = vmul.f32 %v3410_v45, %v3378_v17 }
 0x402   :  { %2569 = vst [vmem:[#allocation8] sm:$0x3] %v2568_v51  ;;  %v8828_v62 = vpop.f32.mrb[35].mxu1  ;;  %7886 = vmatprep.subr.bf16.mxu0 %v10576_v11  ;;  %v3568_v18 = vrot.slane %v3534_v31, 3  ;;  %v3565_v0 = vrot.slane %v3533_v19, 3  ;;  %v3566_v26 = vrot.slane %v3549_v30, 2 }
 0x403   :  { %v3569_v62 = vrot.slane %v3550_v12, 2  ;;  %v3457_v12 = vmul.f32 %v3425_v6, %v3393_v41  ;;  %v10618_v30 = vld [vmem:[#allocation5 + $0x170] sm:$0xff]  }
 0x404   :  { %v3567_v8 = vsel %vm565_vm0, %v3566_v26, %v3565_v0 }
 0x405   :  { %v3570_v46 = vsel %vm565_vm0, %v3569_v62, %v3568_v18  ;;  %v3613_v35 = vpack.c.b16 %v3567_v8, %v3567_v8  ;;  %v3489_v18 = vpack.c.bf16 %v3457_v12, %v3457_v12  ;;  %v10651_v12 = vld [vmem:[#allocation5 + $0x210] sm:$0xff]  }
 0x406   :  { %v3614_v61 = vpack.c.b16 %v3570_v46, %v3570_v46 }
 0x408   :  { %3677 = vmatprep.mubr.bf16.mxu1 %v3614_v61  ;;  %v3553_v61 = vunpack.c.l.b16 %v3489_v18  ;;  %v10657_v18 = vld [vmem:[#allocation5 + $0x218] sm:$0xff]  }
 0x409   :  { %3678 = vmatmul.mubr.bf16.vlgmr.msra.gmra.mrb[52].mxu1 %v3613_v35  ;;  %12336 = vst [vmem:[#allocation13_spill] sm:$0xff] %v10657_v18 }
 0x40a   :  { %7909 = vmatpush3.bf16.msra.mxu1 %v10585_v48  ;;  %v3578_v17 = vrot.slane %v3553_v61, 2 }
 0x40b   :  { %7910 = vmatprep.subr.bf16.mxu1 %v10588_v23 }
 0x41f   :  { %v7717_v53 = vpop.f32.mrb[36].mxu1 }
 0x420   :  { %v7718_v24 = vpop.f32.mrb[37].mxu1 }
 0x421   :  { %v7719_v49 = vadd.f32 %v7718_v24, %v7717_v53  ;;  %v7720_v59 = vpop.f32.mrb[38].mxu1  ;;  %v3409_v53 = vmul.f32 %v3377_v42, %v3377_v42  ;;  %v3458_v24 = vmul.f32 %v3426_v47, %v3394_v57 }
 0x422   :  { %v7721_v51 = vpop.f32.mrb[39].mxu1  ;;  %v3474_v59 = vpack.c.bf16 %v3442_v2, %v3442_v2  ;;  %v10636_v2 = vld [vmem:[#allocation5 + $0x240] sm:$0xff]  }
 0x423   :  { %v2965_v38 = vadd.f32 %v7719_v49, %v10512_v5  ;;  %v10591_v5 = vld [vmem:[#allocation5 + $0x108] sm:$0xff]   ;;  %v3441_v31 = vmul.f32 %v3409_v53, %v3377_v42  ;;  %v3490_v19 = vpack.c.bf16 %v3458_v24, %v3458_v24  ;;  %v10633_v53 = vld [vmem:[#allocation5 + $0x138] sm:$0xff]  }
 0x424   :  { %7911 = vmatpush3.bf16.msra.mxu1 %v10591_v5  ;;  %v10615_v49 = vld [vmem:[#allocation5 + $0x128] sm:$0xff]  }
 0x425   :  { %v10582_v27 = vadd.f32 %v10534_v4, %v2965_v38  ;;  %v10594_v4 = vld [vmem:[#allocation5 + $0x150] sm:$0xff]   ;;  %v3473_v51 = vpack.c.bf16 %v3441_v31, %v3441_v31  ;;  %v3538_v38 = vunpack.c.l.b16 %v3474_v59  ;;  %v3554_v0 = vunpack.c.l.b16 %v3490_v19  ;;  %v10642_v24 = vld [vmem:[#allocation5 + $0x248] sm:$0xff]   ;;  %v10654_v59 = vld [vmem:[#allocation5 + $0x258] sm:$0xff]  }
 0x426   :  { %7912 = vmatprep.subr.bf16.mxu1 %v10594_v4  ;;  %v10648_v31 = vld [vmem:[#allocation5 + $0x250] sm:$0xff]   ;;  %12335 = vst [vmem:[#allocation12_spill] sm:$0xff] %v10654_v59  ;;  %v3329_v19 = vld [vmem:[#allocation2 + $0x20] sm:$0x22] }
 0x427   :  { %v3537_v46 = vunpack.c.l.b16 %v3473_v51  ;;  %v3580_v60 = vrot.slane %v3538_v38, 3  ;;  %v3581_v55 = vrot.slane %v3554_v0, 2  ;;  %v3337_v51 = vld [vmem:[#allocation2 + $0x60] sm:$0x22] }
 0x428   :  { %7913 = vmatpush3.bf16.msra.mxu1 %v10597_v29  ;;  %v3366_v38 = vunpack.c.h.bf16 %v3337_v51  ;;  %v10660_v0 = vld [vmem:[#allocation5 + $0x260] sm:$0xff]  }
 0x429   :  { %7914 = vmatprep.subr.bf16.mxu1 %v10600_v13  ;;  %v3577_v15 = vrot.slane %v3537_v46, 3  ;;  %v3582_v42 = vsel %vm565_vm0, %v3581_v55, %v3580_v60  ;;  %12337 = vst [vmem:[#allocation14_spill] sm:$0xff] %v10660_v0  ;;  %v3365_v46 = vunpack.c.l.bf16 %v3337_v51  ;;  %v10663_v55 = vld [vmem:[#allocation5 + $0x220] sm:$0xff]   ;;  %v10669_v51 = vld [vmem:[#allocation5 + $0x228] sm:$0xff]  }
 0x42a   :  { %v3618_v41 = vpack.c.b16 %v3582_v42, %v3582_v42  ;;  %12338 = vst [vmem:[#allocation15_spill] sm:$0xff] %v10663_v55 }
 0x42b   :  { %v3579_v45 = vsel %vm565_vm0, %v3578_v17, %v3577_v15  ;;  %v3397_v60 = vmax.f32 %v3365_v46, 1e-06  ;;  %v10666_v17 = vld [vmem:[#allocation5 + $0x268] sm:$0xff]  }
 0x42c   :  { %7915 = vmatpush3.bf16.msra.mxu1 %v10603_v36  ;;  %v3617_v6 = vpack.c.b16 %v3579_v45, %v3579_v45  ;;  %3757 = vmatprep.mubr.bf16.mxu1 %v3618_v41  ;;  %12339 = vst [vmem:[#allocation16_spill] sm:$0xff] %v10666_v17 }
 0x42d   :  { %7916 = vmatprep.subr.bf16.mxu1 %v10606_v22  ;;  %v3429_v42 = vmul.f32 %v3397_v60, %v3397_v60 }
 0x430   :  { %7917 = vmatpush3.bf16.msra.mxu1 %v10609_v43 }
 0x431   :  { %7918 = vmatprep.subr.bf16.mxu1 %v10612_v32 }
 0x434   :  { %7919 = vmatpush3.bf16.msra.mxu1 %v10615_v49 }
 0x435   :  { %7920 = vmatprep.subr.bf16.mxu1 %v10618_v30 }
 0x438   :  { %7921 = vmatpush3.bf16.msra.mxu1 %v10621_v52 }
 0x439   :  { %7922 = vmatprep.subr.bf16.mxu1 %v10624_v9 }
 0x43c   :  { %7923 = vmatpush3.bf16.msra.mxu1 %v10633_v53 }
 0x43d   :  { %7952 = vmatprep.subr.bf16.mxu1 %v10636_v2 }
 0x43f   :  { %v7761_v62 = vpop.f32.mrb[40].mxu1  ;;  %3758 = vmatmul.mubr.bf16.vlgmr.msra.gmra.mrb[56].mxu1 %v3617_v6 }
 0x440   :  { %v7762_v26 = vpop.f32.mrb[41].mxu1 }
 0x441   :  { %v7763_v8 = vadd.f32 %v7762_v26, %v7761_v62  ;;  %v7764_v35 = vpop.f32.mrb[42].mxu1  ;;  %v3350_v62 = vunpack.c.h.bf16 %v3329_v19  ;;  %v3349_v26 = vunpack.c.l.bf16 %v3329_v19  ;;  %v3461_v19 = vmul.f32 %v3429_v42, %v3397_v60 }
 0x442   :  { %v7765_v1 = vpop.f32.mrb[43].mxu1 }
 0x443   :  { %v3045_v57 = vadd.f32 %v7763_v8, %v10582_v27  ;;  %v10639_v27 = vld [vmem:[#allocation5 + $0x200] sm:$0xff]   ;;  %v3382_v61 = vmax.f32 %v3350_v62, 1e-06  ;;  %v3398_v8 = vmax.f32 %v3366_v38, 1e-06 }
 0x444   :  { %7953 = vmatpush3.bf16.msra.mxu1 %v10639_v27  ;;  %v3381_v35 = vmax.f32 %v3349_v26, 1e-06  ;;  %v10672_v26 = vld [vmem:[#allocation5 + $0x270] sm:$0xff]  }
 0x445   :  { %v10631_v47 = vadd.f32 %v10553_v34, %v3045_v57  ;;  %7954 = vmatprep.subr.bf16.mxu1 %v10642_v24  ;;  %v10645_v34 = vld [vmem:[#allocation5 + $0x208] sm:$0xff]   ;;  %v3414_v1 = vmul.f32 %v3382_v61, %v3382_v61  ;;  %v3430_v15 = vmul.f32 %v3398_v8, %v3398_v8 }
 0x446   :  { %v3413_v57 = vmul.f32 %v3381_v35, %v3381_v35 }
 0x447   :  { %v3446_v41 = vmul.f32 %v3414_v1, %v3382_v61  ;;  %v3462_v45 = vmul.f32 %v3430_v15, %v3398_v8  ;;  %v10675_v1 = vld [vmem:[#allocation5 + $0x230] sm:$0xff]  }
 0x448   :  { %7955 = vmatpush3.bf16.msra.mxu1 %v10645_v34  ;;  %v3445_v6 = vmul.f32 %v3413_v57, %v3381_v35 }
 0x449   :  { %7956 = vmatprep.subr.bf16.mxu1 %v10648_v31  ;;  %v3478_v62 = vpack.c.bf16 %v3446_v41, %v3446_v41  ;;  %v3494_v38 = vpack.c.bf16 %v3462_v45, %v3462_v45  ;;  %v10678_v41 = vld [vmem:[#allocation5 + $0x278] sm:$0xff]  }
 0x44a   :  { %v3477_v46 = vpack.c.bf16 %v3445_v6, %v3445_v6 }
 0x44c   :  { %7957 = vmatpush3.bf16.msra.mxu1 %v10651_v12  ;;  %v3541_v61 = vunpack.c.l.b16 %v3477_v46  ;;  %v10691_v46 = vld [vmem:[#allocation5 + $0x300] sm:$0xff]  }
 0x44d   :  { %7958 = vmatprep.subr.bf16.mxu1 %v10654_v59 }
 0x44e   :  { %v3589_v45 = vrot.slane %v3541_v61, 3  ;;  %v3339_v61 = vld [vmem:[#allocation2 + $0x70] sm:$0x22] }
 0x450   :  { %7959 = vmatpush3.bf16.msra.mxu1 %v10657_v18  ;;  %v3558_v18 = vunpack.c.l.b16 %v3494_v38  ;;  %v10685_v38 = vld [vmem:[#allocation5 + $0x238] sm:$0xff]  }
 0x451   :  { %7960 = vmatprep.subr.bf16.mxu1 %v10660_v0 }
 0x452   :  { %v3593_v57 = vrot.slane %v3558_v18, 2 }
 0x454   :  { %7961 = vmatpush3.bf16.msra.mxu1 %v10663_v55  ;;  %v3493_v55 = vpack.c.bf16 %v3461_v19, %v3461_v19 }
 0x455   :  { %7962 = vmatprep.subr.bf16.mxu1 %v10666_v17  ;;  %v3542_v17 = vunpack.c.l.b16 %v3478_v62 }
 0x456   :  { %v3557_v8 = vunpack.c.l.b16 %v3493_v55 }
 0x457   :  { %v3592_v15 = vrot.slane %v3542_v17, 3  ;;  %v10688_v17 = vld [vmem:[#allocation5 + $0x340] sm:$0xff]  }
 0x458   :  { %7963 = vmatpush3.bf16.msra.mxu1 %v10669_v51  ;;  %v3590_v6 = vrot.slane %v3557_v8, 2 }
 0x459   :  { %7964 = vmatprep.subr.bf16.mxu1 %v10672_v26  ;;  %v3594_v62 = vsel %vm565_vm0, %v3593_v57, %v3592_v15  ;;  %v3369_v15 = vunpack.c.l.bf16 %v3339_v61 }
 0x45a   :  { %v3622_v55 = vpack.c.b16 %v3594_v62, %v3594_v62 }
 0x45c   :  { %7965 = vmatpush3.bf16.msra.mxu1 %v10675_v1  ;;  %3837 = vmatprep.mubr.bf16.mxu1 %v3622_v55 }
 0x45d   :  { %7966 = vmatprep.subr.bf16.mxu1 %v10678_v41 }
 0x45f   :  { %v7805_v0 = vpop.f32.mrb[44].mxu1 }
 0x460   :  { %v7806_v59 = vpop.f32.mrb[45].mxu1  ;;  %7967 = vmatpush3.bf16.msra.mxu1 %v10685_v38 }
 0x461   :  { %v7807_v35 = vadd.f32 %v7806_v59, %v7805_v0  ;;  %v7808_v60 = vpop.f32.mrb[46].mxu1  ;;  %v3591_v59 = vsel %vm565_vm0, %v3590_v6, %v3589_v45  ;;  %7996 = vmatprep.subr.bf16.mxu1 %v10688_v17 }
 0x462   :  { %v7809_v42 = vpop.f32.mrb[47].mxu1  ;;  %v3621_v18 = vpack.c.b16 %v3591_v59, %v3591_v59 }
 0x463   :  { %v3125_v19 = vadd.f32 %v7807_v35, %v10631_v47  ;;  %v10694_v47 = vld [vmem:[#allocation5 + $0x348] sm:$0xff]   ;;  %v3370_v35 = vunpack.c.h.bf16 %v3339_v61 }
 0x464   :  { %3838 = vmatmul.mubr.bf16.vlgmr.msra.gmra.mrb[60].mxu1 %v3621_v18  ;;  %12340 = vst [vmem:[#allocation17_spill] sm:$0xff] %v10694_v47 }
 0x465   :  { %v3165_v0 = vadd.f32 %v10567_v14, %v3125_v19  ;;  %7997 = vmatpush3.bf16.msra.mxu1 %v10691_v46  ;;  %v3331_v14 = vld [vmem:[#allocation2 + $0x30] sm:$0x22]  ;;  %v3402_v42 = vmax.f32 %v3370_v35, 1e-06 }
 0x466   :  { %7998 = vmatprep.subr.bf16.mxu1 %v10694_v47  ;;  %v3354_v8 = vunpack.c.h.bf16 %v3331_v14  ;;  %v3353_v60 = vunpack.c.l.bf16 %v3331_v14 }
 0x468   :  { %v3386_v57 = vmax.f32 %v3354_v8, 1e-06  ;;  %v3385_v45 = vmax.f32 %v3353_v60, 1e-06  ;;  %v3326_v60 = vld [vmem:[#allocation2 + $0x8] sm:$0x22] }
 0x469   :  { %7999 = vmatpush3.bf16.msra.mxu1 %v10396_v50  ;;  %v3401_v50 = vmax.f32 %v3369_v15, 1e-06 }
 0x46a   :  { %8000 = vmatprep.subr.bf16.mxu1 %v10399_v56  ;;  %v3418_v56 = vmul.f32 %v3386_v57, %v3386_v57 }
 0x46b   :  { %v3433_v6 = vmul.f32 %v3401_v50, %v3401_v50 }
 0x46c   :  { %v3450_v19 = vmul.f32 %v3418_v56, %v3386_v57 }
 0x46d   :  { %8001 = vmatpush3.bf16.msra.mxu1 %v10402_v20  ;;  %v3434_v20 = vmul.f32 %v3402_v42, %v3402_v42  ;;  %v3465_v55 = vmul.f32 %v3433_v6, %v3401_v50 }
 0x46e   :  { %8002 = vmatprep.subr.bf16.mxu1 %v10405_v21  ;;  %v3417_v21 = vmul.f32 %v3385_v45, %v3385_v45 }
 0x46f   :  { %v3497_v14 = vpack.c.bf16 %v3465_v55, %v3465_v55 }
 0x470   :  { %v3449_v62 = vmul.f32 %v3417_v21, %v3385_v45  ;;  %v3344_v21 = vunpack.c.h.bf16 %v3326_v60 }
 0x471   :  { %8003 = vmatpush3.bf16.msra.mxu1 %v10408_v28  ;;  %v3466_v28 = vmul.f32 %v3434_v20, %v3402_v42  ;;  %v3561_v47 = vunpack.c.l.b16 %v3497_v14 }
 0x472   :  { %8004 = vmatprep.subr.bf16.mxu1 %v10411_v25  ;;  %v3482_v25 = vpack.c.bf16 %v3450_v19, %v3450_v19  ;;  %v3481_v18 = vpack.c.bf16 %v3449_v62, %v3449_v62 }
 0x473   :  { %v3498_v59 = vpack.c.bf16 %v3466_v28, %v3466_v28  ;;  %v3602_v56 = vrot.slane %v3561_v47, 2 }
 0x474   :  { %v3545_v15 = vunpack.c.l.b16 %v3481_v18 }
 0x475   :  { %8005 = vmatpush3.bf16.msra.mxu1 %v10414_v54  ;;  %v3546_v54 = vunpack.c.l.b16 %v3482_v25  ;;  %v3562_v8 = vunpack.c.l.b16 %v3498_v59 }
 0x476   :  { %8006 = vmatprep.subr.bf16.mxu1 %v10417_v10  ;;  %v3334_v10 = vld [vmem:[#allocation2 + $0x48] sm:$0x22] }
 0x477   :  { %v3604_v45 = vrot.slane %v3546_v54, 3  ;;  %v3360_v6 = vunpack.c.h.bf16 %v3334_v10 }
 0x479   :  { %8007 = vmatpush3.bf16.msra.mxu1 %v10420_v37  ;;  %v3605_v37 = vrot.slane %v3562_v8, 2 }
 0x47a   :  { %8008 = vmatprep.subr.bf16.mxu1 %v10423_v39  ;;  %v3601_v39 = vrot.slane %v3545_v15, 3 }
 0x47b   :  { %v3606_v19 = vsel %vm565_vm0, %v3605_v37, %v3604_v45 }
 0x47c   :  { %v3626_v28 = vpack.c.b16 %v3606_v19, %v3606_v19  ;;  %v3603_v62 = vsel %vm565_vm0, %v3602_v56, %v3601_v39  ;;  %v10718_v39 = vld [vmem:[#allocation2 + $0x58] sm:$0x22] }
 0x47d   :  { %8009 = vmatpush3.bf16.msra.mxu1 %v10426_v58  ;;  %v3625_v25 = vpack.c.b16 %v3603_v62, %v3603_v62  ;;  %v3376_v58 = vmax.f32 %v3344_v21, 1e-06  ;;  %v3359_v21 = vunpack.c.l.bf16 %v3334_v10  ;;  %v3364_v62 = vunpack.c.h.bf16 %v10718_v39 }
 0x47e   :  { %8010 = vmatprep.subr.bf16.mxu1 %v10429_v63  ;;  %3917 = vmatprep.mubr.bf16.mxu1 %v3626_v28  ;;  %v3392_v63 = vmax.f32 %v3360_v6, 1e-06 }
 0x47f   :  { %v7849_v61 = vpop.f32.mrb[48].mxu1  ;;  %v3396_v10 = vmax.f32 %v3364_v62, 1e-06  ;;  %v10749_v62 = vld [vmem:[#allocation5 + $0xe8] sm:$0xff]  }
 0x480   :  { %v7850_v35 = vpop.f32.mrb[49].mxu1  ;;  %v3424_v47 = vmul.f32 %v3392_v63, %v3392_v63  ;;  %12345 = vst [vmem:[#allocation22_spill] sm:$0xff] %v10749_v62 }
 0x481   :  { %v7851_v57 = vadd.f32 %v7850_v35, %v7849_v61  ;;  %v7852_v42 = vpop.f32.mrb[50].mxu1  ;;  %8011 = vmatpush3.bf16.msra.mxu1 %v10435_v3 }
 0x482   :  { %v7853_v50 = vpop.f32.mrb[51].mxu1  ;;  %8849 = vmatprep.subr.bf16.mxu1 %v12186_v33  ;;  %v3456_v18 = vmul.f32 %v3424_v47, %v3392_v63  ;;  %v10725_v63 = vld [vmem:[#allocation5 + $0xc8] sm:$0xff]  }
 0x483   :  { %v3205_v20 = vadd.f32 %v7851_v57, %v3165_v0  ;;  %v3408_v0 = vmul.f32 %v3376_v58, %v3376_v58  ;;  %v10716_v50 = vld [vmem:[#allocation2 + $0x18] sm:$0x22] }
 0x484   :  { %3918 = vmatmul.mubr.bf16.vlgmr.msra.gmra.mrb[64].mxu1 %v3625_v25  ;;  %v3488_v8 = vpack.c.bf16 %v3456_v18, %v3456_v18  ;;  %v3348_v28 = vunpack.c.h.bf16 %v10716_v50  ;;  %v10731_v18 = vld [vmem:[#allocation5 + $0xd0] sm:$0xff]  }
 0x485   :  { %v3210_v55 = vmul.f32 0.0625, %v3205_v20  ;;  %8865 = vmatprep.mubr.msk.bf16.mxu1 %vm9782_vm1, %v12186_v33  ;;  %v3440_v59 = vmul.f32 %v3408_v0, %v3376_v58  ;;  %v3343_v20 = vunpack.c.l.bf16 %v3326_v60  ;;  %v3391_v58 = vmax.f32 %v3359_v21, 1e-06  ;;  %v10728_v0 = vld [vmem:[#allocation5 + $0x88] sm:$0xff]  }
 0x486   :  { %v3552_v57 = vunpack.c.l.b16 %v3488_v8  ;;  %v3380_v60 = vmax.f32 %v3348_v28, 1e-06 }
 0x487   :  { %9158 = vlog2.f32 %v3210_v55  ;;  %v3472_v54 = vpack.c.bf16 %v3440_v59, %v3440_v59  ;;  %v10722_v55 = vld [vmem:[#allocation5 + $0x80] sm:$0xff]   ;;  %v3375_v25 = vmax.f32 %v3343_v20, 1e-06  ;;  %v3423_v59 = vmul.f32 %v3391_v58, %v3391_v58 }
 0x488   :  { %v3575_v45 = vrot.slane %v3552_v57, 2 }
 0x489   :  { %v3536_v15 = vunpack.c.l.b16 %v3472_v54  ;;  %v3407_v47 = vmul.f32 %v3375_v25, %v3375_v25  ;;  %v10734_v54 = vld [vmem:[#allocation5 + $0x90] sm:$0xff]  }
 0x48b   :  { %v3574_v42 = vrot.slane %v3536_v15, 3  ;;  %v3439_v8 = vmul.f32 %v3407_v47, %v3375_v25 }
 0x48d   :  { %v3576_v37 = vsel %vm565_vm0, %v3575_v45, %v3574_v42  ;;  %v10740_v42 = vld [vmem:[#allocation5 + $0x98] sm:$0xff]   ;;  %v3471_v45 = vpack.c.bf16 %v3439_v8, %v3439_v8  ;;  %v10758_v8 = vld [vmem:[#allocation5 + $0xb0] sm:$0xff]  }
 0x48e   :  { %v3616_v6 = vpack.c.b16 %v3576_v37, %v3576_v37  ;;  %12342 = vst [vmem:[#allocation19_spill] sm:$0xff] %v10740_v42  ;;  %12348 = vst [vmem:[#allocation25_spill] sm:$0xff] %v10758_v8 }
 0x491   :  { %v9159_v14 = vpop.eup %9158 }
 0x492   :  { %v3212_v61 = vmul.f32 0.6931472, %v9159_v14  ;;  %v3412_v14 = vmul.f32 %v3380_v60, %v3380_v60 }
 0x494   :  { %v3213_v3 = vmul.f32 0.33333334, %v3212_v61  ;;  %v3428_v61 = vmul.f32 %v3396_v10, %v3396_v10  ;;  %v3444_v15 = vmul.f32 %v3412_v14, %v3380_v60  ;;  %v10752_v60 = vld [vmem:[#allocation5 + $0xa8] sm:$0xff]  }
 0x495   :  { %12346 = vst [vmem:[#allocation23_spill] sm:$0xff] %v10752_v60 }
 0x496   :  { %v3214_v35 = vmul.f32 1.442695, %v3213_v3  ;;  %v3455_v3 = vmul.f32 %v3423_v59, %v3391_v58  ;;  %v3460_v57 = vmul.f32 %v3428_v61, %v3396_v10  ;;  %v3476_v20 = vpack.c.bf16 %v3444_v15, %v3444_v15  ;;  %v10755_v59 = vld [vmem:[#allocation5 + $0xf0] sm:$0xff]   ;;  %v10762_v15 = vld [vmem:[#allocation5 + $0xf8] sm:$0xff]  }
 0x497   :  { %12347 = vst [vmem:[#allocation24_spill] sm:$0xff] %v10755_v59  ;;  %12349 = vst [vmem:[#allocation26_spill] sm:$0xff] %v10762_v15 }
 0x498   :  { %9160 = vpow2.f32 %v3214_v35  ;;  %v10737_v35 = vld [vmem:[#allocation5 + $0xd8] sm:$0xff]   ;;  %v3487_v37 = vpack.c.bf16 %v3455_v3, %v3455_v3  ;;  %v3492_v21 = vpack.c.bf16 %v3460_v57, %v3460_v57  ;;  %v3540_v25 = vunpack.c.l.b16 %v3476_v20 }
 0x499   :  { %12341 = vst [vmem:[#allocation18_spill] sm:$0xff] %v10737_v35 }
 0x49a   :  { %v3551_v28 = vunpack.c.l.b16 %v3487_v37  ;;  %v3556_v58 = vunpack.c.l.b16 %v3492_v21  ;;  %v3586_v14 = vrot.slane %v3540_v25, 3  ;;  %v10768_v37 = vld [vmem:[#allocation2 + $0x68] sm:$0x22]  ;;  %v10770_v21 = vld [vmem:[#allocation5 + $0xb8] sm:$0xff]  }
 0x49b   :  { %12350 = vst [vmem:[#allocation27_spill] sm:$0xff] %v10770_v21 }
 0x49c   :  { %v3572_v47 = vrot.slane %v3551_v28, 2  ;;  %v3587_v61 = vrot.slane %v3556_v58, 2  ;;  %v3363_v28 = vunpack.c.l.bf16 %v10718_v39  ;;  %v10775_v58 = vld [vmem:[#allocation5 + $0x1c0] sm:$0xff]  }
 0x49d   :  { %12351 = vst [vmem:[#allocation28_spill] sm:$0xff] %v10775_v58 }
 0x49e   :  { %v3588_v57 = vsel %vm565_vm0, %v3587_v61, %v3586_v14  ;;  %v10780_v14 = vld [vmem:[#allocation5 + $0x180] sm:$0xff]  }
 0x49f   :  { %v3620_v25 = vpack.c.b16 %v3588_v57, %v3588_v57  ;;  %12352 = vst [vmem:[#allocation29_spill] sm:$0xff] %v10780_v14 }
 0x4a2   :  { %v9161_v56 = vpop.eup %9160 }
 0x4a3   :  { %v3217_v19 = vpack.c.bf16 %v9161_v56, %v9161_v56  ;;  %v10743_v56 = vld [vmem:[#allocation5 + $0xe0] sm:$0xff]  }
 0x4a4   :  { %12343 = vst [vmem:[#allocation20_spill] sm:$0xff] %v10743_v56 }
 0x4a5   :  { %8846 = vmatmul.mubr.bf16.vlgmr.msra.gmra.mrb[52].mxu0 %v3217_v19  ;;  %v3535_v19 = vunpack.c.l.b16 %v3471_v45  ;;  %v10766_v45 = vld [vmem:[#allocation2 + $0x28] sm:$0x22] }
 0x4a6   :  { %7887 = vmatpush3.bf16.msra.mxu0 %v10722_v55  ;;  %3717 = vmatprep.mubr.bf16.mxu0 %v3616_v6  ;;  %v10746_v6 = vld [vmem:[#allocation5 + $0xa0] sm:$0xff]  }
 0x4a7   :  { %7888 = vmatprep.subr.bf16.mxu0 %v10725_v63  ;;  %12344 = vst [vmem:[#allocation21_spill] sm:$0xff] %v10746_v6  ;;  %v3571_v10 = vrot.slane %v3535_v19, 3  ;;  %v3347_v19 = vunpack.c.l.bf16 %v10716_v50  ;;  %v10783_v50 = vld [vmem:[#allocation5 + $0x1c8] sm:$0xff]  }
 0x4a8   :  { %12353 = vst [vmem:[#allocation30_spill] sm:$0xff] %v10783_v50 }
 0x4a9   :  { %v3573_v3 = vsel %vm565_vm0, %v3572_v47, %v3571_v10  ;;  %v3352_v10 = vunpack.c.h.bf16 %v10766_v45  ;;  %v3368_v47 = vunpack.c.h.bf16 %v10768_v37  ;;  %v3379_v61 = vmax.f32 %v3347_v19, 1e-06 }
 0x4aa   :  { %7889 = vmatpush3.bf16.msra.mxu0 %v10728_v0  ;;  %v3615_v20 = vpack.c.b16 %v3573_v3, %v3573_v3  ;;  %v3395_v3 = vmax.f32 %v3363_v28, 1e-06  ;;  %v10792_v28 = vld [vmem:[#allocation5 + $0x190] sm:$0xff]  }
 0x4ab   :  { %7890 = vmatprep.subr.bf16.mxu0 %v10731_v18  ;;  %v3384_v39 = vmax.f32 %v3352_v10, 1e-06  ;;  %v3400_v57 = vmax.f32 %v3368_v47, 1e-06  ;;  %12356 = vst [vmem:[#allocation33_spill] sm:$0xff] %v10792_v28  ;;  %v10795_v10 = vld [vmem:[#allocation5 + $0x1d8] sm:$0xff]  }
 0x4ac   :  { %12357 = vst [vmem:[#allocation34_spill] sm:$0xff] %v10795_v10 }
 0x4ad   :  { %v3432_v19 = vmul.f32 %v3400_v57, %v3400_v57 }
 0x4ae   :  { %7891 = vmatpush3.bf16.msra.mxu0 %v10734_v54 }
 0x4af   :  { %7892 = vmatprep.subr.bf16.mxu0 %v10737_v35 }
 0x4b2   :  { %7893 = vmatpush3.bf16.msra.mxu0 %v10740_v42 }
 0x4b3   :  { %7894 = vmatprep.subr.bf16.mxu0 %v10743_v56 }
 0x4b6   :  { %7895 = vmatpush3.bf16.msra.mxu0 %v10746_v6 }
 0x4b7   :  { %7896 = vmatprep.subr.bf16.mxu0 %v10749_v62 }
 0x4ba   :  { %7897 = vmatpush3.bf16.msra.mxu0 %v10752_v60  ;;  %v10801_v60 = vld [vmem:[#allocation5 + $0x1e0] sm:$0xff]  }
 0x4bb   :  { %7898 = vmatprep.subr.bf16.mxu0 %v10755_v59  ;;  %12359 = vst [vmem:[#allocation36_spill] sm:$0xff] %v10801_v60 }
 0x4be   :  { %7899 = vmatpush3.bf16.msra.mxu0 %v10758_v8  ;;  %v10798_v8 = vld [vmem:[#allocation5 + $0x198] sm:$0xff]  }
 0x4bf   :  { %7900 = vmatprep.subr.bf16.mxu0 %v10762_v15  ;;  %v3427_v15 = vmul.f32 %v3395_v3, %v3395_v3  ;;  %12358 = vst [vmem:[#allocation35_spill] sm:$0xff] %v10798_v8 }
 0x4c2   :  { %7901 = vmatpush3.bf16.msra.mxu0 %v10770_v21  ;;  %v10786_v21 = vld [vmem:[#allocation5 + $0x188] sm:$0xff]  }
 0x4c3   :  { %7930 = vmatprep.subr.bf16.mxu0 %v10775_v58  ;;  %12354 = vst [vmem:[#allocation31_spill] sm:$0xff] %v10786_v21  ;;  %v3411_v58 = vmul.f32 %v3379_v61, %v3379_v61 }
 0x4c5   :  { %3718 = vmatmul.mubr.bf16.vlgmr.msra.gmra.mrb[56].mxu0 %v3615_v20  ;;  %v10789_v20 = vld [vmem:[#allocation5 + $0x1d0] sm:$0xff]  }
 0x4c6   :  { %7931 = vmatpush3.bf16.msra.mxu0 %v10780_v14  ;;  %3797 = vmatprep.mubr.bf16.mxu0 %v3620_v25  ;;  %12355 = vst [vmem:[#allocation32_spill] sm:$0xff] %v10789_v20  ;;  %v3416_v14 = vmul.f32 %v3384_v39, %v3384_v39  ;;  %v3443_v25 = vmul.f32 %v3411_v58, %v3379_v61  ;;  %v10804_v58 = vld [vmem:[#allocation5 + $0x1a0] sm:$0xff]  }
 0x4c7   :  { %7932 = vmatprep.subr.bf16.mxu0 %v10783_v50  ;;  %v3459_v50 = vmul.f32 %v3427_v15, %v3395_v3  ;;  %12360 = vst [vmem:[#allocation37_spill] sm:$0xff] %v10804_v58 }
 0x4c8   :  { %v3448_v47 = vmul.f32 %v3416_v14, %v3384_v39  ;;  %v3475_v59 = vpack.c.bf16 %v3443_v25, %v3443_v25  ;;  %v10807_v14 = vld [vmem:[#allocation5 + $0x1e8] sm:$0xff]   ;;  %v10813_v25 = vld [vmem:[#allocation5 + $0x1f0] sm:$0xff]  }
 0x4c9   :  { %12361 = vst [vmem:[#allocation38_spill] sm:$0xff] %v10807_v14  ;;  %12363 = vst [vmem:[#allocation40_spill] sm:$0xff] %v10813_v25 }
 0x4ca   :  { %7933 = vmatpush3.bf16.msra.mxu0 %v10786_v21  ;;  %v3464_v21 = vmul.f32 %v3432_v19, %v3400_v57  ;;  %v3480_v62 = vpack.c.bf16 %v3448_v47, %v3448_v47  ;;  %v3539_v15 = vunpack.c.l.b16 %v3475_v59  ;;  %v10810_v57 = vld [vmem:[#allocation5 + $0x1a8] sm:$0xff]   ;;  %v10816_v59 = vld [vmem:[#allocation5 + $0x1b0] sm:$0xff]  }
 0x4cb   :  { %7934 = vmatprep.subr.bf16.mxu0 %v10789_v20  ;;  %v3491_v20 = vpack.c.bf16 %v3459_v50, %v3459_v50  ;;  %12362 = vst [vmem:[#allocation39_spill] sm:$0xff] %v10810_v57  ;;  %12364 = vst [vmem:[#allocation41_spill] sm:$0xff] %v10816_v59 }
 0x4cc   :  { %v3544_v3 = vunpack.c.l.b16 %v3480_v62  ;;  %v3583_v50 = vrot.slane %v3539_v15, 3  ;;  %v10820_v62 = vld [vmem:[#allocation5 + $0x1f8] sm:$0xff]  }
 0x4cd   :  { %v3555_v61 = vunpack.c.l.b16 %v3491_v20  ;;  %12365 = vst [vmem:[#allocation42_spill] sm:$0xff] %v10820_v62  ;;  %v10824_v15 = vld [vmem:[#allocation2 + $0x38] sm:$0x22] }
 0x4ce   :  { %7935 = vmatpush3.bf16.msra.mxu0 %v10792_v28  ;;  %v3496_v28 = vpack.c.bf16 %v3464_v21, %v3464_v21  ;;  %v3598_v21 = vrot.slane %v3544_v3, 3  ;;  %v3351_v3 = vunpack.c.l.bf16 %v10766_v45  ;;  %v10841_v45 = vld [vmem:[#allocation5 + $0x2c8] sm:$0xff]  }
 0x4cf   :  { %7936 = vmatprep.subr.bf16.mxu0 %v10795_v10  ;;  %v3584_v19 = vrot.slane %v3555_v61, 2  ;;  %v10826_v61 = vld [vmem:[#allocation2 + $0x78] sm:$0x22]  ;;  %12369 = vst [vmem:[#allocation46_spill] sm:$0xff] %v10841_v45 }
 0x4d0   :  { %v3560_v39 = vunpack.c.l.b16 %v3496_v28 }
 0x4d1   :  { %v3585_v20 = vsel %vm565_vm0, %v3584_v19, %v3583_v50  ;;  %v10833_v19 = vld [vmem:[#allocation5 + $0x2c0] sm:$0xff]  }
 0x4d2   :  { %7937 = vmatpush3.bf16.msra.mxu0 %v10798_v8  ;;  %v3599_v47 = vrot.slane %v3560_v39, 2  ;;  %v3367_v39 = vunpack.c.l.bf16 %v10768_v37  ;;  %12367 = vst [vmem:[#allocation44_spill] sm:$0xff] %v10833_v19  ;;  %v10859_v8 = vld [vmem:[#allocation5 + $0x2e0] sm:$0xff]  }
 0x4d3   :  { %7938 = vmatprep.subr.bf16.mxu0 %v10801_v60  ;;  %12375 = vst [vmem:[#allocation52_spill] sm:$0xff] %v10859_v8 }
 0x4d4   :  { %v3600_v28 = vsel %vm565_vm0, %v3599_v47, %v3598_v21  ;;  %v3356_v21 = vunpack.c.h.bf16 %v10824_v15  ;;  %v3372_v47 = vunpack.c.h.bf16 %v10826_v61 }
 0x4d5   :  { %v3624_v50 = vpack.c.b16 %v3600_v28, %v3600_v28 }
 0x4d6   :  { %7939 = vmatpush3.bf16.msra.mxu0 %v10804_v58  ;;  %v3388_v37 = vmax.f32 %v3356_v21, 1e-06  ;;  %v3404_v28 = vmax.f32 %v3372_v47, 1e-06  ;;  %v10853_v21 = vld [vmem:[#allocation5 + $0x2d8] sm:$0xff]  }
 0x4d7   :  { %7940 = vmatprep.subr.bf16.mxu0 %v10807_v14  ;;  %12373 = vst [vmem:[#allocation50_spill] sm:$0xff] %v10853_v21  ;;  %v10856_v58 = vld [vmem:[#allocation5 + $0x298] sm:$0xff]  }
 0x4d8   :  { %12374 = vst [vmem:[#allocation51_spill] sm:$0xff] %v10856_v58 }
 0x4da   :  { %7941 = vmatpush3.bf16.msra.mxu0 %v10810_v57  ;;  %v3619_v57 = vpack.c.b16 %v3585_v20, %v3585_v20  ;;  %v3383_v20 = vmax.f32 %v3351_v3, 1e-06  ;;  %v3436_v3 = vmul.f32 %v3404_v28, %v3404_v28 }
 0x4db   :  { %7942 = vmatprep.subr.bf16.mxu0 %v10813_v25  ;;  %v10828_v25 = vld [vmem:[#allocation5 + $0x1b8] sm:$0xff]  }
 0x4dc   :  { %12366 = vst [vmem:[#allocation43_spill] sm:$0xff] %v10828_v25 }
 0x4de   :  { %7943 = vmatpush3.bf16.msra.mxu0 %v10816_v59  ;;  %v10844_v59 = vld [vmem:[#allocation5 + $0x288] sm:$0xff]  }
 0x4df   :  { %7944 = vmatprep.subr.bf16.mxu0 %v10820_v62  ;;  %v10838_v62 = vld [vmem:[#allocation5 + $0x280] sm:$0xff]   ;;  %12370 = vst [vmem:[#allocation47_spill] sm:$0xff] %v10844_v59 }
 0x4e0   :  { %12368 = vst [vmem:[#allocation45_spill] sm:$0xff] %v10838_v62 }
 0x4e2   :  { %7945 = vmatpush3.bf16.msra.mxu0 %v10828_v25  ;;  %v3399_v25 = vmax.f32 %v3367_v39, 1e-06  ;;  %v10850_v39 = vld [vmem:[#allocation5 + $0x290] sm:$0xff]  }
 0x4e3   :  { %7974 = vmatprep.subr.bf16.mxu0 %v10833_v19  ;;  %v3415_v19 = vmul.f32 %v3383_v20, %v3383_v20  ;;  %12372 = vst [vmem:[#allocation49_spill] sm:$0xff] %v10850_v39 }
 0x4e4   :  { %v3431_v14 = vmul.f32 %v3399_v25, %v3399_v25 }
 0x4e5   :  { %3798 = vmatmul.mubr.bf16.vlgmr.msra.gmra.mrb[60].mxu0 %v3619_v57  ;;  %v10847_v57 = vld [vmem:[#allocation5 + $0x2d0] sm:$0xff]  }
 0x4e6   :  { %7975 = vmatpush3.bf16.msra.mxu0 %v10838_v62  ;;  %3877 = vmatprep.mubr.bf16.mxu0 %v3624_v50  ;;  %12371 = vst [vmem:[#allocation48_spill] sm:$0xff] %v10847_v57  ;;  %v3420_v62 = vmul.f32 %v3388_v37, %v3388_v37  ;;  %v3447_v50 = vmul.f32 %v3415_v19, %v3383_v20  ;;  %v10862_v19 = vld [vmem:[#allocation5 + $0x2a0] sm:$0xff]  }
 0x4e7   :  { %7976 = vmatprep.subr.bf16.mxu0 %v10841_v45  ;;  %v3463_v45 = vmul.f32 %v3431_v14, %v3399_v25  ;;  %12376 = vst [vmem:[#allocation53_spill] sm:$0xff] %v10862_v19 }
 0x4e8   :  { %v3452_v47 = vmul.f32 %v3420_v62, %v3388_v37  ;;  %v3479_v60 = vpack.c.bf16 %v3447_v50, %v3447_v50  ;;  %v10865_v62 = vld [vmem:[#allocation5 + $0x2e8] sm:$0xff]   ;;  %v10871_v50 = vld [vmem:[#allocation5 + $0x2f0] sm:$0xff]  }
 0x4e9   :  { %12377 = vst [vmem:[#allocation54_spill] sm:$0xff] %v10865_v62  ;;  %12379 = vst [vmem:[#allocation56_spill] sm:$0xff] %v10871_v50 }
 0x4ea   :  { %7977 = vmatpush3.bf16.msra.mxu0 %v10844_v59  ;;  %v3468_v59 = vmul.f32 %v3436_v3, %v3404_v28  ;;  %v3484_v10 = vpack.c.bf16 %v3452_v47, %v3452_v47  ;;  %v3543_v14 = vunpack.c.l.b16 %v3479_v60  ;;  %v10868_v28 = vld [vmem:[#allocation5 + $0x2a8] sm:$0xff]   ;;  %v7880_v60 = vpop.f32.mrb[52].mxu1 }
 0x4eb   :  { %7978 = vmatprep.subr.bf16.mxu0 %v10847_v57  ;;  %v3495_v57 = vpack.c.bf16 %v3463_v45, %v3463_v45  ;;  %12378 = vst [vmem:[#allocation55_spill] sm:$0xff] %v10868_v28 }
 0x4ec   :  { %v3548_v20 = vunpack.c.l.b16 %v3484_v10  ;;  %v3595_v45 = vrot.slane %v3543_v14, 3  ;;  %v10880_v14 = vld [vmem:[#allocation5 + $0x2f8] sm:$0xff]  }
 0x4ed   :  { %v3559_v25 = vunpack.c.l.b16 %v3495_v57  ;;  %v7881_v57 = vpop.f32.mrb[53].mxu1  ;;  %12381 = vst [vmem:[#allocation58_spill] sm:$0xff] %v10880_v14 }
 0x4ee   :  { %7979 = vmatpush3.bf16.msra.mxu0 %v10850_v39  ;;  %v3500_v39 = vpack.c.bf16 %v3468_v59, %v3468_v59  ;;  %v3610_v59 = vrot.slane %v3548_v20, 3 }
 0x4ef   :  { %7980 = vmatprep.subr.bf16.mxu0 %v10853_v21  ;;  %v3596_v3 = vrot.slane %v3559_v25, 2 }
 0x4f0   :  { %v3564_v37 = vunpack.c.l.b16 %v3500_v39 }
 0x4f1   :  { %v3597_v10 = vsel %vm565_vm0, %v3596_v3, %v3595_v45  ;;  %v10892_v45 = vld [vmem:[#allocation5 + $0x380] sm:$0xff]  }
 0x4f2   :  { %7981 = vmatpush3.bf16.msra.mxu0 %v10856_v58  ;;  %v3611_v47 = vrot.slane %v3564_v37, 2  ;;  %v3623_v20 = vpack.c.b16 %v3597_v10, %v3597_v10  ;;  %v10884_v37 = vld [vmem:[#allocation5 + $0x2b8] sm:$0xff]   ;;  %12384 = vst [vmem:[#allocation61_spill] sm:$0xff] %v10892_v45 }
 0x4f3   :  { %7982 = vmatprep.subr.bf16.mxu0 %v10859_v8  ;;  %v7883_v8 = vpop.f32.mrb[54].mxu1  ;;  %12382 = vst [vmem:[#allocation59_spill] sm:$0xff] %v10884_v37 }
 0x4f4   :  { %v7884_v39 = vpop.f32.mrb[55].mxu1  ;;  %v3612_v25 = vsel %vm565_vm0, %v3611_v47, %v3610_v59  ;;  %v3355_v8 = vunpack.c.l.bf16 %v10824_v15  ;;  %v10895_v47 = vld [vmem:[#allocation5 + $0x3c8] sm:$0xff]  }
 0x4f5   :  { %12385 = vst [vmem:[#allocation62_spill] sm:$0xff] %v10895_v47  ;;  %v10898_v15 = vld [vmem:[#allocation5 + $0x388] sm:$0xff]   ;;  %v10901_v39 = vld [vmem:[#allocation5 + $0x3d0] sm:$0xff]  }
 0x4f6   :  { %7983 = vmatpush3.bf16.msra.mxu0 %v10862_v19  ;;  %v10874_v19 = vadd.f32 %v7881_v57, %v7880_v60  ;;  %v3371_v60 = vunpack.c.l.bf16 %v10826_v61  ;;  %v3628_v57 = vpack.c.b16 %v3612_v25, %v3612_v25  ;;  %v3387_v3 = vmax.f32 %v3355_v8, 1e-06  ;;  %12386 = vst [vmem:[#allocation63_spill] sm:$0xff] %v10898_v15  ;;  %12387 = vst [vmem:[#allocation64_spill] sm:$0xff] %v10901_v39  ;;  %v10904_v25 = vld [vmem:[#allocation5 + $0x390] sm:$0xff]  }
 0x4f7   :  { %7984 = vmatprep.subr.bf16.mxu0 %v10865_v62  ;;  %v10876_v62 = vld [vmem:[#allocation5 + $0x2b0] sm:$0xff]   ;;  %12388 = vst [vmem:[#allocation65_spill] sm:$0xff] %v10904_v25 }
 0x4f8   :  { %12380 = vst [vmem:[#allocation57_spill] sm:$0xff] %v10876_v62  ;;  %v3403_v59 = vmax.f32 %v3371_v60, 1e-06  ;;  %v3419_v61 = vmul.f32 %v3387_v3, %v3387_v3  ;;  %v10907_v60 = vld [vmem:[#allocation5 + $0x3d8] sm:$0xff]  }
 0x4f9   :  { %12389 = vst [vmem:[#allocation66_spill] sm:$0xff] %v10907_v60 }
 0x4fa   :  { %7985 = vmatpush3.bf16.msra.mxu0 %v10868_v28  ;;  %v3435_v10 = vmul.f32 %v3403_v59, %v3403_v59  ;;  %v9117_v28 = vld [vmem:[#allocation7 + $0xf8] sm:$0xff]  }
 0x4fb   :  { %7986 = vmatprep.subr.bf16.mxu0 %v10871_v50 }
 0x4fc   :  { %v3467_v8 = vmul.f32 %v3435_v10, %v3403_v59  ;;  %v10922_v10 = vld [vmem:[#allocation5 + $0x3a8] sm:$0xff]  }
 0x4fd   :  { %12394 = vst [vmem:[#allocation71_spill] sm:$0xff] %v10922_v10 }
 0x4fe   :  { %7987 = vmatpush3.bf16.msra.mxu0 %v10876_v62  ;;  %v10889_v62 = vld [vmem:[#allocation5 + $0x3c0] sm:$0xff]  }
 0x4ff   :  { %7988 = vmatprep.subr.bf16.mxu0 %v10880_v14  ;;  %12383 = vst [vmem:[#allocation60_spill] sm:$0xff] %v10889_v62 }
 0x502   :  { %7989 = vmatpush3.bf16.msra.mxu0 %v10884_v37 }
 0x503   :  { %8018 = vmatprep.subr.bf16.mxu0 %v10889_v62  ;;  %v10934_v62 = vld [vmem:[#allocation5 + $0x3f8] sm:$0xff]  }
 0x504   :  { %12397 = vst [vmem:[#allocation74_spill] sm:$0xff] %v10934_v62 }
 0x505   :  { %3878 = vmatmul.mubr.bf16.vlgmr.msra.gmra.mrb[64].mxu0 %v3623_v20  ;;  %v3451_v20 = vmul.f32 %v3419_v61, %v3387_v3  ;;  %v10919_v61 = vld [vmem:[#allocation5 + $0x3e8] sm:$0xff]  }
 0x506   :  { %8019 = vmatpush3.bf16.msra.mxu0 %v10892_v45  ;;  %3957 = vmatprep.mubr.bf16.mxu0 %v3628_v57  ;;  %v10910_v57 = vld [vmem:[#allocation5 + $0x398] sm:$0xff]   ;;  %v10913_v45 = vld [vmem:[#allocation5 + $0x3e0] sm:$0xff]   ;;  %12393 = vst [vmem:[#allocation70_spill] sm:$0xff] %v10919_v61 }
 0x507   :  { %8020 = vmatprep.subr.bf16.mxu0 %v10895_v47  ;;  %12390 = vst [vmem:[#allocation67_spill] sm:$0xff] %v10910_v57  ;;  %v3499_v47 = vpack.c.bf16 %v3467_v8, %v3467_v8  ;;  %12391 = vst [vmem:[#allocation68_spill] sm:$0xff] %v10913_v45 }
 0x509   :  { %v3563_v59 = vunpack.c.l.b16 %v3499_v47  ;;  %v10930_v47 = vld [vmem:[#allocation5 + $0x3b0] sm:$0xff]  }
 0x50a   :  { %8021 = vmatpush3.bf16.msra.mxu0 %v10898_v15  ;;  %v3483_v15 = vpack.c.bf16 %v3451_v20, %v3451_v20  ;;  %12396 = vst [vmem:[#allocation73_spill] sm:$0xff] %v10930_v47 }
 0x50b   :  { %8022 = vmatprep.subr.bf16.mxu0 %v10901_v39  ;;  %v10916_v39 = vld [vmem:[#allocation5 + $0x3a0] sm:$0xff]   ;;  %v3608_v8 = vrot.slane %v3563_v59, 2  ;;  %v10937_v59 = vld [vmem:[#allocation5 + $0x3b8] sm:$0xff]  }
 0x50c   :  { %12392 = vst [vmem:[#allocation69_spill] sm:$0xff] %v10916_v39  ;;  %v3547_v3 = vunpack.c.l.b16 %v3483_v15  ;;  %12398 = vst [vmem:[#allocation75_spill] sm:$0xff] %v10937_v59 }
 0x50e   :  { %8023 = vmatpush3.bf16.msra.mxu0 %v10904_v25  ;;  %v3607_v20 = vrot.slane %v3547_v3, 3 }
 0x50f   :  { %8024 = vmatprep.subr.bf16.mxu0 %v10907_v60 }
 0x512   :  { %8025 = vmatpush3.bf16.msra.mxu0 %v10910_v57  ;;  %v10925_v57 = vld [vmem:[#allocation5 + $0x3f0] sm:$0xff]  }
 0x513   :  { %8026 = vmatprep.subr.bf16.mxu0 %v10913_v45  ;;  %12395 = vst [vmem:[#allocation72_spill] sm:$0xff] %v10925_v57  ;;  %v7924_v45 = vpop.f32.mrb[56].mxu1 }
 0x514   :  { %v7925_v60 = vpop.f32.mrb[57].mxu1 }
 0x515   :  { %v10928_v25 = vadd.f32 %v7925_v60, %v7924_v45  ;;  %v7927_v15 = vpop.f32.mrb[58].mxu1  ;;  %v10943_v45 = vld [vmem:[#allocation5] sm:$0xff]   ;;  %v10946_v60 = vld [vmem:[#allocation5 + $0x48] sm:$0xff]  }
 0x516   :  { %8027 = vmatpush3.bf16.msra.mxu0 %v10916_v39  ;;  %v7928_v39 = vpop.f32.mrb[59].mxu1  ;;  %12400 = vst [vmem:[#allocation77_spill] sm:$0xff] %v10943_v45  ;;  %12401 = vst [vmem:[#allocation78_spill] sm:$0xff] %v10946_v60  ;;  %v10961_v15 = vld [vmem:[#allocation5 + $0x18] sm:$0xff]  }
 0x517   :  { %8028 = vmatprep.subr.bf16.mxu0 %v10919_v61  ;;  %v3609_v61 = vsel %vm565_vm0, %v3608_v8, %v3607_v20  ;;  %v10949_v39 = vld [vmem:[#allocation5 + $0x8] sm:$0xff]   ;;  %v10955_v20 = vld [vmem:[#allocation5 + $0x10] sm:$0xff]   ;;  %v10958_v8 = vld [vmem:[#allocation5 + $0x58] sm:$0xff]   ;;  %12406 = vst [vmem:[#allocation83_spill] sm:$0xff] %v10961_v15 }
 0x518   :  { %v3627_v3 = vpack.c.b16 %v3609_v61, %v3609_v61  ;;  %12402 = vst [vmem:[#allocation79_spill] sm:$0xff] %v10949_v39  ;;  %v10952_v61 = vld [vmem:[#allocation5 + $0x50] sm:$0xff]   ;;  %12404 = vst [vmem:[#allocation81_spill] sm:$0xff] %v10955_v20 }
 0x519   :  { %12403 = vst [vmem:[#allocation80_spill] sm:$0xff] %v10952_v61  ;;  %12405 = vst [vmem:[#allocation82_spill] sm:$0xff] %v10958_v8 }
 0x51a   :  { %8029 = vmatpush3.bf16.msra.mxu0 %v10922_v10 }
 0x51b   :  { %8030 = vmatprep.subr.bf16.mxu0 %v10925_v57  ;;  %v10940_v57 = vld [vmem:[#allocation5 + $0x40] sm:$0xff]  }
 0x51c   :  { %12399 = vst [vmem:[#allocation76_spill] sm:$0xff] %v10940_v57 }
 0x51e   :  { %8031 = vmatpush3.bf16.msra.mxu0 %v10930_v47 }
 0x51f   :  { %8032 = vmatprep.subr.bf16.mxu0 %v10934_v62 }
 0x522   :  { %8033 = vmatpush3.bf16.msra.mxu0 %v10937_v59 }
 0x523   :  { %8049 = vmatprep.subr.bf16.mxu0 %v10940_v57 }
 0x525   :  { %3958 = vmatmul.mubr.bf16.vlgmr.msra.gmra.mrb[68].mxu0 %v3627_v3  ;;  %v10964_v3 = vld [vmem:[#allocation5 + $0x60] sm:$0xff]  }
 0x526   :  { %8050 = vmatpush3.bf16.msra.mxu0 %v10943_v45  ;;  %12407 = vst [vmem:[#allocation84_spill] sm:$0xff] %v10964_v3 }
 0x527   :  { %8051 = vmatprep.subr.bf16.mxu0 %v10946_v60  ;;  %v10976_v60 = vld [vmem:[#allocation5 + $0x70] sm:$0xff]  }
 0x528   :  { %12411 = vst [vmem:[#allocation88_spill] sm:$0xff] %v10976_v60 }
 0x52a   :  { %8052 = vmatpush3.bf16.msra.mxu0 %v10949_v39  ;;  %v10967_v39 = vld [vmem:[#allocation5 + $0x20] sm:$0xff]  }
 0x52b   :  { %8053 = vmatprep.subr.bf16.mxu0 %v10952_v61  ;;  %12408 = vst [vmem:[#allocation85_spill] sm:$0xff] %v10967_v39  ;;  %v10970_v61 = vld [vmem:[#allocation5 + $0x68] sm:$0xff]  }
 0x52c   :  { %12409 = vst [vmem:[#allocation86_spill] sm:$0xff] %v10970_v61 }
 0x52e   :  { %8054 = vmatpush3.bf16.msra.mxu0 %v10955_v20  ;;  %v10973_v20 = vld [vmem:[#allocation5 + $0x28] sm:$0xff]  }
 0x52f   :  { %8055 = vmatprep.subr.bf16.mxu0 %v10958_v8  ;;  %12410 = vst [vmem:[#allocation87_spill] sm:$0xff] %v10973_v20 }
 0x532   :  { %8056 = vmatpush3.bf16.msra.mxu0 %v10961_v15 }
 0x533   :  { %8057 = vmatprep.subr.bf16.mxu0 %v10964_v3 }
 0x536   :  { %8058 = vmatpush3.bf16.msra.mxu0 %v10967_v39 }
 0x537   :  { %8059 = vmatprep.subr.bf16.mxu0 %v10970_v61  ;;  %v7968_v8 = vpop.f32.mrb[60].mxu1 }
 0x538   :  { %v7969_v15 = vpop.f32.mrb[61].mxu1 }
 0x539   :  { %v10979_v45 = vadd.f32 %v7969_v15, %v7968_v8  ;;  %v7971_v3 = vpop.f32.mrb[62].mxu1 }
 0x53a   :  { %8060 = vmatpush3.bf16.msra.mxu0 %v10973_v20  ;;  %v7972_v57 = vpop.f32.mrb[63].mxu1 }
 0x53b   :  { %8061 = vmatprep.subr.bf16.mxu0 %v10976_v60  ;;  %v3216_v60 = vld [vmem:[#allocation8] sm:$0x3] }
 0x53e   :  { %8062 = vmatpush3.bf16.msra.mxu0 %v10555_v40  ;;  %v9110_v40 = vld [vmem:[#allocation7 + $0xc0] sm:$0xff]  }
 0x53f   :  { %8063 = vmatprep.subr.bf16.mxu0 %v10558_v44  ;;  %8850 = vmatpush3.bf16.msra.mxu1 %v9110_v40  ;;  %v9111_v44 = vld [vmem:[#allocation7 + $0xc8] sm:$0xff]   ;;  %v9116_v40 = vld [vmem:[#allocation7 + $0xf0] sm:$0xff]  }
 0x540   :  { %8851 = vmatprep.subr.bf16.mxu1 %v12186_v33 }
 0x542   :  { %8064 = vmatpush3.bf16.msra.mxu0 %v10561_v16  ;;  %v9112_v16 = vld [vmem:[#allocation7 + $0xd0] sm:$0xff]  }
 0x543   :  { %8093 = vmatprep.subr.bf16.mxu0 %v10564_v7  ;;  %8852 = vmatpush3.bf16.msra.mxu1 %v9111_v44  ;;  %v9113_v7 = vld [vmem:[#allocation7 + $0xd8] sm:$0xff]  }
 0x544   :  { %8853 = vmatprep.subr.bf16.mxu1 %v12186_v33 }
 0x547   :  { %8854 = vmatpush3.bf16.msra.mxu1 %v9112_v16 }
 0x548   :  { %8855 = vmatprep.subr.bf16.mxu1 %v12186_v33 }
 0x54b   :  { %8856 = vmatpush3.bf16.msra.mxu1 %v9113_v7 }
 0x54c   :  { %8857 = vmatprep.subr.bf16.mxu1 %v12186_v33 }
 0x557   :  { %v8012_v61 = vpop.f32.mrb[64].mxu1 }
 0x558   :  { %v8013_v20 = vpop.f32.mrb[65].mxu1 }
 0x559   :  { %v10985_v39 = vadd.f32 %v8013_v20, %v8012_v61  ;;  %v8015_v59 = vpop.f32.mrb[66].mxu1  ;;  %v9115_v20 = vld [vmem:[#allocation7 + $0xe8] sm:$0xff]  }
 0x55a   :  { %v8016_v62 = vpop.f32.mrb[67].mxu1  ;;  %v4088_v59 = vld [vmem:[#allocation2 + $0x40] sm:$0x44] }
 0x55b   :  { %v9114_v62 = vld [vmem:[#allocation7 + $0xe0] sm:$0xff]   ;;  %v4113_v61 = vunpack.c.h.bf16 %v4088_v59 }
 0x55c   :  { %8858 = vmatpush3.bf16.msra.mxu1 %v9114_v62 }
 0x55d   :  { %8859 = vmatprep.subr.bf16.mxu1 %v12186_v33 }
 0x560   :  { %8860 = vmatpush3.bf16.msra.mxu1 %v9115_v20 }
 0x561   :  { %8861 = vmatprep.subr.bf16.mxu1 %v12186_v33 }
 0x564   :  { %8862 = vmatpush3.bf16.msra.mxu1 %v9116_v40 }
 0x565   :  { %8863 = vmatprep.subr.bf16.mxu1 %v12186_v33 }
 0x568   :  { %8864 = vmatpush3.bf16.msra.mxu1 %v9117_v28 }
 0x569   :  { %8071 = vmatprep.subr.bf16.mxu1 %v10576_v11  ;;  %v4082_v11 = vld [vmem:[#allocation2 + $0x10] sm:$0x44] }
 0x578   :  { %v3317_v47 = vpop.f32.mrb[52].mxu0 }
 0x579   :  { %v3323_v8 = vadd.f32 %v3317_v47, %v3216_v60  ;;  %v8847_v15 = vpop.f32.mrb[53].mxu0  ;;  %v4080_v47 = vld [vmem:[#allocation2] sm:$0x44] }
 0x57a   :  { %v3320_v3 = vpop.f32.mrb[54].mxu0  ;;  %v4097_v60 = vunpack.c.h.bf16 %v4080_v47  ;;  %v4112_v15 = vunpack.c.l.bf16 %v4088_v59 }
 0x57b   :  { %3324 = vst [vmem:[#allocation8] sm:$0x3] %v3323_v8  ;;  %v8848_v57 = vpop.f32.mrb[55].mxu0  ;;  %v4096_v8 = vunpack.c.l.bf16 %v4080_v47 }
 0x57c   :  { %v4129_v3 = vmax.f32 %v4097_v60, 1e-06  ;;  %v4145_v57 = vmax.f32 %v4113_v61, 1e-06  ;;  %v4144_v16 = vmax.f32 %v4112_v15, 1e-06 }
 0x57d   :  { %v4128_v44 = vmax.f32 %v4096_v8, 1e-06 }
 0x57e   :  { %v4161_v7 = vmul.f32 %v4129_v3, %v4129_v3  ;;  %v4177_v10 = vmul.f32 %v4145_v57, %v4145_v57  ;;  %v4176_v37 = vmul.f32 %v4144_v16, %v4144_v16 }
 0x57f   :  { %v4160_v62 = vmul.f32 %v4128_v44, %v4128_v44 }
 0x580   :  { %v4193_v14 = vmul.f32 %v4161_v7, %v4129_v3  ;;  %v4209_v50 = vmul.f32 %v4177_v10, %v4145_v57  ;;  %v4208_v21 = vmul.f32 %v4176_v37, %v4144_v16 }
 0x581   :  { %v4192_v58 = vmul.f32 %v4160_v62, %v4128_v44 }
 0x582   :  { %v4225_v47 = vpack.c.bf16 %v4193_v14, %v4193_v14  ;;  %v4241_v59 = vpack.c.bf16 %v4209_v50, %v4209_v50  ;;  %v4240_v20 = vpack.c.bf16 %v4208_v21, %v4208_v21 }
 0x583   :  { %v4224_v61 = vpack.c.bf16 %v4192_v58, %v4192_v58 }
 0x584   :  { %v4289_v15 = vunpack.c.l.b16 %v4225_v47  ;;  %v4305_v6 = vunpack.c.l.b16 %v4241_v59  ;;  %v4304_v3 = vunpack.c.l.b16 %v4240_v20 }
 0x585   :  { %v4288_v35 = vunpack.c.l.b16 %v4224_v61 }
 0x586   :  { %v4323_v57 = vrot.slane %v4289_v15, 4  ;;  %v4324_v37 = vrot.slane %v4305_v6, 3  ;;  %v4321_v50 = vrot.slane %v4304_v3, 3 }
 0x587   :  { %v4320_v14 = vrot.slane %v4288_v35, 4  ;;  %v4090_v35 = vld [vmem:[#allocation2 + $0x50] sm:$0x44] }
 0x588   :  { %v4325_v58 = vsel %vm565_vm0, %v4324_v37, %v4323_v57  ;;  %v4117_v6 = vunpack.c.h.bf16 %v4090_v35 }
 0x589   :  { %v4369_v44 = vpack.c.b16 %v4325_v58, %v4325_v58  ;;  %v4322_v16 = vsel %vm565_vm0, %v4321_v50, %v4320_v14 }
 0x58b   :  { %4432 = vmatprep.mubr.bf16.mxu0 %v4369_v44 }
 0x598   :  { %v7902_v60 = vpop.f32.mrb[56].mxu0 }
 0x599   :  { %v7903_v8 = vpop.f32.mrb[57].mxu0 }
 0x59a   :  { %v7904_v56 = vadd.f32 %v7903_v8, %v7902_v60  ;;  %v7905_v42 = vpop.f32.mrb[58].mxu0 }
 0x59b   :  { %v7906_v10 = vpop.f32.mrb[59].mxu0  ;;  %v4368_v42 = vpack.c.b16 %v4322_v16, %v4322_v16 }
 0x59c   :  { %v3720_v40 = vadd.f32 %v7904_v56, %v10874_v19  ;;  %v4101_v56 = vunpack.c.h.bf16 %v4082_v11  ;;  %v4100_v19 = vunpack.c.l.bf16 %v4082_v11 }
 0x59d   :  { %4433 = vmatmul.mubr.bf16.vlgmr.msra.gmra.mrb[72].mxu0 %v4368_v42 }
 0x59e   :  { %v3760_v21 = vadd.f32 %v10928_v25, %v3720_v40  ;;  %8094 = vmatpush3.bf16.msra.mxu0 %v10585_v48  ;;  %v4116_v48 = vunpack.c.l.bf16 %v4090_v35  ;;  %v4133_v28 = vmax.f32 %v4101_v56, 1e-06  ;;  %v4132_v25 = vmax.f32 %v4100_v19, 1e-06 }
 0x59f   :  { %8095 = vmatprep.subr.bf16.mxu0 %v10588_v23  ;;  %v4149_v23 = vmax.f32 %v4117_v6, 1e-06 }
 0x5a2   :  { %8096 = vmatpush3.bf16.msra.mxu0 %v10591_v5  ;;  %v4148_v5 = vmax.f32 %v4116_v48, 1e-06 }
 0x5a3   :  { %8097 = vmatprep.subr.bf16.mxu0 %v10594_v4  ;;  %v4165_v4 = vmul.f32 %v4133_v28, %v4133_v28 }
 0x5a4   :  { %v4180_v7 = vmul.f32 %v4148_v5, %v4148_v5 }
 0x5a5   :  { %v4197_v62 = vmul.f32 %v4165_v4, %v4133_v28  ;;  %v12415_v28 = vld [vmem:[#allocation15_spill] sm:$0xff] }
 0x5a6   :  { %8098 = vmatpush3.bf16.msra.mxu0 %v10597_v29  ;;  %v4181_v29 = vmul.f32 %v4149_v23, %v4149_v23  ;;  %v4212_v59 = vmul.f32 %v4180_v7, %v4148_v5 }
 0x5a7   :  { %8099 = vmatprep.subr.bf16.mxu0 %v10600_v13  ;;  %v4164_v13 = vmul.f32 %v4132_v25, %v4132_v25 }
 0x5a8   :  { %v4244_v20 = vpack.c.bf16 %v4212_v59, %v4212_v59 }
 0x5a9   :  { %v4196_v47 = vmul.f32 %v4164_v13, %v4132_v25 }
 0x5aa   :  { %8100 = vmatpush3.bf16.msra.mxu0 %v10603_v36  ;;  %v4213_v36 = vmul.f32 %v4181_v29, %v4149_v23  ;;  %v12416_v23 = vld [vmem:[#allocation16_spill] sm:$0xff] }
 0x5ab   :  { %8101 = vmatprep.subr.bf16.mxu0 %v10606_v22  ;;  %v4229_v22 = vpack.c.bf16 %v4197_v62, %v4197_v62  ;;  %v4228_v61 = vpack.c.bf16 %v4196_v47, %v4196_v47 }
 0x5ac   :  { %v4245_v60 = vpack.c.bf16 %v4213_v36, %v4213_v36 }
 0x5ad   :  { %v4292_v10 = vunpack.c.l.b16 %v4228_v61 }
 0x5ae   :  { %8102 = vmatpush3.bf16.msra.mxu0 %v10609_v43  ;;  %v4293_v43 = vunpack.c.l.b16 %v4229_v22  ;;  %v4309_v15 = vunpack.c.l.b16 %v4245_v60 }
 0x5af   :  { %8103 = vmatprep.subr.bf16.mxu0 %v10612_v32  ;;  %v4308_v32 = vunpack.c.l.b16 %v4244_v20 }
 0x5b0   :  { %v4335_v40 = vrot.slane %v4293_v43, 4  ;;  %v4336_v14 = vrot.slane %v4309_v15, 3 }
 0x5b1   :  { %v4333_v58 = vrot.slane %v4308_v32, 3 }
 0x5b2   :  { %8104 = vmatpush3.bf16.msra.mxu0 %v10615_v49  ;;  %v4332_v49 = vrot.slane %v4292_v10, 4  ;;  %v4337_v44 = vsel %vm565_vm0, %v4336_v14, %v4335_v40 }
 0x5b3   :  { %8105 = vmatprep.subr.bf16.mxu0 %v10618_v30  ;;  %v4373_v16 = vpack.c.b16 %v4337_v44, %v4337_v44  ;;  %v11053_v44 = vld [vmem:[#allocation5 + $0x318] sm:$0xff]  }
 0x5b4   :  { %v4334_v42 = vsel %vm565_vm0, %v4333_v58, %v4332_v49 }
 0x5b5   :  { %v4372_v35 = vpack.c.b16 %v4334_v42, %v4334_v42  ;;  %4512 = vmatprep.mubr.bf16.mxu0 %v4373_v16 }
 0x5b6   :  { %8106 = vmatpush3.bf16.msra.mxu0 %v10621_v52  ;;  %v12412_v52 = vld [vmem:[#allocation12_spill] sm:$0xff] }
 0x5b7   :  { %8107 = vmatprep.subr.bf16.mxu0 %v10624_v9  ;;  %v4084_v9 = vld [vmem:[#allocation2 + $0x20] sm:$0x44] }
 0x5b8   :  { %v7946_v8 = vpop.f32.mrb[60].mxu0  ;;  %v4104_v6 = vunpack.c.l.bf16 %v4084_v9 }
 0x5b9   :  { %v7947_v3 = vpop.f32.mrb[61].mxu0 }
 0x5ba   :  { %v7948_v57 = vadd.f32 %v7947_v3, %v7946_v8  ;;  %v7949_v37 = vpop.f32.mrb[62].mxu0  ;;  %8108 = vmatpush3.bf16.msra.mxu0 %v10633_v53  ;;  %v12413_v53 = vld [vmem:[#allocation13_spill] sm:$0xff]  ;;  %v4136_v48 = vmax.f32 %v4104_v6, 1e-06 }
 0x5bb   :  { %v7950_v50 = vpop.f32.mrb[63].mxu0  ;;  %8137 = vmatprep.subr.bf16.mxu0 %v10636_v2  ;;  %v12414_v2 = vld [vmem:[#allocation14_spill] sm:$0xff] }
 0x5bc   :  { %v3800_v30 = vadd.f32 %v7948_v57, %v3760_v21  ;;  %v4105_v21 = vunpack.c.h.bf16 %v4084_v9  ;;  %v4168_v25 = vmul.f32 %v4136_v48, %v4136_v48 }
 0x5bd   :  { %4513 = vmatmul.mubr.bf16.vlgmr.msra.gmra.mrb[76].mxu0 %v4372_v35 }
 0x5be   :  { %v3840_v11 = vadd.f32 %v10979_v45, %v3800_v30  ;;  %8138 = vmatpush3.bf16.msra.mxu0 %v10639_v27  ;;  %v4092_v45 = vld [vmem:[#allocation2 + $0x60] sm:$0x44]  ;;  %v4137_v19 = vmax.f32 %v4105_v21, 1e-06  ;;  %v4200_v13 = vmul.f32 %v4168_v25, %v4136_v48  ;;  %v11044_v30 = vld [vmem:[#allocation5 + $0x350] sm:$0xff]  }
 0x5bf   :  { %8139 = vmatprep.subr.bf16.mxu0 %v10642_v24  ;;  %v4121_v56 = vunpack.c.h.bf16 %v4092_v45  ;;  %v4120_v27 = vunpack.c.l.bf16 %v4092_v45 }
 0x5c0   :  { %v4232_v47 = vpack.c.bf16 %v4200_v13, %v4200_v13 }
 0x5c1   :  { %v4153_v24 = vmax.f32 %v4121_v56, 1e-06  ;;  %v11059_v56 = vld [vmem:[#allocation5 + $0x320] sm:$0xff]  }
 0x5c2   :  { %8140 = vmatpush3.bf16.msra.mxu0 %v10645_v34  ;;  %v4152_v34 = vmax.f32 %v4120_v27, 1e-06  ;;  %v4296_v8 = vunpack.c.l.b16 %v4232_v47  ;;  %v11062_v27 = vld [vmem:[#allocation5 + $0x368] sm:$0xff]  }
 0x5c3   :  { %8141 = vmatprep.subr.bf16.mxu0 %v10648_v31  ;;  %v4169_v31 = vmul.f32 %v4137_v19, %v4137_v19  ;;  %v4081_v47 = vld [vmem:[#allocation2 + $0x8] sm:$0x44] }
 0x5c4   :  { %v4184_v5 = vmul.f32 %v4152_v34, %v4152_v34 }
 0x5c5   :  { %v4201_v4 = vmul.f32 %v4169_v31, %v4137_v19 }
 0x5c6   :  { %8142 = vmatpush3.bf16.msra.mxu0 %v10651_v12  ;;  %v4185_v12 = vmul.f32 %v4153_v24, %v4153_v24  ;;  %v4216_v7 = vmul.f32 %v4184_v5, %v4152_v34  ;;  %v11068_v5 = vld [vmem:[#allocation5 + $0x370] sm:$0xff]  }
 0x5c7   :  { %8143 = vmatprep.subr.bf16.mxu0 %v12412_v52  ;;  %v4233_v62 = vpack.c.bf16 %v4201_v4, %v4201_v4 }
 0x5c8   :  { %v4217_v29 = vmul.f32 %v4185_v12, %v4153_v24  ;;  %v4248_v59 = vpack.c.bf16 %v4216_v7, %v4216_v7  ;;  %v11065_v12 = vld [vmem:[#allocation5 + $0x328] sm:$0xff]  }
 0x5c9   :  { %v4297_v60 = vunpack.c.l.b16 %v4233_v62 }
 0x5ca   :  { %8144 = vmatpush3.bf16.msra.mxu0 %v12413_v53  ;;  %v4249_v36 = vpack.c.bf16 %v4217_v29, %v4217_v29  ;;  %v4312_v43 = vunpack.c.l.b16 %v4248_v59  ;;  %v4089_v59 = vld [vmem:[#allocation2 + $0x48] sm:$0x44] }
 0x5cb   :  { %8145 = vmatprep.subr.bf16.mxu0 %v12414_v2  ;;  %v4347_v10 = vrot.slane %v4297_v60, 4 }
 0x5cc   :  { %v4313_v61 = vunpack.c.l.b16 %v4249_v36  ;;  %v4345_v37 = vrot.slane %v4312_v43, 3 }
 0x5ce   :  { %8146 = vmatpush3.bf16.msra.mxu0 %v12415_v28  ;;  %v4348_v32 = vrot.slane %v4313_v61, 3 }
 0x5cf   :  { %8147 = vmatprep.subr.bf16.mxu0 %v12416_v23 }
 0x5d0   :  { %v4349_v40 = vsel %vm565_vm0, %v4348_v32, %v4347_v10  ;;  %v11074_v10 = vld [vmem:[#allocation5 + $0x378] sm:$0xff]  }
 0x5d1   :  { %v4377_v14 = vpack.c.b16 %v4349_v40, %v4349_v40 }
 0x5d2   :  { %8148 = vmatpush3.bf16.msra.mxu0 %v10669_v51  ;;  %v4344_v51 = vrot.slane %v4296_v8, 4  ;;  %v11071_v8 = vld [vmem:[#allocation5 + $0x330] sm:$0xff]  }
 0x5d3   :  { %8149 = vmatprep.subr.bf16.mxu0 %v10672_v26  ;;  %4592 = vmatprep.mubr.bf16.mxu0 %v4377_v14 }
 0x5d4   :  { %v4346_v50 = vsel %vm565_vm0, %v4345_v37, %v4344_v51  ;;  %v4099_v37 = vunpack.c.h.bf16 %v4081_v47 }
 0x5d5   :  { %v4376_v58 = vpack.c.b16 %v4346_v50, %v4346_v50 }
 0x5d6   :  { %8150 = vmatpush3.bf16.msra.mxu0 %v10675_v1  ;;  %v12417_v1 = vld [vmem:[#allocation17_spill] sm:$0xff] }
 0x5d7   :  { %8151 = vmatprep.subr.bf16.mxu0 %v10678_v41  ;;  %v11041_v41 = vld [vmem:[#allocation5 + $0x308] sm:$0xff]  }
 0x5d8   :  { %v7990_v22 = vpop.f32.mrb[64].mxu0 }
 0x5d9   :  { %v7991_v20 = vpop.f32.mrb[65].mxu0 }
 0x5da   :  { %v7992_v15 = vadd.f32 %v7991_v20, %v7990_v22  ;;  %v7993_v3 = vpop.f32.mrb[66].mxu0  ;;  %8152 = vmatpush3.bf16.msra.mxu0 %v10685_v38  ;;  %v11050_v38 = vld [vmem:[#allocation5 + $0x358] sm:$0xff]  }
 0x5db   :  { %v7994_v57 = vpop.f32.mrb[67].mxu0  ;;  %8181 = vmatprep.subr.bf16.mxu0 %v10688_v17  ;;  %v4086_v17 = vld [vmem:[#allocation2 + $0x30] sm:$0x44] }
 0x5dc   :  { %v3880_v26 = vadd.f32 %v7992_v15, %v3840_v11  ;;  %v4109_v16 = vunpack.c.h.bf16 %v4086_v17  ;;  %v11056_v11 = vld [vmem:[#allocation5 + $0x360] sm:$0xff]   ;;  %v4108_v35 = vunpack.c.l.bf16 %v4086_v17 }
 0x5dd   :  { %4593 = vmatmul.mubr.bf16.vlgmr.msra.gmra.mrb[80].mxu0 %v4376_v58 }
 0x5de   :  { %v11035_v49 = vadd.f32 %v10985_v39, %v3880_v26  ;;  %8182 = vmatpush3.bf16.msra.mxu0 %v10691_v46  ;;  %v11047_v39 = vld [vmem:[#allocation5 + $0x310] sm:$0xff]   ;;  %v4141_v9 = vmax.f32 %v4109_v16, 1e-06  ;;  %v4140_v53 = vmax.f32 %v4108_v35, 1e-06  ;;  %v4115_v26 = vunpack.c.h.bf16 %v4089_v59 }
 0x5df   :  { %8183 = vmatprep.subr.bf16.mxu0 %v12417_v1  ;;  %v4094_v46 = vld [vmem:[#allocation2 + $0x70] sm:$0x44]  ;;  %v11080_v1 = vld [vmem:[#allocation5 + $0x338] sm:$0xff]  }
 0x5e0   :  { %v4125_v42 = vunpack.c.h.bf16 %v4094_v46  ;;  %v4124_v52 = vunpack.c.l.bf16 %v4094_v46  ;;  %v4173_v2 = vmul.f32 %v4141_v9, %v4141_v9  ;;  %v4172_v19 = vmul.f32 %v4140_v53, %v4140_v53 }
 0x5e1   :  { %v4131_v46 = vmax.f32 %v4099_v37, 1e-06  ;;  %v4147_v16 = vmax.f32 %v4115_v26, 1e-06  ;;  %v12419_v37 = vld [vmem:[#allocation19_spill] sm:$0xff] }
 0x5e2   :  { %8184 = vmatpush3.bf16.msra.mxu0 %v11041_v41  ;;  %v4157_v45 = vmax.f32 %v4125_v42, 1e-06  ;;  %v4156_v21 = vmax.f32 %v4124_v52, 1e-06  ;;  %v4205_v48 = vmul.f32 %v4173_v2, %v4141_v9  ;;  %v4204_v28 = vmul.f32 %v4172_v19, %v4140_v53 }
 0x5e3   :  { %8185 = vmatprep.subr.bf16.mxu0 %v11044_v30  ;;  %v4179_v42 = vmul.f32 %v4147_v16, %v4147_v16 }
 0x5e4   :  { %v4189_v6 = vmul.f32 %v4157_v45, %v4157_v45  ;;  %v4188_v24 = vmul.f32 %v4156_v21, %v4156_v21  ;;  %v4237_v23 = vpack.c.bf16 %v4205_v48, %v4205_v48  ;;  %v4236_v4 = vpack.c.bf16 %v4204_v28, %v4204_v28 }
 0x5e5   :  { %v4211_v52 = vmul.f32 %v4179_v42, %v4147_v16  ;;  %v12423_v16 = vld [vmem:[#allocation23_spill] sm:$0xff] }
 0x5e6   :  { %8186 = vmatpush3.bf16.msra.mxu0 %v11047_v39  ;;  %v4221_v34 = vmul.f32 %v4189_v6, %v4157_v45  ;;  %v4220_v31 = vmul.f32 %v4188_v24, %v4156_v21  ;;  %v4301_v7 = vunpack.c.l.b16 %v4237_v23  ;;  %v4300_v22 = vunpack.c.l.b16 %v4236_v4  ;;  %v11089_v23 = vld [vmem:[#allocation2 + $0x58] sm:$0x44] }
 0x5e7   :  { %8187 = vmatprep.subr.bf16.mxu0 %v11050_v38  ;;  %v4243_v21 = vpack.c.bf16 %v4211_v52, %v4211_v52  ;;  %v4098_v4 = vunpack.c.l.bf16 %v4081_v47 }
 0x5e8   :  { %v4253_v25 = vpack.c.bf16 %v4221_v34, %v4221_v34  ;;  %v4252_v29 = vpack.c.bf16 %v4220_v31, %v4220_v31  ;;  %v4359_v43 = vrot.slane %v4301_v7, 4  ;;  %v4356_v32 = vrot.slane %v4300_v22, 4  ;;  %v11087_v31 = vld [vmem:[#allocation2 + $0x18] sm:$0x44] }
 0x5e9   :  { %v4307_v24 = vunpack.c.l.b16 %v4243_v21  ;;  %v4130_v22 = vmax.f32 %v4098_v4, 1e-06  ;;  %v12426_v21 = vld [vmem:[#allocation26_spill] sm:$0xff]  ;;  %v12428_v4 = vld [vmem:[#allocation28_spill] sm:$0xff] }
 0x5ea   :  { %8188 = vmatpush3.bf16.msra.mxu0 %v11053_v44  ;;  %v4317_v62 = vunpack.c.l.b16 %v4253_v25  ;;  %v4316_v60 = vunpack.c.l.b16 %v4252_v29  ;;  %v4114_v29 = vunpack.c.l.bf16 %v4089_v59 }
 0x5eb   :  { %8189 = vmatprep.subr.bf16.mxu0 %v11056_v11  ;;  %v4330_v34 = vrot.slane %v4307_v24, 3  ;;  %v4162_v47 = vmul.f32 %v4130_v22, %v4130_v22 }
 0x5ec   :  { %v4360_v15 = vrot.slane %v4317_v62, 3  ;;  %v4357_v57 = vrot.slane %v4316_v60, 3  ;;  %v4103_v62 = vunpack.c.h.bf16 %v11087_v31  ;;  %v4146_v60 = vmax.f32 %v4114_v29, 1e-06 }
 0x5ee   :  { %8190 = vmatpush3.bf16.msra.mxu0 %v11059_v56  ;;  %v4361_v40 = vsel %vm565_vm0, %v4360_v15, %v4359_v43  ;;  %v4358_v50 = vsel %vm565_vm0, %v4357_v57, %v4356_v32  ;;  %v4178_v59 = vmul.f32 %v4146_v60, %v4146_v60 }
 0x5ef   :  { %8191 = vmatprep.subr.bf16.mxu0 %v11062_v27  ;;  %v4381_v14 = vpack.c.b16 %v4361_v40, %v4361_v40  ;;  %v4380_v17 = vpack.c.b16 %v4358_v50, %v4358_v50  ;;  %v12420_v40 = vld [vmem:[#allocation20_spill] sm:$0xff]  ;;  %v12421_v50 = vld [vmem:[#allocation21_spill] sm:$0xff] }
 0x5f0   :  { %v4210_v32 = vmul.f32 %v4178_v59, %v4146_v60 }
 0x5f1   :  { %4672 = vmatprep.mubr.bf16.mxu0 %v4381_v14 }
 0x5f2   :  { %8192 = vmatpush3.bf16.msra.mxu0 %v11065_v12  ;;  %v4242_v26 = vpack.c.bf16 %v4210_v32, %v4210_v32 }
 0x5f3   :  { %8193 = vmatprep.subr.bf16.mxu0 %v11068_v5 }
 0x5f6   :  { %8194 = vmatpush3.bf16.msra.mxu0 %v11071_v8 }
 0x5f7   :  { %8195 = vmatprep.subr.bf16.mxu0 %v11074_v10 }
 0x5f8   :  { %v8034_v13 = vpop.f32.mrb[68].mxu0 }
 0x5f9   :  { %v8035_v36 = vpop.f32.mrb[69].mxu0 }
 0x5fa   :  { %v8036_v61 = vadd.f32 %v8035_v36, %v8034_v13  ;;  %v8037_v20 = vpop.f32.mrb[70].mxu0  ;;  %8196 = vmatpush3.bf16.msra.mxu0 %v11080_v1  ;;  %v4119_v36 = vunpack.c.h.bf16 %v11089_v23 }
 0x5fb   :  { %v8038_v3 = vpop.f32.mrb[71].mxu0  ;;  %8869 = vmatprep.subr.bf16.mxu0 %v12186_v33 }
 0x5fc   :  { %v3960_v51 = vadd.f32 %v8036_v61, %v11035_v49  ;;  %v4163_v49 = vmul.f32 %v4131_v46, %v4131_v46  ;;  %v4135_v61 = vmax.f32 %v4103_v62, 1e-06  ;;  %v4151_v20 = vmax.f32 %v4119_v36, 1e-06 }
 0x5fd   :  { %4673 = vmatmul.mubr.bf16.vlgmr.msra.gmra.mrb[84].mxu0 %v4380_v17  ;;  %v4194_v3 = vmul.f32 %v4162_v47, %v4130_v22  ;;  %v12422_v17 = vld [vmem:[#allocation22_spill] sm:$0xff]  ;;  %v12432_v47 = vld [vmem:[#allocation32_spill] sm:$0xff] }
 0x5fe   :  { %v3965_v58 = vmul.f32 0.0625, %v3960_v51  ;;  %8885 = vmatprep.mubr.msk.bf16.mxu0 %vm9782_vm1, %v12186_v33  ;;  %v4195_v35 = vmul.f32 %v4163_v49, %v4131_v46  ;;  %v4167_v43 = vmul.f32 %v4135_v61, %v4135_v61  ;;  %v4183_v15 = vmul.f32 %v4151_v20, %v4151_v20  ;;  %v12430_v22 = vld [vmem:[#allocation30_spill] sm:$0xff] }
 0x600   :  { %9162 = vlog2.f32 %v3965_v58  ;;  %v4227_v53 = vpack.c.bf16 %v4195_v35, %v4195_v35  ;;  %v4199_v57 = vmul.f32 %v4167_v43, %v4135_v61  ;;  %v4215_v51 = vmul.f32 %v4183_v15, %v4151_v20  ;;  %v12424_v35 = vld [vmem:[#allocation24_spill] sm:$0xff]  ;;  %v12433_v15 = vld [vmem:[#allocation33_spill] sm:$0xff] }
 0x601   :  { %v4306_v58 = vunpack.c.l.b16 %v4242_v26 }
 0x602   :  { %v4291_v19 = vunpack.c.l.b16 %v4227_v53  ;;  %v4247_v14 = vpack.c.bf16 %v4215_v51, %v4215_v51 }
 0x603   :  { %v4327_v42 = vrot.slane %v4306_v58, 3 }
 0x604   :  { %v4329_v48 = vrot.slane %v4291_v19, 4  ;;  %v4311_v46 = vunpack.c.l.b16 %v4247_v14  ;;  %v11111_v19 = vld [vmem:[#allocation2 + $0x68] sm:$0x44] }
 0x606   :  { %v4331_v28 = vsel %vm565_vm0, %v4330_v34, %v4329_v48  ;;  %v12427_v48 = vld [vmem:[#allocation27_spill] sm:$0xff]  ;;  %v4102_v34 = vunpack.c.l.bf16 %v11087_v31 }
 0x607   :  { %v4371_v13 = vpack.c.b16 %v4331_v28, %v4331_v28  ;;  %v4118_v28 = vunpack.c.l.bf16 %v11089_v23  ;;  %v12431_v31 = vld [vmem:[#allocation31_spill] sm:$0xff] }
 0x608   :  { %v4134_v62 = vmax.f32 %v4102_v34, 1e-06 }
 0x609   :  { %v4150_v36 = vmax.f32 %v4118_v28, 1e-06  ;;  %v12443_v28 = vld [vmem:[#allocation43_spill] sm:$0xff] }
 0x60a   :  { %v9163_v9 = vpop.eup %9162  ;;  %v4166_v23 = vmul.f32 %v4134_v62, %v4134_v62 }
 0x60b   :  { %v3967_v45 = vmul.f32 0.6931472, %v9163_v9  ;;  %v4342_v9 = vrot.slane %v4311_v46, 3  ;;  %v4182_v20 = vmul.f32 %v4150_v36, %v4150_v36 }
 0x60d   :  { %v3968_v2 = vmul.f32 0.33333334, %v3967_v45  ;;  %v12425_v45 = vld [vmem:[#allocation25_spill] sm:$0xff]  ;;  %v4214_v32 = vmul.f32 %v4182_v20, %v4150_v36 }
 0x60e   :  { %v12445_v36 = vld [vmem:[#allocation45_spill] sm:$0xff] }
 0x60f   :  { %v3969_v6 = vmul.f32 1.442695, %v3968_v2  ;;  %v4246_v26 = vpack.c.bf16 %v4214_v32, %v4214_v32 }
 0x611   :  { %9164 = vpow2.f32 %v3969_v6  ;;  %v11109_v6 = vld [vmem:[#allocation2 + $0x28] sm:$0x44]  ;;  %v4310_v58 = vunpack.c.l.b16 %v4246_v26 }
 0x612   :  { %v4107_v29 = vunpack.c.h.bf16 %v11109_v6 }
 0x614   :  { %v4139_v60 = vmax.f32 %v4107_v29, 1e-06 }
 0x616   :  { %v4171_v59 = vmul.f32 %v4139_v60, %v4139_v60 }
 0x61b   :  { %v9165_v25 = vpop.eup %9164 }
 0x61c   :  { %v3972_v7 = vpack.c.bf16 %v9165_v25, %v9165_v25 }
 0x61e   :  { %8866 = vmatmul.mubr.bf16.vlgmr.msra.gmra.mrb[68].mxu1 %v3972_v7  ;;  %v12429_v7 = vld [vmem:[#allocation29_spill] sm:$0xff] }
 0x61f   :  { %8072 = vmatpush3.bf16.msra.mxu1 %v10722_v55  ;;  %4472 = vmatprep.mubr.bf16.mxu1 %v4371_v13  ;;  %v12418_v55 = vld [vmem:[#allocation18_spill] sm:$0xff]  ;;  %v4123_v13 = vunpack.c.h.bf16 %v11111_v19 }
 0x620   :  { %8073 = vmatprep.subr.bf16.mxu1 %v10725_v63  ;;  %v4226_v63 = vpack.c.bf16 %v4194_v3, %v4194_v3  ;;  %v4198_v3 = vmul.f32 %v4166_v23, %v4134_v62 }
 0x621   :  { %v4155_v61 = vmax.f32 %v4123_v13, 1e-06  ;;  %v12444_v13 = vld [vmem:[#allocation44_spill] sm:$0xff] }
 0x623   :  { %8074 = vmatpush3.bf16.msra.mxu1 %v10728_v0  ;;  %v4231_v0 = vpack.c.bf16 %v4199_v57, %v4199_v57  ;;  %v4187_v43 = vmul.f32 %v4155_v61, %v4155_v61  ;;  %v4203_v57 = vmul.f32 %v4171_v59, %v4139_v60 }
 0x624   :  { %8075 = vmatprep.subr.bf16.mxu1 %v10731_v18  ;;  %v4290_v18 = vunpack.c.l.b16 %v4226_v63  ;;  %v4230_v63 = vpack.c.bf16 %v4198_v3, %v4198_v3 }
 0x625   :  { %v4219_v51 = vmul.f32 %v4187_v43, %v4155_v61  ;;  %v12446_v61 = vld [vmem:[#allocation46_spill] sm:$0xff] }
 0x626   :  { %v4326_v49 = vrot.slane %v4290_v18, 4  ;;  %v4294_v18 = vunpack.c.l.b16 %v4230_v63 }
 0x627   :  { %8076 = vmatpush3.bf16.msra.mxu1 %v10734_v54  ;;  %v4295_v54 = vunpack.c.l.b16 %v4231_v0  ;;  %v4235_v0 = vpack.c.bf16 %v4203_v57, %v4203_v57  ;;  %v4251_v14 = vpack.c.bf16 %v4219_v51, %v4219_v51 }
 0x628   :  { %8077 = vmatprep.subr.bf16.mxu1 %v12418_v55  ;;  %v4328_v53 = vsel %vm565_vm0, %v4327_v42, %v4326_v49  ;;  %v12434_v55 = vld [vmem:[#allocation34_spill] sm:$0xff]  ;;  %v4338_v49 = vrot.slane %v4294_v18, 4  ;;  %v4339_v42 = vrot.slane %v4310_v58, 3 }
 0x629   :  { %v4341_v52 = vrot.slane %v4295_v54, 4  ;;  %v4370_v24 = vpack.c.b16 %v4328_v53, %v4328_v53  ;;  %v4299_v54 = vunpack.c.l.b16 %v4235_v0  ;;  %v4315_v46 = vunpack.c.l.b16 %v4251_v14 }
 0x62a   :  { %v4340_v53 = vsel %vm565_vm0, %v4339_v42, %v4338_v49 }
 0x62b   :  { %8078 = vmatpush3.bf16.msra.mxu1 %v12419_v37  ;;  %v4343_v2 = vsel %vm565_vm0, %v4342_v9, %v4341_v52  ;;  %v12435_v37 = vld [vmem:[#allocation35_spill] sm:$0xff]  ;;  %v4353_v52 = vrot.slane %v4299_v54, 4  ;;  %v4354_v9 = vrot.slane %v4315_v46, 3  ;;  %v4374_v34 = vpack.c.b16 %v4340_v53, %v4340_v53 }
 0x62c   :  { %8079 = vmatprep.subr.bf16.mxu1 %v12420_v40  ;;  %v4375_v25 = vpack.c.b16 %v4343_v2, %v4343_v2  ;;  %v12436_v40 = vld [vmem:[#allocation36_spill] sm:$0xff] }
 0x62d   :  { %v4355_v2 = vsel %vm565_vm0, %v4354_v9, %v4353_v52 }
 0x62e   :  { %v4379_v29 = vpack.c.b16 %v4355_v2, %v4355_v2 }
 0x62f   :  { %8080 = vmatpush3.bf16.msra.mxu1 %v12421_v50  ;;  %v12437_v50 = vld [vmem:[#allocation37_spill] sm:$0xff] }
 0x630   :  { %8081 = vmatprep.subr.bf16.mxu1 %v12422_v17  ;;  %v12438_v17 = vld [vmem:[#allocation38_spill] sm:$0xff] }
 0x633   :  { %8082 = vmatpush3.bf16.msra.mxu1 %v12423_v16  ;;  %v12439_v16 = vld [vmem:[#allocation39_spill] sm:$0xff] }
 0x634   :  { %8083 = vmatprep.subr.bf16.mxu1 %v12424_v35  ;;  %v12440_v35 = vld [vmem:[#allocation40_spill] sm:$0xff] }
 0x637   :  { %8084 = vmatpush3.bf16.msra.mxu1 %v12425_v45  ;;  %v12441_v45 = vld [vmem:[#allocation41_spill] sm:$0xff] }
 0x638   :  { %8085 = vmatprep.subr.bf16.mxu1 %v12426_v21  ;;  %v12442_v21 = vld [vmem:[#allocation42_spill] sm:$0xff] }
 0x63b   :  { %8086 = vmatpush3.bf16.msra.mxu1 %v12427_v48  ;;  %v11137_v48 = vld [vmem:[#allocation2 + $0x78] sm:$0x44] }
 0x63c   :  { %8115 = vmatprep.subr.bf16.mxu1 %v12428_v4  ;;  %v4122_v4 = vunpack.c.l.bf16 %v11111_v19  ;;  %v4127_v62 = vunpack.c.h.bf16 %v11137_v48 }
 0x63e   :  { %4473 = vmatmul.mubr.bf16.vlgmr.msra.gmra.mrb[72].mxu1 %v4370_v24  ;;  %v11135_v24 = vld [vmem:[#allocation2 + $0x38] sm:$0x44]  ;;  %v4154_v60 = vmax.f32 %v4122_v4, 1e-06  ;;  %v4159_v23 = vmax.f32 %v4127_v62, 1e-06 }
 0x63f   :  { %8116 = vmatpush3.bf16.msra.mxu1 %v12429_v7  ;;  %4552 = vmatprep.mubr.bf16.mxu1 %v4375_v25  ;;  %v4106_v25 = vunpack.c.l.bf16 %v11109_v6  ;;  %v4111_v7 = vunpack.c.h.bf16 %v11135_v24  ;;  %v12447_v6 = vld [vmem:[#allocation47_spill] sm:$0xff]  ;;  %v12458_v4 = vld [vmem:[#allocation58_spill] sm:$0xff]  ;;  %v4110_v62 = vunpack.c.l.bf16 %v11135_v24  ;;  %v12465_v24 = vld [vmem:[#allocation65_spill] sm:$0xff] }
 0x640   :  { %8117 = vmatprep.subr.bf16.mxu1 %v12430_v22  ;;  %v4186_v20 = vmul.f32 %v4154_v60, %v4154_v60  ;;  %v4191_v43 = vmul.f32 %v4159_v23, %v4159_v23 }
 0x641   :  { %v4138_v22 = vmax.f32 %v4106_v25, 1e-06 }
 0x642   :  { %v4218_v32 = vmul.f32 %v4186_v20, %v4154_v60  ;;  %v4223_v51 = vmul.f32 %v4191_v43, %v4159_v23  ;;  %v12460_v60 = vld [vmem:[#allocation60_spill] sm:$0xff] }
 0x643   :  { %8118 = vmatpush3.bf16.msra.mxu1 %v12431_v31  ;;  %v4143_v31 = vmax.f32 %v4111_v7, 1e-06  ;;  %v4170_v19 = vmul.f32 %v4138_v22, %v4138_v22  ;;  %v12459_v7 = vld [vmem:[#allocation59_spill] sm:$0xff] }
 0x644   :  { %8119 = vmatprep.subr.bf16.mxu1 %v12432_v47  ;;  %v12448_v47 = vld [vmem:[#allocation48_spill] sm:$0xff]  ;;  %v4250_v26 = vpack.c.bf16 %v4218_v32, %v4218_v32  ;;  %v4255_v14 = vpack.c.bf16 %v4223_v51, %v4223_v51  ;;  %v12469_v51 = vld [vmem:[#allocation69_spill] sm:$0xff] }
 0x645   :  { %v4175_v59 = vmul.f32 %v4143_v31, %v4143_v31  ;;  %v4202_v3 = vmul.f32 %v4170_v19, %v4138_v22  ;;  %v12463_v19 = vld [vmem:[#allocation63_spill] sm:$0xff] }
 0x646   :  { %v4314_v58 = vunpack.c.l.b16 %v4250_v26  ;;  %v4319_v46 = vunpack.c.l.b16 %v4255_v14  ;;  %v12470_v26 = vld [vmem:[#allocation70_spill] sm:$0xff] }
 0x647   :  { %8120 = vmatpush3.bf16.msra.mxu1 %v12433_v15  ;;  %v12449_v15 = vld [vmem:[#allocation49_spill] sm:$0xff]  ;;  %v4207_v57 = vmul.f32 %v4175_v59, %v4143_v31  ;;  %v4234_v63 = vpack.c.bf16 %v4202_v3, %v4202_v3  ;;  %v4142_v31 = vmax.f32 %v4110_v62, 1e-06  ;;  %v12464_v59 = vld [vmem:[#allocation64_spill] sm:$0xff]  ;;  %v12467_v3 = vld [vmem:[#allocation67_spill] sm:$0xff] }
 0x648   :  { %8121 = vmatprep.subr.bf16.mxu1 %v12434_v55  ;;  %v12450_v55 = vld [vmem:[#allocation50_spill] sm:$0xff]  ;;  %v4351_v42 = vrot.slane %v4314_v58, 3  ;;  %v4366_v9 = vrot.slane %v4319_v46, 3  ;;  %v12473_v46 = vld [vmem:[#allocation73_spill] sm:$0xff]  ;;  %v12487_v62 = vld [vmem:[#allocation87_spill] sm:$0xff] }
 0x649   :  { %v4239_v0 = vpack.c.bf16 %v4207_v57, %v4207_v57  ;;  %v4298_v18 = vunpack.c.l.b16 %v4234_v63  ;;  %v4174_v20 = vmul.f32 %v4142_v31, %v4142_v31  ;;  %v12468_v57 = vld [vmem:[#allocation68_spill] sm:$0xff] }
 0x64b   :  { %8122 = vmatpush3.bf16.msra.mxu1 %v12435_v37  ;;  %v12451_v37 = vld [vmem:[#allocation51_spill] sm:$0xff]  ;;  %v4303_v54 = vunpack.c.l.b16 %v4239_v0  ;;  %v4350_v49 = vrot.slane %v4298_v18, 4 }
 0x64c   :  { %8123 = vmatprep.subr.bf16.mxu1 %v12436_v40  ;;  %v12452_v40 = vld [vmem:[#allocation52_spill] sm:$0xff] }
 0x64d   :  { %v4365_v52 = vrot.slane %v4303_v54, 4 }
 0x64f   :  { %8124 = vmatpush3.bf16.msra.mxu1 %v12437_v50  ;;  %v12453_v50 = vld [vmem:[#allocation53_spill] sm:$0xff] }
 0x650   :  { %8125 = vmatprep.subr.bf16.mxu1 %v12438_v17  ;;  %v12454_v17 = vld [vmem:[#allocation54_spill] sm:$0xff] }
 0x653   :  { %8126 = vmatpush3.bf16.msra.mxu1 %v12439_v16  ;;  %v12455_v16 = vld [vmem:[#allocation55_spill] sm:$0xff] }
 0x654   :  { %8127 = vmatprep.subr.bf16.mxu1 %v12440_v35  ;;  %v12456_v35 = vld [vmem:[#allocation56_spill] sm:$0xff] }
 0x657   :  { %8128 = vmatpush3.bf16.msra.mxu1 %v12441_v45 }
 0x658   :  { %8129 = vmatprep.subr.bf16.mxu1 %v12442_v21 }
 0x65b   :  { %8130 = vmatpush3.bf16.msra.mxu1 %v12443_v28  ;;  %v4352_v28 = vsel %vm565_vm0, %v4351_v42, %v4350_v49  ;;  %v12474_v42 = vld [vmem:[#allocation74_spill] sm:$0xff] }
 0x65c   :  { %8159 = vmatprep.subr.bf16.mxu1 %v12444_v13  ;;  %v4378_v13 = vpack.c.b16 %v4352_v28, %v4352_v28  ;;  %v12481_v28 = vld [vmem:[#allocation81_spill] sm:$0xff] }
 0x65e   :  { %4553 = vmatmul.mubr.bf16.vlgmr.msra.gmra.mrb[76].mxu1 %v4374_v34  ;;  %v12457_v34 = vld [vmem:[#allocation57_spill] sm:$0xff] }
 0x65f   :  { %8160 = vmatpush3.bf16.msra.mxu1 %v12445_v36  ;;  %4632 = vmatprep.mubr.bf16.mxu1 %v4379_v29  ;;  %v4367_v29 = vsel %vm565_vm0, %v4366_v9, %v4365_v52  ;;  %v4126_v36 = vunpack.c.l.bf16 %v11137_v48  ;;  %v4206_v48 = vmul.f32 %v4174_v20, %v4142_v31  ;;  %v12475_v52 = vld [vmem:[#allocation75_spill] sm:$0xff]  ;;  %v12476_v9 = vld [vmem:[#allocation76_spill] sm:$0xff] }
 0x660   :  { %8161 = vmatprep.subr.bf16.mxu1 %v12446_v61  ;;  %v4383_v22 = vpack.c.b16 %v4367_v29, %v4367_v29  ;;  %v12461_v61 = vld [vmem:[#allocation61_spill] sm:$0xff]  ;;  %v12484_v29 = vld [vmem:[#allocation84_spill] sm:$0xff]  ;;  %v11206_v20 = vld [vmem:[#allocation5 + $0x38] sm:$0xff]  }
 0x661   :  { %v4158_v23 = vmax.f32 %v4126_v36, 1e-06  ;;  %v4238_v32 = vpack.c.bf16 %v4206_v48, %v4206_v48 }
 0x663   :  { %8162 = vmatpush3.bf16.msra.mxu1 %v12447_v6  ;;  %v12462_v6 = vld [vmem:[#allocation62_spill] sm:$0xff] }
 0x664   :  { %8163 = vmatprep.subr.bf16.mxu1 %v12448_v47  ;;  %v4190_v47 = vmul.f32 %v4158_v23, %v4158_v23 }
 0x666   :  { %v4222_v43 = vmul.f32 %v4190_v47, %v4158_v23  ;;  %v11209_v47 = vld [vmem:[#allocation5 + $0x140] sm:$0xff]  }
 0x667   :  { %8164 = vmatpush3.bf16.msra.mxu1 %v12449_v15  ;;  %v12466_v15 = vld [vmem:[#allocation66_spill] sm:$0xff] }
 0x668   :  { %8165 = vmatprep.subr.bf16.mxu1 %v12450_v55  ;;  %v4254_v55 = vpack.c.bf16 %v4222_v43, %v4222_v43 }
 0x66a   :  { %v4318_v63 = vunpack.c.l.b16 %v4254_v55 }
 0x66b   :  { %8166 = vmatpush3.bf16.msra.mxu1 %v12451_v37  ;;  %v4302_v37 = vunpack.c.l.b16 %v4238_v32 }
 0x66c   :  { %8167 = vmatprep.subr.bf16.mxu1 %v12452_v40  ;;  %v12471_v40 = vld [vmem:[#allocation71_spill] sm:$0xff]  ;;  %v4363_v14 = vrot.slane %v4318_v63, 3 }
 0x66d   :  { %v4362_v0 = vrot.slane %v4302_v37, 4  ;;  %v9118_v63 = vld [vmem:[#allocation7 + $0x100] sm:$0xff]  }
 0x66e   :  { %8870 = vmatpush3.bf16.msra.mxu0 %v9118_v63 }
 0x66f   :  { %8168 = vmatpush3.bf16.msra.mxu1 %v12453_v50  ;;  %v12472_v50 = vld [vmem:[#allocation72_spill] sm:$0xff]  ;;  %8871 = vmatprep.subr.bf16.mxu0 %v12186_v33 }
 0x670   :  { %8169 = vmatprep.subr.bf16.mxu1 %v12454_v17  ;;  %v8065_v45 = vpop.f32.mrb[72].mxu0 }
 0x671   :  { %v8066_v53 = vpop.f32.mrb[73].mxu0 }
 0x672   :  { %v11157_v21 = vadd.f32 %v8066_v53, %v8065_v45  ;;  %v8068_v2 = vpop.f32.mrb[74].mxu0  ;;  %v12477_v45 = vld [vmem:[#allocation77_spill] sm:$0xff]  ;;  %v12478_v53 = vld [vmem:[#allocation78_spill] sm:$0xff] }
 0x673   :  { %8170 = vmatpush3.bf16.msra.mxu1 %v12455_v16  ;;  %v8069_v25 = vpop.f32.mrb[75].mxu0  ;;  %v4364_v16 = vsel %vm565_vm0, %v4363_v14, %v4362_v0  ;;  %v12479_v2 = vld [vmem:[#allocation79_spill] sm:$0xff] }
 0x674   :  { %8171 = vmatprep.subr.bf16.mxu1 %v12456_v35  ;;  %v4382_v35 = vpack.c.b16 %v4364_v16, %v4364_v16  ;;  %v12482_v25 = vld [vmem:[#allocation82_spill] sm:$0xff]  ;;  %v9122_v14 = vld [vmem:[#allocation7 + $0x120] sm:$0xff]  }
 0x675   :  { %v9121_v0 = vld [vmem:[#allocation7 + $0x118] sm:$0xff]  }
 0x677   :  { %8172 = vmatpush3.bf16.msra.mxu1 %v12457_v34  ;;  %v12480_v34 = vld [vmem:[#allocation80_spill] sm:$0xff] }
 0x678   :  { %8173 = vmatprep.subr.bf16.mxu1 %v12458_v4  ;;  %v12483_v4 = vld [vmem:[#allocation83_spill] sm:$0xff] }
 0x67b   :  { %8174 = vmatpush3.bf16.msra.mxu1 %v12459_v7  ;;  %v12486_v7 = vld [vmem:[#allocation86_spill] sm:$0xff] }
 0x67c   :  { %8203 = vmatprep.subr.bf16.mxu1 %v12460_v60 }
 0x67e   :  { %4633 = vmatmul.mubr.bf16.vlgmr.msra.gmra.mrb[80].mxu1 %v4378_v13  ;;  %v12485_v13 = vld [vmem:[#allocation85_spill] sm:$0xff] }
 0x67f   :  { %8204 = vmatpush3.bf16.msra.mxu1 %v12461_v61  ;;  %4712 = vmatprep.mubr.bf16.mxu1 %v4383_v22  ;;  %v12488_v22 = vld [vmem:[#allocation88_spill] sm:$0xff] }
 0x680   :  { %8205 = vmatprep.subr.bf16.mxu1 %v12462_v6  ;;  %v11200_v6 = vld [vmem:[#allocation5 + $0x30] sm:$0xff]  }
 0x683   :  { %8206 = vmatpush3.bf16.msra.mxu1 %v12463_v19  ;;  %v11203_v19 = vld [vmem:[#allocation5 + $0x78] sm:$0xff]  }
 0x684   :  { %8207 = vmatprep.subr.bf16.mxu1 %v12464_v59 }
 0x687   :  { %8208 = vmatpush3.bf16.msra.mxu1 %v12465_v24 }
 0x688   :  { %8209 = vmatprep.subr.bf16.mxu1 %v12466_v15 }
 0x68b   :  { %8210 = vmatpush3.bf16.msra.mxu1 %v12467_v3  ;;  %v3971_v3 = vld [vmem:[#allocation8] sm:$0x3] }
 0x68c   :  { %8211 = vmatprep.subr.bf16.mxu1 %v12468_v57 }
 0x68f   :  { %8212 = vmatpush3.bf16.msra.mxu1 %v12469_v51 }
 0x690   :  { %8213 = vmatprep.subr.bf16.mxu1 %v12470_v26  ;;  %v8109_v18 = vpop.f32.mrb[76].mxu0  ;;  %v9119_v26 = vld [vmem:[#allocation7 + $0x108] sm:$0xff]  }
 0x691   :  { %v8110_v58 = vpop.f32.mrb[77].mxu0  ;;  %8872 = vmatpush3.bf16.msra.mxu0 %v9119_v26 }
 0x692   :  { %v11179_v17 = vadd.f32 %v8110_v58, %v8109_v18  ;;  %v8112_v54 = vpop.f32.mrb[78].mxu0  ;;  %8873 = vmatprep.subr.bf16.mxu0 %v12186_v33  ;;  %v4843_v18 = vld [vmem:[#allocation2 + $0x40] sm:$0x44] }
 0x693   :  { %8214 = vmatpush3.bf16.msra.mxu1 %v12471_v40  ;;  %v8113_v49 = vpop.f32.mrb[79].mxu0  ;;  %v9120_v40 = vld [vmem:[#allocation7 + $0x110] sm:$0xff]   ;;  %v4868_v54 = vunpack.c.h.bf16 %v4843_v18 }
 0x694   :  { %8215 = vmatprep.subr.bf16.mxu1 %v12472_v50  ;;  %v4835_v50 = vld [vmem:[#allocation2] sm:$0x44]  ;;  %v4867_v49 = vunpack.c.l.bf16 %v4843_v18 }
 0x695   :  { %8874 = vmatpush3.bf16.msra.mxu0 %v9120_v40  ;;  %v4852_v58 = vunpack.c.h.bf16 %v4835_v50  ;;  %v4851_v16 = vunpack.c.l.bf16 %v4835_v50 }
 0x696   :  { %8875 = vmatprep.subr.bf16.mxu0 %v12186_v33 }
 0x697   :  { %8216 = vmatpush3.bf16.msra.mxu1 %v12473_v46  ;;  %v9123_v46 = vld [vmem:[#allocation7 + $0x128] sm:$0xff]  }
 0x698   :  { %8217 = vmatprep.subr.bf16.mxu1 %v12474_v42  ;;  %v4884_v42 = vmax.f32 %v4852_v58, 1e-06 }
 0x699   :  { %8876 = vmatpush3.bf16.msra.mxu0 %v9121_v0 }
 0x69a   :  { %8877 = vmatprep.subr.bf16.mxu0 %v12186_v33 }
 0x69b   :  { %8218 = vmatpush3.bf16.msra.mxu1 %v12475_v52  ;;  %v9124_v52 = vld [vmem:[#allocation7 + $0x130] sm:$0xff]  }
 0x69c   :  { %8234 = vmatprep.subr.bf16.mxu1 %v12476_v9  ;;  %v4883_v9 = vmax.f32 %v4851_v16, 1e-06  ;;  %v11242_v16 = vld [vmem:[#allocation5 + $0x110] sm:$0xff]  }
 0x69d   :  { %8878 = vmatpush3.bf16.msra.mxu0 %v9122_v14 }
 0x69e   :  { %4713 = vmatmul.mubr.bf16.vlgmr.msra.gmra.mrb[84].mxu1 %v4382_v35  ;;  %8879 = vmatprep.subr.bf16.mxu0 %v12186_v33  ;;  %v4900_v35 = vmax.f32 %v4868_v54, 1e-06  ;;  %v11230_v54 = vld [vmem:[#allocation5 + $0x100] sm:$0xff]  }
 0x69f   :  { %8235 = vmatpush3.bf16.msra.mxu1 %v12477_v45  ;;  %v4899_v45 = vmax.f32 %v4867_v49, 1e-06  ;;  %v11245_v49 = vld [vmem:[#allocation5 + $0x158] sm:$0xff]  }
 0x6a0   :  { %8236 = vmatprep.subr.bf16.mxu1 %v12478_v53  ;;  %v4916_v53 = vmul.f32 %v4884_v42, %v4884_v42 }
 0x6a1   :  { %8880 = vmatpush3.bf16.msra.mxu0 %v9123_v46  ;;  %v11233_v46 = vld [vmem:[#allocation5 + $0x148] sm:$0xff]  }
 0x6a2   :  { %8881 = vmatprep.subr.bf16.mxu0 %v12186_v33 }
 0x6a3   :  { %8237 = vmatpush3.bf16.msra.mxu1 %v12479_v2  ;;  %v4932_v2 = vmul.f32 %v4900_v35, %v4900_v35 }
 0x6a4   :  { %8238 = vmatprep.subr.bf16.mxu1 %v12480_v34  ;;  %v4915_v34 = vmul.f32 %v4883_v9, %v4883_v9 }
 0x6a5   :  { %8882 = vmatpush3.bf16.msra.mxu0 %v9124_v52  ;;  %v11248_v52 = vld [vmem:[#allocation5 + $0x118] sm:$0xff]  }
 0x6a6   :  { %8883 = vmatprep.subr.bf16.mxu0 %v12186_v33 }
 0x6a7   :  { %8239 = vmatpush3.bf16.msra.mxu1 %v12481_v28  ;;  %v4931_v28 = vmul.f32 %v4899_v45, %v4899_v45 }
 0x6a8   :  { %8240 = vmatprep.subr.bf16.mxu1 %v12482_v25  ;;  %v4948_v25 = vmul.f32 %v4916_v53, %v4884_v42  ;;  %v4837_v42 = vld [vmem:[#allocation2 + $0x10] sm:$0x44]  ;;  %v11251_v53 = vld [vmem:[#allocation5 + $0x160] sm:$0xff]  }
 0x6ab   :  { %8241 = vmatpush3.bf16.msra.mxu1 %v12483_v4  ;;  %v4964_v4 = vmul.f32 %v4932_v2, %v4900_v35  ;;  %v4845_v35 = vld [vmem:[#allocation2 + $0x50] sm:$0x44]  ;;  %v4855_v2 = vunpack.c.l.bf16 %v4837_v42 }
 0x6ac   :  { %8242 = vmatprep.subr.bf16.mxu1 %v12484_v29  ;;  %v9125_v29 = vld [vmem:[#allocation7 + $0x138] sm:$0xff]  }
 0x6ad   :  { %8884 = vmatpush3.bf16.msra.mxu0 %v9125_v29 }
 0x6af   :  { %8243 = vmatpush3.bf16.msra.mxu1 %v12485_v13  ;;  %v4947_v13 = vmul.f32 %v4915_v34, %v4883_v9  ;;  %v4856_v9 = vunpack.c.h.bf16 %v4837_v42  ;;  %v4871_v34 = vunpack.c.l.bf16 %v4845_v35  ;;  %v11266_v42 = vld [vmem:[#allocation5 + $0x130] sm:$0xff]  }
 0x6b0   :  { %8244 = vmatprep.subr.bf16.mxu1 %v12486_v7  ;;  %v8153_v36 = vpop.f32.mrb[80].mxu0  ;;  %v4963_v7 = vmul.f32 %v4931_v28, %v4899_v45  ;;  %v4872_v45 = vunpack.c.h.bf16 %v4845_v35 }
 0x6b1   :  { %v8154_v60 = vpop.f32.mrb[81].mxu0  ;;  %v4888_v28 = vmax.f32 %v4856_v9, 1e-06  ;;  %v4903_v29 = vmax.f32 %v4871_v34, 1e-06 }
 0x6b2   :  { %v11198_v61 = vadd.f32 %v8154_v60, %v8153_v36  ;;  %v8156_v31 = vpop.f32.mrb[82].mxu0  ;;  %v4996_v36 = vpack.c.bf16 %v4964_v4, %v4964_v4  ;;  %v4979_v60 = vpack.c.bf16 %v4947_v13, %v4947_v13  ;;  %v4887_v4 = vmax.f32 %v4855_v2, 1e-06  ;;  %v11254_v13 = vld [vmem:[#allocation5 + $0x120] sm:$0xff]   ;;  %v11269_v2 = vld [vmem:[#allocation5 + $0x178] sm:$0xff]  }
 0x6b3   :  { %8245 = vmatpush3.bf16.msra.mxu1 %v12487_v62  ;;  %v8157_v23 = vpop.f32.mrb[83].mxu0  ;;  %v4980_v62 = vpack.c.bf16 %v4948_v25, %v4948_v25  ;;  %v4995_v31 = vpack.c.bf16 %v4963_v7, %v4963_v7  ;;  %v4904_v25 = vmax.f32 %v4872_v45, 1e-06  ;;  %v4920_v7 = vmul.f32 %v4888_v28, %v4888_v28 }
 0x6b4   :  { %8246 = vmatprep.subr.bf16.mxu1 %v12488_v22 }
 0x6b7   :  { %8247 = vmatpush3.bf16.msra.mxu1 %v11200_v6 }
 0x6b8   :  { %8248 = vmatprep.subr.bf16.mxu1 %v11203_v19 }
 0x6bb   :  { %8249 = vmatpush3.bf16.msra.mxu1 %v11206_v20 }
 0x6bc   :  { %8278 = vmatprep.subr.bf16.mxu1 %v11209_v47 }
 0x6d0   :  { %v8197_v59 = vpop.f32.mrb[84].mxu0 }
 0x6d1   :  { %v8198_v24 = vpop.f32.mrb[85].mxu0 }
 0x6d2   :  { %v11212_v48 = vadd.f32 %v8198_v24, %v8197_v59  ;;  %v8200_v43 = vpop.f32.mrb[86].mxu0  ;;  %v5044_v59 = vunpack.c.l.b16 %v4980_v62  ;;  %v5060_v24 = vunpack.c.l.b16 %v4996_v36  ;;  %v4936_v62 = vmul.f32 %v4904_v25, %v4904_v25  ;;  %v11257_v36 = vld [vmem:[#allocation5 + $0x168] sm:$0xff]  }
 0x6d3   :  { %v8201_v15 = vpop.f32.mrb[87].mxu0 }
 0x6f1   :  { %v4072_v32 = vpop.f32.mrb[68].mxu1 }
 0x6f2   :  { %v4078_v55 = vadd.f32 %v4072_v32, %v3971_v3  ;;  %v8867_v57 = vpop.f32.mrb[69].mxu1  ;;  %v5043_v3 = vunpack.c.l.b16 %v4979_v60  ;;  %v5059_v32 = vunpack.c.l.b16 %v4995_v31  ;;  %v4935_v60 = vmul.f32 %v4903_v29, %v4903_v29 }
 0x6f3   :  { %v4075_v51 = vpop.f32.mrb[70].mxu1  ;;  %v11221_v57 = vld [vmem:[#allocation5 + $0xc0] sm:$0xff]   ;;  %v4952_v31 = vmul.f32 %v4920_v7, %v4888_v28 }
 0x6f4   :  { %4079 = vst [vmem:[#allocation8] sm:$0x3] %v4078_v55  ;;  %v8868_v37 = vpop.f32.mrb[71].mxu1  ;;  %8256 = vmatprep.subr.bf16.mxu0 %v11221_v57  ;;  %v5078_v51 = vrot.slane %v5044_v59, 5  ;;  %v5075_v26 = vrot.slane %v5043_v3, 5  ;;  %v5076_v40 = vrot.slane %v5059_v32, 4 }
 0x6f5   :  { %v5079_v37 = vrot.slane %v5060_v24, 4  ;;  %v4967_v24 = vmul.f32 %v4935_v60, %v4903_v29  ;;  %v11263_v32 = vld [vmem:[#allocation5 + $0x170] sm:$0xff]  }
 0x6f6   :  { %v5077_v18 = vsel %vm565_vm0, %v5076_v40, %v5075_v26 }
 0x6f7   :  { %v5080_v0 = vsel %vm565_vm0, %v5079_v37, %v5078_v51  ;;  %v5123_v58 = vpack.c.b16 %v5077_v18, %v5077_v18  ;;  %v4999_v51 = vpack.c.bf16 %v4967_v24, %v4967_v24  ;;  %v11296_v24 = vld [vmem:[#allocation5 + $0x210] sm:$0xff]  }
 0x6f8   :  { %v5124_v50 = vpack.c.b16 %v5080_v0, %v5080_v0 }
 0x6fa   :  { %5187 = vmatprep.mubr.bf16.mxu1 %v5124_v50  ;;  %v5063_v50 = vunpack.c.l.b16 %v4999_v51  ;;  %v11302_v51 = vld [vmem:[#allocation5 + $0x218] sm:$0xff]  }
 0x6fb   :  { %5188 = vmatmul.mubr.bf16.vlgmr.msra.gmra.mrb[88].mxu1 %v5123_v58  ;;  %12490 = vst [vmem:[#allocation13_spill] sm:$0xff] %v11302_v51 }
 0x6fc   :  { %8279 = vmatpush3.bf16.msra.mxu1 %v11230_v54  ;;  %v5088_v28 = vrot.slane %v5063_v50, 4 }
 0x6fd   :  { %8280 = vmatprep.subr.bf16.mxu1 %v11233_v46 }
 0x711   :  { %v8087_v22 = vpop.f32.mrb[72].mxu1 }
 0x712   :  { %v8088_v23 = vpop.f32.mrb[73].mxu1 }
 0x713   :  { %v8089_v43 = vadd.f32 %v8088_v23, %v8087_v22  ;;  %v8090_v15 = vpop.f32.mrb[74].mxu1  ;;  %v4919_v22 = vmul.f32 %v4887_v4, %v4887_v4  ;;  %v4968_v23 = vmul.f32 %v4936_v62, %v4904_v25 }
 0x714   :  { %v8091_v55 = vpop.f32.mrb[75].mxu1  ;;  %v4984_v15 = vpack.c.bf16 %v4952_v31, %v4952_v31  ;;  %v11281_v31 = vld [vmem:[#allocation5 + $0x240] sm:$0xff]  }
 0x715   :  { %v4475_v63 = vadd.f32 %v8089_v43, %v11157_v21  ;;  %v11236_v21 = vld [vmem:[#allocation5 + $0x108] sm:$0xff]   ;;  %v4951_v59 = vmul.f32 %v4919_v22, %v4887_v4  ;;  %v5000_v3 = vpack.c.bf16 %v4968_v23, %v4968_v23  ;;  %v11278_v22 = vld [vmem:[#allocation5 + $0x138] sm:$0xff]  }
 0x716   :  { %8281 = vmatpush3.bf16.msra.mxu1 %v11236_v21  ;;  %v11260_v43 = vld [vmem:[#allocation5 + $0x128] sm:$0xff]  }
 0x717   :  { %v11227_v14 = vadd.f32 %v11179_v17, %v4475_v63  ;;  %v11239_v17 = vld [vmem:[#allocation5 + $0x150] sm:$0xff]   ;;  %v4983_v55 = vpack.c.bf16 %v4951_v59, %v4951_v59  ;;  %v5048_v63 = vunpack.c.l.b16 %v4984_v15  ;;  %v5064_v26 = vunpack.c.l.b16 %v5000_v3  ;;  %v11287_v23 = vld [vmem:[#allocation5 + $0x248] sm:$0xff]   ;;  %v11299_v15 = vld [vmem:[#allocation5 + $0x258] sm:$0xff]  }
 0x718   :  { %8282 = vmatprep.subr.bf16.mxu1 %v11239_v17  ;;  %v11293_v59 = vld [vmem:[#allocation5 + $0x250] sm:$0xff]   ;;  %12489 = vst [vmem:[#allocation12_spill] sm:$0xff] %v11299_v15  ;;  %v4839_v3 = vld [vmem:[#allocation2 + $0x20] sm:$0x44] }
 0x719   :  { %v5047_v0 = vunpack.c.l.b16 %v4983_v55  ;;  %v5090_v35 = vrot.slane %v5048_v63, 5  ;;  %v5091_v9 = vrot.slane %v5064_v26, 4  ;;  %v4847_v55 = vld [vmem:[#allocation2 + $0x60] sm:$0x44] }
 0x71a   :  { %8283 = vmatpush3.bf16.msra.mxu1 %v11242_v16  ;;  %v4876_v63 = vunpack.c.h.bf16 %v4847_v55  ;;  %v11305_v26 = vld [vmem:[#allocation5 + $0x260] sm:$0xff]  }
 0x71b   :  { %8284 = vmatprep.subr.bf16.mxu1 %v11245_v49  ;;  %v5087_v34 = vrot.slane %v5047_v0, 5  ;;  %v5092_v4 = vsel %vm565_vm0, %v5091_v9, %v5090_v35  ;;  %12491 = vst [vmem:[#allocation14_spill] sm:$0xff] %v11305_v26  ;;  %v4875_v0 = vunpack.c.l.bf16 %v4847_v55  ;;  %v11308_v9 = vld [vmem:[#allocation5 + $0x220] sm:$0xff]   ;;  %v11314_v55 = vld [vmem:[#allocation5 + $0x228] sm:$0xff]  }
 0x71c   :  { %v5128_v29 = vpack.c.b16 %v5092_v4, %v5092_v4  ;;  %12492 = vst [vmem:[#allocation15_spill] sm:$0xff] %v11308_v9 }
 0x71d   :  { %v5089_v7 = vsel %vm565_vm0, %v5088_v28, %v5087_v34  ;;  %v4907_v35 = vmax.f32 %v4875_v0, 1e-06  ;;  %v11311_v28 = vld [vmem:[#allocation5 + $0x268] sm:$0xff]  }
 0x71e   :  { %8285 = vmatpush3.bf16.msra.mxu1 %v11248_v52  ;;  %v5127_v60 = vpack.c.b16 %v5089_v7, %v5089_v7  ;;  %5267 = vmatprep.mubr.bf16.mxu1 %v5128_v29  ;;  %12493 = vst [vmem:[#allocation16_spill] sm:$0xff] %v11311_v28 }
 0x71f   :  { %8286 = vmatprep.subr.bf16.mxu1 %v11251_v53  ;;  %v4939_v4 = vmul.f32 %v4907_v35, %v4907_v35 }
 0x722   :  { %8287 = vmatpush3.bf16.msra.mxu1 %v11254_v13 }
 0x723   :  { %8288 = vmatprep.subr.bf16.mxu1 %v11257_v36 }
 0x726   :  { %8289 = vmatpush3.bf16.msra.mxu1 %v11260_v43 }
 0x727   :  { %8290 = vmatprep.subr.bf16.mxu1 %v11263_v32 }
 0x72a   :  { %8291 = vmatpush3.bf16.msra.mxu1 %v11266_v42 }
 0x72b   :  { %8292 = vmatprep.subr.bf16.mxu1 %v11269_v2 }
 0x72e   :  { %8293 = vmatpush3.bf16.msra.mxu1 %v11278_v22 }
 0x72f   :  { %8322 = vmatprep.subr.bf16.mxu1 %v11281_v31 }
 0x731   :  { %v8131_v37 = vpop.f32.mrb[76].mxu1  ;;  %5268 = vmatmul.mubr.bf16.vlgmr.msra.gmra.mrb[92].mxu1 %v5127_v60 }
 0x732   :  { %v8132_v40 = vpop.f32.mrb[77].mxu1 }
 0x733   :  { %v8133_v18 = vadd.f32 %v8132_v40, %v8131_v37  ;;  %v8134_v58 = vpop.f32.mrb[78].mxu1  ;;  %v4860_v37 = vunpack.c.h.bf16 %v4839_v3  ;;  %v4859_v40 = vunpack.c.l.bf16 %v4839_v3  ;;  %v4971_v3 = vmul.f32 %v4939_v4, %v4907_v35 }
 0x734   :  { %v8135_v45 = vpop.f32.mrb[79].mxu1 }
 0x735   :  { %v4555_v25 = vadd.f32 %v8133_v18, %v11227_v14  ;;  %v11284_v14 = vld [vmem:[#allocation5 + $0x200] sm:$0xff]   ;;  %v4892_v50 = vmax.f32 %v4860_v37, 1e-06  ;;  %v4908_v18 = vmax.f32 %v4876_v63, 1e-06 }
 0x736   :  { %8323 = vmatpush3.bf16.msra.mxu1 %v11284_v14  ;;  %v4891_v58 = vmax.f32 %v4859_v40, 1e-06  ;;  %v11317_v40 = vld [vmem:[#allocation5 + $0x270] sm:$0xff]  }
 0x737   :  { %v11276_v62 = vadd.f32 %v11198_v61, %v4555_v25  ;;  %8324 = vmatprep.subr.bf16.mxu1 %v11287_v23  ;;  %v11290_v61 = vld [vmem:[#allocation5 + $0x208] sm:$0xff]   ;;  %v4924_v45 = vmul.f32 %v4892_v50, %v4892_v50  ;;  %v4940_v34 = vmul.f32 %v4908_v18, %v4908_v18 }
 0x738   :  { %v4923_v25 = vmul.f32 %v4891_v58, %v4891_v58 }
 0x739   :  { %v4956_v29 = vmul.f32 %v4924_v45, %v4892_v50  ;;  %v4972_v7 = vmul.f32 %v4940_v34, %v4908_v18  ;;  %v11320_v45 = vld [vmem:[#allocation5 + $0x230] sm:$0xff]  }
 0x73a   :  { %8325 = vmatpush3.bf16.msra.mxu1 %v11290_v61  ;;  %v4955_v60 = vmul.f32 %v4923_v25, %v4891_v58 }
 0x73b   :  { %8326 = vmatprep.subr.bf16.mxu1 %v11293_v59  ;;  %v4988_v37 = vpack.c.bf16 %v4956_v29, %v4956_v29  ;;  %v5004_v63 = vpack.c.bf16 %v4972_v7, %v4972_v7  ;;  %v11323_v29 = vld [vmem:[#allocation5 + $0x278] sm:$0xff]  }
 0x73c   :  { %v4987_v0 = vpack.c.bf16 %v4955_v60, %v4955_v60 }
 0x73e   :  { %8327 = vmatpush3.bf16.msra.mxu1 %v11296_v24  ;;  %v5051_v50 = vunpack.c.l.b16 %v4987_v0  ;;  %v11336_v0 = vld [vmem:[#allocation5 + $0x300] sm:$0xff]  }
 0x73f   :  { %8328 = vmatprep.subr.bf16.mxu1 %v11299_v15 }
 0x740   :  { %v5099_v7 = vrot.slane %v5051_v50, 5  ;;  %v4849_v50 = vld [vmem:[#allocation2 + $0x70] sm:$0x44] }
 0x742   :  { %8329 = vmatpush3.bf16.msra.mxu1 %v11302_v51  ;;  %v5068_v51 = vunpack.c.l.b16 %v5004_v63  ;;  %v11330_v63 = vld [vmem:[#allocation5 + $0x238] sm:$0xff]  }
 0x743   :  { %8330 = vmatprep.subr.bf16.mxu1 %v11305_v26 }
 0x744   :  { %v5103_v25 = vrot.slane %v5068_v51, 4 }
 0x746   :  { %8331 = vmatpush3.bf16.msra.mxu1 %v11308_v9  ;;  %v5003_v9 = vpack.c.bf16 %v4971_v3, %v4971_v3 }
 0x747   :  { %8332 = vmatprep.subr.bf16.mxu1 %v11311_v28  ;;  %v5052_v28 = vunpack.c.l.b16 %v4988_v37 }
 0x748   :  { %v5067_v18 = vunpack.c.l.b16 %v5003_v9 }
 0x749   :  { %v5102_v34 = vrot.slane %v5052_v28, 5  ;;  %v11333_v28 = vld [vmem:[#allocation5 + $0x340] sm:$0xff]  }
 0x74a   :  { %8333 = vmatpush3.bf16.msra.mxu1 %v11314_v55  ;;  %v5100_v60 = vrot.slane %v5067_v18, 4 }
 0x74b   :  { %8334 = vmatprep.subr.bf16.mxu1 %v11317_v40  ;;  %v5104_v37 = vsel %vm565_vm0, %v5103_v25, %v5102_v34  ;;  %v4879_v34 = vunpack.c.l.bf16 %v4849_v50 }
 0x74c   :  { %v5132_v9 = vpack.c.b16 %v5104_v37, %v5104_v37 }
 0x74e   :  { %8335 = vmatpush3.bf16.msra.mxu1 %v11320_v45  ;;  %5347 = vmatprep.mubr.bf16.mxu1 %v5132_v9 }
 0x74f   :  { %8336 = vmatprep.subr.bf16.mxu1 %v11323_v29 }
 0x751   :  { %v8175_v26 = vpop.f32.mrb[80].mxu1 }
 0x752   :  { %v8176_v15 = vpop.f32.mrb[81].mxu1  ;;  %8337 = vmatpush3.bf16.msra.mxu1 %v11330_v63 }
 0x753   :  { %v8177_v58 = vadd.f32 %v8176_v15, %v8175_v26  ;;  %v8178_v35 = vpop.f32.mrb[82].mxu1  ;;  %v5101_v15 = vsel %vm565_vm0, %v5100_v60, %v5099_v7  ;;  %8366 = vmatprep.subr.bf16.mxu1 %v11333_v28 }
 0x754   :  { %v8179_v4 = vpop.f32.mrb[83].mxu1  ;;  %v5131_v51 = vpack.c.b16 %v5101_v15, %v5101_v15 }
 0x755   :  { %v4635_v3 = vadd.f32 %v8177_v58, %v11276_v62  ;;  %v11339_v62 = vld [vmem:[#allocation5 + $0x348] sm:$0xff]   ;;  %v4880_v58 = vunpack.c.h.bf16 %v4849_v50 }
 0x756   :  { %5348 = vmatmul.mubr.bf16.vlgmr.msra.gmra.mrb[96].mxu1 %v5131_v51  ;;  %12494 = vst [vmem:[#allocation17_spill] sm:$0xff] %v11339_v62 }
 0x757   :  { %v4675_v26 = vadd.f32 %v11212_v48, %v4635_v3  ;;  %8367 = vmatpush3.bf16.msra.mxu1 %v11336_v0  ;;  %v4841_v48 = vld [vmem:[#allocation2 + $0x30] sm:$0x44]  ;;  %v4912_v4 = vmax.f32 %v4880_v58, 1e-06 }
 0x758   :  { %8368 = vmatprep.subr.bf16.mxu1 %v11339_v62  ;;  %v4864_v18 = vunpack.c.h.bf16 %v4841_v48  ;;  %v4863_v35 = vunpack.c.l.bf16 %v4841_v48 }
 0x75a   :  { %v4896_v25 = vmax.f32 %v4864_v18, 1e-06  ;;  %v4895_v7 = vmax.f32 %v4863_v35, 1e-06  ;;  %v4836_v35 = vld [vmem:[#allocation2 + $0x8] sm:$0x44] }
 0x75b   :  { %8369 = vmatpush3.bf16.msra.mxu1 %v11041_v41  ;;  %v4911_v41 = vmax.f32 %v4879_v34, 1e-06 }
 0x75c   :  { %8370 = vmatprep.subr.bf16.mxu1 %v11044_v30  ;;  %v4928_v30 = vmul.f32 %v4896_v25, %v4896_v25 }
 0x75d   :  { %v4943_v60 = vmul.f32 %v4911_v41, %v4911_v41 }
 0x75e   :  { %v4960_v3 = vmul.f32 %v4928_v30, %v4896_v25 }
 0x75f   :  { %8371 = vmatpush3.bf16.msra.mxu1 %v11047_v39  ;;  %v4944_v39 = vmul.f32 %v4912_v4, %v4912_v4  ;;  %v4975_v9 = vmul.f32 %v4943_v60, %v4911_v41 }
 0x760   :  { %8372 = vmatprep.subr.bf16.mxu1 %v11050_v38  ;;  %v4927_v38 = vmul.f32 %v4895_v7, %v4895_v7 }
 0x761   :  { %v5007_v48 = vpack.c.bf16 %v4975_v9, %v4975_v9 }
 0x762   :  { %v4959_v37 = vmul.f32 %v4927_v38, %v4895_v7  ;;  %v4854_v38 = vunpack.c.h.bf16 %v4836_v35 }
 0x763   :  { %8373 = vmatpush3.bf16.msra.mxu1 %v11053_v44  ;;  %v4976_v44 = vmul.f32 %v4944_v39, %v4912_v4  ;;  %v5071_v62 = vunpack.c.l.b16 %v5007_v48 }
 0x764   :  { %8374 = vmatprep.subr.bf16.mxu1 %v11056_v11  ;;  %v4992_v11 = vpack.c.bf16 %v4960_v3, %v4960_v3  ;;  %v4991_v51 = vpack.c.bf16 %v4959_v37, %v4959_v37 }
 0x765   :  { %v5008_v15 = vpack.c.bf16 %v4976_v44, %v4976_v44  ;;  %v5112_v30 = vrot.slane %v5071_v62, 4 }
 0x766   :  { %v5055_v34 = vunpack.c.l.b16 %v4991_v51 }
 0x767   :  { %8375 = vmatpush3.bf16.msra.mxu1 %v11059_v56  ;;  %v5056_v56 = vunpack.c.l.b16 %v4992_v11  ;;  %v5072_v18 = vunpack.c.l.b16 %v5008_v15 }
 0x768   :  { %8376 = vmatprep.subr.bf16.mxu1 %v11062_v27  ;;  %v4844_v27 = vld [vmem:[#allocation2 + $0x48] sm:$0x44] }
 0x769   :  { %v5114_v7 = vrot.slane %v5056_v56, 5  ;;  %v4870_v60 = vunpack.c.h.bf16 %v4844_v27 }
 0x76b   :  { %8377 = vmatpush3.bf16.msra.mxu1 %v11065_v12  ;;  %v5115_v12 = vrot.slane %v5072_v18, 4 }
 0x76c   :  { %8378 = vmatprep.subr.bf16.mxu1 %v11068_v5  ;;  %v5111_v5 = vrot.slane %v5055_v34, 5 }
 0x76d   :  { %v5116_v3 = vsel %vm565_vm0, %v5115_v12, %v5114_v7 }
 0x76e   :  { %v5136_v44 = vpack.c.b16 %v5116_v3, %v5116_v3  ;;  %v5113_v37 = vsel %vm565_vm0, %v5112_v30, %v5111_v5  ;;  %v11363_v5 = vld [vmem:[#allocation2 + $0x58] sm:$0x44] }
 0x76f   :  { %8379 = vmatpush3.bf16.msra.mxu1 %v11071_v8  ;;  %v5135_v11 = vpack.c.b16 %v5113_v37, %v5113_v37  ;;  %v4886_v8 = vmax.f32 %v4854_v38, 1e-06  ;;  %v4869_v38 = vunpack.c.l.bf16 %v4844_v27  ;;  %v4874_v37 = vunpack.c.h.bf16 %v11363_v5 }
 0x770   :  { %8380 = vmatprep.subr.bf16.mxu1 %v11074_v10  ;;  %5427 = vmatprep.mubr.bf16.mxu1 %v5136_v44  ;;  %v4902_v10 = vmax.f32 %v4870_v60, 1e-06 }
 0x771   :  { %v8219_v50 = vpop.f32.mrb[84].mxu1  ;;  %v4906_v27 = vmax.f32 %v4874_v37, 1e-06  ;;  %v11394_v37 = vld [vmem:[#allocation5 + $0xe8] sm:$0xff]  }
 0x772   :  { %v8220_v58 = vpop.f32.mrb[85].mxu1  ;;  %v4934_v62 = vmul.f32 %v4902_v10, %v4902_v10  ;;  %12499 = vst [vmem:[#allocation22_spill] sm:$0xff] %v11394_v37 }
 0x773   :  { %v8221_v25 = vadd.f32 %v8220_v58, %v8219_v50  ;;  %v8222_v4 = vpop.f32.mrb[86].mxu1  ;;  %8381 = vmatpush3.bf16.msra.mxu1 %v11080_v1 }
 0x774   :  { %v8223_v41 = vpop.f32.mrb[87].mxu1  ;;  %8889 = vmatprep.subr.bf16.mxu1 %v12186_v33  ;;  %v4966_v51 = vmul.f32 %v4934_v62, %v4902_v10  ;;  %v11370_v10 = vld [vmem:[#allocation5 + $0xc8] sm:$0xff]  }
 0x775   :  { %v4715_v39 = vadd.f32 %v8221_v25, %v4675_v26  ;;  %v4918_v26 = vmul.f32 %v4886_v8, %v4886_v8  ;;  %v11361_v41 = vld [vmem:[#allocation2 + $0x18] sm:$0x44] }
 0x776   :  { %5428 = vmatmul.mubr.bf16.vlgmr.msra.gmra.mrb[100].mxu1 %v5135_v11  ;;  %v4998_v18 = vpack.c.bf16 %v4966_v51, %v4966_v51  ;;  %v4858_v44 = vunpack.c.h.bf16 %v11361_v41  ;;  %v11376_v51 = vld [vmem:[#allocation5 + $0xd0] sm:$0xff]  }
 0x777   :  { %v4720_v9 = vmul.f32 0.0625, %v4715_v39  ;;  %8905 = vmatprep.mubr.msk.bf16.mxu1 %vm9782_vm1, %v12186_v33  ;;  %v4950_v15 = vmul.f32 %v4918_v26, %v4886_v8  ;;  %v4853_v39 = vunpack.c.l.bf16 %v4836_v35  ;;  %v4901_v8 = vmax.f32 %v4869_v38, 1e-06  ;;  %v11373_v26 = vld [vmem:[#allocation5 + $0x88] sm:$0xff]  }
 0x778   :  { %v5062_v25 = vunpack.c.l.b16 %v4998_v18  ;;  %v4890_v35 = vmax.f32 %v4858_v44, 1e-06 }
 0x779   :  { %9166 = vlog2.f32 %v4720_v9  ;;  %v4982_v56 = vpack.c.bf16 %v4950_v15, %v4950_v15  ;;  %v11367_v9 = vld [vmem:[#allocation5 + $0x80] sm:$0xff]   ;;  %v4885_v11 = vmax.f32 %v4853_v39, 1e-06  ;;  %v4933_v15 = vmul.f32 %v4901_v8, %v4901_v8 }
 0x77a   :  { %v5085_v7 = vrot.slane %v5062_v25, 4 }
 0x77b   :  { %v5046_v34 = vunpack.c.l.b16 %v4982_v56  ;;  %v4917_v62 = vmul.f32 %v4885_v11, %v4885_v11  ;;  %v11379_v56 = vld [vmem:[#allocation5 + $0x90] sm:$0xff]  }
 0x77d   :  { %v5084_v4 = vrot.slane %v5046_v34, 5  ;;  %v4949_v18 = vmul.f32 %v4917_v62, %v4885_v11 }
 0x77f   :  { %v5086_v12 = vsel %vm565_vm0, %v5085_v7, %v5084_v4  ;;  %v11385_v4 = vld [vmem:[#allocation5 + $0x98] sm:$0xff]   ;;  %v4981_v7 = vpack.c.bf16 %v4949_v18, %v4949_v18  ;;  %v11403_v18 = vld [vmem:[#allocation5 + $0xb0] sm:$0xff]  }
 0x780   :  { %v5126_v60 = vpack.c.b16 %v5086_v12, %v5086_v12  ;;  %12496 = vst [vmem:[#allocation19_spill] sm:$0xff] %v11385_v4  ;;  %12502 = vst [vmem:[#allocation25_spill] sm:$0xff] %v11403_v18 }
 0x783   :  { %v9167_v48 = vpop.eup %9166 }
 0x784   :  { %v4722_v50 = vmul.f32 0.6931472, %v9167_v48  ;;  %v4922_v48 = vmul.f32 %v4890_v35, %v4890_v35 }
 0x786   :  { %v4723_v1 = vmul.f32 0.33333334, %v4722_v50  ;;  %v4938_v50 = vmul.f32 %v4906_v27, %v4906_v27  ;;  %v4954_v34 = vmul.f32 %v4922_v48, %v4890_v35  ;;  %v11397_v35 = vld [vmem:[#allocation5 + $0xa8] sm:$0xff]  }
 0x787   :  { %12500 = vst [vmem:[#allocation23_spill] sm:$0xff] %v11397_v35 }
 0x788   :  { %v4724_v58 = vmul.f32 1.442695, %v4723_v1  ;;  %v4965_v1 = vmul.f32 %v4933_v15, %v4901_v8  ;;  %v4970_v25 = vmul.f32 %v4938_v50, %v4906_v27  ;;  %v4986_v39 = vpack.c.bf16 %v4954_v34, %v4954_v34  ;;  %v11400_v15 = vld [vmem:[#allocation5 + $0xf0] sm:$0xff]   ;;  %v11407_v34 = vld [vmem:[#allocation5 + $0xf8] sm:$0xff]  }
 0x789   :  { %12501 = vst [vmem:[#allocation24_spill] sm:$0xff] %v11400_v15  ;;  %12503 = vst [vmem:[#allocation26_spill] sm:$0xff] %v11407_v34 }
 0x78a   :  { %9168 = vpow2.f32 %v4724_v58  ;;  %v11382_v58 = vld [vmem:[#allocation5 + $0xd8] sm:$0xff]   ;;  %v4997_v12 = vpack.c.bf16 %v4965_v1, %v4965_v1  ;;  %v5002_v38 = vpack.c.bf16 %v4970_v25, %v4970_v25  ;;  %v5050_v11 = vunpack.c.l.b16 %v4986_v39 }
 0x78b   :  { %12495 = vst [vmem:[#allocation18_spill] sm:$0xff] %v11382_v58 }
 0x78c   :  { %v5061_v44 = vunpack.c.l.b16 %v4997_v12  ;;  %v5066_v8 = vunpack.c.l.b16 %v5002_v38  ;;  %v5096_v48 = vrot.slane %v5050_v11, 5  ;;  %v11413_v12 = vld [vmem:[#allocation2 + $0x68] sm:$0x44]  ;;  %v11415_v38 = vld [vmem:[#allocation5 + $0xb8] sm:$0xff]  }
 0x78d   :  { %12504 = vst [vmem:[#allocation27_spill] sm:$0xff] %v11415_v38 }
 0x78e   :  { %v5082_v62 = vrot.slane %v5061_v44, 4  ;;  %v5097_v50 = vrot.slane %v5066_v8, 4  ;;  %v4873_v44 = vunpack.c.l.bf16 %v11363_v5  ;;  %v11420_v8 = vld [vmem:[#allocation5 + $0x1c0] sm:$0xff]  }
 0x78f   :  { %12505 = vst [vmem:[#allocation28_spill] sm:$0xff] %v11420_v8 }
 0x790   :  { %v5098_v25 = vsel %vm565_vm0, %v5097_v50, %v5096_v48  ;;  %v11425_v48 = vld [vmem:[#allocation5 + $0x180] sm:$0xff]  }
 0x791   :  { %v5130_v11 = vpack.c.b16 %v5098_v25, %v5098_v25  ;;  %12506 = vst [vmem:[#allocation29_spill] sm:$0xff] %v11425_v48 }
 0x794   :  { %v9169_v30 = vpop.eup %9168 }
 0x795   :  { %v4727_v3 = vpack.c.bf16 %v9169_v30, %v9169_v30  ;;  %v11388_v30 = vld [vmem:[#allocation5 + $0xe0] sm:$0xff]  }
 0x796   :  { %12497 = vst [vmem:[#allocation20_spill] sm:$0xff] %v11388_v30 }
 0x797   :  { %8886 = vmatmul.mubr.bf16.vlgmr.msra.gmra.mrb[88].mxu0 %v4727_v3  ;;  %v5045_v3 = vunpack.c.l.b16 %v4981_v7  ;;  %v11411_v7 = vld [vmem:[#allocation2 + $0x28] sm:$0x44] }
 0x798   :  { %8257 = vmatpush3.bf16.msra.mxu0 %v11367_v9  ;;  %5227 = vmatprep.mubr.bf16.mxu0 %v5126_v60  ;;  %v11391_v60 = vld [vmem:[#allocation5 + $0xa0] sm:$0xff]  }
 0x799   :  { %8258 = vmatprep.subr.bf16.mxu0 %v11370_v10  ;;  %12498 = vst [vmem:[#allocation21_spill] sm:$0xff] %v11391_v60  ;;  %v5081_v27 = vrot.slane %v5045_v3, 5  ;;  %v4857_v3 = vunpack.c.l.bf16 %v11361_v41  ;;  %v11428_v41 = vld [vmem:[#allocation5 + $0x1c8] sm:$0xff]  }
 0x79a   :  { %12507 = vst [vmem:[#allocation30_spill] sm:$0xff] %v11428_v41 }
 0x79b   :  { %v5083_v1 = vsel %vm565_vm0, %v5082_v62, %v5081_v27  ;;  %v4862_v27 = vunpack.c.h.bf16 %v11411_v7  ;;  %v4878_v62 = vunpack.c.h.bf16 %v11413_v12  ;;  %v4889_v50 = vmax.f32 %v4857_v3, 1e-06 }
 0x79c   :  { %8259 = vmatpush3.bf16.msra.mxu0 %v11373_v26  ;;  %v5125_v39 = vpack.c.b16 %v5083_v1, %v5083_v1  ;;  %v4905_v1 = vmax.f32 %v4873_v44, 1e-06  ;;  %v11437_v44 = vld [vmem:[#allocation5 + $0x190] sm:$0xff]  }
 0x79d   :  { %8260 = vmatprep.subr.bf16.mxu0 %v11376_v51  ;;  %v4894_v5 = vmax.f32 %v4862_v27, 1e-06  ;;  %v4910_v25 = vmax.f32 %v4878_v62, 1e-06  ;;  %12510 = vst [vmem:[#allocation33_spill] sm:$0xff] %v11437_v44  ;;  %v11440_v27 = vld [vmem:[#allocation5 + $0x1d8] sm:$0xff]  }
 0x79e   :  { %12511 = vst [vmem:[#allocation34_spill] sm:$0xff] %v11440_v27 }
 0x79f   :  { %v4942_v3 = vmul.f32 %v4910_v25, %v4910_v25 }
 0x7a0   :  { %8261 = vmatpush3.bf16.msra.mxu0 %v11379_v56 }
 0x7a1   :  { %8262 = vmatprep.subr.bf16.mxu0 %v11382_v58 }
 0x7a4   :  { %8263 = vmatpush3.bf16.msra.mxu0 %v11385_v4 }
 0x7a5   :  { %8264 = vmatprep.subr.bf16.mxu0 %v11388_v30 }
 0x7a8   :  { %8265 = vmatpush3.bf16.msra.mxu0 %v11391_v60 }
 0x7a9   :  { %8266 = vmatprep.subr.bf16.mxu0 %v11394_v37 }
 0x7ac   :  { %8267 = vmatpush3.bf16.msra.mxu0 %v11397_v35  ;;  %v11446_v35 = vld [vmem:[#allocation5 + $0x1e0] sm:$0xff]  }
 0x7ad   :  { %8268 = vmatprep.subr.bf16.mxu0 %v11400_v15  ;;  %12513 = vst [vmem:[#allocation36_spill] sm:$0xff] %v11446_v35 }
 0x7b0   :  { %8269 = vmatpush3.bf16.msra.mxu0 %v11403_v18  ;;  %v11443_v18 = vld [vmem:[#allocation5 + $0x198] sm:$0xff]  }
 0x7b1   :  { %8270 = vmatprep.subr.bf16.mxu0 %v11407_v34  ;;  %v4937_v34 = vmul.f32 %v4905_v1, %v4905_v1  ;;  %12512 = vst [vmem:[#allocation35_spill] sm:$0xff] %v11443_v18 }
 0x7b4   :  { %8271 = vmatpush3.bf16.msra.mxu0 %v11415_v38  ;;  %v11431_v38 = vld [vmem:[#allocation5 + $0x188] sm:$0xff]  }
 0x7b5   :  { %8300 = vmatprep.subr.bf16.mxu0 %v11420_v8  ;;  %12508 = vst [vmem:[#allocation31_spill] sm:$0xff] %v11431_v38  ;;  %v4921_v8 = vmul.f32 %v4889_v50, %v4889_v50 }
 0x7b7   :  { %5228 = vmatmul.mubr.bf16.vlgmr.msra.gmra.mrb[92].mxu0 %v5125_v39  ;;  %v11434_v39 = vld [vmem:[#allocation5 + $0x1d0] sm:$0xff]  }
 0x7b8   :  { %8301 = vmatpush3.bf16.msra.mxu0 %v11425_v48  ;;  %5307 = vmatprep.mubr.bf16.mxu0 %v5130_v11  ;;  %12509 = vst [vmem:[#allocation32_spill] sm:$0xff] %v11434_v39  ;;  %v4926_v48 = vmul.f32 %v4894_v5, %v4894_v5  ;;  %v4953_v11 = vmul.f32 %v4921_v8, %v4889_v50  ;;  %v11449_v8 = vld [vmem:[#allocation5 + $0x1a0] sm:$0xff]  }
 0x7b9   :  { %8302 = vmatprep.subr.bf16.mxu0 %v11428_v41  ;;  %v4969_v41 = vmul.f32 %v4937_v34, %v4905_v1  ;;  %12514 = vst [vmem:[#allocation37_spill] sm:$0xff] %v11449_v8 }
 0x7ba   :  { %v4958_v62 = vmul.f32 %v4926_v48, %v4894_v5  ;;  %v4985_v15 = vpack.c.bf16 %v4953_v11, %v4953_v11  ;;  %v11452_v48 = vld [vmem:[#allocation5 + $0x1e8] sm:$0xff]   ;;  %v11458_v11 = vld [vmem:[#allocation5 + $0x1f0] sm:$0xff]  }
 0x7bb   :  { %12515 = vst [vmem:[#allocation38_spill] sm:$0xff] %v11452_v48  ;;  %12517 = vst [vmem:[#allocation40_spill] sm:$0xff] %v11458_v11 }
 0x7bc   :  { %8303 = vmatpush3.bf16.msra.mxu0 %v11431_v38  ;;  %v4974_v38 = vmul.f32 %v4942_v3, %v4910_v25  ;;  %v4990_v37 = vpack.c.bf16 %v4958_v62, %v4958_v62  ;;  %v5049_v34 = vunpack.c.l.b16 %v4985_v15  ;;  %v11455_v25 = vld [vmem:[#allocation5 + $0x1a8] sm:$0xff]   ;;  %v11461_v15 = vld [vmem:[#allocation5 + $0x1b0] sm:$0xff]  }
 0x7bd   :  { %8304 = vmatprep.subr.bf16.mxu0 %v11434_v39  ;;  %v5001_v39 = vpack.c.bf16 %v4969_v41, %v4969_v41  ;;  %12516 = vst [vmem:[#allocation39_spill] sm:$0xff] %v11455_v25  ;;  %12518 = vst [vmem:[#allocation41_spill] sm:$0xff] %v11461_v15 }
 0x7be   :  { %v5054_v1 = vunpack.c.l.b16 %v4990_v37  ;;  %v5093_v41 = vrot.slane %v5049_v34, 5  ;;  %v11465_v37 = vld [vmem:[#allocation5 + $0x1f8] sm:$0xff]  }
 0x7bf   :  { %v5065_v50 = vunpack.c.l.b16 %v5001_v39  ;;  %12519 = vst [vmem:[#allocation42_spill] sm:$0xff] %v11465_v37  ;;  %v11469_v34 = vld [vmem:[#allocation2 + $0x38] sm:$0x44] }
 0x7c0   :  { %8305 = vmatpush3.bf16.msra.mxu0 %v11437_v44  ;;  %v5006_v44 = vpack.c.bf16 %v4974_v38, %v4974_v38  ;;  %v5108_v38 = vrot.slane %v5054_v1, 5  ;;  %v4861_v1 = vunpack.c.l.bf16 %v11411_v7  ;;  %v11486_v7 = vld [vmem:[#allocation5 + $0x2c8] sm:$0xff]  }
 0x7c1   :  { %8306 = vmatprep.subr.bf16.mxu0 %v11440_v27  ;;  %v5094_v3 = vrot.slane %v5065_v50, 4  ;;  %v11471_v50 = vld [vmem:[#allocation2 + $0x78] sm:$0x44]  ;;  %12523 = vst [vmem:[#allocation46_spill] sm:$0xff] %v11486_v7 }
 0x7c2   :  { %v5070_v5 = vunpack.c.l.b16 %v5006_v44 }
 0x7c3   :  { %v5095_v39 = vsel %vm565_vm0, %v5094_v3, %v5093_v41  ;;  %v11478_v3 = vld [vmem:[#allocation5 + $0x2c0] sm:$0xff]  }
 0x7c4   :  { %8307 = vmatpush3.bf16.msra.mxu0 %v11443_v18  ;;  %v5109_v62 = vrot.slane %v5070_v5, 4  ;;  %v4877_v5 = vunpack.c.l.bf16 %v11413_v12  ;;  %12521 = vst [vmem:[#allocation44_spill] sm:$0xff] %v11478_v3  ;;  %v11504_v18 = vld [vmem:[#allocation5 + $0x2e0] sm:$0xff]  }
 0x7c5   :  { %8308 = vmatprep.subr.bf16.mxu0 %v11446_v35  ;;  %12529 = vst [vmem:[#allocation52_spill] sm:$0xff] %v11504_v18 }
 0x7c6   :  { %v5110_v44 = vsel %vm565_vm0, %v5109_v62, %v5108_v38  ;;  %v4866_v38 = vunpack.c.h.bf16 %v11469_v34  ;;  %v4882_v62 = vunpack.c.h.bf16 %v11471_v50 }
 0x7c7   :  { %v5134_v41 = vpack.c.b16 %v5110_v44, %v5110_v44 }
 0x7c8   :  { %8309 = vmatpush3.bf16.msra.mxu0 %v11449_v8  ;;  %v4898_v12 = vmax.f32 %v4866_v38, 1e-06  ;;  %v4914_v44 = vmax.f32 %v4882_v62, 1e-06  ;;  %v11498_v38 = vld [vmem:[#allocation5 + $0x2d8] sm:$0xff]  }
 0x7c9   :  { %8310 = vmatprep.subr.bf16.mxu0 %v11452_v48  ;;  %12527 = vst [vmem:[#allocation50_spill] sm:$0xff] %v11498_v38  ;;  %v11501_v8 = vld [vmem:[#allocation5 + $0x298] sm:$0xff]  }
 0x7ca   :  { %12528 = vst [vmem:[#allocation51_spill] sm:$0xff] %v11501_v8 }
 0x7cc   :  { %8311 = vmatpush3.bf16.msra.mxu0 %v11455_v25  ;;  %v5129_v25 = vpack.c.b16 %v5095_v39, %v5095_v39  ;;  %v4893_v39 = vmax.f32 %v4861_v1, 1e-06  ;;  %v4946_v1 = vmul.f32 %v4914_v44, %v4914_v44 }
 0x7cd   :  { %8312 = vmatprep.subr.bf16.mxu0 %v11458_v11  ;;  %v11473_v11 = vld [vmem:[#allocation5 + $0x1b8] sm:$0xff]  }
 0x7ce   :  { %12520 = vst [vmem:[#allocation43_spill] sm:$0xff] %v11473_v11 }
 0x7d0   :  { %8313 = vmatpush3.bf16.msra.mxu0 %v11461_v15  ;;  %v11489_v15 = vld [vmem:[#allocation5 + $0x288] sm:$0xff]  }
 0x7d1   :  { %8314 = vmatprep.subr.bf16.mxu0 %v11465_v37  ;;  %v11483_v37 = vld [vmem:[#allocation5 + $0x280] sm:$0xff]   ;;  %12524 = vst [vmem:[#allocation47_spill] sm:$0xff] %v11489_v15 }
 0x7d2   :  { %12522 = vst [vmem:[#allocation45_spill] sm:$0xff] %v11483_v37 }
 0x7d4   :  { %8315 = vmatpush3.bf16.msra.mxu0 %v11473_v11  ;;  %v4909_v11 = vmax.f32 %v4877_v5, 1e-06  ;;  %v11495_v5 = vld [vmem:[#allocation5 + $0x290] sm:$0xff]  }
 0x7d5   :  { %8344 = vmatprep.subr.bf16.mxu0 %v11478_v3  ;;  %v4925_v3 = vmul.f32 %v4893_v39, %v4893_v39  ;;  %12526 = vst [vmem:[#allocation49_spill] sm:$0xff] %v11495_v5 }
 0x7d6   :  { %v4941_v48 = vmul.f32 %v4909_v11, %v4909_v11 }
 0x7d7   :  { %5308 = vmatmul.mubr.bf16.vlgmr.msra.gmra.mrb[96].mxu0 %v5129_v25  ;;  %v11492_v25 = vld [vmem:[#allocation5 + $0x2d0] sm:$0xff]  }
 0x7d8   :  { %8345 = vmatpush3.bf16.msra.mxu0 %v11483_v37  ;;  %5387 = vmatprep.mubr.bf16.mxu0 %v5134_v41  ;;  %12525 = vst [vmem:[#allocation48_spill] sm:$0xff] %v11492_v25  ;;  %v4930_v37 = vmul.f32 %v4898_v12, %v4898_v12  ;;  %v4957_v41 = vmul.f32 %v4925_v3, %v4893_v39  ;;  %v11507_v3 = vld [vmem:[#allocation5 + $0x2a0] sm:$0xff]  }
 0x7d9   :  { %8346 = vmatprep.subr.bf16.mxu0 %v11486_v7  ;;  %v4973_v7 = vmul.f32 %v4941_v48, %v4909_v11  ;;  %12530 = vst [vmem:[#allocation53_spill] sm:$0xff] %v11507_v3 }
 0x7da   :  { %v4962_v62 = vmul.f32 %v4930_v37, %v4898_v12  ;;  %v4989_v35 = vpack.c.bf16 %v4957_v41, %v4957_v41  ;;  %v11510_v37 = vld [vmem:[#allocation5 + $0x2e8] sm:$0xff]   ;;  %v11516_v41 = vld [vmem:[#allocation5 + $0x2f0] sm:$0xff]  }
 0x7db   :  { %12531 = vst [vmem:[#allocation54_spill] sm:$0xff] %v11510_v37  ;;  %12533 = vst [vmem:[#allocation56_spill] sm:$0xff] %v11516_v41 }
 0x7dc   :  { %8347 = vmatpush3.bf16.msra.mxu0 %v11489_v15  ;;  %v4978_v15 = vmul.f32 %v4946_v1, %v4914_v44  ;;  %v4994_v27 = vpack.c.bf16 %v4962_v62, %v4962_v62  ;;  %v5053_v48 = vunpack.c.l.b16 %v4989_v35  ;;  %v11513_v44 = vld [vmem:[#allocation5 + $0x2a8] sm:$0xff]   ;;  %v8250_v35 = vpop.f32.mrb[88].mxu1 }
 0x7dd   :  { %8348 = vmatprep.subr.bf16.mxu0 %v11492_v25  ;;  %v5005_v25 = vpack.c.bf16 %v4973_v7, %v4973_v7  ;;  %12532 = vst [vmem:[#allocation55_spill] sm:$0xff] %v11513_v44 }
 0x7de   :  { %v5058_v39 = vunpack.c.l.b16 %v4994_v27  ;;  %v5105_v7 = vrot.slane %v5053_v48, 5  ;;  %v11525_v48 = vld [vmem:[#allocation5 + $0x2f8] sm:$0xff]  }
 0x7df   :  { %v5069_v11 = vunpack.c.l.b16 %v5005_v25  ;;  %v8251_v25 = vpop.f32.mrb[89].mxu1  ;;  %12535 = vst [vmem:[#allocation58_spill] sm:$0xff] %v11525_v48 }
 0x7e0   :  { %8349 = vmatpush3.bf16.msra.mxu0 %v11495_v5  ;;  %v5010_v5 = vpack.c.bf16 %v4978_v15, %v4978_v15  ;;  %v5120_v15 = vrot.slane %v5058_v39, 5 }
 0x7e1   :  { %8350 = vmatprep.subr.bf16.mxu0 %v11498_v38  ;;  %v5106_v1 = vrot.slane %v5069_v11, 4 }
 0x7e2   :  { %v5074_v12 = vunpack.c.l.b16 %v5010_v5 }
 0x7e3   :  { %v5107_v27 = vsel %vm565_vm0, %v5106_v1, %v5105_v7  ;;  %v11537_v7 = vld [vmem:[#allocation5 + $0x380] sm:$0xff]  }
 0x7e4   :  { %8351 = vmatpush3.bf16.msra.mxu0 %v11501_v8  ;;  %v5121_v62 = vrot.slane %v5074_v12, 4  ;;  %v5133_v39 = vpack.c.b16 %v5107_v27, %v5107_v27  ;;  %v11529_v12 = vld [vmem:[#allocation5 + $0x2b8] sm:$0xff]   ;;  %12538 = vst [vmem:[#allocation61_spill] sm:$0xff] %v11537_v7 }
 0x7e5   :  { %8352 = vmatprep.subr.bf16.mxu0 %v11504_v18  ;;  %v8253_v18 = vpop.f32.mrb[90].mxu1  ;;  %12536 = vst [vmem:[#allocation59_spill] sm:$0xff] %v11529_v12 }
 0x7e6   :  { %v8254_v5 = vpop.f32.mrb[91].mxu1  ;;  %v5122_v11 = vsel %vm565_vm0, %v5121_v62, %v5120_v15  ;;  %v4865_v18 = vunpack.c.l.bf16 %v11469_v34  ;;  %v11540_v62 = vld [vmem:[#allocation5 + $0x3c8] sm:$0xff]  }
 0x7e7   :  { %12539 = vst [vmem:[#allocation62_spill] sm:$0xff] %v11540_v62  ;;  %v11543_v34 = vld [vmem:[#allocation5 + $0x388] sm:$0xff]   ;;  %v11546_v5 = vld [vmem:[#allocation5 + $0x3d0] sm:$0xff]  }
 0x7e8   :  { %8353 = vmatpush3.bf16.msra.mxu0 %v11507_v3  ;;  %v11519_v3 = vadd.f32 %v8251_v25, %v8250_v35  ;;  %v4881_v35 = vunpack.c.l.bf16 %v11471_v50  ;;  %v5138_v25 = vpack.c.b16 %v5122_v11, %v5122_v11  ;;  %v4897_v1 = vmax.f32 %v4865_v18, 1e-06  ;;  %12540 = vst [vmem:[#allocation63_spill] sm:$0xff] %v11543_v34  ;;  %12541 = vst [vmem:[#allocation64_spill] sm:$0xff] %v11546_v5  ;;  %v11549_v11 = vld [vmem:[#allocation5 + $0x390] sm:$0xff]  }
 0x7e9   :  { %8354 = vmatprep.subr.bf16.mxu0 %v11510_v37  ;;  %v11521_v37 = vld [vmem:[#allocation5 + $0x2b0] sm:$0xff]   ;;  %12542 = vst [vmem:[#allocation65_spill] sm:$0xff] %v11549_v11 }
 0x7ea   :  { %12534 = vst [vmem:[#allocation57_spill] sm:$0xff] %v11521_v37  ;;  %v4913_v15 = vmax.f32 %v4881_v35, 1e-06  ;;  %v4929_v50 = vmul.f32 %v4897_v1, %v4897_v1  ;;  %v11552_v35 = vld [vmem:[#allocation5 + $0x3d8] sm:$0xff]  }
 0x7eb   :  { %12543 = vst [vmem:[#allocation66_spill] sm:$0xff] %v11552_v35 }
 0x7ec   :  { %8355 = vmatpush3.bf16.msra.mxu0 %v11513_v44  ;;  %v4945_v27 = vmul.f32 %v4913_v15, %v4913_v15  ;;  %v9133_v44 = vld [vmem:[#allocation7 + $0x178] sm:$0xff]  }
 0x7ed   :  { %8356 = vmatprep.subr.bf16.mxu0 %v11516_v41 }
 0x7ee   :  { %v4977_v18 = vmul.f32 %v4945_v27, %v4913_v15  ;;  %v11567_v27 = vld [vmem:[#allocation5 + $0x3a8] sm:$0xff]  }
 0x7ef   :  { %12548 = vst [vmem:[#allocation71_spill] sm:$0xff] %v11567_v27 }
 0x7f0   :  { %8357 = vmatpush3.bf16.msra.mxu0 %v11521_v37  ;;  %v11534_v37 = vld [vmem:[#allocation5 + $0x3c0] sm:$0xff]  }
 0x7f1   :  { %8358 = vmatprep.subr.bf16.mxu0 %v11525_v48  ;;  %12537 = vst [vmem:[#allocation60_spill] sm:$0xff] %v11534_v37 }
 0x7f4   :  { %8359 = vmatpush3.bf16.msra.mxu0 %v11529_v12 }
 0x7f5   :  { %8388 = vmatprep.subr.bf16.mxu0 %v11534_v37  ;;  %v11579_v37 = vld [vmem:[#allocation5 + $0x3f8] sm:$0xff]  }
 0x7f6   :  { %12551 = vst [vmem:[#allocation74_spill] sm:$0xff] %v11579_v37 }
 0x7f7   :  { %5388 = vmatmul.mubr.bf16.vlgmr.msra.gmra.mrb[100].mxu0 %v5133_v39  ;;  %v4961_v39 = vmul.f32 %v4929_v50, %v4897_v1  ;;  %v11564_v50 = vld [vmem:[#allocation5 + $0x3e8] sm:$0xff]  }
 0x7f8   :  { %8389 = vmatpush3.bf16.msra.mxu0 %v11537_v7  ;;  %5467 = vmatprep.mubr.bf16.mxu0 %v5138_v25  ;;  %v11555_v25 = vld [vmem:[#allocation5 + $0x398] sm:$0xff]   ;;  %v11558_v7 = vld [vmem:[#allocation5 + $0x3e0] sm:$0xff]   ;;  %12547 = vst [vmem:[#allocation70_spill] sm:$0xff] %v11564_v50 }
 0x7f9   :  { %8390 = vmatprep.subr.bf16.mxu0 %v11540_v62  ;;  %12544 = vst [vmem:[#allocation67_spill] sm:$0xff] %v11555_v25  ;;  %v5009_v62 = vpack.c.bf16 %v4977_v18, %v4977_v18  ;;  %12545 = vst [vmem:[#allocation68_spill] sm:$0xff] %v11558_v7 }
 0x7fb   :  { %v5073_v15 = vunpack.c.l.b16 %v5009_v62  ;;  %v11575_v62 = vld [vmem:[#allocation5 + $0x3b0] sm:$0xff]  }
 0x7fc   :  { %8391 = vmatpush3.bf16.msra.mxu0 %v11543_v34  ;;  %v4993_v34 = vpack.c.bf16 %v4961_v39, %v4961_v39  ;;  %12550 = vst [vmem:[#allocation73_spill] sm:$0xff] %v11575_v62 }
 0x7fd   :  { %8392 = vmatprep.subr.bf16.mxu0 %v11546_v5  ;;  %v11561_v5 = vld [vmem:[#allocation5 + $0x3a0] sm:$0xff]   ;;  %v5118_v18 = vrot.slane %v5073_v15, 4  ;;  %v11582_v15 = vld [vmem:[#allocation5 + $0x3b8] sm:$0xff]  }
 0x7fe   :  { %12546 = vst [vmem:[#allocation69_spill] sm:$0xff] %v11561_v5  ;;  %v5057_v1 = vunpack.c.l.b16 %v4993_v34  ;;  %12552 = vst [vmem:[#allocation75_spill] sm:$0xff] %v11582_v15 }
 0x800   :  { %8393 = vmatpush3.bf16.msra.mxu0 %v11549_v11  ;;  %v5117_v39 = vrot.slane %v5057_v1, 5 }
 0x801   :  { %8394 = vmatprep.subr.bf16.mxu0 %v11552_v35 }
 0x804   :  { %8395 = vmatpush3.bf16.msra.mxu0 %v11555_v25  ;;  %v11570_v25 = vld [vmem:[#allocation5 + $0x3f0] sm:$0xff]  }
 0x805   :  { %8396 = vmatprep.subr.bf16.mxu0 %v11558_v7  ;;  %12549 = vst [vmem:[#allocation72_spill] sm:$0xff] %v11570_v25  ;;  %v8294_v7 = vpop.f32.mrb[92].mxu1 }
 0x806   :  { %v8295_v35 = vpop.f32.mrb[93].mxu1 }
 0x807   :  { %v11573_v11 = vadd.f32 %v8295_v35, %v8294_v7  ;;  %v8297_v34 = vpop.f32.mrb[94].mxu1  ;;  %v11588_v7 = vld [vmem:[#allocation5] sm:$0xff]   ;;  %v11591_v35 = vld [vmem:[#allocation5 + $0x48] sm:$0xff]  }
 0x808   :  { %8397 = vmatpush3.bf16.msra.mxu0 %v11561_v5  ;;  %v8298_v5 = vpop.f32.mrb[95].mxu1  ;;  %12554 = vst [vmem:[#allocation77_spill] sm:$0xff] %v11588_v7  ;;  %12555 = vst [vmem:[#allocation78_spill] sm:$0xff] %v11591_v35  ;;  %v11606_v34 = vld [vmem:[#allocation5 + $0x18] sm:$0xff]  }
 0x809   :  { %8398 = vmatprep.subr.bf16.mxu0 %v11564_v50  ;;  %v5119_v50 = vsel %vm565_vm0, %v5118_v18, %v5117_v39  ;;  %v11594_v5 = vld [vmem:[#allocation5 + $0x8] sm:$0xff]   ;;  %v11600_v39 = vld [vmem:[#allocation5 + $0x10] sm:$0xff]   ;;  %v11603_v18 = vld [vmem:[#allocation5 + $0x58] sm:$0xff]   ;;  %12560 = vst [vmem:[#allocation83_spill] sm:$0xff] %v11606_v34 }
 0x80a   :  { %v5137_v1 = vpack.c.b16 %v5119_v50, %v5119_v50  ;;  %12556 = vst [vmem:[#allocation79_spill] sm:$0xff] %v11594_v5  ;;  %v11597_v50 = vld [vmem:[#allocation5 + $0x50] sm:$0xff]   ;;  %12558 = vst [vmem:[#allocation81_spill] sm:$0xff] %v11600_v39 }
 0x80b   :  { %12557 = vst [vmem:[#allocation80_spill] sm:$0xff] %v11597_v50  ;;  %12559 = vst [vmem:[#allocation82_spill] sm:$0xff] %v11603_v18 }
 0x80c   :  { %8399 = vmatpush3.bf16.msra.mxu0 %v11567_v27 }
 0x80d   :  { %8400 = vmatprep.subr.bf16.mxu0 %v11570_v25  ;;  %v11585_v25 = vld [vmem:[#allocation5 + $0x40] sm:$0xff]  }
 0x80e   :  { %12553 = vst [vmem:[#allocation76_spill] sm:$0xff] %v11585_v25 }
 0x810   :  { %8401 = vmatpush3.bf16.msra.mxu0 %v11575_v62 }
 0x811   :  { %8402 = vmatprep.subr.bf16.mxu0 %v11579_v37 }
 0x814   :  { %8403 = vmatpush3.bf16.msra.mxu0 %v11582_v15 }
 0x815   :  { %8419 = vmatprep.subr.bf16.mxu0 %v11585_v25 }
 0x817   :  { %5468 = vmatmul.mubr.bf16.vlgmr.msra.gmra.mrb[104].mxu0 %v5137_v1  ;;  %v11609_v1 = vld [vmem:[#allocation5 + $0x60] sm:$0xff]  }
 0x818   :  { %8420 = vmatpush3.bf16.msra.mxu0 %v11588_v7  ;;  %12561 = vst [vmem:[#allocation84_spill] sm:$0xff] %v11609_v1 }
 0x819   :  { %8421 = vmatprep.subr.bf16.mxu0 %v11591_v35  ;;  %v11621_v35 = vld [vmem:[#allocation5 + $0x70] sm:$0xff]  }
 0x81a   :  { %12565 = vst [vmem:[#allocation88_spill] sm:$0xff] %v11621_v35 }
 0x81c   :  { %8422 = vmatpush3.bf16.msra.mxu0 %v11594_v5  ;;  %v11612_v5 = vld [vmem:[#allocation5 + $0x20] sm:$0xff]  }
 0x81d   :  { %8423 = vmatprep.subr.bf16.mxu0 %v11597_v50  ;;  %12562 = vst [vmem:[#allocation85_spill] sm:$0xff] %v11612_v5  ;;  %v11615_v50 = vld [vmem:[#allocation5 + $0x68] sm:$0xff]  }
 0x81e   :  { %12563 = vst [vmem:[#allocation86_spill] sm:$0xff] %v11615_v50 }
 0x820   :  { %8424 = vmatpush3.bf16.msra.mxu0 %v11600_v39  ;;  %v11618_v39 = vld [vmem:[#allocation5 + $0x28] sm:$0xff]  }
 0x821   :  { %8425 = vmatprep.subr.bf16.mxu0 %v11603_v18  ;;  %12564 = vst [vmem:[#allocation87_spill] sm:$0xff] %v11618_v39 }
 0x824   :  { %8426 = vmatpush3.bf16.msra.mxu0 %v11606_v34 }
 0x825   :  { %8427 = vmatprep.subr.bf16.mxu0 %v11609_v1 }
 0x828   :  { %8428 = vmatpush3.bf16.msra.mxu0 %v11612_v5 }
 0x829   :  { %8429 = vmatprep.subr.bf16.mxu0 %v11615_v50  ;;  %v8338_v18 = vpop.f32.mrb[96].mxu1 }
 0x82a   :  { %v8339_v34 = vpop.f32.mrb[97].mxu1 }
 0x82b   :  { %v11624_v7 = vadd.f32 %v8339_v34, %v8338_v18  ;;  %v8341_v1 = vpop.f32.mrb[98].mxu1 }
 0x82c   :  { %8430 = vmatpush3.bf16.msra.mxu0 %v11618_v39  ;;  %v8342_v25 = vpop.f32.mrb[99].mxu1 }
 0x82d   :  { %8431 = vmatprep.subr.bf16.mxu0 %v11621_v35  ;;  %v4726_v35 = vld [vmem:[#allocation8] sm:$0x3] }
 0x830   :  { %8432 = vmatpush3.bf16.msra.mxu0 %v11200_v6  ;;  %v9126_v6 = vld [vmem:[#allocation7 + $0x140] sm:$0xff]  }
 0x831   :  { %8433 = vmatprep.subr.bf16.mxu0 %v11203_v19  ;;  %8890 = vmatpush3.bf16.msra.mxu1 %v9126_v6  ;;  %v9127_v19 = vld [vmem:[#allocation7 + $0x148] sm:$0xff]   ;;  %v9132_v6 = vld [vmem:[#allocation7 + $0x170] sm:$0xff]  }
 0x832   :  { %8891 = vmatprep.subr.bf16.mxu1 %v12186_v33 }
 0x834   :  { %8434 = vmatpush3.bf16.msra.mxu0 %v11206_v20  ;;  %v9128_v20 = vld [vmem:[#allocation7 + $0x150] sm:$0xff]  }
 0x835   :  { %8463 = vmatprep.subr.bf16.mxu0 %v11209_v47  ;;  %8892 = vmatpush3.bf16.msra.mxu1 %v9127_v19  ;;  %v9129_v47 = vld [vmem:[#allocation7 + $0x158] sm:$0xff]  }
 0x836   :  { %8893 = vmatprep.subr.bf16.mxu1 %v12186_v33 }
 0x839   :  { %8894 = vmatpush3.bf16.msra.mxu1 %v9128_v20 }
 0x83a   :  { %8895 = vmatprep.subr.bf16.mxu1 %v12186_v33 }
 0x83d   :  { %8896 = vmatpush3.bf16.msra.mxu1 %v9129_v47 }
 0x83e   :  { %8897 = vmatprep.subr.bf16.mxu1 %v12186_v33 }
 0x849   :  { %v8382_v50 = vpop.f32.mrb[100].mxu1 }
 0x84a   :  { %v8383_v39 = vpop.f32.mrb[101].mxu1 }
 0x84b   :  { %v11630_v5 = vadd.f32 %v8383_v39, %v8382_v50  ;;  %v8385_v15 = vpop.f32.mrb[102].mxu1  ;;  %v9131_v39 = vld [vmem:[#allocation7 + $0x168] sm:$0xff]  }
 0x84c   :  { %v8386_v37 = vpop.f32.mrb[103].mxu1  ;;  %v5598_v15 = vld [vmem:[#allocation2 + $0x40] sm:$0x88] }
 0x84d   :  { %v9130_v37 = vld [vmem:[#allocation7 + $0x160] sm:$0xff]   ;;  %v5623_v50 = vunpack.c.h.bf16 %v5598_v15 }
 0x84e   :  { %8898 = vmatpush3.bf16.msra.mxu1 %v9130_v37 }
 0x84f   :  { %8899 = vmatprep.subr.bf16.mxu1 %v12186_v33 }
 0x852   :  { %8900 = vmatpush3.bf16.msra.mxu1 %v9131_v39 }
 0x853   :  { %8901 = vmatprep.subr.bf16.mxu1 %v12186_v33 }
 0x856   :  { %8902 = vmatpush3.bf16.msra.mxu1 %v9132_v6 }
 0x857   :  { %8903 = vmatprep.subr.bf16.mxu1 %v12186_v33 }
 0x85a   :  { %8904 = vmatpush3.bf16.msra.mxu1 %v9133_v44 }
 0x85b   :  { %8441 = vmatprep.subr.bf16.mxu1 %v11221_v57  ;;  %v5592_v57 = vld [vmem:[#allocation2 + $0x10] sm:$0x88] }
 0x86a   :  { %v4827_v62 = vpop.f32.mrb[88].mxu0 }
 0x86b   :  { %v4833_v18 = vadd.f32 %v4827_v62, %v4726_v35  ;;  %v8887_v34 = vpop.f32.mrb[89].mxu0  ;;  %v5590_v62 = vld [vmem:[#allocation2] sm:$0x88] }
 0x86c   :  { %v4830_v1 = vpop.f32.mrb[90].mxu0  ;;  %v5607_v35 = vunpack.c.h.bf16 %v5590_v62  ;;  %v5622_v34 = vunpack.c.l.bf16 %v5598_v15 }
 0x86d   :  { %4834 = vst [vmem:[#allocation8] sm:$0x3] %v4833_v18  ;;  %v8888_v25 = vpop.f32.mrb[91].mxu0  ;;  %v5606_v18 = vunpack.c.l.bf16 %v5590_v62 }
 0x86e   :  { %v5639_v1 = vmax.f32 %v5607_v35, 1e-06  ;;  %v5655_v25 = vmax.f32 %v5623_v50, 1e-06  ;;  %v5654_v20 = vmax.f32 %v5622_v34, 1e-06 }
 0x86f   :  { %v5638_v19 = vmax.f32 %v5606_v18, 1e-06 }
 0x870   :  { %v5671_v47 = vmul.f32 %v5639_v1, %v5639_v1  ;;  %v5687_v27 = vmul.f32 %v5655_v25, %v5655_v25  ;;  %v5686_v12 = vmul.f32 %v5654_v20, %v5654_v20 }
 0x871   :  { %v5670_v37 = vmul.f32 %v5638_v19, %v5638_v19 }
 0x872   :  { %v5703_v48 = vmul.f32 %v5671_v47, %v5639_v1  ;;  %v5719_v41 = vmul.f32 %v5687_v27, %v5655_v25  ;;  %v5718_v38 = vmul.f32 %v5686_v12, %v5654_v20 }
 0x873   :  { %v5702_v8 = vmul.f32 %v5670_v37, %v5638_v19 }
 0x874   :  { %v5735_v62 = vpack.c.bf16 %v5703_v48, %v5703_v48  ;;  %v5751_v15 = vpack.c.bf16 %v5719_v41, %v5719_v41  ;;  %v5750_v39 = vpack.c.bf16 %v5718_v38, %v5718_v38 }
 0x875   :  { %v5734_v50 = vpack.c.bf16 %v5702_v8, %v5702_v8 }
 0x876   :  { %v5799_v34 = vunpack.c.l.b16 %v5735_v62  ;;  %v5815_v60 = vunpack.c.l.b16 %v5751_v15  ;;  %v5814_v1 = vunpack.c.l.b16 %v5750_v39 }
 0x877   :  { %v5798_v58 = vunpack.c.l.b16 %v5734_v50 }
 0x878   :  { %v5833_v25 = vrot.slane %v5799_v34, 6  ;;  %v5834_v12 = vrot.slane %v5815_v60, 5  ;;  %v5831_v41 = vrot.slane %v5814_v1, 5 }
 0x879   :  { %v5830_v48 = vrot.slane %v5798_v58, 6  ;;  %v5600_v58 = vld [vmem:[#allocation2 + $0x50] sm:$0x88] }
 0x87a   :  { %v5835_v8 = vsel %vm565_vm0, %v5834_v12, %v5833_v25  ;;  %v5627_v60 = vunpack.c.h.bf16 %v5600_v58 }
 0x87b   :  { %v5879_v19 = vpack.c.b16 %v5835_v8, %v5835_v8  ;;  %v5832_v20 = vsel %vm565_vm0, %v5831_v41, %v5830_v48 }
 0x87d   :  { %5942 = vmatprep.mubr.bf16.mxu0 %v5879_v19 }
 0x88a   :  { %v8272_v35 = vpop.f32.mrb[92].mxu0 }
 0x88b   :  { %v8273_v18 = vpop.f32.mrb[93].mxu0 }
 0x88c   :  { %v8274_v30 = vadd.f32 %v8273_v18, %v8272_v35  ;;  %v8275_v4 = vpop.f32.mrb[94].mxu0 }
 0x88d   :  { %v8276_v27 = vpop.f32.mrb[95].mxu0  ;;  %v5878_v4 = vpack.c.b16 %v5832_v20, %v5832_v20 }
 0x88e   :  { %v5230_v6 = vadd.f32 %v8274_v30, %v11519_v3  ;;  %v5611_v30 = vunpack.c.h.bf16 %v5592_v57  ;;  %v5610_v3 = vunpack.c.l.bf16 %v5592_v57 }
 0x88f   :  { %5943 = vmatmul.mubr.bf16.vlgmr.msra.gmra.mrb[108].mxu0 %v5878_v4 }
 0x890   :  { %v5270_v38 = vadd.f32 %v11573_v11, %v5230_v6  ;;  %8464 = vmatpush3.bf16.msra.mxu0 %v11230_v54  ;;  %v5626_v54 = vunpack.c.l.bf16 %v5600_v58  ;;  %v5643_v44 = vmax.f32 %v5611_v30, 1e-06  ;;  %v5642_v11 = vmax.f32 %v5610_v3, 1e-06 }
 0x891   :  { %8465 = vmatprep.subr.bf16.mxu0 %v11233_v46  ;;  %v5659_v46 = vmax.f32 %v5627_v60, 1e-06 }
 0x894   :  { %8466 = vmatpush3.bf16.msra.mxu0 %v11236_v21  ;;  %v5658_v21 = vmax.f32 %v5626_v54, 1e-06 }
 0x895   :  { %8467 = vmatprep.subr.bf16.mxu0 %v11239_v17  ;;  %v5675_v17 = vmul.f32 %v5643_v44, %v5643_v44 }
 0x896   :  { %v5690_v47 = vmul.f32 %v5658_v21, %v5658_v21 }
 0x897   :  { %v5707_v37 = vmul.f32 %v5675_v17, %v5643_v44  ;;  %v12569_v44 = vld [vmem:[#allocation15_spill] sm:$0xff] }
 0x898   :  { %8468 = vmatpush3.bf16.msra.mxu0 %v11242_v16  ;;  %v5691_v16 = vmul.f32 %v5659_v46, %v5659_v46  ;;  %v5722_v15 = vmul.f32 %v5690_v47, %v5658_v21 }
 0x899   :  { %8469 = vmatprep.subr.bf16.mxu0 %v11245_v49  ;;  %v5674_v49 = vmul.f32 %v5642_v11, %v5642_v11 }
 0x89a   :  { %v5754_v39 = vpack.c.bf16 %v5722_v15, %v5722_v15 }
 0x89b   :  { %v5706_v62 = vmul.f32 %v5674_v49, %v5642_v11 }
 0x89c   :  { %8470 = vmatpush3.bf16.msra.mxu0 %v11248_v52  ;;  %v5723_v52 = vmul.f32 %v5691_v16, %v5659_v46  ;;  %v12570_v46 = vld [vmem:[#allocation16_spill] sm:$0xff] }
 0x89d   :  { %8471 = vmatprep.subr.bf16.mxu0 %v11251_v53  ;;  %v5739_v53 = vpack.c.bf16 %v5707_v37, %v5707_v37  ;;  %v5738_v50 = vpack.c.bf16 %v5706_v62, %v5706_v62 }
 0x89e   :  { %v5755_v35 = vpack.c.bf16 %v5723_v52, %v5723_v52 }
 0x89f   :  { %v5802_v27 = vunpack.c.l.b16 %v5738_v50 }
 0x8a0   :  { %8472 = vmatpush3.bf16.msra.mxu0 %v11254_v13  ;;  %v5803_v13 = vunpack.c.l.b16 %v5739_v53  ;;  %v5819_v34 = vunpack.c.l.b16 %v5755_v35 }
 0x8a1   :  { %8473 = vmatprep.subr.bf16.mxu0 %v11257_v36  ;;  %v5818_v36 = vunpack.c.l.b16 %v5754_v39 }
 0x8a2   :  { %v5845_v6 = vrot.slane %v5803_v13, 6  ;;  %v5846_v48 = vrot.slane %v5819_v34, 5 }
 0x8a3   :  { %v5843_v8 = vrot.slane %v5818_v36, 5 }
 0x8a4   :  { %8474 = vmatpush3.bf16.msra.mxu0 %v11260_v43  ;;  %v5842_v43 = vrot.slane %v5802_v27, 6  ;;  %v5847_v19 = vsel %vm565_vm0, %v5846_v48, %v5845_v6 }
 0x8a5   :  { %8475 = vmatprep.subr.bf16.mxu0 %v11263_v32  ;;  %v5883_v20 = vpack.c.b16 %v5847_v19, %v5847_v19  ;;  %v11698_v19 = vld [vmem:[#allocation5 + $0x318] sm:$0xff]  }
 0x8a6   :  { %v5844_v4 = vsel %vm565_vm0, %v5843_v8, %v5842_v43 }
 0x8a7   :  { %v5882_v58 = vpack.c.b16 %v5844_v4, %v5844_v4  ;;  %6022 = vmatprep.mubr.bf16.mxu0 %v5883_v20 }
 0x8a8   :  { %8476 = vmatpush3.bf16.msra.mxu0 %v11266_v42  ;;  %v12566_v42 = vld [vmem:[#allocation12_spill] sm:$0xff] }
 0x8a9   :  { %8477 = vmatprep.subr.bf16.mxu0 %v11269_v2  ;;  %v5594_v2 = vld [vmem:[#allocation2 + $0x20] sm:$0x88] }
 0x8aa   :  { %v8316_v18 = vpop.f32.mrb[96].mxu0  ;;  %v5614_v60 = vunpack.c.l.bf16 %v5594_v2 }
 0x8ab   :  { %v8317_v1 = vpop.f32.mrb[97].mxu0 }
 0x8ac   :  { %v8318_v25 = vadd.f32 %v8317_v1, %v8316_v18  ;;  %v8319_v12 = vpop.f32.mrb[98].mxu0  ;;  %8478 = vmatpush3.bf16.msra.mxu0 %v11278_v22  ;;  %v12567_v22 = vld [vmem:[#allocation13_spill] sm:$0xff]  ;;  %v5646_v54 = vmax.f32 %v5614_v60, 1e-06 }
 0x8ad   :  { %v8320_v41 = vpop.f32.mrb[99].mxu0  ;;  %8507 = vmatprep.subr.bf16.mxu0 %v11281_v31  ;;  %v12568_v31 = vld [vmem:[#allocation14_spill] sm:$0xff] }
 0x8ae   :  { %v5310_v32 = vadd.f32 %v8318_v25, %v5270_v38  ;;  %v5615_v38 = vunpack.c.h.bf16 %v5594_v2  ;;  %v5678_v11 = vmul.f32 %v5646_v54, %v5646_v54 }
 0x8af   :  { %6023 = vmatmul.mubr.bf16.vlgmr.msra.gmra.mrb[112].mxu0 %v5882_v58 }
 0x8b0   :  { %v5350_v57 = vadd.f32 %v11624_v7, %v5310_v32  ;;  %8508 = vmatpush3.bf16.msra.mxu0 %v11284_v14  ;;  %v5602_v7 = vld [vmem:[#allocation2 + $0x60] sm:$0x88]  ;;  %v5647_v3 = vmax.f32 %v5615_v38, 1e-06  ;;  %v5710_v49 = vmul.f32 %v5678_v11, %v5646_v54  ;;  %v11689_v32 = vld [vmem:[#allocation5 + $0x350] sm:$0xff]  }
 0x8b1   :  { %8509 = vmatprep.subr.bf16.mxu0 %v11287_v23  ;;  %v5631_v30 = vunpack.c.h.bf16 %v5602_v7  ;;  %v5630_v14 = vunpack.c.l.bf16 %v5602_v7 }
 0x8b2   :  { %v5742_v62 = vpack.c.bf16 %v5710_v49, %v5710_v49 }
 0x8b3   :  { %v5663_v23 = vmax.f32 %v5631_v30, 1e-06  ;;  %v11704_v30 = vld [vmem:[#allocation5 + $0x320] sm:$0xff]  }
 0x8b4   :  { %8510 = vmatpush3.bf16.msra.mxu0 %v11290_v61  ;;  %v5662_v61 = vmax.f32 %v5630_v14, 1e-06  ;;  %v5806_v18 = vunpack.c.l.b16 %v5742_v62  ;;  %v11707_v14 = vld [vmem:[#allocation5 + $0x368] sm:$0xff]  }
 0x8b5   :  { %8511 = vmatprep.subr.bf16.mxu0 %v11293_v59  ;;  %v5679_v59 = vmul.f32 %v5647_v3, %v5647_v3  ;;  %v5591_v62 = vld [vmem:[#allocation2 + $0x8] sm:$0x88] }
 0x8b6   :  { %v5694_v21 = vmul.f32 %v5662_v61, %v5662_v61 }
 0x8b7   :  { %v5711_v17 = vmul.f32 %v5679_v59, %v5647_v3 }
 0x8b8   :  { %8512 = vmatpush3.bf16.msra.mxu0 %v11296_v24  ;;  %v5695_v24 = vmul.f32 %v5663_v23, %v5663_v23  ;;  %v5726_v47 = vmul.f32 %v5694_v21, %v5662_v61  ;;  %v11713_v21 = vld [vmem:[#allocation5 + $0x370] sm:$0xff]  }
 0x8b9   :  { %8513 = vmatprep.subr.bf16.mxu0 %v12566_v42  ;;  %v5743_v37 = vpack.c.bf16 %v5711_v17, %v5711_v17 }
 0x8ba   :  { %v5727_v16 = vmul.f32 %v5695_v24, %v5663_v23  ;;  %v5758_v15 = vpack.c.bf16 %v5726_v47, %v5726_v47  ;;  %v11710_v24 = vld [vmem:[#allocation5 + $0x328] sm:$0xff]  }
 0x8bb   :  { %v5807_v35 = vunpack.c.l.b16 %v5743_v37 }
 0x8bc   :  { %8514 = vmatpush3.bf16.msra.mxu0 %v12567_v22  ;;  %v5759_v52 = vpack.c.bf16 %v5727_v16, %v5727_v16  ;;  %v5822_v13 = vunpack.c.l.b16 %v5758_v15  ;;  %v5599_v15 = vld [vmem:[#allocation2 + $0x48] sm:$0x88] }
 0x8bd   :  { %8515 = vmatprep.subr.bf16.mxu0 %v12568_v31  ;;  %v5857_v27 = vrot.slane %v5807_v35, 6 }
 0x8be   :  { %v5823_v50 = vunpack.c.l.b16 %v5759_v52  ;;  %v5855_v12 = vrot.slane %v5822_v13, 5 }
 0x8c0   :  { %8516 = vmatpush3.bf16.msra.mxu0 %v12569_v44  ;;  %v5858_v36 = vrot.slane %v5823_v50, 5 }
 0x8c1   :  { %8517 = vmatprep.subr.bf16.mxu0 %v12570_v46 }
 0x8c2   :  { %v5859_v6 = vsel %vm565_vm0, %v5858_v36, %v5857_v27  ;;  %v11719_v27 = vld [vmem:[#allocation5 + $0x378] sm:$0xff]  }
 0x8c3   :  { %v5887_v48 = vpack.c.b16 %v5859_v6, %v5859_v6 }
 0x8c4   :  { %8518 = vmatpush3.bf16.msra.mxu0 %v11314_v55  ;;  %v5854_v55 = vrot.slane %v5806_v18, 6  ;;  %v11716_v18 = vld [vmem:[#allocation5 + $0x330] sm:$0xff]  }
 0x8c5   :  { %8519 = vmatprep.subr.bf16.mxu0 %v11317_v40  ;;  %6102 = vmatprep.mubr.bf16.mxu0 %v5887_v48 }
 0x8c6   :  { %v5856_v41 = vsel %vm565_vm0, %v5855_v12, %v5854_v55  ;;  %v5609_v12 = vunpack.c.h.bf16 %v5591_v62 }
 0x8c7   :  { %v5886_v8 = vpack.c.b16 %v5856_v41, %v5856_v41 }
 0x8c8   :  { %8520 = vmatpush3.bf16.msra.mxu0 %v11320_v45  ;;  %v12571_v45 = vld [vmem:[#allocation17_spill] sm:$0xff] }
 0x8c9   :  { %8521 = vmatprep.subr.bf16.mxu0 %v11323_v29  ;;  %v11686_v29 = vld [vmem:[#allocation5 + $0x308] sm:$0xff]  }
 0x8ca   :  { %v8360_v53 = vpop.f32.mrb[100].mxu0 }
 0x8cb   :  { %v8361_v39 = vpop.f32.mrb[101].mxu0 }
 0x8cc   :  { %v8362_v34 = vadd.f32 %v8361_v39, %v8360_v53  ;;  %v8363_v1 = vpop.f32.mrb[102].mxu0  ;;  %8522 = vmatpush3.bf16.msra.mxu0 %v11330_v63  ;;  %v11695_v63 = vld [vmem:[#allocation5 + $0x358] sm:$0xff]  }
 0x8cd   :  { %v8364_v25 = vpop.f32.mrb[103].mxu0  ;;  %8551 = vmatprep.subr.bf16.mxu0 %v11333_v28  ;;  %v5596_v28 = vld [vmem:[#allocation2 + $0x30] sm:$0x88] }
 0x8ce   :  { %v5390_v40 = vadd.f32 %v8362_v34, %v5350_v57  ;;  %v5619_v20 = vunpack.c.h.bf16 %v5596_v28  ;;  %v11701_v57 = vld [vmem:[#allocation5 + $0x360] sm:$0xff]   ;;  %v5618_v58 = vunpack.c.l.bf16 %v5596_v28 }
 0x8cf   :  { %6103 = vmatmul.mubr.bf16.vlgmr.msra.gmra.mrb[116].mxu0 %v5886_v8 }
 0x8d0   :  { %v11680_v43 = vadd.f32 %v11630_v5, %v5390_v40  ;;  %8552 = vmatpush3.bf16.msra.mxu0 %v11336_v0  ;;  %v11692_v5 = vld [vmem:[#allocation5 + $0x310] sm:$0xff]   ;;  %v5651_v2 = vmax.f32 %v5619_v20, 1e-06  ;;  %v5650_v22 = vmax.f32 %v5618_v58, 1e-06  ;;  %v5625_v40 = vunpack.c.h.bf16 %v5599_v15 }
 0x8d1   :  { %8553 = vmatprep.subr.bf16.mxu0 %v12571_v45  ;;  %v5604_v0 = vld [vmem:[#allocation2 + $0x70] sm:$0x88]  ;;  %v11725_v45 = vld [vmem:[#allocation5 + $0x338] sm:$0xff]  }
 0x8d2   :  { %v5635_v4 = vunpack.c.h.bf16 %v5604_v0  ;;  %v5634_v42 = vunpack.c.l.bf16 %v5604_v0  ;;  %v5683_v31 = vmul.f32 %v5651_v2, %v5651_v2  ;;  %v5682_v3 = vmul.f32 %v5650_v22, %v5650_v22 }
 0x8d3   :  { %v5641_v0 = vmax.f32 %v5609_v12, 1e-06  ;;  %v5657_v20 = vmax.f32 %v5625_v40, 1e-06  ;;  %v12573_v12 = vld [vmem:[#allocation19_spill] sm:$0xff] }
 0x8d4   :  { %8554 = vmatpush3.bf16.msra.mxu0 %v11686_v29  ;;  %v5667_v7 = vmax.f32 %v5635_v4, 1e-06  ;;  %v5666_v38 = vmax.f32 %v5634_v42, 1e-06  ;;  %v5715_v54 = vmul.f32 %v5683_v31, %v5651_v2  ;;  %v5714_v44 = vmul.f32 %v5682_v3, %v5650_v22 }
 0x8d5   :  { %8555 = vmatprep.subr.bf16.mxu0 %v11689_v32  ;;  %v5689_v4 = vmul.f32 %v5657_v20, %v5657_v20 }
 0x8d6   :  { %v5699_v60 = vmul.f32 %v5667_v7, %v5667_v7  ;;  %v5698_v23 = vmul.f32 %v5666_v38, %v5666_v38  ;;  %v5747_v46 = vpack.c.bf16 %v5715_v54, %v5715_v54  ;;  %v5746_v17 = vpack.c.bf16 %v5714_v44, %v5714_v44 }
 0x8d7   :  { %v5721_v42 = vmul.f32 %v5689_v4, %v5657_v20  ;;  %v12577_v20 = vld [vmem:[#allocation23_spill] sm:$0xff] }
 0x8d8   :  { %8556 = vmatpush3.bf16.msra.mxu0 %v11692_v5  ;;  %v5731_v61 = vmul.f32 %v5699_v60, %v5667_v7  ;;  %v5730_v59 = vmul.f32 %v5698_v23, %v5666_v38  ;;  %v5811_v47 = vunpack.c.l.b16 %v5747_v46  ;;  %v5810_v53 = vunpack.c.l.b16 %v5746_v17  ;;  %v11734_v46 = vld [vmem:[#allocation2 + $0x58] sm:$0x88] }
 0x8d9   :  { %8557 = vmatprep.subr.bf16.mxu0 %v11695_v63  ;;  %v5753_v38 = vpack.c.bf16 %v5721_v42, %v5721_v42  ;;  %v5608_v17 = vunpack.c.l.bf16 %v5591_v62 }
 0x8da   :  { %v5763_v11 = vpack.c.bf16 %v5731_v61, %v5731_v61  ;;  %v5762_v16 = vpack.c.bf16 %v5730_v59, %v5730_v59  ;;  %v5869_v13 = vrot.slane %v5811_v47, 6  ;;  %v5866_v36 = vrot.slane %v5810_v53, 6  ;;  %v11732_v59 = vld [vmem:[#allocation2 + $0x18] sm:$0x88] }
 0x8db   :  { %v5817_v23 = vunpack.c.l.b16 %v5753_v38  ;;  %v5640_v53 = vmax.f32 %v5608_v17, 1e-06  ;;  %v12580_v38 = vld [vmem:[#allocation26_spill] sm:$0xff]  ;;  %v12582_v17 = vld [vmem:[#allocation28_spill] sm:$0xff] }
 0x8dc   :  { %8558 = vmatpush3.bf16.msra.mxu0 %v11698_v19  ;;  %v5827_v37 = vunpack.c.l.b16 %v5763_v11  ;;  %v5826_v35 = vunpack.c.l.b16 %v5762_v16  ;;  %v5624_v16 = vunpack.c.l.bf16 %v5599_v15 }
 0x8dd   :  { %8559 = vmatprep.subr.bf16.mxu0 %v11701_v57  ;;  %v5840_v61 = vrot.slane %v5817_v23, 5  ;;  %v5672_v62 = vmul.f32 %v5640_v53, %v5640_v53 }
 0x8de   :  { %v5870_v34 = vrot.slane %v5827_v37, 5  ;;  %v5867_v25 = vrot.slane %v5826_v35, 5  ;;  %v5613_v37 = vunpack.c.h.bf16 %v11732_v59  ;;  %v5656_v35 = vmax.f32 %v5624_v16, 1e-06 }
 0x8e0   :  { %8560 = vmatpush3.bf16.msra.mxu0 %v11704_v30  ;;  %v5871_v6 = vsel %vm565_vm0, %v5870_v34, %v5869_v13  ;;  %v5868_v41 = vsel %vm565_vm0, %v5867_v25, %v5866_v36  ;;  %v5688_v15 = vmul.f32 %v5656_v35, %v5656_v35 }
 0x8e1   :  { %8561 = vmatprep.subr.bf16.mxu0 %v11707_v14  ;;  %v5891_v48 = vpack.c.b16 %v5871_v6, %v5871_v6  ;;  %v5890_v28 = vpack.c.b16 %v5868_v41, %v5868_v41  ;;  %v12574_v6 = vld [vmem:[#allocation20_spill] sm:$0xff]  ;;  %v12575_v41 = vld [vmem:[#allocation21_spill] sm:$0xff] }
 0x8e2   :  { %v5720_v36 = vmul.f32 %v5688_v15, %v5656_v35 }
 0x8e3   :  { %6182 = vmatprep.mubr.bf16.mxu0 %v5891_v48 }
 0x8e4   :  { %8562 = vmatpush3.bf16.msra.mxu0 %v11710_v24  ;;  %v5752_v40 = vpack.c.bf16 %v5720_v36, %v5720_v36 }
 0x8e5   :  { %8563 = vmatprep.subr.bf16.mxu0 %v11713_v21 }
 0x8e8   :  { %8564 = vmatpush3.bf16.msra.mxu0 %v11716_v18 }
 0x8e9   :  { %8565 = vmatprep.subr.bf16.mxu0 %v11719_v27 }
 0x8ea   :  { %v8404_v49 = vpop.f32.mrb[104].mxu0 }
 0x8eb   :  { %v8405_v52 = vpop.f32.mrb[105].mxu0 }
 0x8ec   :  { %v8406_v50 = vadd.f32 %v8405_v52, %v8404_v49  ;;  %v8407_v39 = vpop.f32.mrb[106].mxu0  ;;  %8566 = vmatpush3.bf16.msra.mxu0 %v11725_v45  ;;  %v5629_v52 = vunpack.c.h.bf16 %v11734_v46 }
 0x8ed   :  { %v8408_v1 = vpop.f32.mrb[107].mxu0  ;;  %8909 = vmatprep.subr.bf16.mxu0 %v12186_v33 }
 0x8ee   :  { %v5470_v55 = vadd.f32 %v8406_v50, %v11680_v43  ;;  %v5673_v43 = vmul.f32 %v5641_v0, %v5641_v0  ;;  %v5645_v50 = vmax.f32 %v5613_v37, 1e-06  ;;  %v5661_v39 = vmax.f32 %v5629_v52, 1e-06 }
 0x8ef   :  { %6183 = vmatmul.mubr.bf16.vlgmr.msra.gmra.mrb[120].mxu0 %v5890_v28  ;;  %v5704_v1 = vmul.f32 %v5672_v62, %v5640_v53  ;;  %v12576_v28 = vld [vmem:[#allocation22_spill] sm:$0xff]  ;;  %v12586_v62 = vld [vmem:[#allocation32_spill] sm:$0xff] }
 0x8f0   :  { %v5475_v8 = vmul.f32 0.0625, %v5470_v55  ;;  %8925 = vmatprep.mubr.msk.bf16.mxu0 %vm9782_vm1, %v12186_v33  ;;  %v5705_v58 = vmul.f32 %v5673_v43, %v5641_v0  ;;  %v5677_v13 = vmul.f32 %v5645_v50, %v5645_v50  ;;  %v5693_v34 = vmul.f32 %v5661_v39, %v5661_v39  ;;  %v12584_v53 = vld [vmem:[#allocation30_spill] sm:$0xff] }
 0x8f2   :  { %9170 = vlog2.f32 %v5475_v8  ;;  %v5737_v22 = vpack.c.bf16 %v5705_v58, %v5705_v58  ;;  %v5709_v25 = vmul.f32 %v5677_v13, %v5645_v50  ;;  %v5725_v55 = vmul.f32 %v5693_v34, %v5661_v39  ;;  %v12578_v58 = vld [vmem:[#allocation24_spill] sm:$0xff]  ;;  %v12587_v34 = vld [vmem:[#allocation33_spill] sm:$0xff] }
 0x8f3   :  { %v5816_v8 = vunpack.c.l.b16 %v5752_v40 }
 0x8f4   :  { %v5801_v3 = vunpack.c.l.b16 %v5737_v22  ;;  %v5757_v48 = vpack.c.bf16 %v5725_v55, %v5725_v55 }
 0x8f5   :  { %v5837_v4 = vrot.slane %v5816_v8, 5 }
 0x8f6   :  { %v5839_v54 = vrot.slane %v5801_v3, 6  ;;  %v5821_v0 = vunpack.c.l.b16 %v5757_v48  ;;  %v11756_v3 = vld [vmem:[#allocation2 + $0x68] sm:$0x88] }
 0x8f8   :  { %v5841_v44 = vsel %vm565_vm0, %v5840_v61, %v5839_v54  ;;  %v12581_v54 = vld [vmem:[#allocation27_spill] sm:$0xff]  ;;  %v5612_v61 = vunpack.c.l.bf16 %v11732_v59 }
 0x8f9   :  { %v5881_v49 = vpack.c.b16 %v5841_v44, %v5841_v44  ;;  %v5628_v44 = vunpack.c.l.bf16 %v11734_v46  ;;  %v12585_v59 = vld [vmem:[#allocation31_spill] sm:$0xff] }
 0x8fa   :  { %v5644_v37 = vmax.f32 %v5612_v61, 1e-06 }
 0x8fb   :  { %v5660_v52 = vmax.f32 %v5628_v44, 1e-06  ;;  %v12597_v44 = vld [vmem:[#allocation43_spill] sm:$0xff] }
 0x8fc   :  { %v9171_v2 = vpop.eup %9170  ;;  %v5676_v46 = vmul.f32 %v5644_v37, %v5644_v37 }
 0x8fd   :  { %v5477_v7 = vmul.f32 0.6931472, %v9171_v2  ;;  %v5852_v2 = vrot.slane %v5821_v0, 5  ;;  %v5692_v39 = vmul.f32 %v5660_v52, %v5660_v52 }
 0x8ff   :  { %v5478_v31 = vmul.f32 0.33333334, %v5477_v7  ;;  %v12579_v7 = vld [vmem:[#allocation25_spill] sm:$0xff]  ;;  %v5724_v36 = vmul.f32 %v5692_v39, %v5660_v52 }
 0x900   :  { %v12599_v52 = vld [vmem:[#allocation45_spill] sm:$0xff] }
 0x901   :  { %v5479_v60 = vmul.f32 1.442695, %v5478_v31  ;;  %v5756_v40 = vpack.c.bf16 %v5724_v36, %v5724_v36 }
 0x903   :  { %9172 = vpow2.f32 %v5479_v60  ;;  %v11754_v60 = vld [vmem:[#allocation2 + $0x28] sm:$0x88]  ;;  %v5820_v8 = vunpack.c.l.b16 %v5756_v40 }
 0x904   :  { %v5617_v16 = vunpack.c.h.bf16 %v11754_v60 }
 0x906   :  { %v5649_v35 = vmax.f32 %v5617_v16, 1e-06 }
 0x908   :  { %v5681_v15 = vmul.f32 %v5649_v35, %v5649_v35 }
 0x90d   :  { %v9173_v11 = vpop.eup %9172 }
 0x90e   :  { %v5482_v47 = vpack.c.bf16 %v9173_v11, %v9173_v11 }
 0x910   :  { %8906 = vmatmul.mubr.bf16.vlgmr.msra.gmra.mrb[104].mxu1 %v5482_v47  ;;  %v12583_v47 = vld [vmem:[#allocation29_spill] sm:$0xff] }
 0x911   :  { %8442 = vmatpush3.bf16.msra.mxu1 %v11367_v9  ;;  %5982 = vmatprep.mubr.bf16.mxu1 %v5881_v49  ;;  %v12572_v9 = vld [vmem:[#allocation18_spill] sm:$0xff]  ;;  %v5633_v49 = vunpack.c.h.bf16 %v11756_v3 }
 0x912   :  { %8443 = vmatprep.subr.bf16.mxu1 %v11370_v10  ;;  %v5736_v10 = vpack.c.bf16 %v5704_v1, %v5704_v1  ;;  %v5708_v1 = vmul.f32 %v5676_v46, %v5644_v37 }
 0x913   :  { %v5665_v50 = vmax.f32 %v5633_v49, 1e-06  ;;  %v12598_v49 = vld [vmem:[#allocation44_spill] sm:$0xff] }
 0x915   :  { %8444 = vmatpush3.bf16.msra.mxu1 %v11373_v26  ;;  %v5741_v26 = vpack.c.bf16 %v5709_v25, %v5709_v25  ;;  %v5697_v13 = vmul.f32 %v5665_v50, %v5665_v50  ;;  %v5713_v25 = vmul.f32 %v5681_v15, %v5649_v35 }
 0x916   :  { %8445 = vmatprep.subr.bf16.mxu1 %v11376_v51  ;;  %v5800_v51 = vunpack.c.l.b16 %v5736_v10  ;;  %v5740_v10 = vpack.c.bf16 %v5708_v1, %v5708_v1 }
 0x917   :  { %v5729_v55 = vmul.f32 %v5697_v13, %v5665_v50  ;;  %v12600_v50 = vld [vmem:[#allocation46_spill] sm:$0xff] }
 0x918   :  { %v5836_v43 = vrot.slane %v5800_v51, 6  ;;  %v5804_v51 = vunpack.c.l.b16 %v5740_v10 }
 0x919   :  { %8446 = vmatpush3.bf16.msra.mxu1 %v11379_v56  ;;  %v5805_v56 = vunpack.c.l.b16 %v5741_v26  ;;  %v5745_v26 = vpack.c.bf16 %v5713_v25, %v5713_v25  ;;  %v5761_v48 = vpack.c.bf16 %v5729_v55, %v5729_v55 }
 0x91a   :  { %8447 = vmatprep.subr.bf16.mxu1 %v12572_v9  ;;  %v5838_v22 = vsel %vm565_vm0, %v5837_v4, %v5836_v43  ;;  %v12588_v9 = vld [vmem:[#allocation34_spill] sm:$0xff]  ;;  %v5848_v43 = vrot.slane %v5804_v51, 6  ;;  %v5849_v4 = vrot.slane %v5820_v8, 5 }
 0x91b   :  { %v5851_v42 = vrot.slane %v5805_v56, 6  ;;  %v5880_v23 = vpack.c.b16 %v5838_v22, %v5838_v22  ;;  %v5809_v56 = vunpack.c.l.b16 %v5745_v26  ;;  %v5825_v0 = vunpack.c.l.b16 %v5761_v48 }
 0x91c   :  { %v5850_v22 = vsel %vm565_vm0, %v5849_v4, %v5848_v43 }
 0x91d   :  { %8448 = vmatpush3.bf16.msra.mxu1 %v12573_v12  ;;  %v5853_v31 = vsel %vm565_vm0, %v5852_v2, %v5851_v42  ;;  %v12589_v12 = vld [vmem:[#allocation35_spill] sm:$0xff]  ;;  %v5863_v42 = vrot.slane %v5809_v56, 6  ;;  %v5864_v2 = vrot.slane %v5825_v0, 5  ;;  %v5884_v61 = vpack.c.b16 %v5850_v22, %v5850_v22 }
 0x91e   :  { %8449 = vmatprep.subr.bf16.mxu1 %v12574_v6  ;;  %v5885_v11 = vpack.c.b16 %v5853_v31, %v5853_v31  ;;  %v12590_v6 = vld [vmem:[#allocation36_spill] sm:$0xff] }
 0x91f   :  { %v5865_v31 = vsel %vm565_vm0, %v5864_v2, %v5863_v42 }
 0x920   :  { %v5889_v16 = vpack.c.b16 %v5865_v31, %v5865_v31 }
 0x921   :  { %8450 = vmatpush3.bf16.msra.mxu1 %v12575_v41  ;;  %v12591_v41 = vld [vmem:[#allocation37_spill] sm:$0xff] }
 0x922   :  { %8451 = vmatprep.subr.bf16.mxu1 %v12576_v28  ;;  %v12592_v28 = vld [vmem:[#allocation38_spill] sm:$0xff] }
 0x925   :  { %8452 = vmatpush3.bf16.msra.mxu1 %v12577_v20  ;;  %v12593_v20 = vld [vmem:[#allocation39_spill] sm:$0xff] }
 0x926   :  { %8453 = vmatprep.subr.bf16.mxu1 %v12578_v58  ;;  %v12594_v58 = vld [vmem:[#allocation40_spill] sm:$0xff] }
 0x929   :  { %8454 = vmatpush3.bf16.msra.mxu1 %v12579_v7  ;;  %v12595_v7 = vld [vmem:[#allocation41_spill] sm:$0xff] }
 0x92a   :  { %8455 = vmatprep.subr.bf16.mxu1 %v12580_v38  ;;  %v12596_v38 = vld [vmem:[#allocation42_spill] sm:$0xff] }
 0x92d   :  { %8456 = vmatpush3.bf16.msra.mxu1 %v12581_v54  ;;  %v11782_v54 = vld [vmem:[#allocation2 + $0x78] sm:$0x88] }
 0x92e   :  { %8485 = vmatprep.subr.bf16.mxu1 %v12582_v17  ;;  %v5632_v17 = vunpack.c.l.bf16 %v11756_v3  ;;  %v5637_v37 = vunpack.c.h.bf16 %v11782_v54 }
 0x930   :  { %5983 = vmatmul.mubr.bf16.vlgmr.msra.gmra.mrb[108].mxu1 %v5880_v23  ;;  %v11780_v23 = vld [vmem:[#allocation2 + $0x38] sm:$0x88]  ;;  %v5664_v35 = vmax.f32 %v5632_v17, 1e-06  ;;  %v5669_v46 = vmax.f32 %v5637_v37, 1e-06 }
 0x931   :  { %8486 = vmatpush3.bf16.msra.mxu1 %v12583_v47  ;;  %6062 = vmatprep.mubr.bf16.mxu1 %v5885_v11  ;;  %v5616_v11 = vunpack.c.l.bf16 %v11754_v60  ;;  %v5621_v47 = vunpack.c.h.bf16 %v11780_v23  ;;  %v12601_v60 = vld [vmem:[#allocation47_spill] sm:$0xff]  ;;  %v12612_v17 = vld [vmem:[#allocation58_spill] sm:$0xff]  ;;  %v5620_v37 = vunpack.c.l.bf16 %v11780_v23  ;;  %v12619_v23 = vld [vmem:[#allocation65_spill] sm:$0xff] }
 0x932   :  { %8487 = vmatprep.subr.bf16.mxu1 %v12584_v53  ;;  %v5696_v39 = vmul.f32 %v5664_v35, %v5664_v35  ;;  %v5701_v13 = vmul.f32 %v5669_v46, %v5669_v46 }
 0x933   :  { %v5648_v53 = vmax.f32 %v5616_v11, 1e-06 }
 0x934   :  { %v5728_v36 = vmul.f32 %v5696_v39, %v5664_v35  ;;  %v5733_v55 = vmul.f32 %v5701_v13, %v5669_v46  ;;  %v12614_v35 = vld [vmem:[#allocation60_spill] sm:$0xff] }
 0x935   :  { %8488 = vmatpush3.bf16.msra.mxu1 %v12585_v59  ;;  %v5653_v59 = vmax.f32 %v5621_v47, 1e-06  ;;  %v5680_v3 = vmul.f32 %v5648_v53, %v5648_v53  ;;  %v12613_v47 = vld [vmem:[#allocation59_spill] sm:$0xff] }
 0x936   :  { %8489 = vmatprep.subr.bf16.mxu1 %v12586_v62  ;;  %v12602_v62 = vld [vmem:[#allocation48_spill] sm:$0xff]  ;;  %v5760_v40 = vpack.c.bf16 %v5728_v36, %v5728_v36  ;;  %v5765_v48 = vpack.c.bf16 %v5733_v55, %v5733_v55  ;;  %v12623_v55 = vld [vmem:[#allocation69_spill] sm:$0xff] }
 0x937   :  { %v5685_v15 = vmul.f32 %v5653_v59, %v5653_v59  ;;  %v5712_v1 = vmul.f32 %v5680_v3, %v5648_v53  ;;  %v12617_v3 = vld [vmem:[#allocation63_spill] sm:$0xff] }
 0x938   :  { %v5824_v8 = vunpack.c.l.b16 %v5760_v40  ;;  %v5829_v0 = vunpack.c.l.b16 %v5765_v48  ;;  %v12624_v40 = vld [vmem:[#allocation70_spill] sm:$0xff] }
 0x939   :  { %8490 = vmatpush3.bf16.msra.mxu1 %v12587_v34  ;;  %v12603_v34 = vld [vmem:[#allocation49_spill] sm:$0xff]  ;;  %v5717_v25 = vmul.f32 %v5685_v15, %v5653_v59  ;;  %v5744_v10 = vpack.c.bf16 %v5712_v1, %v5712_v1  ;;  %v5652_v59 = vmax.f32 %v5620_v37, 1e-06  ;;  %v12618_v15 = vld [vmem:[#allocation64_spill] sm:$0xff]  ;;  %v12621_v1 = vld [vmem:[#allocation67_spill] sm:$0xff] }
 0x93a   :  { %8491 = vmatprep.subr.bf16.mxu1 %v12588_v9  ;;  %v12604_v9 = vld [vmem:[#allocation50_spill] sm:$0xff]  ;;  %v5861_v4 = vrot.slane %v5824_v8, 5  ;;  %v5876_v2 = vrot.slane %v5829_v0, 5  ;;  %v12627_v0 = vld [vmem:[#allocation73_spill] sm:$0xff]  ;;  %v12641_v37 = vld [vmem:[#allocation87_spill] sm:$0xff] }
 0x93b   :  { %v5749_v26 = vpack.c.bf16 %v5717_v25, %v5717_v25  ;;  %v5808_v51 = vunpack.c.l.b16 %v5744_v10  ;;  %v5684_v39 = vmul.f32 %v5652_v59, %v5652_v59  ;;  %v12622_v25 = vld [vmem:[#allocation68_spill] sm:$0xff] }
 0x93d   :  { %8492 = vmatpush3.bf16.msra.mxu1 %v12589_v12  ;;  %v12605_v12 = vld [vmem:[#allocation51_spill] sm:$0xff]  ;;  %v5813_v56 = vunpack.c.l.b16 %v5749_v26  ;;  %v5860_v43 = vrot.slane %v5808_v51, 6 }
 0x93e   :  { %8493 = vmatprep.subr.bf16.mxu1 %v12590_v6  ;;  %v12606_v6 = vld [vmem:[#allocation52_spill] sm:$0xff] }
 0x93f   :  { %v5875_v42 = vrot.slane %v5813_v56, 6 }
 0x941   :  { %8494 = vmatpush3.bf16.msra.mxu1 %v12591_v41  ;;  %v12607_v41 = vld [vmem:[#allocation53_spill] sm:$0xff] }
 0x942   :  { %8495 = vmatprep.subr.bf16.mxu1 %v12592_v28  ;;  %v12608_v28 = vld [vmem:[#allocation54_spill] sm:$0xff] }
 0x945   :  { %8496 = vmatpush3.bf16.msra.mxu1 %v12593_v20  ;;  %v12609_v20 = vld [vmem:[#allocation55_spill] sm:$0xff] }
 0x946   :  { %8497 = vmatprep.subr.bf16.mxu1 %v12594_v58  ;;  %v12610_v58 = vld [vmem:[#allocation56_spill] sm:$0xff] }
 0x949   :  { %8498 = vmatpush3.bf16.msra.mxu1 %v12595_v7 }
 0x94a   :  { %8499 = vmatprep.subr.bf16.mxu1 %v12596_v38 }
 0x94d   :  { %8500 = vmatpush3.bf16.msra.mxu1 %v12597_v44  ;;  %v5862_v44 = vsel %vm565_vm0, %v5861_v4, %v5860_v43  ;;  %v12628_v4 = vld [vmem:[#allocation74_spill] sm:$0xff] }
 0x94e   :  { %8529 = vmatprep.subr.bf16.mxu1 %v12598_v49  ;;  %v5888_v49 = vpack.c.b16 %v5862_v44, %v5862_v44  ;;  %v12635_v44 = vld [vmem:[#allocation81_spill] sm:$0xff] }
 0x950   :  { %6063 = vmatmul.mubr.bf16.vlgmr.msra.gmra.mrb[112].mxu1 %v5884_v61  ;;  %v12611_v61 = vld [vmem:[#allocation57_spill] sm:$0xff] }
 0x951   :  { %8530 = vmatpush3.bf16.msra.mxu1 %v12599_v52  ;;  %6142 = vmatprep.mubr.bf16.mxu1 %v5889_v16  ;;  %v5877_v16 = vsel %vm565_vm0, %v5876_v2, %v5875_v42  ;;  %v5636_v52 = vunpack.c.l.bf16 %v11782_v54  ;;  %v5716_v54 = vmul.f32 %v5684_v39, %v5652_v59  ;;  %v12629_v42 = vld [vmem:[#allocation75_spill] sm:$0xff]  ;;  %v12630_v2 = vld [vmem:[#allocation76_spill] sm:$0xff] }
 0x952   :  { %8531 = vmatprep.subr.bf16.mxu1 %v12600_v50  ;;  %v5893_v53 = vpack.c.b16 %v5877_v16, %v5877_v16  ;;  %v12615_v50 = vld [vmem:[#allocation61_spill] sm:$0xff]  ;;  %v12638_v16 = vld [vmem:[#allocation84_spill] sm:$0xff]  ;;  %v9581_v39 = vld [vmem:[#allocation5 + $0x38] sm:$0xff]  }
 0x953   :  { %v5668_v46 = vmax.f32 %v5636_v52, 1e-06  ;;  %v5748_v36 = vpack.c.bf16 %v5716_v54, %v5716_v54 }
 0x955   :  { %8532 = vmatpush3.bf16.msra.mxu1 %v12601_v60  ;;  %v12616_v60 = vld [vmem:[#allocation62_spill] sm:$0xff] }
 0x956   :  { %8533 = vmatprep.subr.bf16.mxu1 %v12602_v62  ;;  %v5700_v62 = vmul.f32 %v5668_v46, %v5668_v46 }
 0x958   :  { %v5732_v13 = vmul.f32 %v5700_v62, %v5668_v46  ;;  %v9582_v62 = vld [vmem:[#allocation5 + $0x140] sm:$0xff]  }
 0x959   :  { %8534 = vmatpush3.bf16.msra.mxu1 %v12603_v34  ;;  %v12620_v34 = vld [vmem:[#allocation66_spill] sm:$0xff] }
 0x95a   :  { %8535 = vmatprep.subr.bf16.mxu1 %v12604_v9  ;;  %v5764_v9 = vpack.c.bf16 %v5732_v13, %v5732_v13 }
 0x95c   :  { %v5828_v10 = vunpack.c.l.b16 %v5764_v9 }
 0x95d   :  { %8536 = vmatpush3.bf16.msra.mxu1 %v12605_v12  ;;  %v5812_v12 = vunpack.c.l.b16 %v5748_v36 }
 0x95e   :  { %8537 = vmatprep.subr.bf16.mxu1 %v12606_v6  ;;  %v12625_v6 = vld [vmem:[#allocation71_spill] sm:$0xff]  ;;  %v5873_v48 = vrot.slane %v5828_v10, 5 }
 0x95f   :  { %v5872_v26 = vrot.slane %v5812_v12, 6  ;;  %v9134_v10 = vld [vmem:[#allocation7 + $0x180] sm:$0xff]  }
 0x960   :  { %8910 = vmatpush3.bf16.msra.mxu0 %v9134_v10 }
 0x961   :  { %8538 = vmatpush3.bf16.msra.mxu1 %v12607_v41  ;;  %v12626_v41 = vld [vmem:[#allocation72_spill] sm:$0xff]  ;;  %8911 = vmatprep.subr.bf16.mxu0 %v12186_v33 }
 0x962   :  { %8539 = vmatprep.subr.bf16.mxu1 %v12608_v28  ;;  %v8435_v7 = vpop.f32.mrb[108].mxu0 }
 0x963   :  { %v8436_v22 = vpop.f32.mrb[109].mxu0 }
 0x964   :  { %v11802_v38 = vadd.f32 %v8436_v22, %v8435_v7  ;;  %v8438_v31 = vpop.f32.mrb[110].mxu0  ;;  %v12631_v7 = vld [vmem:[#allocation77_spill] sm:$0xff]  ;;  %v12632_v22 = vld [vmem:[#allocation78_spill] sm:$0xff] }
 0x965   :  { %8540 = vmatpush3.bf16.msra.mxu1 %v12609_v20  ;;  %v8439_v11 = vpop.f32.mrb[111].mxu0  ;;  %v5874_v20 = vsel %vm565_vm0, %v5873_v48, %v5872_v26  ;;  %v12633_v31 = vld [vmem:[#allocation79_spill] sm:$0xff] }
 0x966   :  { %8541 = vmatprep.subr.bf16.mxu1 %v12610_v58  ;;  %v5892_v58 = vpack.c.b16 %v5874_v20, %v5874_v20  ;;  %v12636_v11 = vld [vmem:[#allocation82_spill] sm:$0xff]  ;;  %v9138_v48 = vld [vmem:[#allocation7 + $0x1a0] sm:$0xff]  }
 0x967   :  { %v9137_v26 = vld [vmem:[#allocation7 + $0x198] sm:$0xff]  }
 0x969   :  { %8542 = vmatpush3.bf16.msra.mxu1 %v12611_v61  ;;  %v12634_v61 = vld [vmem:[#allocation80_spill] sm:$0xff] }
 0x96a   :  { %8543 = vmatprep.subr.bf16.mxu1 %v12612_v17  ;;  %v12637_v17 = vld [vmem:[#allocation83_spill] sm:$0xff] }
 0x96d   :  { %8544 = vmatpush3.bf16.msra.mxu1 %v12613_v47  ;;  %v12640_v47 = vld [vmem:[#allocation86_spill] sm:$0xff] }
 0x96e   :  { %8573 = vmatprep.subr.bf16.mxu1 %v12614_v35 }
 0x970   :  { %6143 = vmatmul.mubr.bf16.vlgmr.msra.gmra.mrb[116].mxu1 %v5888_v49  ;;  %v12639_v49 = vld [vmem:[#allocation85_spill] sm:$0xff] }
 0x971   :  { %8574 = vmatpush3.bf16.msra.mxu1 %v12615_v50  ;;  %6222 = vmatprep.mubr.bf16.mxu1 %v5893_v53  ;;  %v12642_v53 = vld [vmem:[#allocation88_spill] sm:$0xff] }
 0x972   :  { %8575 = vmatprep.subr.bf16.mxu1 %v12616_v60  ;;  %v9579_v60 = vld [vmem:[#allocation5 + $0x30] sm:$0xff]  }
 0x975   :  { %8576 = vmatpush3.bf16.msra.mxu1 %v12617_v3  ;;  %v9580_v3 = vld [vmem:[#allocation5 + $0x78] sm:$0xff]  }
 0x976   :  { %8577 = vmatprep.subr.bf16.mxu1 %v12618_v15 }
 0x979   :  { %8578 = vmatpush3.bf16.msra.mxu1 %v12619_v23 }
 0x97a   :  { %8579 = vmatprep.subr.bf16.mxu1 %v12620_v34 }
 0x97d   :  { %8580 = vmatpush3.bf16.msra.mxu1 %v12621_v1  ;;  %v5481_v1 = vld [vmem:[#allocation8] sm:$0x3] }
 0x97e   :  { %8581 = vmatprep.subr.bf16.mxu1 %v12622_v25 }
 0x981   :  { %8582 = vmatpush3.bf16.msra.mxu1 %v12623_v55 }
 0x982   :  { %8583 = vmatprep.subr.bf16.mxu1 %v12624_v40  ;;  %v8479_v51 = vpop.f32.mrb[112].mxu0  ;;  %v9135_v40 = vld [vmem:[#allocation7 + $0x188] sm:$0xff]  }
 0x983   :  { %v8480_v8 = vpop.f32.mrb[113].mxu0  ;;  %8912 = vmatpush3.bf16.msra.mxu0 %v9135_v40 }
 0x984   :  { %v11824_v28 = vadd.f32 %v8480_v8, %v8479_v51  ;;  %v8482_v56 = vpop.f32.mrb[114].mxu0  ;;  %8913 = vmatprep.subr.bf16.mxu0 %v12186_v33  ;;  %v6353_v51 = vld [vmem:[#allocation2 + $0x40] sm:$0x88] }
 0x985   :  { %8584 = vmatpush3.bf16.msra.mxu1 %v12625_v6  ;;  %v8483_v43 = vpop.f32.mrb[115].mxu0  ;;  %v9136_v6 = vld [vmem:[#allocation7 + $0x190] sm:$0xff]   ;;  %v6378_v56 = vunpack.c.h.bf16 %v6353_v51 }
 0x986   :  { %8585 = vmatprep.subr.bf16.mxu1 %v12626_v41  ;;  %v6345_v41 = vld [vmem:[#allocation2] sm:$0x88]  ;;  %v6377_v43 = vunpack.c.l.bf16 %v6353_v51  ;;  %v9586_v51 = vld [vmem:[#allocation5 + $0x108] sm:$0xff]  }
 0x987   :  { %8914 = vmatpush3.bf16.msra.mxu0 %v9136_v6  ;;  %v6362_v8 = vunpack.c.h.bf16 %v6345_v41  ;;  %v6361_v20 = vunpack.c.l.bf16 %v6345_v41  ;;  %v9585_v41 = vld [vmem:[#allocation5 + $0x148] sm:$0xff]  }
 0x988   :  { %8915 = vmatprep.subr.bf16.mxu0 %v12186_v33 }
 0x989   :  { %8586 = vmatpush3.bf16.msra.mxu1 %v12627_v0  ;;  %v9139_v0 = vld [vmem:[#allocation7 + $0x1a8] sm:$0xff]  }
 0x98a   :  { %8587 = vmatprep.subr.bf16.mxu1 %v12628_v4  ;;  %v6394_v4 = vmax.f32 %v6362_v8, 1e-06  ;;  %v9588_v8 = vld [vmem:[#allocation5 + $0x110] sm:$0xff]  }
 0x98b   :  { %8916 = vmatpush3.bf16.msra.mxu0 %v9137_v26 }
 0x98c   :  { %8917 = vmatprep.subr.bf16.mxu0 %v12186_v33 }
 0x98d   :  { %8588 = vmatpush3.bf16.msra.mxu1 %v12629_v42  ;;  %v9140_v42 = vld [vmem:[#allocation7 + $0x1b0] sm:$0xff]  }
 0x98e   :  { %8604 = vmatprep.subr.bf16.mxu1 %v12630_v2  ;;  %v6393_v2 = vmax.f32 %v6361_v20, 1e-06  ;;  %v9590_v20 = vld [vmem:[#allocation5 + $0x118] sm:$0xff]  }
 0x98f   :  { %8918 = vmatpush3.bf16.msra.mxu0 %v9138_v48  ;;  %v9584_v48 = vld [vmem:[#allocation5 + $0x100] sm:$0xff]  }
 0x990   :  { %6223 = vmatmul.mubr.bf16.vlgmr.msra.gmra.mrb[120].mxu1 %v5892_v58  ;;  %8919 = vmatprep.subr.bf16.mxu0 %v12186_v33  ;;  %v6410_v58 = vmax.f32 %v6378_v56, 1e-06  ;;  %v9589_v56 = vld [vmem:[#allocation5 + $0x158] sm:$0xff]  }
 0x991   :  { %8605 = vmatpush3.bf16.msra.mxu1 %v12631_v7  ;;  %v6409_v7 = vmax.f32 %v6377_v43, 1e-06 }
 0x992   :  { %8606 = vmatprep.subr.bf16.mxu1 %v12632_v22  ;;  %v6426_v22 = vmul.f32 %v6394_v4, %v6394_v4 }
 0x993   :  { %8920 = vmatpush3.bf16.msra.mxu0 %v9139_v0  ;;  %v6355_v0 = vld [vmem:[#allocation2 + $0x50] sm:$0x88] }
 0x994   :  { %8921 = vmatprep.subr.bf16.mxu0 %v12186_v33 }
 0x995   :  { %8607 = vmatpush3.bf16.msra.mxu1 %v12633_v31  ;;  %v6442_v31 = vmul.f32 %v6410_v58, %v6410_v58 }
 0x996   :  { %8608 = vmatprep.subr.bf16.mxu1 %v12634_v61  ;;  %v6425_v61 = vmul.f32 %v6393_v2, %v6393_v2 }
 0x997   :  { %8922 = vmatpush3.bf16.msra.mxu0 %v9140_v42 }
 0x998   :  { %8923 = vmatprep.subr.bf16.mxu0 %v12186_v33 }
 0x999   :  { %8609 = vmatpush3.bf16.msra.mxu1 %v12635_v44  ;;  %v6441_v44 = vmul.f32 %v6409_v7, %v6409_v7 }
 0x99a   :  { %8610 = vmatprep.subr.bf16.mxu1 %v12636_v11  ;;  %v6458_v11 = vmul.f32 %v6426_v22, %v6394_v4  ;;  %v6382_v4 = vunpack.c.h.bf16 %v6355_v0 }
 0x99c   :  { %v6414_v22 = vmax.f32 %v6382_v4, 1e-06  ;;  %v9600_v4 = vld [vmem:[#allocation5 + $0x200] sm:$0xff]  }
 0x99d   :  { %8611 = vmatpush3.bf16.msra.mxu1 %v12637_v17  ;;  %v6474_v17 = vmul.f32 %v6442_v31, %v6410_v58  ;;  %v9591_v58 = vld [vmem:[#allocation5 + $0x160] sm:$0xff]  }
 0x99e   :  { %8612 = vmatprep.subr.bf16.mxu1 %v12638_v16  ;;  %v9141_v16 = vld [vmem:[#allocation7 + $0x1b8] sm:$0xff]  }
 0x99f   :  { %8924 = vmatpush3.bf16.msra.mxu0 %v9141_v16  ;;  %v9593_v16 = vld [vmem:[#allocation5 + $0x168] sm:$0xff]  }
 0x9a1   :  { %8613 = vmatpush3.bf16.msra.mxu1 %v12639_v49  ;;  %v6457_v49 = vmul.f32 %v6425_v61, %v6393_v2  ;;  %v6381_v2 = vunpack.c.l.bf16 %v6355_v0  ;;  %v9598_v0 = vld [vmem:[#allocation5 + $0x138] sm:$0xff]  }
 0x9a2   :  { %8614 = vmatprep.subr.bf16.mxu1 %v12640_v47  ;;  %v8523_v52 = vpop.f32.mrb[116].mxu0  ;;  %v6473_v47 = vmul.f32 %v6441_v44, %v6409_v7  ;;  %v9592_v44 = vld [vmem:[#allocation5 + $0x120] sm:$0xff]  }
 0x9a3   :  { %v8524_v35 = vpop.f32.mrb[117].mxu0  ;;  %v6413_v61 = vmax.f32 %v6381_v2, 1e-06  ;;  %v9604_v2 = vld [vmem:[#allocation5 + $0x210] sm:$0xff]  }
 0x9a4   :  { %v11843_v50 = vadd.f32 %v8524_v35, %v8523_v52  ;;  %v8526_v59 = vpop.f32.mrb[118].mxu0  ;;  %v6506_v52 = vpack.c.bf16 %v6474_v17, %v6474_v17  ;;  %v6489_v35 = vpack.c.bf16 %v6457_v49, %v6457_v49  ;;  %v6446_v17 = vmul.f32 %v6414_v22, %v6414_v22 }
 0x9a5   :  { %8615 = vmatpush3.bf16.msra.mxu1 %v12641_v37  ;;  %v8527_v46 = vpop.f32.mrb[119].mxu0  ;;  %v6490_v37 = vpack.c.bf16 %v6458_v11, %v6458_v11  ;;  %v6505_v59 = vpack.c.bf16 %v6473_v47, %v6473_v47  ;;  %v6445_v47 = vmul.f32 %v6413_v61, %v6413_v61 }
 0x9a6   :  { %8616 = vmatprep.subr.bf16.mxu1 %v12642_v53 }
 0x9a9   :  { %8617 = vmatpush3.bf16.msra.mxu1 %v9579_v60  ;;  %v6554_v60 = vunpack.c.l.b16 %v6490_v37 }
 0x9aa   :  { %8618 = vmatprep.subr.bf16.mxu1 %v9580_v3  ;;  %v6570_v3 = vunpack.c.l.b16 %v6506_v52  ;;  %v6478_v52 = vmul.f32 %v6446_v17, %v6414_v22  ;;  %v6357_v22 = vld [vmem:[#allocation2 + $0x60] sm:$0x88] }
 0x9ad   :  { %8619 = vmatpush3.bf16.msra.mxu1 %v9581_v39 }
 0x9ae   :  { %8648 = vmatprep.subr.bf16.mxu1 %v9582_v62 }
 0x9c2   :  { %v8567_v15 = vpop.f32.mrb[120].mxu0 }
 0x9c3   :  { %v8568_v23 = vpop.f32.mrb[121].mxu0 }
 0x9c4   :  { %v11845_v54 = vadd.f32 %v8568_v23, %v8567_v15  ;;  %v8570_v13 = vpop.f32.mrb[122].mxu0  ;;  %v6553_v15 = vunpack.c.l.b16 %v6489_v35  ;;  %v6569_v23 = vunpack.c.l.b16 %v6505_v59  ;;  %v6477_v35 = vmul.f32 %v6445_v47, %v6413_v61  ;;  %v9594_v59 = vld [vmem:[#allocation5 + $0x128] sm:$0xff]  }
 0x9c5   :  { %v8571_v34 = vpop.f32.mrb[123].mxu0 }
 0x9c6   :  { %v9583_v34 = vld [vmem:[#allocation5 + $0xc0] sm:$0xff]  }
 0x9c7   :  { %8626 = vmatprep.subr.bf16.mxu0 %v9583_v34 }
 0x9e3   :  { %v5582_v36 = vpop.f32.mrb[104].mxu1 }
 0x9e4   :  { %v5588_v9 = vadd.f32 %v5582_v36, %v5481_v1  ;;  %v8907_v25 = vpop.f32.mrb[105].mxu1  ;;  %v6588_v1 = vrot.slane %v6554_v60, 7  ;;  %v6589_v36 = vrot.slane %v6570_v3, 6  ;;  %v6510_v60 = vpack.c.bf16 %v6478_v52, %v6478_v52  ;;  %v9595_v3 = vld [vmem:[#allocation5 + $0x170] sm:$0xff]  }
 0x9e5   :  { %v5585_v55 = vpop.f32.mrb[106].mxu1  ;;  %v6585_v25 = vrot.slane %v6553_v15, 7 }
 0x9e6   :  { %5589 = vst [vmem:[#allocation8] sm:$0x3] %v5588_v9  ;;  %v8908_v12 = vpop.f32.mrb[107].mxu1  ;;  %v6586_v55 = vrot.slane %v6569_v23, 6 }
 0x9e7   :  { %v6590_v12 = vsel %vm565_vm0, %v6589_v36, %v6588_v1 }
 0x9e8   :  { %v6634_v40 = vpack.c.b16 %v6590_v12, %v6590_v12  ;;  %v6587_v6 = vsel %vm565_vm0, %v6586_v55, %v6585_v25  ;;  %v9596_v55 = vld [vmem:[#allocation5 + $0x130] sm:$0xff]  }
 0x9e9   :  { %v6633_v26 = vpack.c.b16 %v6587_v6, %v6587_v6 }
 0x9ea   :  { %6697 = vmatprep.mubr.bf16.mxu1 %v6634_v40 }
 0x9eb   :  { %6698 = vmatmul.mubr.bf16.vlgmr.msra.gmra.mrb[124].mxu1 %v6633_v26  ;;  %v9597_v26 = vld [vmem:[#allocation5 + $0x178] sm:$0xff]  }
 0x9ec   :  { %8649 = vmatpush3.bf16.msra.mxu1 %v9584_v48 }
 0x9ed   :  { %8650 = vmatprep.subr.bf16.mxu1 %v9585_v41 }
 0x9f0   :  { %8651 = vmatpush3.bf16.msra.mxu1 %v9586_v51 }
 0xa03   :  { %v8457_v53 = vpop.f32.mrb[108].mxu1 }
 0xa04   :  { %v8458_v46 = vpop.f32.mrb[109].mxu1 }
 0xa05   :  { %v8459_v39 = vadd.f32 %v8458_v46, %v8457_v53  ;;  %v8460_v62 = vpop.f32.mrb[110].mxu1 }
 0xa06   :  { %v8461_v13 = vpop.f32.mrb[111].mxu1  ;;  %v6509_v62 = vpack.c.bf16 %v6477_v35, %v6477_v35 }
 0xa07   :  { %v5985_v9 = vadd.f32 %v8459_v39, %v11802_v38  ;;  %v9587_v38 = vld [vmem:[#allocation5 + $0x150] sm:$0xff]   ;;  %v6574_v13 = vunpack.c.l.b16 %v6510_v60 }
 0xa08   :  { %8652 = vmatprep.subr.bf16.mxu1 %v9587_v38  ;;  %v6573_v36 = vunpack.c.l.b16 %v6509_v62 }
 0xa09   :  { %v11857_v10 = vadd.f32 %v11824_v28, %v5985_v9  ;;  %8653 = vmatpush3.bf16.msra.mxu1 %v9588_v8  ;;  %v6347_v28 = vld [vmem:[#allocation2 + $0x10] sm:$0x88]  ;;  %v6601_v40 = vrot.slane %v6574_v13, 6  ;;  %v9610_v13 = vld [vmem:[#allocation5 + $0x228] sm:$0xff]  }
 0xa0a   :  { %8654 = vmatprep.subr.bf16.mxu1 %v9589_v56  ;;  %v6366_v43 = vunpack.c.h.bf16 %v6347_v28  ;;  %v6365_v42 = vunpack.c.l.bf16 %v6347_v28  ;;  %v6598_v41 = vrot.slane %v6573_v36, 6  ;;  %v9611_v36 = vld [vmem:[#allocation5 + $0x270] sm:$0xff]  }
 0xa0c   :  { %v6398_v7 = vmax.f32 %v6366_v43, 1e-06  ;;  %v6397_v31 = vmax.f32 %v6365_v42, 1e-06  ;;  %v9599_v43 = vld [vmem:[#allocation5 + $0x240] sm:$0xff]   ;;  %v9603_v42 = vld [vmem:[#allocation5 + $0x250] sm:$0xff]  }
 0xa0d   :  { %8655 = vmatpush3.bf16.msra.mxu1 %v9590_v20 }
 0xa0e   :  { %8656 = vmatprep.subr.bf16.mxu1 %v9591_v58  ;;  %v6430_v11 = vmul.f32 %v6398_v7, %v6398_v7  ;;  %v6429_v49 = vmul.f32 %v6397_v31, %v6397_v31  ;;  %v9601_v58 = vld [vmem:[#allocation5 + $0x248] sm:$0xff]  }
 0xa10   :  { %v6462_v37 = vmul.f32 %v6430_v11, %v6398_v7  ;;  %v6461_v53 = vmul.f32 %v6429_v49, %v6397_v31  ;;  %v9605_v7 = vld [vmem:[#allocation5 + $0x258] sm:$0xff]   ;;  %v9607_v11 = vld [vmem:[#allocation5 + $0x260] sm:$0xff]  }
 0xa11   :  { %8657 = vmatpush3.bf16.msra.mxu1 %v9592_v44  ;;  %v9606_v31 = vld [vmem:[#allocation5 + $0x218] sm:$0xff]   ;;  %v6386_v44 = vunpack.c.h.bf16 %v6357_v22 }
 0xa12   :  { %8658 = vmatprep.subr.bf16.mxu1 %v9593_v16  ;;  %v6494_v46 = vpack.c.bf16 %v6462_v37, %v6462_v37  ;;  %v6493_v39 = vpack.c.bf16 %v6461_v53, %v6461_v53  ;;  %v6385_v16 = vunpack.c.l.bf16 %v6357_v22  ;;  %v9608_v53 = vld [vmem:[#allocation5 + $0x220] sm:$0xff]  }
 0xa13   :  { %v6418_v47 = vmax.f32 %v6386_v44, 1e-06  ;;  %v9617_v44 = vld [vmem:[#allocation5 + $0x348] sm:$0xff]  }
 0xa14   :  { %v6558_v23 = vunpack.c.l.b16 %v6494_v46  ;;  %v6557_v1 = vunpack.c.l.b16 %v6493_v39  ;;  %v6417_v52 = vmax.f32 %v6385_v16, 1e-06  ;;  %v9609_v46 = vld [vmem:[#allocation5 + $0x268] sm:$0xff]  }
 0xa15   :  { %8659 = vmatpush3.bf16.msra.mxu1 %v9594_v59  ;;  %v6450_v59 = vmul.f32 %v6418_v47, %v6418_v47 }
 0xa16   :  { %8660 = vmatprep.subr.bf16.mxu1 %v9595_v3  ;;  %v6600_v12 = vrot.slane %v6558_v23, 7  ;;  %v6597_v48 = vrot.slane %v6557_v1, 7  ;;  %v6449_v3 = vmul.f32 %v6417_v52, %v6417_v52 }
 0xa17   :  { %v6482_v62 = vmul.f32 %v6450_v59, %v6418_v47 }
 0xa18   :  { %v6602_v38 = vsel %vm565_vm0, %v6601_v40, %v6600_v12  ;;  %v6599_v56 = vsel %vm565_vm0, %v6598_v41, %v6597_v48  ;;  %v6481_v23 = vmul.f32 %v6449_v3, %v6417_v52 }
 0xa19   :  { %8661 = vmatpush3.bf16.msra.mxu1 %v9596_v55  ;;  %v6638_v8 = vpack.c.b16 %v6602_v38, %v6602_v38  ;;  %v6637_v20 = vpack.c.b16 %v6599_v56, %v6599_v56  ;;  %v6514_v1 = vpack.c.bf16 %v6482_v62, %v6482_v62  ;;  %v9612_v38 = vld [vmem:[#allocation5 + $0x230] sm:$0xff]  }
 0xa1a   :  { %8662 = vmatprep.subr.bf16.mxu1 %v9597_v26 }
 0xa1b   :  { %6777 = vmatprep.mubr.bf16.mxu1 %v6638_v8  ;;  %v6578_v40 = vunpack.c.l.b16 %v6514_v1 }
 0xa1d   :  { %8663 = vmatpush3.bf16.msra.mxu1 %v9598_v0  ;;  %v6613_v56 = vrot.slane %v6578_v40, 6 }
 0xa1e   :  { %8692 = vmatprep.subr.bf16.mxu1 %v9599_v43 }
 0xa20   :  { %6778 = vmatmul.mubr.bf16.vlgmr.msra.gmra.mrb[128].mxu1 %v6637_v20  ;;  %v9613_v20 = vld [vmem:[#allocation5 + $0x278] sm:$0xff]  }
 0xa21   :  { %8693 = vmatpush3.bf16.msra.mxu1 %v9600_v4 }
 0xa22   :  { %8694 = vmatprep.subr.bf16.mxu1 %v9601_v58 }
 0xa23   :  { %v8501_v15 = vpop.f32.mrb[112].mxu1 }
 0xa24   :  { %v8502_v34 = vpop.f32.mrb[113].mxu1 }
 0xa25   :  { %v8503_v9 = vadd.f32 %v8502_v34, %v8501_v15  ;;  %v8504_v25 = vpop.f32.mrb[114].mxu1 }
 0xa26   :  { %v8505_v6 = vpop.f32.mrb[115].mxu1  ;;  %v6513_v25 = vpack.c.bf16 %v6481_v23, %v6481_v23 }
 0xa27   :  { %v6065_v51 = vadd.f32 %v8503_v9, %v11857_v10  ;;  %v9602_v10 = vld [vmem:[#allocation5 + $0x208] sm:$0xff]  }
 0xa28   :  { %8695 = vmatpush3.bf16.msra.mxu1 %v9602_v10  ;;  %v6577_v48 = vunpack.c.l.b16 %v6513_v25 }
 0xa29   :  { %v11864_v28 = vadd.f32 %v11843_v50, %v6065_v51  ;;  %8696 = vmatprep.subr.bf16.mxu1 %v9603_v42  ;;  %v6349_v50 = vld [vmem:[#allocation2 + $0x20] sm:$0x88] }
 0xa2a   :  { %v6370_v61 = vunpack.c.h.bf16 %v6349_v50  ;;  %v6369_v17 = vunpack.c.l.bf16 %v6349_v50  ;;  %v6610_v4 = vrot.slane %v6577_v48, 6  ;;  %v9614_v50 = vld [vmem:[#allocation5 + $0x238] sm:$0xff]  }
 0xa2c   :  { %8697 = vmatpush3.bf16.msra.mxu1 %v9604_v2  ;;  %v6402_v49 = vmax.f32 %v6370_v61, 1e-06  ;;  %v6401_v37 = vmax.f32 %v6369_v17, 1e-06  ;;  %v9616_v61 = vld [vmem:[#allocation5 + $0x300] sm:$0xff]  }
 0xa2d   :  { %8698 = vmatprep.subr.bf16.mxu1 %v9605_v7 }
 0xa2e   :  { %v6434_v35 = vmul.f32 %v6402_v49, %v6402_v49  ;;  %v6433_v60 = vmul.f32 %v6401_v37, %v6401_v37 }
 0xa30   :  { %8699 = vmatpush3.bf16.msra.mxu1 %v9606_v31  ;;  %v6466_v39 = vmul.f32 %v6434_v35, %v6402_v49  ;;  %v6465_v15 = vmul.f32 %v6433_v60, %v6401_v37  ;;  %v9615_v31 = vld [vmem:[#allocation5 + $0x340] sm:$0xff]  }
 0xa31   :  { %8700 = vmatprep.subr.bf16.mxu1 %v9607_v11 }
 0xa32   :  { %v6498_v34 = vpack.c.bf16 %v6466_v39, %v6466_v39  ;;  %v6497_v9 = vpack.c.bf16 %v6465_v15, %v6465_v15 }
 0xa34   :  { %8701 = vmatpush3.bf16.msra.mxu1 %v9608_v53  ;;  %v6562_v12 = vunpack.c.l.b16 %v6498_v34  ;;  %v6561_v26 = vunpack.c.l.b16 %v6497_v9 }
 0xa35   :  { %8702 = vmatprep.subr.bf16.mxu1 %v9609_v46 }
 0xa36   :  { %v6612_v8 = vrot.slane %v6562_v12, 7  ;;  %v6609_v43 = vrot.slane %v6561_v26, 7 }
 0xa38   :  { %8703 = vmatpush3.bf16.msra.mxu1 %v9610_v13  ;;  %v6614_v10 = vsel %vm565_vm0, %v6613_v56, %v6612_v8  ;;  %v6611_v2 = vsel %vm565_vm0, %v6610_v4, %v6609_v43  ;;  %v6346_v13 = vld [vmem:[#allocation2 + $0x8] sm:$0x88] }
 0xa39   :  { %8704 = vmatprep.subr.bf16.mxu1 %v9611_v36  ;;  %v6642_v42 = vpack.c.b16 %v6614_v10, %v6614_v10  ;;  %v6641_v22 = vpack.c.b16 %v6611_v2, %v6611_v2 }
 0xa3b   :  { %6857 = vmatprep.mubr.bf16.mxu1 %v6642_v42 }
 0xa3c   :  { %8705 = vmatpush3.bf16.msra.mxu1 %v9612_v38 }
 0xa3d   :  { %8706 = vmatprep.subr.bf16.mxu1 %v9613_v20 }
 0xa40   :  { %8707 = vmatpush3.bf16.msra.mxu1 %v9614_v50 }
 0xa41   :  { %8736 = vmatprep.subr.bf16.mxu1 %v9615_v31 }
 0xa43   :  { %v8545_v55 = vpop.f32.mrb[116].mxu1  ;;  %6858 = vmatmul.mubr.bf16.vlgmr.msra.gmra.mrb[132].mxu1 %v6641_v22 }
 0xa44   :  { %v8546_v6 = vpop.f32.mrb[117].mxu1  ;;  %8737 = vmatpush3.bf16.msra.mxu1 %v9616_v61 }
 0xa45   :  { %v8547_v41 = vadd.f32 %v8546_v6, %v8545_v55  ;;  %v8548_v51 = vpop.f32.mrb[118].mxu1  ;;  %8738 = vmatprep.subr.bf16.mxu1 %v9617_v44  ;;  %v6364_v6 = vunpack.c.h.bf16 %v6346_v13  ;;  %v11889_v44 = vld [vmem:[#allocation2 + $0x18] sm:$0x88] }
 0xa46   :  { %v8549_v0 = vpop.f32.mrb[119].mxu1 }
 0xa47   :  { %v6145_v58 = vadd.f32 %v8547_v41, %v11864_v28  ;;  %v6359_v28 = vld [vmem:[#allocation2 + $0x70] sm:$0x88] }
 0xa48   :  { %8739 = vmatpush3.bf16.msra.mxu1 %v11686_v29  ;;  %v6390_v17 = vunpack.c.h.bf16 %v6359_v28  ;;  %v6389_v49 = vunpack.c.l.bf16 %v6359_v28 }
 0xa49   :  { %v6185_v7 = vadd.f32 %v11845_v54, %v6145_v58  ;;  %8740 = vmatprep.subr.bf16.mxu1 %v11689_v32  ;;  %v6351_v54 = vld [vmem:[#allocation2 + $0x30] sm:$0x88] }
 0xa4a   :  { %v6374_v11 = vunpack.c.h.bf16 %v6351_v54  ;;  %v6373_v16 = vunpack.c.l.bf16 %v6351_v54  ;;  %v6422_v37 = vmax.f32 %v6390_v17, 1e-06  ;;  %v6421_v29 = vmax.f32 %v6389_v49, 1e-06  ;;  %v11891_v54 = vld [vmem:[#allocation2 + $0x58] sm:$0x88] }
 0xa4c   :  { %8741 = vmatpush3.bf16.msra.mxu1 %v11692_v5  ;;  %v6406_v47 = vmax.f32 %v6374_v11, 1e-06  ;;  %v6405_v52 = vmax.f32 %v6373_v16, 1e-06  ;;  %v6454_v5 = vmul.f32 %v6422_v37, %v6422_v37  ;;  %v6453_v53 = vmul.f32 %v6421_v29, %v6421_v29 }
 0xa4d   :  { %8742 = vmatprep.subr.bf16.mxu1 %v11695_v63  ;;  %v6363_v11 = vunpack.c.l.bf16 %v6346_v13  ;;  %v9624_v13 = vld [vmem:[#allocation5 + $0x98] sm:$0xff]  }
 0xa4e   :  { %v6438_v32 = vmul.f32 %v6406_v47, %v6406_v47  ;;  %v6437_v63 = vmul.f32 %v6405_v52, %v6405_v52  ;;  %v6485_v46 = vmul.f32 %v6453_v53, %v6421_v29 }
 0xa4f   :  { %v6395_v29 = vmax.f32 %v6363_v11, 1e-06 }
 0xa50   :  { %8743 = vmatpush3.bf16.msra.mxu1 %v11698_v19  ;;  %v6470_v35 = vmul.f32 %v6438_v32, %v6406_v47  ;;  %v6486_v19 = vmul.f32 %v6454_v5, %v6422_v37  ;;  %v6469_v59 = vmul.f32 %v6437_v63, %v6405_v52  ;;  %v6517_v39 = vpack.c.bf16 %v6485_v46, %v6485_v46  ;;  %v9618_v52 = vld [vmem:[#allocation5 + $0x80] sm:$0xff]   ;;  %v9619_v5 = vld [vmem:[#allocation5 + $0xc8] sm:$0xff]   ;;  %v9621_v46 = vld [vmem:[#allocation5 + $0xd0] sm:$0xff]  }
 0xa51   :  { %8744 = vmatprep.subr.bf16.mxu1 %v11701_v57  ;;  %v6368_v47 = vunpack.c.h.bf16 %v11889_v44  ;;  %v6384_v37 = vunpack.c.h.bf16 %v11891_v54 }
 0xa52   :  { %v6502_v57 = vpack.c.bf16 %v6470_v35, %v6470_v35  ;;  %v6518_v60 = vpack.c.bf16 %v6486_v19, %v6486_v19  ;;  %v6501_v3 = vpack.c.bf16 %v6469_v59, %v6469_v59  ;;  %v6581_v1 = vunpack.c.l.b16 %v6517_v39  ;;  %v9620_v35 = vld [vmem:[#allocation5 + $0x88] sm:$0xff]  }
 0xa53   :  { %v6400_v63 = vmax.f32 %v6368_v47, 1e-06  ;;  %v6416_v53 = vmax.f32 %v6384_v37, 1e-06  ;;  %v6427_v19 = vmul.f32 %v6395_v29, %v6395_v29  ;;  %v9638_v37 = vld [vmem:[#allocation5 + $0x190] sm:$0xff]  }
 0xa54   :  { %8745 = vmatpush3.bf16.msra.mxu1 %v11704_v30  ;;  %v6566_v30 = vunpack.c.l.b16 %v6502_v57  ;;  %v6582_v15 = vunpack.c.l.b16 %v6518_v60  ;;  %v6565_v34 = vunpack.c.l.b16 %v6501_v3  ;;  %v6622_v12 = vrot.slane %v6581_v1, 6  ;;  %v9622_v3 = vld [vmem:[#allocation5 + $0x90] sm:$0xff]   ;;  %v9625_v1 = vld [vmem:[#allocation5 + $0xe0] sm:$0xff]  }
 0xa55   :  { %8746 = vmatprep.subr.bf16.mxu1 %v11707_v14  ;;  %v6354_v14 = vld [vmem:[#allocation2 + $0x48] sm:$0x88]  ;;  %v6432_v57 = vmul.f32 %v6400_v63, %v6400_v63  ;;  %v6448_v60 = vmul.f32 %v6416_v53, %v6416_v53  ;;  %v6459_v39 = vmul.f32 %v6427_v19, %v6395_v29 }
 0xa56   :  { %v6624_v25 = vrot.slane %v6566_v30, 7  ;;  %v6380_v26 = vunpack.c.h.bf16 %v6354_v14  ;;  %v6379_v17 = vunpack.c.l.bf16 %v6354_v14  ;;  %v9623_v30 = vld [vmem:[#allocation5 + $0xd8] sm:$0xff]  }
 0xa57   :  { %v6491_v14 = vpack.c.bf16 %v6459_v39, %v6459_v39 }
 0xa58   :  { %8747 = vmatpush3.bf16.msra.mxu1 %v11710_v24  ;;  %v6625_v24 = vrot.slane %v6582_v15, 6  ;;  %v6411_v32 = vmax.f32 %v6379_v17, 1e-06  ;;  %v6464_v15 = vmul.f32 %v6432_v57, %v6400_v63 }
 0xa59   :  { %8748 = vmatprep.subr.bf16.mxu1 %v11713_v21  ;;  %v6621_v21 = vrot.slane %v6565_v34, 7 }
 0xa5a   :  { %v6626_v48 = vsel %vm565_vm0, %v6625_v24, %v6624_v25  ;;  %v6443_v59 = vmul.f32 %v6411_v32, %v6411_v32  ;;  %v9626_v25 = vld [vmem:[#allocation5 + $0xa0] sm:$0xff]   ;;  %v6555_v24 = vunpack.c.l.b16 %v6491_v14 }
 0xa5b   :  { %v6646_v41 = vpack.c.b16 %v6626_v48, %v6626_v48  ;;  %v6623_v51 = vsel %vm565_vm0, %v6622_v12, %v6621_v21  ;;  %v9627_v21 = vld [vmem:[#allocation5 + $0xe8] sm:$0xff]  }
 0xa5c   :  { %8749 = vmatpush3.bf16.msra.mxu1 %v11716_v18  ;;  %v6645_v8 = vpack.c.b16 %v6623_v51, %v6623_v51  ;;  %v6396_v18 = vmax.f32 %v6364_v6, 1e-06  ;;  %v9628_v6 = vld [vmem:[#allocation5 + $0xa8] sm:$0xff]  }
 0xa5d   :  { %8750 = vmatprep.subr.bf16.mxu1 %v11719_v27  ;;  %6937 = vmatprep.mubr.bf16.mxu1 %v6646_v41  ;;  %v6412_v27 = vmax.f32 %v6380_v26, 1e-06  ;;  %v6591_v26 = vrot.slane %v6555_v24, 7  ;;  %v9629_v41 = vld [vmem:[#allocation5 + $0xf0] sm:$0xff]   ;;  %v9647_v24 = vld [vmem:[#allocation5 + $0x1f8] sm:$0xff]  }
 0xa5e   :  { %v6428_v56 = vmul.f32 %v6396_v18, %v6396_v18 }
 0xa5f   :  { %v6444_v0 = vmul.f32 %v6412_v27, %v6412_v27 }
 0xa60   :  { %8751 = vmatpush3.bf16.msra.mxu1 %v11725_v45  ;;  %v6460_v20 = vmul.f32 %v6428_v56, %v6396_v18 }
 0xa61   :  { %8929 = vmatprep.subr.bf16.mxu1 %v12186_v33  ;;  %v6476_v43 = vmul.f32 %v6444_v0, %v6412_v27  ;;  %v9631_v27 = vld [vmem:[#allocation5 + $0xf8] sm:$0xff]   ;;  %v11897_v0 = vld [vmem:[#allocation2 + $0x28] sm:$0x88] }
 0xa62   :  { %v6492_v10 = vpack.c.bf16 %v6460_v20, %v6460_v20  ;;  %v11899_v20 = vld [vmem:[#allocation2 + $0x68] sm:$0x88] }
 0xa63   :  { %v8589_v62 = vpop.f32.mrb[120].mxu1  ;;  %6938 = vmatmul.mubr.bf16.vlgmr.msra.gmra.mrb[136].mxu1 %v6645_v8  ;;  %v6508_v42 = vpack.c.bf16 %v6476_v43, %v6476_v43  ;;  %v9630_v8 = vld [vmem:[#allocation5 + $0xb0] sm:$0xff]  }
 0xa64   :  { %v8590_v23 = vpop.f32.mrb[121].mxu1  ;;  %8945 = vmatprep.mubr.msk.bf16.mxu1 %vm9782_vm1, %v12186_v33 }
 0xa65   :  { %v8591_v36 = vadd.f32 %v8590_v23, %v8589_v62  ;;  %v8592_v9 = vpop.f32.mrb[122].mxu1  ;;  %v6572_v50 = vunpack.c.l.b16 %v6508_v42  ;;  %v6475_v62 = vmul.f32 %v6443_v59, %v6411_v32  ;;  %v6480_v23 = vmul.f32 %v6448_v60, %v6416_v53  ;;  %v9639_v32 = vld [vmem:[#allocation5 + $0x1d8] sm:$0xff]   ;;  %v9641_v59 = vld [vmem:[#allocation5 + $0x1e0] sm:$0xff]  }
 0xa66   :  { %v8593_v55 = vpop.f32.mrb[123].mxu1  ;;  %v9640_v53 = vld [vmem:[#allocation5 + $0x198] sm:$0xff]   ;;  %v9642_v60 = vld [vmem:[#allocation5 + $0x1a0] sm:$0xff]  }
 0xa67   :  { %v6225_v40 = vadd.f32 %v8591_v36, %v6185_v7  ;;  %v6556_v7 = vunpack.c.l.b16 %v6492_v10  ;;  %v6595_v31 = vrot.slane %v6572_v50, 6  ;;  %v6507_v34 = vpack.c.bf16 %v6475_v62, %v6475_v62  ;;  %v9634_v50 = vld [vmem:[#allocation5 + $0x180] sm:$0xff]   ;;  %v9643_v62 = vld [vmem:[#allocation5 + $0x1e8] sm:$0xff]  }
 0xa68   :  { %v6496_v36 = vpack.c.bf16 %v6464_v15, %v6464_v15  ;;  %v6512_v9 = vpack.c.bf16 %v6480_v23, %v6480_v23  ;;  %v6383_v10 = vunpack.c.l.bf16 %v11891_v54  ;;  %v9644_v23 = vld [vmem:[#allocation5 + $0x1a8] sm:$0xff]  }
 0xa69   :  { %v6230_v38 = vmul.f32 0.0625, %v6225_v40  ;;  %v6594_v22 = vrot.slane %v6556_v7, 7  ;;  %v6571_v55 = vunpack.c.l.b16 %v6507_v34  ;;  %v6388_v7 = vunpack.c.h.bf16 %v11899_v20  ;;  %v9645_v34 = vld [vmem:[#allocation5 + $0x1f0] sm:$0xff]  }
 0xa6a   :  { %v6560_v12 = vunpack.c.l.b16 %v6496_v36  ;;  %v6576_v40 = vunpack.c.l.b16 %v6512_v9  ;;  %v9646_v9 = vld [vmem:[#allocation5 + $0x1b0] sm:$0xff]  }
 0xa6b   :  { %9174 = vlog2.f32 %v6230_v38  ;;  %v6596_v61 = vsel %vm565_vm0, %v6595_v31, %v6594_v22  ;;  %v6592_v48 = vrot.slane %v6571_v55, 6  ;;  %v6415_v31 = vmax.f32 %v6383_v10, 1e-06 }
 0xa6c   :  { %v6636_v16 = vpack.c.b16 %v6596_v61, %v6596_v61  ;;  %v6606_v51 = vrot.slane %v6560_v12, 7  ;;  %v6607_v38 = vrot.slane %v6576_v40, 6  ;;  %v9635_v61 = vld [vmem:[#allocation5 + $0x1c8] sm:$0xff]   ;;  %v6420_v11 = vmax.f32 %v6388_v7, 1e-06  ;;  %v9654_v7 = vld [vmem:[#allocation5 + $0x290] sm:$0xff]  }
 0xa6d   :  { %v6593_v18 = vsel %vm565_vm0, %v6592_v48, %v6591_v26  ;;  %v6447_v17 = vmul.f32 %v6415_v31, %v6415_v31  ;;  %v11909_v12 = vld [vmem:[#allocation2 + $0x78] sm:$0x88]  ;;  %v6371_v26 = vunpack.c.l.bf16 %v11897_v0  ;;  %v6387_v48 = vunpack.c.l.bf16 %v11899_v20 }
 0xa6e   :  { %v6608_v56 = vsel %vm565_vm0, %v6607_v38, %v6606_v51  ;;  %v6635_v43 = vpack.c.b16 %v6593_v18, %v6593_v18  ;;  %v6452_v47 = vmul.f32 %v6420_v11, %v6420_v11  ;;  %v9649_v51 = vld [vmem:[#allocation5 + $0x2c0] sm:$0xff]  }
 0xa6f   :  { %v6640_v42 = vpack.c.b16 %v6608_v56, %v6608_v56  ;;  %v6479_v29 = vmul.f32 %v6447_v17, %v6415_v31  ;;  %v9650_v18 = vld [vmem:[#allocation5 + $0x280] sm:$0xff]   ;;  %v6419_v56 = vmax.f32 %v6387_v48, 1e-06  ;;  %v9655_v31 = vld [vmem:[#allocation5 + $0x2d8] sm:$0xff]  }
 0xa70   :  { %v6484_v63 = vmul.f32 %v6452_v47, %v6420_v11  ;;  %v9656_v11 = vld [vmem:[#allocation5 + $0x298] sm:$0xff]   ;;  %v9657_v17 = vld [vmem:[#allocation5 + $0x2e0] sm:$0xff]  }
 0xa71   :  { %v6511_v19 = vpack.c.bf16 %v6479_v29, %v6479_v29  ;;  %v6451_v10 = vmul.f32 %v6419_v56, %v6419_v56  ;;  %v9658_v47 = vld [vmem:[#allocation5 + $0x2a0] sm:$0xff]   ;;  %v9659_v29 = vld [vmem:[#allocation5 + $0x2e8] sm:$0xff]  }
 0xa72   :  { %v6516_v57 = vpack.c.bf16 %v6484_v63, %v6484_v63  ;;  %v9660_v63 = vld [vmem:[#allocation5 + $0x2a8] sm:$0xff]  }
 0xa73   :  { %v6575_v39 = vunpack.c.l.b16 %v6511_v19  ;;  %v9661_v19 = vld [vmem:[#allocation5 + $0x2f0] sm:$0xff]  }
 0xa74   :  { %v6580_v15 = vunpack.c.l.b16 %v6516_v57 }
 0xa75   :  { %v9175_v4 = vpop.eup %9174  ;;  %v6604_v14 = vrot.slane %v6575_v39, 6 }
 0xa76   :  { %v6232_v58 = vmul.f32 0.6931472, %v9175_v4  ;;  %v9632_v4 = vld [vmem:[#allocation5 + $0xb8] sm:$0xff]   ;;  %v6619_v36 = vrot.slane %v6580_v15, 6 }
 0xa78   :  { %v6233_v45 = vmul.f32 0.33333334, %v6232_v58  ;;  %v6367_v58 = vunpack.c.l.bf16 %v11889_v44  ;;  %v9636_v44 = vld [vmem:[#allocation5 + $0x188] sm:$0xff]  }
 0xa7a   :  { %v6234_v2 = vmul.f32 1.442695, %v6233_v45  ;;  %v9633_v45 = vld [vmem:[#allocation5 + $0x1c0] sm:$0xff]   ;;  %v6399_v22 = vmax.f32 %v6367_v58, 1e-06 }
 0xa7c   :  { %9176 = vpow2.f32 %v6234_v2  ;;  %v6372_v2 = vunpack.c.h.bf16 %v11897_v0  ;;  %v6431_v54 = vmul.f32 %v6399_v22, %v6399_v22  ;;  %v9652_v0 = vld [vmem:[#allocation5 + $0x288] sm:$0xff]  }
 0xa86   :  { %v9177_v28 = vpop.eup %9176 }
 0xa87   :  { %v6237_v49 = vpack.c.bf16 %v9177_v28, %v9177_v28  ;;  %v6404_v28 = vmax.f32 %v6372_v2, 1e-06 }
 0xa89   :  { %8926 = vmatmul.mubr.bf16.vlgmr.msra.gmra.mrb[124].mxu0 %v6237_v49  ;;  %v6436_v49 = vmul.f32 %v6404_v28, %v6404_v28 }
 0xa8a   :  { %8627 = vmatpush3.bf16.msra.mxu0 %v9618_v52  ;;  %6737 = vmatprep.mubr.bf16.mxu0 %v6636_v16  ;;  %v9637_v16 = vld [vmem:[#allocation5 + $0x1d0] sm:$0xff]   ;;  %v6463_v52 = vmul.f32 %v6431_v54, %v6399_v22  ;;  %v6483_v22 = vmul.f32 %v6451_v10, %v6419_v56  ;;  %v9676_v10 = vld [vmem:[#allocation5 + $0x3a8] sm:$0xff]  }
 0xa8b   :  { %8628 = vmatprep.subr.bf16.mxu0 %v9619_v5  ;;  %v6468_v5 = vmul.f32 %v6436_v49, %v6404_v28 }
 0xa8c   :  { %v6515_v54 = vpack.c.bf16 %v6483_v22, %v6483_v22 }
 0xa8e   :  { %8629 = vmatpush3.bf16.msra.mxu0 %v9620_v35  ;;  %v6495_v35 = vpack.c.bf16 %v6463_v52, %v6463_v52  ;;  %v6579_v52 = vunpack.c.l.b16 %v6515_v54 }
 0xa8f   :  { %8630 = vmatprep.subr.bf16.mxu0 %v9621_v46  ;;  %v6500_v46 = vpack.c.bf16 %v6468_v5, %v6468_v5 }
 0xa92   :  { %8631 = vmatpush3.bf16.msra.mxu0 %v9622_v3  ;;  %v6559_v3 = vunpack.c.l.b16 %v6495_v35  ;;  %v6616_v35 = vrot.slane %v6579_v52, 6 }
 0xa93   :  { %8632 = vmatprep.subr.bf16.mxu0 %v9623_v30  ;;  %v6564_v30 = vunpack.c.l.b16 %v6500_v46 }
 0xa96   :  { %8633 = vmatpush3.bf16.msra.mxu0 %v9624_v13  ;;  %v6603_v13 = vrot.slane %v6559_v3, 7 }
 0xa97   :  { %8634 = vmatprep.subr.bf16.mxu0 %v9625_v1  ;;  %v6618_v1 = vrot.slane %v6564_v30, 7 }
 0xa99   :  { %v6620_v55 = vsel %vm565_vm0, %v6619_v36, %v6618_v1  ;;  %v6391_v36 = vunpack.c.l.bf16 %v11909_v12 }
 0xa9a   :  { %8635 = vmatpush3.bf16.msra.mxu0 %v9626_v25  ;;  %v6605_v25 = vsel %vm565_vm0, %v6604_v14, %v6603_v13 }
 0xa9b   :  { %8636 = vmatprep.subr.bf16.mxu0 %v9627_v21  ;;  %v11907_v21 = vld [vmem:[#allocation2 + $0x38] sm:$0x88]  ;;  %v6639_v40 = vpack.c.b16 %v6605_v25, %v6605_v25  ;;  %v9665_v25 = vld [vmem:[#allocation5 + $0x3c0] sm:$0xff]  }
 0xa9c   :  { %v6376_v38 = vunpack.c.h.bf16 %v11907_v21  ;;  %v6375_v1 = vunpack.c.l.bf16 %v11907_v21  ;;  %v9670_v21 = vld [vmem:[#allocation5 + $0x390] sm:$0xff]  }
 0xa9e   :  { %8637 = vmatpush3.bf16.msra.mxu0 %v9628_v6  ;;  %v9648_v6 = vld [vmem:[#allocation5 + $0x1b8] sm:$0xff]  }
 0xa9f   :  { %8638 = vmatprep.subr.bf16.mxu0 %v9629_v41  ;;  %v6644_v41 = vpack.c.b16 %v6620_v55, %v6620_v55  ;;  %v6407_v55 = vmax.f32 %v6375_v1, 1e-06 }
 0xaa1   :  { %v6439_v48 = vmul.f32 %v6407_v55, %v6407_v55 }
 0xaa2   :  { %8639 = vmatpush3.bf16.msra.mxu0 %v9630_v8  ;;  %v6392_v8 = vunpack.c.h.bf16 %v11909_v12 }
 0xaa3   :  { %8640 = vmatprep.subr.bf16.mxu0 %v9631_v27  ;;  %v6403_v27 = vmax.f32 %v6371_v26, 1e-06  ;;  %v9668_v26 = vld [vmem:[#allocation5 + $0x388] sm:$0xff]   ;;  %v6471_v12 = vmul.f32 %v6439_v48, %v6407_v55 }
 0xaa4   :  { %v6424_v58 = vmax.f32 %v6392_v8, 1e-06  ;;  %v9671_v8 = vld [vmem:[#allocation5 + $0x3d8] sm:$0xff]  }
 0xaa5   :  { %v6435_v20 = vmul.f32 %v6403_v27, %v6403_v27 }
 0xaa6   :  { %8641 = vmatpush3.bf16.msra.mxu0 %v9632_v4  ;;  %v6408_v4 = vmax.f32 %v6376_v38, 1e-06  ;;  %v6456_v2 = vmul.f32 %v6424_v58, %v6424_v58 }
 0xaa7   :  { %8670 = vmatprep.subr.bf16.mxu0 %v9633_v45 }
 0xaa8   :  { %v6440_v45 = vmul.f32 %v6408_v4, %v6408_v4  ;;  %v6488_v28 = vmul.f32 %v6456_v2, %v6424_v58  ;;  %v9677_v2 = vld [vmem:[#allocation5 + $0x3f0] sm:$0xff]  }
 0xaa9   :  { %6738 = vmatmul.mubr.bf16.vlgmr.msra.gmra.mrb[128].mxu0 %v6635_v43  ;;  %v9651_v43 = vld [vmem:[#allocation5 + $0x2c8] sm:$0xff]  }
 0xaaa   :  { %8671 = vmatpush3.bf16.msra.mxu0 %v9634_v50  ;;  %6817 = vmatprep.mubr.bf16.mxu0 %v6640_v42  ;;  %v9653_v42 = vld [vmem:[#allocation5 + $0x2d0] sm:$0xff]   ;;  %v6467_v50 = vmul.f32 %v6435_v20, %v6403_v27  ;;  %v6520_v49 = vpack.c.bf16 %v6488_v28, %v6488_v28  ;;  %v6503_v27 = vpack.c.bf16 %v6471_v12, %v6471_v12  ;;  %v9675_v20 = vld [vmem:[#allocation5 + $0x3e8] sm:$0xff]  }
 0xaab   :  { %8672 = vmatprep.subr.bf16.mxu0 %v9635_v61  ;;  %v6472_v61 = vmul.f32 %v6440_v45, %v6408_v4  ;;  %v9674_v4 = vld [vmem:[#allocation5 + $0x3a0] sm:$0xff]  }
 0xaac   :  { %v6584_v5 = vunpack.c.l.b16 %v6520_v49  ;;  %v6567_v58 = vunpack.c.l.b16 %v6503_v27 }
 0xaae   :  { %8673 = vmatpush3.bf16.msra.mxu0 %v9636_v44  ;;  %v6499_v44 = vpack.c.bf16 %v6467_v50, %v6467_v50  ;;  %v6631_v46 = vrot.slane %v6584_v5, 6 }
 0xaaf   :  { %8674 = vmatprep.subr.bf16.mxu0 %v9637_v16  ;;  %v6504_v16 = vpack.c.bf16 %v6472_v61, %v6472_v61  ;;  %v9678_v61 = vld [vmem:[#allocation5 + $0x3b0] sm:$0xff]  }
 0xab2   :  { %8675 = vmatpush3.bf16.msra.mxu0 %v9638_v37  ;;  %v6563_v37 = vunpack.c.l.b16 %v6499_v44  ;;  %v9679_v44 = vld [vmem:[#allocation5 + $0x3f8] sm:$0xff]  }
 0xab3   :  { %8676 = vmatprep.subr.bf16.mxu0 %v9639_v32  ;;  %v6568_v32 = vunpack.c.l.b16 %v6504_v16 }
 0xab6   :  { %8677 = vmatpush3.bf16.msra.mxu0 %v9640_v53  ;;  %v6615_v53 = vrot.slane %v6563_v37, 7 }
 0xab7   :  { %8678 = vmatprep.subr.bf16.mxu0 %v9641_v59  ;;  %v6630_v59 = vrot.slane %v6568_v32, 7 }
 0xab8   :  { %v6617_v30 = vsel %vm565_vm0, %v6616_v35, %v6615_v53  ;;  %v6236_v35 = vld [vmem:[#allocation8] sm:$0x3] }
 0xab9   :  { %v6632_v13 = vsel %vm565_vm0, %v6631_v46, %v6630_v59  ;;  %v6643_v14 = vpack.c.b16 %v6617_v30, %v6617_v30  ;;  %v9144_v30 = vld [vmem:[#allocation7 + $0x1d0] sm:$0xff]  }
 0xaba   :  { %8679 = vmatpush3.bf16.msra.mxu0 %v9642_v60 }
 0xabb   :  { %8680 = vmatprep.subr.bf16.mxu0 %v9643_v62  ;;  %v9662_v62 = vld [vmem:[#allocation5 + $0x2b0] sm:$0xff]  }
 0xabe   :  { %8681 = vmatpush3.bf16.msra.mxu0 %v9644_v23  ;;  %v8620_v57 = vpop.f32.mrb[124].mxu1  ;;  %v9663_v23 = vld [vmem:[#allocation5 + $0x2f8] sm:$0xff]  }
 0xabf   :  { %8682 = vmatprep.subr.bf16.mxu0 %v9645_v34  ;;  %v8621_v60 = vpop.f32.mrb[125].mxu1  ;;  %v9664_v34 = vld [vmem:[#allocation5 + $0x2b8] sm:$0xff]  }
 0xac0   :  { %v11915_v3 = vadd.f32 %v8621_v60, %v8620_v57  ;;  %v8623_v39 = vpop.f32.mrb[126].mxu1 }
 0xac1   :  { %v8624_v15 = vpop.f32.mrb[127].mxu1  ;;  %v9142_v39 = vld [vmem:[#allocation7 + $0x1c0] sm:$0xff]  }
 0xac2   :  { %8683 = vmatpush3.bf16.msra.mxu0 %v9646_v9  ;;  %v6648_v9 = vpack.c.b16 %v6632_v13, %v6632_v13  ;;  %8930 = vmatpush3.bf16.msra.mxu1 %v9142_v39  ;;  %v9145_v15 = vld [vmem:[#allocation7 + $0x1d8] sm:$0xff]   ;;  %v9147_v13 = vld [vmem:[#allocation7 + $0x1e8] sm:$0xff]  }
 0xac3   :  { %8684 = vmatprep.subr.bf16.mxu0 %v9647_v24  ;;  %v9666_v24 = vld [vmem:[#allocation5 + $0x380] sm:$0xff]   ;;  %8931 = vmatprep.subr.bf16.mxu1 %v12186_v33 }
 0xac6   :  { %8685 = vmatpush3.bf16.msra.mxu0 %v9648_v6  ;;  %v9667_v6 = vld [vmem:[#allocation5 + $0x3c8] sm:$0xff]  }
 0xac7   :  { %8714 = vmatprep.subr.bf16.mxu0 %v9649_v51  ;;  %v9669_v51 = vld [vmem:[#allocation5 + $0x3d0] sm:$0xff]  }
 0xac9   :  { %6818 = vmatmul.mubr.bf16.vlgmr.msra.gmra.mrb[132].mxu0 %v6639_v40  ;;  %v6423_v40 = vmax.f32 %v6391_v36, 1e-06 }
 0xaca   :  { %8715 = vmatpush3.bf16.msra.mxu0 %v9650_v18  ;;  %6897 = vmatprep.mubr.bf16.mxu0 %v6644_v41  ;;  %v9672_v18 = vld [vmem:[#allocation5 + $0x398] sm:$0xff]  }
 0xacb   :  { %8716 = vmatprep.subr.bf16.mxu0 %v9651_v43  ;;  %v6455_v41 = vmul.f32 %v6423_v40, %v6423_v40  ;;  %v9673_v43 = vld [vmem:[#allocation5 + $0x3e0] sm:$0xff]  }
 0xacd   :  { %v6487_v38 = vmul.f32 %v6455_v41, %v6423_v40 }
 0xace   :  { %8717 = vmatpush3.bf16.msra.mxu0 %v9652_v0 }
 0xacf   :  { %8718 = vmatprep.subr.bf16.mxu0 %v9653_v42  ;;  %v6519_v56 = vpack.c.bf16 %v6487_v38, %v6487_v38  ;;  %v6627_v42 = vrot.slane %v6567_v58, 7 }
 0xad1   :  { %v6583_v0 = vunpack.c.l.b16 %v6519_v56 }
 0xad2   :  { %8719 = vmatpush3.bf16.msra.mxu0 %v9654_v7 }
 0xad3   :  { %8720 = vmatprep.subr.bf16.mxu0 %v9655_v31  ;;  %v6628_v45 = vrot.slane %v6583_v0, 6 }
 0xad5   :  { %v6629_v28 = vsel %vm565_vm0, %v6628_v45, %v6627_v42 }
 0xad6   :  { %8721 = vmatpush3.bf16.msra.mxu0 %v9656_v11  ;;  %v6647_v54 = vpack.c.b16 %v6629_v28, %v6629_v28 }
 0xad7   :  { %8722 = vmatprep.subr.bf16.mxu0 %v9657_v17  ;;  %v9680_v17 = vld [vmem:[#allocation5 + $0x3b8] sm:$0xff]  }
 0xada   :  { %8723 = vmatpush3.bf16.msra.mxu0 %v9658_v47 }
 0xadb   :  { %8724 = vmatprep.subr.bf16.mxu0 %v9659_v29 }
 0xade   :  { %8725 = vmatpush3.bf16.msra.mxu0 %v9660_v63 }
 0xadf   :  { %8726 = vmatprep.subr.bf16.mxu0 %v9661_v19 }
 0xae2   :  { %8727 = vmatpush3.bf16.msra.mxu0 %v9662_v62  ;;  %v9143_v62 = vld [vmem:[#allocation7 + $0x1c8] sm:$0xff]  }
 0xae3   :  { %8728 = vmatprep.subr.bf16.mxu0 %v9663_v23  ;;  %8932 = vmatpush3.bf16.msra.mxu1 %v9143_v62  ;;  %v9146_v23 = vld [vmem:[#allocation7 + $0x1e0] sm:$0xff]  }
 0xae4   :  { %8933 = vmatprep.subr.bf16.mxu1 %v12186_v33 }
 0xae6   :  { %8729 = vmatpush3.bf16.msra.mxu0 %v9664_v34  ;;  %v9149_v34 = vld [vmem:[#allocation7 + $0x1f8] sm:$0xff]  }
 0xae7   :  { %8758 = vmatprep.subr.bf16.mxu0 %v9665_v25  ;;  %8934 = vmatpush3.bf16.msra.mxu1 %v9144_v30 }
 0xae8   :  { %8935 = vmatprep.subr.bf16.mxu1 %v12186_v33 }
 0xae9   :  { %6898 = vmatmul.mubr.bf16.vlgmr.msra.gmra.mrb[136].mxu0 %v6643_v14  ;;  %v9148_v14 = vld [vmem:[#allocation7 + $0x1f0] sm:$0xff]  }
 0xaea   :  { %8759 = vmatpush3.bf16.msra.mxu0 %v9666_v24  ;;  %6977 = vmatprep.mubr.bf16.mxu0 %v6648_v9 }
 0xaeb   :  { %8760 = vmatprep.subr.bf16.mxu0 %v9667_v6  ;;  %8936 = vmatpush3.bf16.msra.mxu1 %v9145_v15 }
 0xaec   :  { %8937 = vmatprep.subr.bf16.mxu1 %v12186_v33 }
 0xaee   :  { %8761 = vmatpush3.bf16.msra.mxu0 %v9668_v26 }
 0xaef   :  { %8762 = vmatprep.subr.bf16.mxu0 %v9669_v51  ;;  %8938 = vmatpush3.bf16.msra.mxu1 %v9146_v23 }
 0xaf0   :  { %8939 = vmatprep.subr.bf16.mxu1 %v12186_v33 }
 0xaf2   :  { %8763 = vmatpush3.bf16.msra.mxu0 %v9670_v21 }
 0xaf3   :  { %8764 = vmatprep.subr.bf16.mxu0 %v9671_v8  ;;  %v8664_v7 = vpop.f32.mrb[128].mxu1  ;;  %8940 = vmatpush3.bf16.msra.mxu1 %v9147_v13 }
 0xaf4   :  { %v8665_v50 = vpop.f32.mrb[129].mxu1  ;;  %8941 = vmatprep.subr.bf16.mxu1 %v12186_v33 }
 0xaf5   :  { %v8666_v22 = vadd.f32 %v8665_v50, %v8664_v7  ;;  %v8667_v31 = vpop.f32.mrb[130].mxu1 }
 0xaf6   :  { %8765 = vmatpush3.bf16.msra.mxu0 %v9672_v18  ;;  %v8668_v11 = vpop.f32.mrb[131].mxu1 }
 0xaf7   :  { %8766 = vmatprep.subr.bf16.mxu0 %v9673_v43  ;;  %8942 = vmatpush3.bf16.msra.mxu1 %v9148_v14 }
 0xaf8   :  { %8943 = vmatprep.subr.bf16.mxu1 %v12186_v33 }
 0xafa   :  { %8767 = vmatpush3.bf16.msra.mxu0 %v9674_v4 }
 0xafb   :  { %8768 = vmatprep.subr.bf16.mxu0 %v9675_v20  ;;  %8944 = vmatpush3.bf16.msra.mxu1 %v9149_v34 }
 0xafe   :  { %8769 = vmatpush3.bf16.msra.mxu0 %v9676_v10 }
 0xaff   :  { %8770 = vmatprep.subr.bf16.mxu0 %v9677_v2 }
 0xb02   :  { %8771 = vmatpush3.bf16.msra.mxu0 %v9678_v61 }
 0xb03   :  { %8772 = vmatprep.subr.bf16.mxu0 %v9679_v44 }
 0xb06   :  { %8773 = vmatpush3.bf16.msra.mxu0 %v9680_v17 }
 0xb09   :  { %6978 = vmatmul.mubr.bf16.vlgmr.msra.gmra.mrb[140].mxu0 %v6647_v54 }
 0xb16   :  { %v8708_v16 = vpop.f32.mrb[132].mxu1 }
 0xb17   :  { %v8709_v49 = vpop.f32.mrb[133].mxu1 }
 0xb18   :  { %v8710_v47 = vadd.f32 %v8709_v49, %v8708_v16  ;;  %v8711_v37 = vpop.f32.mrb[134].mxu1 }
 0xb19   :  { %v8712_v52 = vpop.f32.mrb[135].mxu1 }
 0xb36   :  { %v8752_v29 = vpop.f32.mrb[136].mxu1 }
 0xb37   :  { %v8753_v32 = vpop.f32.mrb[137].mxu1 }
 0xb38   :  { %v8754_v5 = vadd.f32 %v8753_v32, %v8752_v29  ;;  %v8755_v63 = vpop.f32.mrb[138].mxu1 }
 0xb39   :  { %v8756_v53 = vpop.f32.mrb[139].mxu1 }
 0xb5c   :  { %v6337_v19 = vpop.f32.mrb[124].mxu0 }
 0xb5d   :  { %v6343_v59 = vadd.f32 %v6337_v19, %v6236_v35  ;;  %v8927_v46 = vpop.f32.mrb[125].mxu0 }
 0xb5e   :  { %v6340_v57 = vpop.f32.mrb[126].mxu0 }
 0xb5f   :  { %6344 = vst [vmem:[#allocation8] sm:$0x3] %v6343_v59  ;;  %v8928_v60 = vpop.f32.mrb[127].mxu0 }
 0xb66   :  { %v6991_v61 = vld [vmem:[#allocation8] sm:$0x3] }
 0xb7c   :  { %v8642_v1 = vpop.f32.mrb[128].mxu0 }
 0xb7d   :  { %v8643_v36 = vpop.f32.mrb[129].mxu0 }
 0xb7e   :  { %v8644_v9 = vadd.f32 %v8643_v36, %v8642_v1  ;;  %v8645_v25 = vpop.f32.mrb[130].mxu0 }
 0xb7f   :  { %v8646_v24 = vpop.f32.mrb[131].mxu0 }
 0xb80   :  { %v6740_v55 = vadd.f32 %v8644_v9, %v11915_v3 }
 0xb82   :  { %v6780_v40 = vadd.f32 %v8666_v22, %v6740_v55 }
 0xb9c   :  { %v8686_v6 = vpop.f32.mrb[132].mxu0 }
 0xb9d   :  { %v8687_v26 = vpop.f32.mrb[133].mxu0 }
 0xb9e   :  { %v8688_v48 = vadd.f32 %v8687_v26, %v8686_v6  ;;  %v8689_v41 = vpop.f32.mrb[134].mxu0 }
 0xb9f   :  { %v8690_v51 = vpop.f32.mrb[135].mxu0 }
 0xba0   :  { %v6820_v21 = vadd.f32 %v8688_v48, %v6780_v40 }
 0xba2   :  { %v6860_v12 = vadd.f32 %v8710_v47, %v6820_v21 }
 0xbbc   :  { %v8730_v38 = vpop.f32.mrb[136].mxu0 }
 0xbbd   :  { %v8731_v8 = vpop.f32.mrb[137].mxu0 }
 0xbbe   :  { %v8732_v18 = vadd.f32 %v8731_v8, %v8730_v38  ;;  %v8733_v27 = vpop.f32.mrb[138].mxu0 }
 0xbbf   :  { %v8734_v33 = vpop.f32.mrb[139].mxu0 }
 0xbc0   :  { %v6900_v56 = vadd.f32 %v8732_v18, %v6860_v12 }
 0xbc2   :  { %v6940_v43 = vadd.f32 %v8754_v5, %v6900_v56 }
 0xbdc   :  { %v8774_v4 = vpop.f32.mrb[140].mxu0 }
 0xbdd   :  { %v8775_v58 = vpop.f32.mrb[141].mxu0 }
 0xbde   :  { %v8776_v0 = vadd.f32 %v8775_v58, %v8774_v4  ;;  %v8777_v20 = vpop.f32.mrb[142].mxu0 }
 0xbdf   :  { %v8778_v3 = vpop.f32.mrb[143].mxu0 }
 0xbe0   :  { %v6980_v10 = vadd.f32 %v8776_v0, %v6940_v43 }
 0xbe2   :  { %v6985_v42 = vmul.f32 0.0625, %v6980_v10 }
 0xbe4   :  { %9178 = vlog2.f32 %v6985_v42 }
 0xbee   :  { %v9179_v45 = vpop.eup %9178 }
 0xbef   :  { %v6987_v2 = vmul.f32 0.6931472, %v9179_v45 }
 0xbf1   :  { %v6988_v7 = vmul.f32 0.33333334, %v6987_v2 }
 0xbf3   :  { %v6989_v50 = vmul.f32 1.442695, %v6988_v7 }
 0xbf5   :  { %9180 = vpow2.f32 %v6989_v50 }
 0xbff   :  { %v9181_v22 = vpop.eup %9180 }
 0xc00   :  { %v6992_v31 = vpack.c.bf16 %v9181_v22, %v9181_v22 }
 0xc02   :  { %8946 = vmatmul.mubr.bf16.vlgmr.msra.gmra.mrb[140].mxu1 %v6992_v31 }
 0xcd5   :  { %v7092_v28 = vpop.f32.mrb[140].mxu1 }
 0xcd6   :  { %v7098_v11 = vadd.f32 %v7092_v28, %v6991_v61  ;;  %v8947_v44 = vpop.f32.mrb[141].mxu1 }
 0xcd7   :  { %v7095_v54 = vpop.f32.mrb[142].mxu1 }
 0xcd8   :  { %7099 = vst [vmem:[#allocation8] sm:$0x3] %v7098_v11  ;;  %v8948_v17 = vpop.f32.mrb[143].mxu1 }
 0xcd9   :  { %9758 = shalt.err (!%p9755_p0)
}
 0xcda   :  { %s9759_s5 = scalar_lea.hbm %s11946_s4, 32 }
 0xcdb   :  { %p9760_p1 = scmp.ne.s32.totalorder %s11946_s4, %s9759_s5  ;;  %p9763_p2 = scmp.lt.u32.totalorder %s9759_s5, %s11946_s4 }
 0xcdd   :  { %p9765_p3 = pnand %p9763_p2, %p9760_p1 }
 0xcdf   :  { %9768 = shalt.err (!%p9765_p3)
}
 0xce0   :  { %7109 = dma.vmem_to_hbm [thread:$0]  %s7107_s26, 32, %s11946_s4, [#allocation4]  }
 0xce1   :  { %9773 = dma.done.wait [#allocation4], 32  }
 0xce2   :  { %9774 = vsyncadd [#allocation4], 4294967264 }
 0xce3   :  { %7113 = vsyncpa [#allocation3], 1 }
 0xce4   :  { %7114 = vsyncpa [#allocation6], 1 }
 0xce5   :  { %7115 = vsyncpa [#allocation4], 1 }

</bundles_post_ra>
